<compile_context>
chip_gen: v7x
topology: tpu7x:2x2x1
jax: 0.10.0
libtpu: 0.0.40
codegen_flags: <defaults>
</compile_context>

<pallas_src>
import functools

import jax
import jax.numpy as jnp
from jax import lax
from jax.experimental import pallas as pl
from jax.experimental.pallas import tpu as pltpu

# ----------------------------- problem sizes -----------------------------
B = 2            # batch
C = 4            # channels (species)
Hs = 16          # spatial height
Ws = 16          # spatial width
N = Hs * Ws      # flattened spatial (lane axis, multiple of 128)
T = 8            # number of requested time points
HID = 32         # hidden width of the non-parametric channel MLP
DT = 0.02        # euler step_size (from options=dict(step_size=0.02))
T_SPACING = 0.1  # spacing of requested time points -> 5 euler sub-steps per output
SUBSTEPS = int(round(T_SPACING / DT))  # = 5; requested time grid lands exactly on the Euler grid
assert abs(SUBSTEPS * DT - T_SPACING) < 1e-12, "time points must align with the Euler step grid"


# ----------------------------- Pallas kernel -----------------------------
def _semi_parametric_ode_kernel(init_ref, lap_ref, diff_dt_ref, w1_ref, b1_ref,
                                w2_dt_ref, b2_dt_ref, out_ref, *, n_times, substeps):
  """Integrates the full trajectory of one batch-group in a single grid step.

  init_ref    : (R, N)     stacked initial state (R = batches_in_group * C rows)
  lap_ref     : (N, N)     periodic 5-pt Laplacian acting on the flattened spatial axis
  diff_dt_ref : (R, 1)     dt * per-row diffusion coefficient
  w1_ref      : (Hg, R)    block-diagonal MLP layer-1 weights (Hg = batches_in_group * HID)
  b1_ref      : (Hg, 1)
  w2_dt_ref   : (R, Hg)    dt * block-diagonal MLP layer-2 weights
  b2_dt_ref   : (R, 1)     dt * layer-2 bias
  out_ref     : (T, R, N)  trajectory, one dense (R, N) slab per time point
  """
  # Read all loop-invariant operands once; they stay resident in vregs/VMEM.
  y = init_ref[...].astype(jnp.float32)
  lap = lap_ref[...]
  diff_dt = diff_dt_ref[...]
  w1 = w1_ref[...]
  b1 = b1_ref[...]
  w2_dt = w2_dt_ref[...]
  b2_dt = b2_dt_ref[...]

  def euler_step(_, yy):
    # parametric part: channel-wise diffusion; Laplacian as a spatial matmul (MXU).
    delta_u = jnp.dot(yy, lap, preferred_element_type=jnp.float32)             # (R, N)
    # non-parametric part: point-wise channel MLP (MXU + EUP tanh).
    # delta_u and h are independent (both read only yy) -> MXU pipelines them.
    h = jnp.tanh(jnp.dot(w1, yy, preferred_element_type=jnp.float32) + b1)     # (Hg, N)
    # dt has been folded into diff_dt / w2_dt / b2_dt (hoisted out of the loop).
    return (yy + diff_dt * delta_u
            + jnp.dot(w2_dt, h, preferred_element_type=jnp.float32) + b2_dt)

  # solution[0] = init_value
  out_ref[pl.ds(0, 1)] = y[None].astype(out_ref.dtype)

  # Outer time loop: static Python (compile-time store offsets, lane-dense slabs).
  # Inner substep loop: fori_loop(unroll=True) -> full LLO visibility, bounded live ranges.
  # TODO(synk): if a Mosaic dump shows the 256x256 Laplacian RHS being re-pushed every
  # substep, drive it explicitly with pltpu.matmul_push_rhs / matmul_acc_lhs / matmul_pop
  # (or move the stencil to pltpu.roll); kept on jnp.dot here for robustness.
  for ti in range(1, n_times):
    y = lax.fori_loop(0, substeps, euler_step, y, unroll=True)
    out_ref[pl.ds(ti, 1)] = y[None].astype(out_ref.dtype)


# ----------------------------- wrapper -----------------------------
def _block_diag(m, reps):
  """(a, b) -> (reps*a, reps*b) block-diagonal replication."""
  a, b = m.shape
  out = jnp.zeros((reps * a, reps * b), m.dtype)
  for i in range(reps):
    out = out.at[i * a:(i + 1) * a, i * b:(i + 1) * b].set(m)
  return out


def _default_num_groups(batch):
  """v7x has 2 TensorCores/chip: split independent batch trajectories across them.

  Single-TC chips (v5e/v6e) prefer full batch fusion (one grid step, batches stacked
  into the matmul M dimension)."""
  try:
    kind = jax.devices()[0].device_kind.lower()
  except Exception:
    return 1
  groups = 2 if "v7" in kind else 1
  if groups < 1 or batch % groups != 0:
    groups = 1
  return groups


def semi_parametric_forward(init_value, lap, diff, w1, b1, w2, b2, *, num_groups=None):
  """init_value: (B, C, N) float32 -> (B, T, C, N) float32 Euler trajectory."""
  batch, chan, n = init_value.shape
  hid = w1.shape[0]
  if num_groups is None:
    num_groups = _default_num_groups(batch)
  g = num_groups
  bg = batch // g            # batches per group (per grid step / per TensorCore)
  r = bg * chan              # stacked state rows per group
  hg = bg * hid              # stacked hidden rows per group

  # Stack batches of a group along the sublane (row) axis; replicate the shared model
  # weights block-diagonally so channel mixing stays within each batch.
  init_g = init_value.reshape(g, r, n)
  w1_g = _block_diag(w1, bg)                 # (Hg, R)
  b1_g = jnp.tile(b1, (bg, 1))               # (Hg, 1)
  w2_dt_g = DT * _block_diag(w2, bg)         # (R, Hg)   dt hoisted into the weights
  b2_dt_g = DT * jnp.tile(b2, (bg, 1))       # (R, 1)
  diff_dt_g = DT * jnp.tile(diff, (bg, 1))   # (R, 1)    per-channel coefs tiled per batch

  kernel = functools.partial(_semi_parametric_ode_kernel, n_times=T, substeps=SUBSTEPS)

  out = pl.pallas_call(
      kernel,
      out_shape=jax.ShapeDtypeStruct((g, T, r, n), jnp.float32),
      grid_spec=pltpu.PrefetchScalarGridSpec(
          num_scalar_prefetch=0,
          grid=(g,),
          in_specs=[
              pl.BlockSpec((None, r, n), lambda i: (i, 0, 0)),   # stacked init state
              pl.BlockSpec((n, n), lambda i: (0, 0)),            # Laplacian (shared, loop-invariant)
              pl.BlockSpec((r, 1), lambda i: (0, 0)),            # dt * diffusion coefs
              pl.BlockSpec((hg, r), lambda i: (0, 0)),           # block-diag W1
              pl.BlockSpec((hg, 1), lambda i: (0, 0)),           # b1
              pl.BlockSpec((r, hg), lambda i: (0, 0)),           # dt * block-diag W2
              pl.BlockSpec((r, 1), lambda i: (0, 0)),            # dt * b2
          ],
          out_specs=pl.BlockSpec((None, T, r, n), lambda i: (i, 0, 0, 0)),
      ),
      compiler_params=pltpu.CompilerParams(dimension_semantics=("parallel",)),
  )(init_g, lap, diff_dt_g, w1_g, b1_g, w2_dt_g, b2_dt_g)

  # (G, T, R, N) -> (B, T, C, N)   (== odeint(...).permute(1, 0, 2, 3))
  out = out.reshape(g, T, bg, chan, n)
  out = jnp.transpose(out, (0, 2, 1, 3, 4)).reshape(batch, T, chan, n)
  return out


# ----------------------------- pure-JAX reference -----------------------------
def reference_forward(init_value, lap, diff, w1, b1, w2, b2):
  def deriv(y):  # y: (B, C, N)
    delta_u = jnp.einsum("bcn,nm->bcm", y, lap)
    para = diff[None] * delta_u
    h = jnp.tanh(jnp.einsum("hc,bcn->bhn", w1, y) + b1[None])
    nonpara = jnp.einsum("ch,bhn->bcn", w2, h) + b2[None]
    return para + nonpara

  sol = [init_value]
  y = init_value
  for _ in range(1, T):
    for _ in range(SUBSTEPS):
      y = y + DT * deriv(y)
    sol.append(y)
  sol = jnp.stack(sol, axis=0)              # (T, B, C, N)  == odeint output
  return jnp.transpose(sol, (1, 0, 2, 3))   # .permute(1, 0, 2, 3)


# ----------------------------- parameter construction -----------------------------
def make_laplacian_matrix(h, w):
  n = h * w
  eye = jnp.eye(n, dtype=jnp.float32).reshape(n, h, w)
  lap = (-4.0 * eye
         + jnp.roll(eye, 1, axis=1) + jnp.roll(eye, -1, axis=1)
         + jnp.roll(eye, 1, axis=2) + jnp.roll(eye, -1, axis=2))
  return lap.reshape(n, n)  # symmetric (periodic BCs); acts on row-major flattened fields


if __name__ == "__main__":
  key = jax.random.PRNGKey(0)
  k_init, k_w1, k_b1, k_w2, k_b2 = jax.random.split(key, 5)

  init_value = 0.5 * jax.random.normal(k_init, (B, C, N), dtype=jnp.float32)

  lap = make_laplacian_matrix(Hs, Ws)
  diff = jnp.array([[0.05], [0.10], [0.08], [0.12]], dtype=jnp.float32)   # (C, 1)
  w1 = 0.1 * jax.random.normal(k_w1, (HID, C), dtype=jnp.float32)
  b1 = 0.1 * jax.random.normal(k_b1, (HID, 1), dtype=jnp.float32)
  w2 = 0.1 * jax.random.normal(k_w2, (C, HID), dtype=jnp.float32)
  b2 = 0.1 * jax.random.normal(k_b2, (C, 1), dtype=jnp.float32)

  out = semi_parametric_forward(init_value, lap, diff, w1, b1, w2, b2)
  out = jax.block_until_ready(out)

  ref = jax.block_until_ready(reference_forward(init_value, lap, diff, w1, b1, w2, b2))

  assert out.shape == (B, T, C, N), out.shape
  assert jnp.allclose(out, ref, rtol=1e-2, atol=1e-2), "Pallas kernel mismatch vs reference"

  # TODO(synk): get_penalty / orthogonality penalty path is not part of forward(); not kernelized.
  print("KERNEL_OK")
</pallas_src>

<mosaic_0001>
module attributes {stable_mosaic.version = 11 : i64} {
  func.func @_semi_parametric_ode_kernel(%arg0: i32, %arg1: memref<1x8x256xf32, #tpu.memory_space<vmem>>, %arg2: memref<256x256xf32, #tpu.memory_space<vmem>>, %arg3: memref<8x1xf32, #tpu.memory_space<vmem>>, %arg4: memref<64x8xf32, #tpu.memory_space<vmem>>, %arg5: memref<64x1xf32, #tpu.memory_space<vmem>>, %arg6: memref<8x64xf32, #tpu.memory_space<vmem>>, %arg7: memref<8x1xf32, #tpu.memory_space<vmem>>, %arg8: memref<1x8x8x256xf32, #tpu.memory_space<vmem>>) attributes {dimension_semantics = [#tpu.dimension_semantics<parallel>], iteration_bounds = array<i64: 1>, scalar_prefetch = 0 : i64, scratch_operands = 0 : i64, tpu.core_type = #tpu.core_type<tc>, window_params = [{transform_indices = @transform_0, window_bounds = array<i64: 1, 8, 256>}, {pipeline_mode = #tpu.pipeline_mode<synchronous>, transform_indices = @transform_1, window_bounds = array<i64: 256, 256>}, {pipeline_mode = #tpu.pipeline_mode<synchronous>, transform_indices = @transform_2, window_bounds = array<i64: 8, 1>}, {pipeline_mode = #tpu.pipeline_mode<synchronous>, transform_indices = @transform_3, window_bounds = array<i64: 64, 8>}, {pipeline_mode = #tpu.pipeline_mode<synchronous>, transform_indices = @transform_4, window_bounds = array<i64: 64, 1>}, {pipeline_mode = #tpu.pipeline_mode<synchronous>, transform_indices = @transform_5, window_bounds = array<i64: 8, 64>}, {pipeline_mode = #tpu.pipeline_mode<synchronous>, transform_indices = @transform_6, window_bounds = array<i64: 8, 1>}, {transform_indices = @transform_7, window_bounds = array<i64: 1, 8, 8, 256>}]} {
    %c0 = arith.constant 0 : index
    %c0_0 = arith.constant 0 : index
    %c0_1 = arith.constant 0 : index
    %0 = vector.load %arg1[%c0, %c0_0, %c0_1] : memref<1x8x256xf32, #tpu.memory_space<vmem>>, vector<1x8x256xf32>
    %1 = vector.shape_cast %0 : vector<1x8x256xf32> to vector<8x256xf32>
    %c0_2 = arith.constant 0 : index
    %c0_3 = arith.constant 0 : index
    %2 = vector.load %arg2[%c0_2, %c0_3] : memref<256x256xf32, #tpu.memory_space<vmem>>, vector<256x256xf32>
    %c0_4 = arith.constant 0 : index
    %c0_5 = arith.constant 0 : index
    %3 = vector.load %arg3[%c0_4, %c0_5] : memref<8x1xf32, #tpu.memory_space<vmem>>, vector<8x1xf32>
    %c0_6 = arith.constant 0 : index
    %c0_7 = arith.constant 0 : index
    %4 = vector.load %arg4[%c0_6, %c0_7] : memref<64x8xf32, #tpu.memory_space<vmem>>, vector<64x8xf32>
    %c0_8 = arith.constant 0 : index
    %c0_9 = arith.constant 0 : index
    %5 = vector.load %arg5[%c0_8, %c0_9] : memref<64x1xf32, #tpu.memory_space<vmem>>, vector<64x1xf32>
    %c0_10 = arith.constant 0 : index
    %c0_11 = arith.constant 0 : index
    %6 = vector.load %arg6[%c0_10, %c0_11] : memref<8x64xf32, #tpu.memory_space<vmem>>, vector<8x64xf32>
    %c0_12 = arith.constant 0 : index
    %c0_13 = arith.constant 0 : index
    %7 = vector.load %arg7[%c0_12, %c0_13] : memref<8x1xf32, #tpu.memory_space<vmem>>, vector<8x1xf32>
    %8 = vector.shape_cast %1 : vector<8x256xf32> to vector<1x8x256xf32>
    %c0_14 = arith.constant 0 : index
    %c0_15 = arith.constant 0 : index
    %c0_16 = arith.constant 0 : index
    %c0_17 = arith.constant 0 : index
    %9 = vector.load %arg8[%c0_14, %c0_15, %c0_16, %c0_17] : memref<1x8x8x256xf32, #tpu.memory_space<vmem>>, vector<1x1x8x256xf32>
    %10 = vector.shape_cast %9 : vector<1x1x8x256xf32> to vector<1x8x256xf32>
    %11 = vector.shape_cast %8 : vector<1x8x256xf32> to vector<1x1x8x256xf32>
    tpu.vector_store %arg8[%c0_14, %c0_15, %c0_16, %c0_17], %11 {strides = array<i32>} : memref<1x8x8x256xf32, #tpu.memory_space<vmem>>, vector<1x1x8x256xf32>,
    %c0_i32 = arith.constant 0 : i32
    %cst = arith.constant dense<0.000000e+00> : vector<8x256xf32>
    %12 = tpu.matmul %1, %2, %cst {dimension_numbers = #tpu.dot_dimension_numbers<[1], [0], [0], [1], [0, 0, 1, 1], [], []>} : vector<8x256xf32>, vector<256x256xf32>, vector<8x256xf32> -> vector<8x256xf32>
    %cst_18 = arith.constant dense<0.000000e+00> : vector<64x256xf32>
    %13 = tpu.matmul %4, %1, %cst_18 {dimension_numbers = #tpu.dot_dimension_numbers<[1], [0], [0], [1], [0, 0, 1, 1], [], []>} : vector<64x8xf32>, vector<8x256xf32>, vector<64x256xf32> -> vector<64x256xf32>
    %14 = vector.broadcast %5 : vector<64x1xf32> to vector<64x256xf32>
    %15 = arith.addf %13, %14 : vector<64x256xf32>
    %16 = math.tanh %15 : vector<64x256xf32>
    %17 = vector.broadcast %3 : vector<8x1xf32> to vector<8x256xf32>
    %18 = arith.mulf %17, %12 : vector<8x256xf32>
    %19 = arith.addf %1, %18 : vector<8x256xf32>
    %cst_19 = arith.constant dense<0.000000e+00> : vector<8x256xf32>
    %20 = tpu.matmul %6, %16, %cst_19 {dimension_numbers = #tpu.dot_dimension_numbers<[1], [0], [0], [1], [0, 0, 1, 1], [], []>} : vector<8x64xf32>, vector<64x256xf32>, vector<8x256xf32> -> vector<8x256xf32>
    %21 = arith.addf %19, %20 : vector<8x256xf32>
    %22 = vector.broadcast %7 : vector<8x1xf32> to vector<8x256xf32>
    %23 = arith.addf %21, %22 : vector<8x256xf32>
    %c1_i32 = arith.constant 1 : i32
    %cst_20 = arith.constant dense<0.000000e+00> : vector<8x256xf32>
    %24 = tpu.matmul %23, %2, %cst_20 {dimension_numbers = #tpu.dot_dimension_numbers<[1], [0], [0], [1], [0, 0, 1, 1], [], []>} : vector<8x256xf32>, vector<256x256xf32>, vector<8x256xf32> -> vector<8x256xf32>
    %cst_21 = arith.constant dense<0.000000e+00> : vector<64x256xf32>
    %25 = tpu.matmul %4, %23, %cst_21 {dimension_numbers = #tpu.dot_dimension_numbers<[1], [0], [0], [1], [0, 0, 1, 1], [], []>} : vector<64x8xf32>, vector<8x256xf32>, vector<64x256xf32> -> vector<64x256xf32>
    %26 = vector.broadcast %5 : vector<64x1xf32> to vector<64x256xf32>
    %27 = arith.addf %25, %26 : vector<64x256xf32>
    %28 = math.tanh %27 : vector<64x256xf32>
    %29 = vector.broadcast %3 : vector<8x1xf32> to vector<8x256xf32>
    %30 = arith.mulf %29, %24 : vector<8x256xf32>
    %31 = arith.addf %23, %30 : vector<8x256xf32>
    %cst_22 = arith.constant dense<0.000000e+00> : vector<8x256xf32>
    %32 = tpu.matmul %6, %28, %cst_22 {dimension_numbers = #tpu.dot_dimension_numbers<[1], [0], [0], [1], [0, 0, 1, 1], [], []>} : vector<8x64xf32>, vector<64x256xf32>, vector<8x256xf32> -> vector<8x256xf32>
    %33 = arith.addf %31, %32 : vector<8x256xf32>
    %34 = vector.broadcast %7 : vector<8x1xf32> to vector<8x256xf32>
    %35 = arith.addf %33, %34 : vector<8x256xf32>
    %c2_i32 = arith.constant 2 : i32
    %cst_23 = arith.constant dense<0.000000e+00> : vector<8x256xf32>
    %36 = tpu.matmul %35, %2, %cst_23 {dimension_numbers = #tpu.dot_dimension_numbers<[1], [0], [0], [1], [0, 0, 1, 1], [], []>} : vector<8x256xf32>, vector<256x256xf32>, vector<8x256xf32> -> vector<8x256xf32>
    %cst_24 = arith.constant dense<0.000000e+00> : vector<64x256xf32>
    %37 = tpu.matmul %4, %35, %cst_24 {dimension_numbers = #tpu.dot_dimension_numbers<[1], [0], [0], [1], [0, 0, 1, 1], [], []>} : vector<64x8xf32>, vector<8x256xf32>, vector<64x256xf32> -> vector<64x256xf32>
    %38 = vector.broadcast %5 : vector<64x1xf32> to vector<64x256xf32>
    %39 = arith.addf %37, %38 : vector<64x256xf32>
    %40 = math.tanh %39 : vector<64x256xf32>
    %41 = vector.broadcast %3 : vector<8x1xf32> to vector<8x256xf32>
    %42 = arith.mulf %41, %36 : vector<8x256xf32>
    %43 = arith.addf %35, %42 : vector<8x256xf32>
    %cst_25 = arith.constant dense<0.000000e+00> : vector<8x256xf32>
    %44 = tpu.matmul %6, %40, %cst_25 {dimension_numbers = #tpu.dot_dimension_numbers<[1], [0], [0], [1], [0, 0, 1, 1], [], []>} : vector<8x64xf32>, vector<64x256xf32>, vector<8x256xf32> -> vector<8x256xf32>
    %45 = arith.addf %43, %44 : vector<8x256xf32>
    %46 = vector.broadcast %7 : vector<8x1xf32> to vector<8x256xf32>
    %47 = arith.addf %45, %46 : vector<8x256xf32>
    %c3_i32 = arith.constant 3 : i32
    %cst_26 = arith.constant dense<0.000000e+00> : vector<8x256xf32>
    %48 = tpu.matmul %47, %2, %cst_26 {dimension_numbers = #tpu.dot_dimension_numbers<[1], [0], [0], [1], [0, 0, 1, 1], [], []>} : vector<8x256xf32>, vector<256x256xf32>, vector<8x256xf32> -> vector<8x256xf32>
    %cst_27 = arith.constant dense<0.000000e+00> : vector<64x256xf32>
    %49 = tpu.matmul %4, %47, %cst_27 {dimension_numbers = #tpu.dot_dimension_numbers<[1], [0], [0], [1], [0, 0, 1, 1], [], []>} : vector<64x8xf32>, vector<8x256xf32>, vector<64x256xf32> -> vector<64x256xf32>
    %50 = vector.broadcast %5 : vector<64x1xf32> to vector<64x256xf32>
    %51 = arith.addf %49, %50 : vector<64x256xf32>
    %52 = math.tanh %51 : vector<64x256xf32>
    %53 = vector.broadcast %3 : vector<8x1xf32> to vector<8x256xf32>
    %54 = arith.mulf %53, %48 : vector<8x256xf32>
    %55 = arith.addf %47, %54 : vector<8x256xf32>
    %cst_28 = arith.constant dense<0.000000e+00> : vector<8x256xf32>
    %56 = tpu.matmul %6, %52, %cst_28 {dimension_numbers = #tpu.dot_dimension_numbers<[1], [0], [0], [1], [0, 0, 1, 1], [], []>} : vector<8x64xf32>, vector<64x256xf32>, vector<8x256xf32> -> vector<8x256xf32>
    %57 = arith.addf %55, %56 : vector<8x256xf32>
    %58 = vector.broadcast %7 : vector<8x1xf32> to vector<8x256xf32>
    %59 = arith.addf %57, %58 : vector<8x256xf32>
    %c4_i32 = arith.constant 4 : i32
    %cst_29 = arith.constant dense<0.000000e+00> : vector<8x256xf32>
    %60 = tpu.matmul %59, %2, %cst_29 {dimension_numbers = #tpu.dot_dimension_numbers<[1], [0], [0], [1], [0, 0, 1, 1], [], []>} : vector<8x256xf32>, vector<256x256xf32>, vector<8x256xf32> -> vector<8x256xf32>
    %cst_30 = arith.constant dense<0.000000e+00> : vector<64x256xf32>
    %61 = tpu.matmul %4, %59, %cst_30 {dimension_numbers = #tpu.dot_dimension_numbers<[1], [0], [0], [1], [0, 0, 1, 1], [], []>} : vector<64x8xf32>, vector<8x256xf32>, vector<64x256xf32> -> vector<64x256xf32>
    %62 = vector.broadcast %5 : vector<64x1xf32> to vector<64x256xf32>
    %63 = arith.addf %61, %62 : vector<64x256xf32>
    %64 = math.tanh %63 : vector<64x256xf32>
    %65 = vector.broadcast %3 : vector<8x1xf32> to vector<8x256xf32>
    %66 = arith.mulf %65, %60 : vector<8x256xf32>
    %67 = arith.addf %59, %66 : vector<8x256xf32>
    %cst_31 = arith.constant dense<0.000000e+00> : vector<8x256xf32>
    %68 = tpu.matmul %6, %64, %cst_31 {dimension_numbers = #tpu.dot_dimension_numbers<[1], [0], [0], [1], [0, 0, 1, 1], [], []>} : vector<8x64xf32>, vector<64x256xf32>, vector<8x256xf32> -> vector<8x256xf32>
    %69 = arith.addf %67, %68 : vector<8x256xf32>
    %70 = vector.broadcast %7 : vector<8x1xf32> to vector<8x256xf32>
    %71 = arith.addf %69, %70 : vector<8x256xf32>
    %72 = vector.shape_cast %71 : vector<8x256xf32> to vector<1x8x256xf32>
    %c0_32 = arith.constant 0 : index
    %c1 = arith.constant 1 : index
    %c0_33 = arith.constant 0 : index
    %c0_34 = arith.constant 0 : index
    %73 = vector.load %arg8[%c0_32, %c1, %c0_33, %c0_34] : memref<1x8x8x256xf32, #tpu.memory_space<vmem>>, vector<1x1x8x256xf32>
    %74 = vector.shape_cast %73 : vector<1x1x8x256xf32> to vector<1x8x256xf32>
    %75 = vector.shape_cast %72 : vector<1x8x256xf32> to vector<1x1x8x256xf32>
    tpu.vector_store %arg8[%c0_32, %c1, %c0_33, %c0_34], %75 {strides = array<i32>} : memref<1x8x8x256xf32, #tpu.memory_space<vmem>>, vector<1x1x8x256xf32>,
    %c0_i32_35 = arith.constant 0 : i32
    %cst_36 = arith.constant dense<0.000000e+00> : vector<8x256xf32>
    %76 = tpu.matmul %71, %2, %cst_36 {dimension_numbers = #tpu.dot_dimension_numbers<[1], [0], [0], [1], [0, 0, 1, 1], [], []>} : vector<8x256xf32>, vector<256x256xf32>, vector<8x256xf32> -> vector<8x256xf32>
    %cst_37 = arith.constant dense<0.000000e+00> : vector<64x256xf32>
    %77 = tpu.matmul %4, %71, %cst_37 {dimension_numbers = #tpu.dot_dimension_numbers<[1], [0], [0], [1], [0, 0, 1, 1], [], []>} : vector<64x8xf32>, vector<8x256xf32>, vector<64x256xf32> -> vector<64x256xf32>
    %78 = vector.broadcast %5 : vector<64x1xf32> to vector<64x256xf32>
    %79 = arith.addf %77, %78 : vector<64x256xf32>
    %80 = math.tanh %79 : vector<64x256xf32>
    %81 = vector.broadcast %3 : vector<8x1xf32> to vector<8x256xf32>
    %82 = arith.mulf %81, %76 : vector<8x256xf32>
    %83 = arith.addf %71, %82 : vector<8x256xf32>
    %cst_38 = arith.constant dense<0.000000e+00> : vector<8x256xf32>
    %84 = tpu.matmul %6, %80, %cst_38 {dimension_numbers = #tpu.dot_dimension_numbers<[1], [0], [0], [1], [0, 0, 1, 1], [], []>} : vector<8x64xf32>, vector<64x256xf32>, vector<8x256xf32> -> vector<8x256xf32>
    %85 = arith.addf %83, %84 : vector<8x256xf32>
    %86 = vector.broadcast %7 : vector<8x1xf32> to vector<8x256xf32>
    %87 = arith.addf %85, %86 : vector<8x256xf32>
    %c1_i32_39 = arith.constant 1 : i32
    %cst_40 = arith.constant dense<0.000000e+00> : vector<8x256xf32>
    %88 = tpu.matmul %87, %2, %cst_40 {dimension_numbers = #tpu.dot_dimension_numbers<[1], [0], [0], [1], [0, 0, 1, 1], [], []>} : vector<8x256xf32>, vector<256x256xf32>, vector<8x256xf32> -> vector<8x256xf32>
    %cst_41 = arith.constant dense<0.000000e+00> : vector<64x256xf32>
    %89 = tpu.matmul %4, %87, %cst_41 {dimension_numbers = #tpu.dot_dimension_numbers<[1], [0], [0], [1], [0, 0, 1, 1], [], []>} : vector<64x8xf32>, vector<8x256xf32>, vector<64x256xf32> -> vector<64x256xf32>
    %90 = vector.broadcast %5 : vector<64x1xf32> to vector<64x256xf32>
    %91 = arith.addf %89, %90 : vector<64x256xf32>
    %92 = math.tanh %91 : vector<64x256xf32>
    %93 = vector.broadcast %3 : vector<8x1xf32> to vector<8x256xf32>
    %94 = arith.mulf %93, %88 : vector<8x256xf32>
    %95 = arith.addf %87, %94 : vector<8x256xf32>
    %cst_42 = arith.constant dense<0.000000e+00> : vector<8x256xf32>
    %96 = tpu.matmul %6, %92, %cst_42 {dimension_numbers = #tpu.dot_dimension_numbers<[1], [0], [0], [1], [0, 0, 1, 1], [], []>} : vector<8x64xf32>, vector<64x256xf32>, vector<8x256xf32> -> vector<8x256xf32>
    %97 = arith.addf %95, %96 : vector<8x256xf32>
    %98 = vector.broadcast %7 : vector<8x1xf32> to vector<8x256xf32>
    %99 = arith.addf %97, %98 : vector<8x256xf32>
    %c2_i32_43 = arith.constant 2 : i32
    %cst_44 = arith.constant dense<0.000000e+00> : vector<8x256xf32>
    %100 = tpu.matmul %99, %2, %cst_44 {dimension_numbers = #tpu.dot_dimension_numbers<[1], [0], [0], [1], [0, 0, 1, 1], [], []>} : vector<8x256xf32>, vector<256x256xf32>, vector<8x256xf32> -> vector<8x256xf32>
    %cst_45 = arith.constant dense<0.000000e+00> : vector<64x256xf32>
    %101 = tpu.matmul %4, %99, %cst_45 {dimension_numbers = #tpu.dot_dimension_numbers<[1], [0], [0], [1], [0, 0, 1, 1], [], []>} : vector<64x8xf32>, vector<8x256xf32>, vector<64x256xf32> -> vector<64x256xf32>
    %102 = vector.broadcast %5 : vector<64x1xf32> to vector<64x256xf32>
    %103 = arith.addf %101, %102 : vector<64x256xf32>
    %104 = math.tanh %103 : vector<64x256xf32>
    %105 = vector.broadcast %3 : vector<8x1xf32> to vector<8x256xf32>
    %106 = arith.mulf %105, %100 : vector<8x256xf32>
    %107 = arith.addf %99, %106 : vector<8x256xf32>
    %cst_46 = arith.constant dense<0.000000e+00> : vector<8x256xf32>
    %108 = tpu.matmul %6, %104, %cst_46 {dimension_numbers = #tpu.dot_dimension_numbers<[1], [0], [0], [1], [0, 0, 1, 1], [], []>} : vector<8x64xf32>, vector<64x256xf32>, vector<8x256xf32> -> vector<8x256xf32>
    %109 = arith.addf %107, %108 : vector<8x256xf32>
    %110 = vector.broadcast %7 : vector<8x1xf32> to vector<8x256xf32>
    %111 = arith.addf %109, %110 : vector<8x256xf32>
    %c3_i32_47 = arith.constant 3 : i32
    %cst_48 = arith.constant dense<0.000000e+00> : vector<8x256xf32>
    %112 = tpu.matmul %111, %2, %cst_48 {dimension_numbers = #tpu.dot_dimension_numbers<[1], [0], [0], [1], [0, 0, 1, 1], [], []>} : vector<8x256xf32>, vector<256x256xf32>, vector<8x256xf32> -> vector<8x256xf32>
    %cst_49 = arith.constant dense<0.000000e+00> : vector<64x256xf32>
    %113 = tpu.matmul %4, %111, %cst_49 {dimension_numbers = #tpu.dot_dimension_numbers<[1], [0], [0], [1], [0, 0, 1, 1], [], []>} : vector<64x8xf32>, vector<8x256xf32>, vector<64x256xf32> -> vector<64x256xf32>
    %114 = vector.broadcast %5 : vector<64x1xf32> to vector<64x256xf32>
    %115 = arith.addf %113, %114 : vector<64x256xf32>
    %116 = math.tanh %115 : vector<64x256xf32>
    %117 = vector.broadcast %3 : vector<8x1xf32> to vector<8x256xf32>
    %118 = arith.mulf %117, %112 : vector<8x256xf32>
    %119 = arith.addf %111, %118 : vector<8x256xf32>
    %cst_50 = arith.constant dense<0.000000e+00> : vector<8x256xf32>
    %120 = tpu.matmul %6, %116, %cst_50 {dimension_numbers = #tpu.dot_dimension_numbers<[1], [0], [0], [1], [0, 0, 1, 1], [], []>} : vector<8x64xf32>, vector<64x256xf32>, vector<8x256xf32> -> vector<8x256xf32>
    %121 = arith.addf %119, %120 : vector<8x256xf32>
    %122 = vector.broadcast %7 : vector<8x1xf32> to vector<8x256xf32>
    %123 = arith.addf %121, %122 : vector<8x256xf32>
    %c4_i32_51 = arith.constant 4 : i32
    %cst_52 = arith.constant dense<0.000000e+00> : vector<8x256xf32>
    %124 = tpu.matmul %123, %2, %cst_52 {dimension_numbers = #tpu.dot_dimension_numbers<[1], [0], [0], [1], [0, 0, 1, 1], [], []>} : vector<8x256xf32>, vector<256x256xf32>, vector<8x256xf32> -> vector<8x256xf32>
    %cst_53 = arith.constant dense<0.000000e+00> : vector<64x256xf32>
    %125 = tpu.matmul %4, %123, %cst_53 {dimension_numbers = #tpu.dot_dimension_numbers<[1], [0], [0], [1], [0, 0, 1, 1], [], []>} : vector<64x8xf32>, vector<8x256xf32>, vector<64x256xf32> -> vector<64x256xf32>
    %126 = vector.broadcast %5 : vector<64x1xf32> to vector<64x256xf32>
    %127 = arith.addf %125, %126 : vector<64x256xf32>
    %128 = math.tanh %127 : vector<64x256xf32>
    %129 = vector.broadcast %3 : vector<8x1xf32> to vector<8x256xf32>
    %130 = arith.mulf %129, %124 : vector<8x256xf32>
    %131 = arith.addf %123, %130 : vector<8x256xf32>
    %cst_54 = arith.constant dense<0.000000e+00> : vector<8x256xf32>
    %132 = tpu.matmul %6, %128, %cst_54 {dimension_numbers = #tpu.dot_dimension_numbers<[1], [0], [0], [1], [0, 0, 1, 1], [], []>} : vector<8x64xf32>, vector<64x256xf32>, vector<8x256xf32> -> vector<8x256xf32>
    %133 = arith.addf %131, %132 : vector<8x256xf32>
    %134 = vector.broadcast %7 : vector<8x1xf32> to vector<8x256xf32>
    %135 = arith.addf %133, %134 : vector<8x256xf32>
    %136 = vector.shape_cast %135 : vector<8x256xf32> to vector<1x8x256xf32>
    %c0_55 = arith.constant 0 : index
    %c2 = arith.constant 2 : index
    %c0_56 = arith.constant 0 : index
    %c0_57 = arith.constant 0 : index
    %137 = vector.load %arg8[%c0_55, %c2, %c0_56, %c0_57] : memref<1x8x8x256xf32, #tpu.memory_space<vmem>>, vector<1x1x8x256xf32>
    %138 = vector.shape_cast %137 : vector<1x1x8x256xf32> to vector<1x8x256xf32>
    %139 = vector.shape_cast %136 : vector<1x8x256xf32> to vector<1x1x8x256xf32>
    tpu.vector_store %arg8[%c0_55, %c2, %c0_56, %c0_57], %139 {strides = array<i32>} : memref<1x8x8x256xf32, #tpu.memory_space<vmem>>, vector<1x1x8x256xf32>,
    %c0_i32_58 = arith.constant 0 : i32
    %cst_59 = arith.constant dense<0.000000e+00> : vector<8x256xf32>
    %140 = tpu.matmul %135, %2, %cst_59 {dimension_numbers = #tpu.dot_dimension_numbers<[1], [0], [0], [1], [0, 0, 1, 1], [], []>} : vector<8x256xf32>, vector<256x256xf32>, vector<8x256xf32> -> vector<8x256xf32>
    %cst_60 = arith.constant dense<0.000000e+00> : vector<64x256xf32>
    %141 = tpu.matmul %4, %135, %cst_60 {dimension_numbers = #tpu.dot_dimension_numbers<[1], [0], [0], [1], [0, 0, 1, 1], [], []>} : vector<64x8xf32>, vector<8x256xf32>, vector<64x256xf32> -> vector<64x256xf32>
    %142 = vector.broadcast %5 : vector<64x1xf32> to vector<64x256xf32>
    %143 = arith.addf %141, %142 : vector<64x256xf32>
    %144 = math.tanh %143 : vector<64x256xf32>
    %145 = vector.broadcast %3 : vector<8x1xf32> to vector<8x256xf32>
    %146 = arith.mulf %145, %140 : vector<8x256xf32>
    %147 = arith.addf %135, %146 : vector<8x256xf32>
    %cst_61 = arith.constant dense<0.000000e+00> : vector<8x256xf32>
    %148 = tpu.matmul %6, %144, %cst_61 {dimension_numbers = #tpu.dot_dimension_numbers<[1], [0], [0], [1], [0, 0, 1, 1], [], []>} : vector<8x64xf32>, vector<64x256xf32>, vector<8x256xf32> -> vector<8x256xf32>
    %149 = arith.addf %147, %148 : vector<8x256xf32>
    %150 = vector.broadcast %7 : vector<8x1xf32> to vector<8x256xf32>
    %151 = arith.addf %149, %150 : vector<8x256xf32>
    %c1_i32_62 = arith.constant 1 : i32
    %cst_63 = arith.constant dense<0.000000e+00> : vector<8x256xf32>
    %152 = tpu.matmul %151, %2, %cst_63 {dimension_numbers = #tpu.dot_dimension_numbers<[1], [0], [0], [1], [0, 0, 1, 1], [], []>} : vector<8x256xf32>, vector<256x256xf32>, vector<8x256xf32> -> vector<8x256xf32>
    %cst_64 = arith.constant dense<0.000000e+00> : vector<64x256xf32>
    %153 = tpu.matmul %4, %151, %cst_64 {dimension_numbers = #tpu.dot_dimension_numbers<[1], [0], [0], [1], [0, 0, 1, 1], [], []>} : vector<64x8xf32>, vector<8x256xf32>, vector<64x256xf32> -> vector<64x256xf32>
    %154 = vector.broadcast %5 : vector<64x1xf32> to vector<64x256xf32>
    %155 = arith.addf %153, %154 : vector<64x256xf32>
    %156 = math.tanh %155 : vector<64x256xf32>
    %157 = vector.broadcast %3 : vector<8x1xf32> to vector<8x256xf32>
    %158 = arith.mulf %157, %152 : vector<8x256xf32>
    %159 = arith.addf %151, %158 : vector<8x256xf32>
    %cst_65 = arith.constant dense<0.000000e+00> : vector<8x256xf32>
    %160 = tpu.matmul %6, %156, %cst_65 {dimension_numbers = #tpu.dot_dimension_numbers<[1], [0], [0], [1], [0, 0, 1, 1], [], []>} : vector<8x64xf32>, vector<64x256xf32>, vector<8x256xf32> -> vector<8x256xf32>
    %161 = arith.addf %159, %160 : vector<8x256xf32>
    %162 = vector.broadcast %7 : vector<8x1xf32> to vector<8x256xf32>
    %163 = arith.addf %161, %162 : vector<8x256xf32>
    %c2_i32_66 = arith.constant 2 : i32
    %cst_67 = arith.constant dense<0.000000e+00> : vector<8x256xf32>
    %164 = tpu.matmul %163, %2, %cst_67 {dimension_numbers = #tpu.dot_dimension_numbers<[1], [0], [0], [1], [0, 0, 1, 1], [], []>} : vector<8x256xf32>, vector<256x256xf32>, vector<8x256xf32> -> vector<8x256xf32>
    %cst_68 = arith.constant dense<0.000000e+00> : vector<64x256xf32>
    %165 = tpu.matmul %4, %163, %cst_68 {dimension_numbers = #tpu.dot_dimension_numbers<[1], [0], [0], [1], [0, 0, 1, 1], [], []>} : vector<64x8xf32>, vector<8x256xf32>, vector<64x256xf32> -> vector<64x256xf32>
    %166 = vector.broadcast %5 : vector<64x1xf32> to vector<64x256xf32>
    %167 = arith.addf %165, %166 : vector<64x256xf32>
    %168 = math.tanh %167 : vector<64x256xf32>
    %169 = vector.broadcast %3 : vector<8x1xf32> to vector<8x256xf32>
    %170 = arith.mulf %169, %164 : vector<8x256xf32>
    %171 = arith.addf %163, %170 : vector<8x256xf32>
    %cst_69 = arith.constant dense<0.000000e+00> : vector<8x256xf32>
    %172 = tpu.matmul %6, %168, %cst_69 {dimension_numbers = #tpu.dot_dimension_numbers<[1], [0], [0], [1], [0, 0, 1, 1], [], []>} : vector<8x64xf32>, vector<64x256xf32>, vector<8x256xf32> -> vector<8x256xf32>
    %173 = arith.addf %171, %172 : vector<8x256xf32>
    %174 = vector.broadcast %7 : vector<8x1xf32> to vector<8x256xf32>
    %175 = arith.addf %173, %174 : vector<8x256xf32>
    %c3_i32_70 = arith.constant 3 : i32
    %cst_71 = arith.constant dense<0.000000e+00> : vector<8x256xf32>
    %176 = tpu.matmul %175, %2, %cst_71 {dimension_numbers = #tpu.dot_dimension_numbers<[1], [0], [0], [1], [0, 0, 1, 1], [], []>} : vector<8x256xf32>, vector<256x256xf32>, vector<8x256xf32> -> vector<8x256xf32>
    %cst_72 = arith.constant dense<0.000000e+00> : vector<64x256xf32>
    %177 = tpu.matmul %4, %175, %cst_72 {dimension_numbers = #tpu.dot_dimension_numbers<[1], [0], [0], [1], [0, 0, 1, 1], [], []>} : vector<64x8xf32>, vector<8x256xf32>, vector<64x256xf32> -> vector<64x256xf32>
    %178 = vector.broadcast %5 : vector<64x1xf32> to vector<64x256xf32>
    %179 = arith.addf %177, %178 : vector<64x256xf32>
    %180 = math.tanh %179 : vector<64x256xf32>
    %181 = vector.broadcast %3 : vector<8x1xf32> to vector<8x256xf32>
    %182 = arith.mulf %181, %176 : vector<8x256xf32>
    %183 = arith.addf %175, %182 : vector<8x256xf32>
    %cst_73 = arith.constant dense<0.000000e+00> : vector<8x256xf32>
    %184 = tpu.matmul %6, %180, %cst_73 {dimension_numbers = #tpu.dot_dimension_numbers<[1], [0], [0], [1], [0, 0, 1, 1], [], []>} : vector<8x64xf32>, vector<64x256xf32>, vector<8x256xf32> -> vector<8x256xf32>
    %185 = arith.addf %183, %184 : vector<8x256xf32>
    %186 = vector.broadcast %7 : vector<8x1xf32> to vector<8x256xf32>
    %187 = arith.addf %185, %186 : vector<8x256xf32>
    %c4_i32_74 = arith.constant 4 : i32
    %cst_75 = arith.constant dense<0.000000e+00> : vector<8x256xf32>
    %188 = tpu.matmul %187, %2, %cst_75 {dimension_numbers = #tpu.dot_dimension_numbers<[1], [0], [0], [1], [0, 0, 1, 1], [], []>} : vector<8x256xf32>, vector<256x256xf32>, vector<8x256xf32> -> vector<8x256xf32>
    %cst_76 = arith.constant dense<0.000000e+00> : vector<64x256xf32>
    %189 = tpu.matmul %4, %187, %cst_76 {dimension_numbers = #tpu.dot_dimension_numbers<[1], [0], [0], [1], [0, 0, 1, 1], [], []>} : vector<64x8xf32>, vector<8x256xf32>, vector<64x256xf32> -> vector<64x256xf32>
    %190 = vector.broadcast %5 : vector<64x1xf32> to vector<64x256xf32>
    %191 = arith.addf %189, %190 : vector<64x256xf32>
    %192 = math.tanh %191 : vector<64x256xf32>
    %193 = vector.broadcast %3 : vector<8x1xf32> to vector<8x256xf32>
    %194 = arith.mulf %193, %188 : vector<8x256xf32>
    %195 = arith.addf %187, %194 : vector<8x256xf32>
    %cst_77 = arith.constant dense<0.000000e+00> : vector<8x256xf32>
    %196 = tpu.matmul %6, %192, %cst_77 {dimension_numbers = #tpu.dot_dimension_numbers<[1], [0], [0], [1], [0, 0, 1, 1], [], []>} : vector<8x64xf32>, vector<64x256xf32>, vector<8x256xf32> -> vector<8x256xf32>
    %197 = arith.addf %195, %196 : vector<8x256xf32>
    %198 = vector.broadcast %7 : vector<8x1xf32> to vector<8x256xf32>
    %199 = arith.addf %197, %198 : vector<8x256xf32>
    %200 = vector.shape_cast %199 : vector<8x256xf32> to vector<1x8x256xf32>
    %c0_78 = arith.constant 0 : index
    %c3 = arith.constant 3 : index
    %c0_79 = arith.constant 0 : index
    %c0_80 = arith.constant 0 : index
    %201 = vector.load %arg8[%c0_78, %c3, %c0_79, %c0_80] : memref<1x8x8x256xf32, #tpu.memory_space<vmem>>, vector<1x1x8x256xf32>
    %202 = vector.shape_cast %201 : vector<1x1x8x256xf32> to vector<1x8x256xf32>
    %203 = vector.shape_cast %200 : vector<1x8x256xf32> to vector<1x1x8x256xf32>
    tpu.vector_store %arg8[%c0_78, %c3, %c0_79, %c0_80], %203 {strides = array<i32>} : memref<1x8x8x256xf32, #tpu.memory_space<vmem>>, vector<1x1x8x256xf32>,
    %c0_i32_81 = arith.constant 0 : i32
    %cst_82 = arith.constant dense<0.000000e+00> : vector<8x256xf32>
    %204 = tpu.matmul %199, %2, %cst_82 {dimension_numbers = #tpu.dot_dimension_numbers<[1], [0], [0], [1], [0, 0, 1, 1], [], []>} : vector<8x256xf32>, vector<256x256xf32>, vector<8x256xf32> -> vector<8x256xf32>
    %cst_83 = arith.constant dense<0.000000e+00> : vector<64x256xf32>
    %205 = tpu.matmul %4, %199, %cst_83 {dimension_numbers = #tpu.dot_dimension_numbers<[1], [0], [0], [1], [0, 0, 1, 1], [], []>} : vector<64x8xf32>, vector<8x256xf32>, vector<64x256xf32> -> vector<64x256xf32>
    %206 = vector.broadcast %5 : vector<64x1xf32> to vector<64x256xf32>
    %207 = arith.addf %205, %206 : vector<64x256xf32>
    %208 = math.tanh %207 : vector<64x256xf32>
    %209 = vector.broadcast %3 : vector<8x1xf32> to vector<8x256xf32>
    %210 = arith.mulf %209, %204 : vector<8x256xf32>
    %211 = arith.addf %199, %210 : vector<8x256xf32>
    %cst_84 = arith.constant dense<0.000000e+00> : vector<8x256xf32>
    %212 = tpu.matmul %6, %208, %cst_84 {dimension_numbers = #tpu.dot_dimension_numbers<[1], [0], [0], [1], [0, 0, 1, 1], [], []>} : vector<8x64xf32>, vector<64x256xf32>, vector<8x256xf32> -> vector<8x256xf32>
    %213 = arith.addf %211, %212 : vector<8x256xf32>
    %214 = vector.broadcast %7 : vector<8x1xf32> to vector<8x256xf32>
    %215 = arith.addf %213, %214 : vector<8x256xf32>
    %c1_i32_85 = arith.constant 1 : i32
    %cst_86 = arith.constant dense<0.000000e+00> : vector<8x256xf32>
    %216 = tpu.matmul %215, %2, %cst_86 {dimension_numbers = #tpu.dot_dimension_numbers<[1], [0], [0], [1], [0, 0, 1, 1], [], []>} : vector<8x256xf32>, vector<256x256xf32>, vector<8x256xf32> -> vector<8x256xf32>
    %cst_87 = arith.constant dense<0.000000e+00> : vector<64x256xf32>
    %217 = tpu.matmul %4, %215, %cst_87 {dimension_numbers = #tpu.dot_dimension_numbers<[1], [0], [0], [1], [0, 0, 1, 1], [], []>} : vector<64x8xf32>, vector<8x256xf32>, vector<64x256xf32> -> vector<64x256xf32>
    %218 = vector.broadcast %5 : vector<64x1xf32> to vector<64x256xf32>
    %219 = arith.addf %217, %218 : vector<64x256xf32>
    %220 = math.tanh %219 : vector<64x256xf32>
    %221 = vector.broadcast %3 : vector<8x1xf32> to vector<8x256xf32>
    %222 = arith.mulf %221, %216 : vector<8x256xf32>
    %223 = arith.addf %215, %222 : vector<8x256xf32>
    %cst_88 = arith.constant dense<0.000000e+00> : vector<8x256xf32>
    %224 = tpu.matmul %6, %220, %cst_88 {dimension_numbers = #tpu.dot_dimension_numbers<[1], [0], [0], [1], [0, 0, 1, 1], [], []>} : vector<8x64xf32>, vector<64x256xf32>, vector<8x256xf32> -> vector<8x256xf32>
    %225 = arith.addf %223, %224 : vector<8x256xf32>
    %226 = vector.broadcast %7 : vector<8x1xf32> to vector<8x256xf32>
    %227 = arith.addf %225, %226 : vector<8x256xf32>
    %c2_i32_89 = arith.constant 2 : i32
    %cst_90 = arith.constant dense<0.000000e+00> : vector<8x256xf32>
    %228 = tpu.matmul %227, %2, %cst_90 {dimension_numbers = #tpu.dot_dimension_numbers<[1], [0], [0], [1], [0, 0, 1, 1], [], []>} : vector<8x256xf32>, vector<256x256xf32>, vector<8x256xf32> -> vector<8x256xf32>
    %cst_91 = arith.constant dense<0.000000e+00> : vector<64x256xf32>
    %229 = tpu.matmul %4, %227, %cst_91 {dimension_numbers = #tpu.dot_dimension_numbers<[1], [0], [0], [1], [0, 0, 1, 1], [], []>} : vector<64x8xf32>, vector<8x256xf32>, vector<64x256xf32> -> vector<64x256xf32>
    %230 = vector.broadcast %5 : vector<64x1xf32> to vector<64x256xf32>
    %231 = arith.addf %229, %230 : vector<64x256xf32>
    %232 = math.tanh %231 : vector<64x256xf32>
    %233 = vector.broadcast %3 : vector<8x1xf32> to vector<8x256xf32>
    %234 = arith.mulf %233, %228 : vector<8x256xf32>
    %235 = arith.addf %227, %234 : vector<8x256xf32>
    %cst_92 = arith.constant dense<0.000000e+00> : vector<8x256xf32>
    %236 = tpu.matmul %6, %232, %cst_92 {dimension_numbers = #tpu.dot_dimension_numbers<[1], [0], [0], [1], [0, 0, 1, 1], [], []>} : vector<8x64xf32>, vector<64x256xf32>, vector<8x256xf32> -> vector<8x256xf32>
    %237 = arith.addf %235, %236 : vector<8x256xf32>
    %238 = vector.broadcast %7 : vector<8x1xf32> to vector<8x256xf32>
    %239 = arith.addf %237, %238 : vector<8x256xf32>
    %c3_i32_93 = arith.constant 3 : i32
    %cst_94 = arith.constant dense<0.000000e+00> : vector<8x256xf32>
    %240 = tpu.matmul %239, %2, %cst_94 {dimension_numbers = #tpu.dot_dimension_numbers<[1], [0], [0], [1], [0, 0, 1, 1], [], []>} : vector<8x256xf32>, vector<256x256xf32>, vector<8x256xf32> -> vector<8x256xf32>
    %cst_95 = arith.constant dense<0.000000e+00> : vector<64x256xf32>
    %241 = tpu.matmul %4, %239, %cst_95 {dimension_numbers = #tpu.dot_dimension_numbers<[1], [0], [0], [1], [0, 0, 1, 1], [], []>} : vector<64x8xf32>, vector<8x256xf32>, vector<64x256xf32> -> vector<64x256xf32>
    %242 = vector.broadcast %5 : vector<64x1xf32> to vector<64x256xf32>
    %243 = arith.addf %241, %242 : vector<64x256xf32>
    %244 = math.tanh %243 : vector<64x256xf32>
    %245 = vector.broadcast %3 : vector<8x1xf32> to vector<8x256xf32>
    %246 = arith.mulf %245, %240 : vector<8x256xf32>
    %247 = arith.addf %239, %246 : vector<8x256xf32>
    %cst_96 = arith.constant dense<0.000000e+00> : vector<8x256xf32>
    %248 = tpu.matmul %6, %244, %cst_96 {dimension_numbers = #tpu.dot_dimension_numbers<[1], [0], [0], [1], [0, 0, 1, 1], [], []>} : vector<8x64xf32>, vector<64x256xf32>, vector<8x256xf32> -> vector<8x256xf32>
    %249 = arith.addf %247, %248 : vector<8x256xf32>
    %250 = vector.broadcast %7 : vector<8x1xf32> to vector<8x256xf32>
    %251 = arith.addf %249, %250 : vector<8x256xf32>
    %c4_i32_97 = arith.constant 4 : i32
    %cst_98 = arith.constant dense<0.000000e+00> : vector<8x256xf32>
    %252 = tpu.matmul %251, %2, %cst_98 {dimension_numbers = #tpu.dot_dimension_numbers<[1], [0], [0], [1], [0, 0, 1, 1], [], []>} : vector<8x256xf32>, vector<256x256xf32>, vector<8x256xf32> -> vector<8x256xf32>
    %cst_99 = arith.constant dense<0.000000e+00> : vector<64x256xf32>
    %253 = tpu.matmul %4, %251, %cst_99 {dimension_numbers = #tpu.dot_dimension_numbers<[1], [0], [0], [1], [0, 0, 1, 1], [], []>} : vector<64x8xf32>, vector<8x256xf32>, vector<64x256xf32> -> vector<64x256xf32>
    %254 = vector.broadcast %5 : vector<64x1xf32> to vector<64x256xf32>
    %255 = arith.addf %253, %254 : vector<64x256xf32>
    %256 = math.tanh %255 : vector<64x256xf32>
    %257 = vector.broadcast %3 : vector<8x1xf32> to vector<8x256xf32>
    %258 = arith.mulf %257, %252 : vector<8x256xf32>
    %259 = arith.addf %251, %258 : vector<8x256xf32>
    %cst_100 = arith.constant dense<0.000000e+00> : vector<8x256xf32>
    %260 = tpu.matmul %6, %256, %cst_100 {dimension_numbers = #tpu.dot_dimension_numbers<[1], [0], [0], [1], [0, 0, 1, 1], [], []>} : vector<8x64xf32>, vector<64x256xf32>, vector<8x256xf32> -> vector<8x256xf32>
    %261 = arith.addf %259, %260 : vector<8x256xf32>
    %262 = vector.broadcast %7 : vector<8x1xf32> to vector<8x256xf32>
    %263 = arith.addf %261, %262 : vector<8x256xf32>
    %264 = vector.shape_cast %263 : vector<8x256xf32> to vector<1x8x256xf32>
    %c0_101 = arith.constant 0 : index
    %c4 = arith.constant 4 : index
    %c0_102 = arith.constant 0 : index
    %c0_103 = arith.constant 0 : index
    %265 = vector.load %arg8[%c0_101, %c4, %c0_102, %c0_103] : memref<1x8x8x256xf32, #tpu.memory_space<vmem>>, vector<1x1x8x256xf32>
    %266 = vector.shape_cast %265 : vector<1x1x8x256xf32> to vector<1x8x256xf32>
    %267 = vector.shape_cast %264 : vector<1x8x256xf32> to vector<1x1x8x256xf32>
    tpu.vector_store %arg8[%c0_101, %c4, %c0_102, %c0_103], %267 {strides = array<i32>} : memref<1x8x8x256xf32, #tpu.memory_space<vmem>>, vector<1x1x8x256xf32>,
    %c0_i32_104 = arith.constant 0 : i32
    %cst_105 = arith.constant dense<0.000000e+00> : vector<8x256xf32>
    %268 = tpu.matmul %263, %2, %cst_105 {dimension_numbers = #tpu.dot_dimension_numbers<[1], [0], [0], [1], [0, 0, 1, 1], [], []>} : vector<8x256xf32>, vector<256x256xf32>, vector<8x256xf32> -> vector<8x256xf32>
    %cst_106 = arith.constant dense<0.000000e+00> : vector<64x256xf32>
    %269 = tpu.matmul %4, %263, %cst_106 {dimension_numbers = #tpu.dot_dimension_numbers<[1], [0], [0], [1], [0, 0, 1, 1], [], []>} : vector<64x8xf32>, vector<8x256xf32>, vector<64x256xf32> -> vector<64x256xf32>
    %270 = vector.broadcast %5 : vector<64x1xf32> to vector<64x256xf32>
    %271 = arith.addf %269, %270 : vector<64x256xf32>
    %272 = math.tanh %271 : vector<64x256xf32>
    %273 = vector.broadcast %3 : vector<8x1xf32> to vector<8x256xf32>
    %274 = arith.mulf %273, %268 : vector<8x256xf32>
    %275 = arith.addf %263, %274 : vector<8x256xf32>
    %cst_107 = arith.constant dense<0.000000e+00> : vector<8x256xf32>
    %276 = tpu.matmul %6, %272, %cst_107 {dimension_numbers = #tpu.dot_dimension_numbers<[1], [0], [0], [1], [0, 0, 1, 1], [], []>} : vector<8x64xf32>, vector<64x256xf32>, vector<8x256xf32> -> vector<8x256xf32>
    %277 = arith.addf %275, %276 : vector<8x256xf32>
    %278 = vector.broadcast %7 : vector<8x1xf32> to vector<8x256xf32>
    %279 = arith.addf %277, %278 : vector<8x256xf32>
    %c1_i32_108 = arith.constant 1 : i32
    %cst_109 = arith.constant dense<0.000000e+00> : vector<8x256xf32>
    %280 = tpu.matmul %279, %2, %cst_109 {dimension_numbers = #tpu.dot_dimension_numbers<[1], [0], [0], [1], [0, 0, 1, 1], [], []>} : vector<8x256xf32>, vector<256x256xf32>, vector<8x256xf32> -> vector<8x256xf32>
    %cst_110 = arith.constant dense<0.000000e+00> : vector<64x256xf32>
    %281 = tpu.matmul %4, %279, %cst_110 {dimension_numbers = #tpu.dot_dimension_numbers<[1], [0], [0], [1], [0, 0, 1, 1], [], []>} : vector<64x8xf32>, vector<8x256xf32>, vector<64x256xf32> -> vector<64x256xf32>
    %282 = vector.broadcast %5 : vector<64x1xf32> to vector<64x256xf32>
    %283 = arith.addf %281, %282 : vector<64x256xf32>
    %284 = math.tanh %283 : vector<64x256xf32>
    %285 = vector.broadcast %3 : vector<8x1xf32> to vector<8x256xf32>
    %286 = arith.mulf %285, %280 : vector<8x256xf32>
    %287 = arith.addf %279, %286 : vector<8x256xf32>
    %cst_111 = arith.constant dense<0.000000e+00> : vector<8x256xf32>
    %288 = tpu.matmul %6, %284, %cst_111 {dimension_numbers = #tpu.dot_dimension_numbers<[1], [0], [0], [1], [0, 0, 1, 1], [], []>} : vector<8x64xf32>, vector<64x256xf32>, vector<8x256xf32> -> vector<8x256xf32>
    %289 = arith.addf %287, %288 : vector<8x256xf32>
    %290 = vector.broadcast %7 : vector<8x1xf32> to vector<8x256xf32>
    %291 = arith.addf %289, %290 : vector<8x256xf32>
    %c2_i32_112 = arith.constant 2 : i32
    %cst_113 = arith.constant dense<0.000000e+00> : vector<8x256xf32>
    %292 = tpu.matmul %291, %2, %cst_113 {dimension_numbers = #tpu.dot_dimension_numbers<[1], [0], [0], [1], [0, 0, 1, 1], [], []>} : vector<8x256xf32>, vector<256x256xf32>, vector<8x256xf32> -> vector<8x256xf32>
    %cst_114 = arith.constant dense<0.000000e+00> : vector<64x256xf32>
    %293 = tpu.matmul %4, %291, %cst_114 {dimension_numbers = #tpu.dot_dimension_numbers<[1], [0], [0], [1], [0, 0, 1, 1], [], []>} : vector<64x8xf32>, vector<8x256xf32>, vector<64x256xf32> -> vector<64x256xf32>
    %294 = vector.broadcast %5 : vector<64x1xf32> to vector<64x256xf32>
    %295 = arith.addf %293, %294 : vector<64x256xf32>
    %296 = math.tanh %295 : vector<64x256xf32>
    %297 = vector.broadcast %3 : vector<8x1xf32> to vector<8x256xf32>
    %298 = arith.mulf %297, %292 : vector<8x256xf32>
    %299 = arith.addf %291, %298 : vector<8x256xf32>
    %cst_115 = arith.constant dense<0.000000e+00> : vector<8x256xf32>
    %300 = tpu.matmul %6, %296, %cst_115 {dimension_numbers = #tpu.dot_dimension_numbers<[1], [0], [0], [1], [0, 0, 1, 1], [], []>} : vector<8x64xf32>, vector<64x256xf32>, vector<8x256xf32> -> vector<8x256xf32>
    %301 = arith.addf %299, %300 : vector<8x256xf32>
    %302 = vector.broadcast %7 : vector<8x1xf32> to vector<8x256xf32>
    %303 = arith.addf %301, %302 : vector<8x256xf32>
    %c3_i32_116 = arith.constant 3 : i32
    %cst_117 = arith.constant dense<0.000000e+00> : vector<8x256xf32>
    %304 = tpu.matmul %303, %2, %cst_117 {dimension_numbers = #tpu.dot_dimension_numbers<[1], [0], [0], [1], [0, 0, 1, 1], [], []>} : vector<8x256xf32>, vector<256x256xf32>, vector<8x256xf32> -> vector<8x256xf32>
    %cst_118 = arith.constant dense<0.000000e+00> : vector<64x256xf32>
    %305 = tpu.matmul %4, %303, %cst_118 {dimension_numbers = #tpu.dot_dimension_numbers<[1], [0], [0], [1], [0, 0, 1, 1], [], []>} : vector<64x8xf32>, vector<8x256xf32>, vector<64x256xf32> -> vector<64x256xf32>
    %306 = vector.broadcast %5 : vector<64x1xf32> to vector<64x256xf32>
    %307 = arith.addf %305, %306 : vector<64x256xf32>
    %308 = math.tanh %307 : vector<64x256xf32>
    %309 = vector.broadcast %3 : vector<8x1xf32> to vector<8x256xf32>
    %310 = arith.mulf %309, %304 : vector<8x256xf32>
    %311 = arith.addf %303, %310 : vector<8x256xf32>
    %cst_119 = arith.constant dense<0.000000e+00> : vector<8x256xf32>
    %312 = tpu.matmul %6, %308, %cst_119 {dimension_numbers = #tpu.dot_dimension_numbers<[1], [0], [0], [1], [0, 0, 1, 1], [], []>} : vector<8x64xf32>, vector<64x256xf32>, vector<8x256xf32> -> vector<8x256xf32>
    %313 = arith.addf %311, %312 : vector<8x256xf32>
    %314 = vector.broadcast %7 : vector<8x1xf32> to vector<8x256xf32>
    %315 = arith.addf %313, %314 : vector<8x256xf32>
    %c4_i32_120 = arith.constant 4 : i32
    %cst_121 = arith.constant dense<0.000000e+00> : vector<8x256xf32>
    %316 = tpu.matmul %315, %2, %cst_121 {dimension_numbers = #tpu.dot_dimension_numbers<[1], [0], [0], [1], [0, 0, 1, 1], [], []>} : vector<8x256xf32>, vector<256x256xf32>, vector<8x256xf32> -> vector<8x256xf32>
    %cst_122 = arith.constant dense<0.000000e+00> : vector<64x256xf32>
    %317 = tpu.matmul %4, %315, %cst_122 {dimension_numbers = #tpu.dot_dimension_numbers<[1], [0], [0], [1], [0, 0, 1, 1], [], []>} : vector<64x8xf32>, vector<8x256xf32>, vector<64x256xf32> -> vector<64x256xf32>
    %318 = vector.broadcast %5 : vector<64x1xf32> to vector<64x256xf32>
    %319 = arith.addf %317, %318 : vector<64x256xf32>
    %320 = math.tanh %319 : vector<64x256xf32>
    %321 = vector.broadcast %3 : vector<8x1xf32> to vector<8x256xf32>
    %322 = arith.mulf %321, %316 : vector<8x256xf32>
    %323 = arith.addf %315, %322 : vector<8x256xf32>
    %cst_123 = arith.constant dense<0.000000e+00> : vector<8x256xf32>
    %324 = tpu.matmul %6, %320, %cst_123 {dimension_numbers = #tpu.dot_dimension_numbers<[1], [0], [0], [1], [0, 0, 1, 1], [], []>} : vector<8x64xf32>, vector<64x256xf32>, vector<8x256xf32> -> vector<8x256xf32>
    %325 = arith.addf %323, %324 : vector<8x256xf32>
    %326 = vector.broadcast %7 : vector<8x1xf32> to vector<8x256xf32>
    %327 = arith.addf %325, %326 : vector<8x256xf32>
    %328 = vector.shape_cast %327 : vector<8x256xf32> to vector<1x8x256xf32>
    %c0_124 = arith.constant 0 : index
    %c5 = arith.constant 5 : index
    %c0_125 = arith.constant 0 : index
    %c0_126 = arith.constant 0 : index
    %329 = vector.load %arg8[%c0_124, %c5, %c0_125, %c0_126] : memref<1x8x8x256xf32, #tpu.memory_space<vmem>>, vector<1x1x8x256xf32>
    %330 = vector.shape_cast %329 : vector<1x1x8x256xf32> to vector<1x8x256xf32>
    %331 = vector.shape_cast %328 : vector<1x8x256xf32> to vector<1x1x8x256xf32>
    tpu.vector_store %arg8[%c0_124, %c5, %c0_125, %c0_126], %331 {strides = array<i32>} : memref<1x8x8x256xf32, #tpu.memory_space<vmem>>, vector<1x1x8x256xf32>,
    %c0_i32_127 = arith.constant 0 : i32
    %cst_128 = arith.constant dense<0.000000e+00> : vector<8x256xf32>
    %332 = tpu.matmul %327, %2, %cst_128 {dimension_numbers = #tpu.dot_dimension_numbers<[1], [0], [0], [1], [0, 0, 1, 1], [], []>} : vector<8x256xf32>, vector<256x256xf32>, vector<8x256xf32> -> vector<8x256xf32>
    %cst_129 = arith.constant dense<0.000000e+00> : vector<64x256xf32>
    %333 = tpu.matmul %4, %327, %cst_129 {dimension_numbers = #tpu.dot_dimension_numbers<[1], [0], [0], [1], [0, 0, 1, 1], [], []>} : vector<64x8xf32>, vector<8x256xf32>, vector<64x256xf32> -> vector<64x256xf32>
    %334 = vector.broadcast %5 : vector<64x1xf32> to vector<64x256xf32>
    %335 = arith.addf %333, %334 : vector<64x256xf32>
    %336 = math.tanh %335 : vector<64x256xf32>
    %337 = vector.broadcast %3 : vector<8x1xf32> to vector<8x256xf32>
    %338 = arith.mulf %337, %332 : vector<8x256xf32>
    %339 = arith.addf %327, %338 : vector<8x256xf32>
    %cst_130 = arith.constant dense<0.000000e+00> : vector<8x256xf32>
    %340 = tpu.matmul %6, %336, %cst_130 {dimension_numbers = #tpu.dot_dimension_numbers<[1], [0], [0], [1], [0, 0, 1, 1], [], []>} : vector<8x64xf32>, vector<64x256xf32>, vector<8x256xf32> -> vector<8x256xf32>
    %341 = arith.addf %339, %340 : vector<8x256xf32>
    %342 = vector.broadcast %7 : vector<8x1xf32> to vector<8x256xf32>
    %343 = arith.addf %341, %342 : vector<8x256xf32>
    %c1_i32_131 = arith.constant 1 : i32
    %cst_132 = arith.constant dense<0.000000e+00> : vector<8x256xf32>
    %344 = tpu.matmul %343, %2, %cst_132 {dimension_numbers = #tpu.dot_dimension_numbers<[1], [0], [0], [1], [0, 0, 1, 1], [], []>} : vector<8x256xf32>, vector<256x256xf32>, vector<8x256xf32> -> vector<8x256xf32>
    %cst_133 = arith.constant dense<0.000000e+00> : vector<64x256xf32>
    %345 = tpu.matmul %4, %343, %cst_133 {dimension_numbers = #tpu.dot_dimension_numbers<[1], [0], [0], [1], [0, 0, 1, 1], [], []>} : vector<64x8xf32>, vector<8x256xf32>, vector<64x256xf32> -> vector<64x256xf32>
    %346 = vector.broadcast %5 : vector<64x1xf32> to vector<64x256xf32>
    %347 = arith.addf %345, %346 : vector<64x256xf32>
    %348 = math.tanh %347 : vector<64x256xf32>
    %349 = vector.broadcast %3 : vector<8x1xf32> to vector<8x256xf32>
    %350 = arith.mulf %349, %344 : vector<8x256xf32>
    %351 = arith.addf %343, %350 : vector<8x256xf32>
    %cst_134 = arith.constant dense<0.000000e+00> : vector<8x256xf32>
    %352 = tpu.matmul %6, %348, %cst_134 {dimension_numbers = #tpu.dot_dimension_numbers<[1], [0], [0], [1], [0, 0, 1, 1], [], []>} : vector<8x64xf32>, vector<64x256xf32>, vector<8x256xf32> -> vector<8x256xf32>
    %353 = arith.addf %351, %352 : vector<8x256xf32>
    %354 = vector.broadcast %7 : vector<8x1xf32> to vector<8x256xf32>
    %355 = arith.addf %353, %354 : vector<8x256xf32>
    %c2_i32_135 = arith.constant 2 : i32
    %cst_136 = arith.constant dense<0.000000e+00> : vector<8x256xf32>
    %356 = tpu.matmul %355, %2, %cst_136 {dimension_numbers = #tpu.dot_dimension_numbers<[1], [0], [0], [1], [0, 0, 1, 1], [], []>} : vector<8x256xf32>, vector<256x256xf32>, vector<8x256xf32> -> vector<8x256xf32>
    %cst_137 = arith.constant dense<0.000000e+00> : vector<64x256xf32>
    %357 = tpu.matmul %4, %355, %cst_137 {dimension_numbers = #tpu.dot_dimension_numbers<[1], [0], [0], [1], [0, 0, 1, 1], [], []>} : vector<64x8xf32>, vector<8x256xf32>, vector<64x256xf32> -> vector<64x256xf32>
    %358 = vector.broadcast %5 : vector<64x1xf32> to vector<64x256xf32>
    %359 = arith.addf %357, %358 : vector<64x256xf32>
    %360 = math.tanh %359 : vector<64x256xf32>
    %361 = vector.broadcast %3 : vector<8x1xf32> to vector<8x256xf32>
    %362 = arith.mulf %361, %356 : vector<8x256xf32>
    %363 = arith.addf %355, %362 : vector<8x256xf32>
    %cst_138 = arith.constant dense<0.000000e+00> : vector<8x256xf32>
    %364 = tpu.matmul %6, %360, %cst_138 {dimension_numbers = #tpu.dot_dimension_numbers<[1], [0], [0], [1], [0, 0, 1, 1], [], []>} : vector<8x64xf32>, vector<64x256xf32>, vector<8x256xf32> -> vector<8x256xf32>
    %365 = arith.addf %363, %364 : vector<8x256xf32>
    %366 = vector.broadcast %7 : vector<8x1xf32> to vector<8x256xf32>
    %367 = arith.addf %365, %366 : vector<8x256xf32>
    %c3_i32_139 = arith.constant 3 : i32
    %cst_140 = arith.constant dense<0.000000e+00> : vector<8x256xf32>
    %368 = tpu.matmul %367, %2, %cst_140 {dimension_numbers = #tpu.dot_dimension_numbers<[1], [0], [0], [1], [0, 0, 1, 1], [], []>} : vector<8x256xf32>, vector<256x256xf32>, vector<8x256xf32> -> vector<8x256xf32>
    %cst_141 = arith.constant dense<0.000000e+00> : vector<64x256xf32>
    %369 = tpu.matmul %4, %367, %cst_141 {dimension_numbers = #tpu.dot_dimension_numbers<[1], [0], [0], [1], [0, 0, 1, 1], [], []>} : vector<64x8xf32>, vector<8x256xf32>, vector<64x256xf32> -> vector<64x256xf32>
    %370 = vector.broadcast %5 : vector<64x1xf32> to vector<64x256xf32>
    %371 = arith.addf %369, %370 : vector<64x256xf32>
    %372 = math.tanh %371 : vector<64x256xf32>
    %373 = vector.broadcast %3 : vector<8x1xf32> to vector<8x256xf32>
    %374 = arith.mulf %373, %368 : vector<8x256xf32>
    %375 = arith.addf %367, %374 : vector<8x256xf32>
    %cst_142 = arith.constant dense<0.000000e+00> : vector<8x256xf32>
    %376 = tpu.matmul %6, %372, %cst_142 {dimension_numbers = #tpu.dot_dimension_numbers<[1], [0], [0], [1], [0, 0, 1, 1], [], []>} : vector<8x64xf32>, vector<64x256xf32>, vector<8x256xf32> -> vector<8x256xf32>
    %377 = arith.addf %375, %376 : vector<8x256xf32>
    %378 = vector.broadcast %7 : vector<8x1xf32> to vector<8x256xf32>
    %379 = arith.addf %377, %378 : vector<8x256xf32>
    %c4_i32_143 = arith.constant 4 : i32
    %cst_144 = arith.constant dense<0.000000e+00> : vector<8x256xf32>
    %380 = tpu.matmul %379, %2, %cst_144 {dimension_numbers = #tpu.dot_dimension_numbers<[1], [0], [0], [1], [0, 0, 1, 1], [], []>} : vector<8x256xf32>, vector<256x256xf32>, vector<8x256xf32> -> vector<8x256xf32>
    %cst_145 = arith.constant dense<0.000000e+00> : vector<64x256xf32>
    %381 = tpu.matmul %4, %379, %cst_145 {dimension_numbers = #tpu.dot_dimension_numbers<[1], [0], [0], [1], [0, 0, 1, 1], [], []>} : vector<64x8xf32>, vector<8x256xf32>, vector<64x256xf32> -> vector<64x256xf32>
    %382 = vector.broadcast %5 : vector<64x1xf32> to vector<64x256xf32>
    %383 = arith.addf %381, %382 : vector<64x256xf32>
    %384 = math.tanh %383 : vector<64x256xf32>
    %385 = vector.broadcast %3 : vector<8x1xf32> to vector<8x256xf32>
    %386 = arith.mulf %385, %380 : vector<8x256xf32>
    %387 = arith.addf %379, %386 : vector<8x256xf32>
    %cst_146 = arith.constant dense<0.000000e+00> : vector<8x256xf32>
    %388 = tpu.matmul %6, %384, %cst_146 {dimension_numbers = #tpu.dot_dimension_numbers<[1], [0], [0], [1], [0, 0, 1, 1], [], []>} : vector<8x64xf32>, vector<64x256xf32>, vector<8x256xf32> -> vector<8x256xf32>
    %389 = arith.addf %387, %388 : vector<8x256xf32>
    %390 = vector.broadcast %7 : vector<8x1xf32> to vector<8x256xf32>
    %391 = arith.addf %389, %390 : vector<8x256xf32>
    %392 = vector.shape_cast %391 : vector<8x256xf32> to vector<1x8x256xf32>
    %c0_147 = arith.constant 0 : index
    %c6 = arith.constant 6 : index
    %c0_148 = arith.constant 0 : index
    %c0_149 = arith.constant 0 : index
    %393 = vector.load %arg8[%c0_147, %c6, %c0_148, %c0_149] : memref<1x8x8x256xf32, #tpu.memory_space<vmem>>, vector<1x1x8x256xf32>
    %394 = vector.shape_cast %393 : vector<1x1x8x256xf32> to vector<1x8x256xf32>
    %395 = vector.shape_cast %392 : vector<1x8x256xf32> to vector<1x1x8x256xf32>
    tpu.vector_store %arg8[%c0_147, %c6, %c0_148, %c0_149], %395 {strides = array<i32>} : memref<1x8x8x256xf32, #tpu.memory_space<vmem>>, vector<1x1x8x256xf32>,
    %c0_i32_150 = arith.constant 0 : i32
    %cst_151 = arith.constant dense<0.000000e+00> : vector<8x256xf32>
    %396 = tpu.matmul %391, %2, %cst_151 {dimension_numbers = #tpu.dot_dimension_numbers<[1], [0], [0], [1], [0, 0, 1, 1], [], []>} : vector<8x256xf32>, vector<256x256xf32>, vector<8x256xf32> -> vector<8x256xf32>
    %cst_152 = arith.constant dense<0.000000e+00> : vector<64x256xf32>
    %397 = tpu.matmul %4, %391, %cst_152 {dimension_numbers = #tpu.dot_dimension_numbers<[1], [0], [0], [1], [0, 0, 1, 1], [], []>} : vector<64x8xf32>, vector<8x256xf32>, vector<64x256xf32> -> vector<64x256xf32>
    %398 = vector.broadcast %5 : vector<64x1xf32> to vector<64x256xf32>
    %399 = arith.addf %397, %398 : vector<64x256xf32>
    %400 = math.tanh %399 : vector<64x256xf32>
    %401 = vector.broadcast %3 : vector<8x1xf32> to vector<8x256xf32>
    %402 = arith.mulf %401, %396 : vector<8x256xf32>
    %403 = arith.addf %391, %402 : vector<8x256xf32>
    %cst_153 = arith.constant dense<0.000000e+00> : vector<8x256xf32>
    %404 = tpu.matmul %6, %400, %cst_153 {dimension_numbers = #tpu.dot_dimension_numbers<[1], [0], [0], [1], [0, 0, 1, 1], [], []>} : vector<8x64xf32>, vector<64x256xf32>, vector<8x256xf32> -> vector<8x256xf32>
    %405 = arith.addf %403, %404 : vector<8x256xf32>
    %406 = vector.broadcast %7 : vector<8x1xf32> to vector<8x256xf32>
    %407 = arith.addf %405, %406 : vector<8x256xf32>
    %c1_i32_154 = arith.constant 1 : i32
    %cst_155 = arith.constant dense<0.000000e+00> : vector<8x256xf32>
    %408 = tpu.matmul %407, %2, %cst_155 {dimension_numbers = #tpu.dot_dimension_numbers<[1], [0], [0], [1], [0, 0, 1, 1], [], []>} : vector<8x256xf32>, vector<256x256xf32>, vector<8x256xf32> -> vector<8x256xf32>
    %cst_156 = arith.constant dense<0.000000e+00> : vector<64x256xf32>
    %409 = tpu.matmul %4, %407, %cst_156 {dimension_numbers = #tpu.dot_dimension_numbers<[1], [0], [0], [1], [0, 0, 1, 1], [], []>} : vector<64x8xf32>, vector<8x256xf32>, vector<64x256xf32> -> vector<64x256xf32>
    %410 = vector.broadcast %5 : vector<64x1xf32> to vector<64x256xf32>
    %411 = arith.addf %409, %410 : vector<64x256xf32>
    %412 = math.tanh %411 : vector<64x256xf32>
    %413 = vector.broadcast %3 : vector<8x1xf32> to vector<8x256xf32>
    %414 = arith.mulf %413, %408 : vector<8x256xf32>
    %415 = arith.addf %407, %414 : vector<8x256xf32>
    %cst_157 = arith.constant dense<0.000000e+00> : vector<8x256xf32>
    %416 = tpu.matmul %6, %412, %cst_157 {dimension_numbers = #tpu.dot_dimension_numbers<[1], [0], [0], [1], [0, 0, 1, 1], [], []>} : vector<8x64xf32>, vector<64x256xf32>, vector<8x256xf32> -> vector<8x256xf32>
    %417 = arith.addf %415, %416 : vector<8x256xf32>
    %418 = vector.broadcast %7 : vector<8x1xf32> to vector<8x256xf32>
    %419 = arith.addf %417, %418 : vector<8x256xf32>
    %c2_i32_158 = arith.constant 2 : i32
    %cst_159 = arith.constant dense<0.000000e+00> : vector<8x256xf32>
    %420 = tpu.matmul %419, %2, %cst_159 {dimension_numbers = #tpu.dot_dimension_numbers<[1], [0], [0], [1], [0, 0, 1, 1], [], []>} : vector<8x256xf32>, vector<256x256xf32>, vector<8x256xf32> -> vector<8x256xf32>
    %cst_160 = arith.constant dense<0.000000e+00> : vector<64x256xf32>
    %421 = tpu.matmul %4, %419, %cst_160 {dimension_numbers = #tpu.dot_dimension_numbers<[1], [0], [0], [1], [0, 0, 1, 1], [], []>} : vector<64x8xf32>, vector<8x256xf32>, vector<64x256xf32> -> vector<64x256xf32>
    %422 = vector.broadcast %5 : vector<64x1xf32> to vector<64x256xf32>
    %423 = arith.addf %421, %422 : vector<64x256xf32>
    %424 = math.tanh %423 : vector<64x256xf32>
    %425 = vector.broadcast %3 : vector<8x1xf32> to vector<8x256xf32>
    %426 = arith.mulf %425, %420 : vector<8x256xf32>
    %427 = arith.addf %419, %426 : vector<8x256xf32>
    %cst_161 = arith.constant dense<0.000000e+00> : vector<8x256xf32>
    %428 = tpu.matmul %6, %424, %cst_161 {dimension_numbers = #tpu.dot_dimension_numbers<[1], [0], [0], [1], [0, 0, 1, 1], [], []>} : vector<8x64xf32>, vector<64x256xf32>, vector<8x256xf32> -> vector<8x256xf32>
    %429 = arith.addf %427, %428 : vector<8x256xf32>
    %430 = vector.broadcast %7 : vector<8x1xf32> to vector<8x256xf32>
    %431 = arith.addf %429, %430 : vector<8x256xf32>
    %c3_i32_162 = arith.constant 3 : i32
    %cst_163 = arith.constant dense<0.000000e+00> : vector<8x256xf32>
    %432 = tpu.matmul %431, %2, %cst_163 {dimension_numbers = #tpu.dot_dimension_numbers<[1], [0], [0], [1], [0, 0, 1, 1], [], []>} : vector<8x256xf32>, vector<256x256xf32>, vector<8x256xf32> -> vector<8x256xf32>
    %cst_164 = arith.constant dense<0.000000e+00> : vector<64x256xf32>
    %433 = tpu.matmul %4, %431, %cst_164 {dimension_numbers = #tpu.dot_dimension_numbers<[1], [0], [0], [1], [0, 0, 1, 1], [], []>} : vector<64x8xf32>, vector<8x256xf32>, vector<64x256xf32> -> vector<64x256xf32>
    %434 = vector.broadcast %5 : vector<64x1xf32> to vector<64x256xf32>
    %435 = arith.addf %433, %434 : vector<64x256xf32>
    %436 = math.tanh %435 : vector<64x256xf32>
    %437 = vector.broadcast %3 : vector<8x1xf32> to vector<8x256xf32>
    %438 = arith.mulf %437, %432 : vector<8x256xf32>
    %439 = arith.addf %431, %438 : vector<8x256xf32>
    %cst_165 = arith.constant dense<0.000000e+00> : vector<8x256xf32>
    %440 = tpu.matmul %6, %436, %cst_165 {dimension_numbers = #tpu.dot_dimension_numbers<[1], [0], [0], [1], [0, 0, 1, 1], [], []>} : vector<8x64xf32>, vector<64x256xf32>, vector<8x256xf32> -> vector<8x256xf32>
    %441 = arith.addf %439, %440 : vector<8x256xf32>
    %442 = vector.broadcast %7 : vector<8x1xf32> to vector<8x256xf32>
    %443 = arith.addf %441, %442 : vector<8x256xf32>
    %c4_i32_166 = arith.constant 4 : i32
    %cst_167 = arith.constant dense<0.000000e+00> : vector<8x256xf32>
    %444 = tpu.matmul %443, %2, %cst_167 {dimension_numbers = #tpu.dot_dimension_numbers<[1], [0], [0], [1], [0, 0, 1, 1], [], []>} : vector<8x256xf32>, vector<256x256xf32>, vector<8x256xf32> -> vector<8x256xf32>
    %cst_168 = arith.constant dense<0.000000e+00> : vector<64x256xf32>
    %445 = tpu.matmul %4, %443, %cst_168 {dimension_numbers = #tpu.dot_dimension_numbers<[1], [0], [0], [1], [0, 0, 1, 1], [], []>} : vector<64x8xf32>, vector<8x256xf32>, vector<64x256xf32> -> vector<64x256xf32>
    %446 = vector.broadcast %5 : vector<64x1xf32> to vector<64x256xf32>
    %447 = arith.addf %445, %446 : vector<64x256xf32>
    %448 = math.tanh %447 : vector<64x256xf32>
    %449 = vector.broadcast %3 : vector<8x1xf32> to vector<8x256xf32>
    %450 = arith.mulf %449, %444 : vector<8x256xf32>
    %451 = arith.addf %443, %450 : vector<8x256xf32>
    %cst_169 = arith.constant dense<0.000000e+00> : vector<8x256xf32>
    %452 = tpu.matmul %6, %448, %cst_169 {dimension_numbers = #tpu.dot_dimension_numbers<[1], [0], [0], [1], [0, 0, 1, 1], [], []>} : vector<8x64xf32>, vector<64x256xf32>, vector<8x256xf32> -> vector<8x256xf32>
    %453 = arith.addf %451, %452 : vector<8x256xf32>
    %454 = vector.broadcast %7 : vector<8x1xf32> to vector<8x256xf32>
    %455 = arith.addf %453, %454 : vector<8x256xf32>
    %456 = vector.shape_cast %455 : vector<8x256xf32> to vector<1x8x256xf32>
    %c0_170 = arith.constant 0 : index
    %c7 = arith.constant 7 : index
    %c0_171 = arith.constant 0 : index
    %c0_172 = arith.constant 0 : index
    %457 = vector.load %arg8[%c0_170, %c7, %c0_171, %c0_172] : memref<1x8x8x256xf32, #tpu.memory_space<vmem>>, vector<1x1x8x256xf32>
    %458 = vector.shape_cast %457 : vector<1x1x8x256xf32> to vector<1x8x256xf32>
    %459 = vector.shape_cast %456 : vector<1x8x256xf32> to vector<1x1x8x256xf32>
    tpu.vector_store %arg8[%c0_170, %c7, %c0_171, %c0_172], %459 {strides = array<i32>} : memref<1x8x8x256xf32, #tpu.memory_space<vmem>>, vector<1x1x8x256xf32>,
    return
  }
  func.func @transform_0(%arg0: i32) -> (i32, i32, i32) {
    %c0_i32 = arith.constant 0 : i32
    %c0_i32_0 = arith.constant 0 : i32
    %c0_i32_1 = arith.constant 0 : i32
    return %arg0, %c0_i32, %c0_i32_0 : i32, i32, i32
  }
  func.func @transform_1(%arg0: i32) -> (i32, i32) {
    %c0_i32 = arith.constant 0 : i32
    %c0_i32_0 = arith.constant 0 : i32
    %c0_i32_1 = arith.constant 0 : i32
    return %c0_i32, %c0_i32_0 : i32, i32
  }
  func.func @transform_2(%arg0: i32) -> (i32, i32) {
    %c0_i32 = arith.constant 0 : i32
    %c0_i32_0 = arith.constant 0 : i32
    %c0_i32_1 = arith.constant 0 : i32
    return %c0_i32, %c0_i32_0 : i32, i32
  }
  func.func @transform_3(%arg0: i32) -> (i32, i32) {
    %c0_i32 = arith.constant 0 : i32
    %c0_i32_0 = arith.constant 0 : i32
    %c0_i32_1 = arith.constant 0 : i32
    return %c0_i32, %c0_i32_0 : i32, i32
  }
  func.func @transform_4(%arg0: i32) -> (i32, i32) {
    %c0_i32 = arith.constant 0 : i32
    %c0_i32_0 = arith.constant 0 : i32
    %c0_i32_1 = arith.constant 0 : i32
    return %c0_i32, %c0_i32_0 : i32, i32
  }
  func.func @transform_5(%arg0: i32) -> (i32, i32) {
    %c0_i32 = arith.constant 0 : i32
    %c0_i32_0 = arith.constant 0 : i32
    %c0_i32_1 = arith.constant 0 : i32
    return %c0_i32, %c0_i32_0 : i32, i32
  }
  func.func @transform_6(%arg0: i32) -> (i32, i32) {
    %c0_i32 = arith.constant 0 : i32
    %c0_i32_0 = arith.constant 0 : i32
    %c0_i32_1 = arith.constant 0 : i32
    return %c0_i32, %c0_i32_0 : i32, i32
  }
  func.func @transform_7(%arg0: i32) -> (i32, i32, i32, i32) {
    %c0_i32 = arith.constant 0 : i32
    %c0_i32_0 = arith.constant 0 : i32
    %c0_i32_1 = arith.constant 0 : i32
    %c0_i32_2 = arith.constant 0 : i32
    return %arg0, %c0_i32, %c0_i32_0, %c0_i32_1 : i32, i32, i32, i32
  }
}

</mosaic_0001>

<bundles_post_ra>
// kernel: tpu_custom_call.1
= control target key start
LH: loop header
LB: loop body
LE: loop exit
PB: predicated region body
PF: predicated region fallthrough
CT: control target
= control target key end

     0   :  { %12 = vsyncpa [#allocation3], 0  ;;  %s18317_s0 = inlined_call_operand.vmem [shape: f32[1,8,256], index: 0, kind: input, shape index: {}]   ;;  %s18318_s1 = inlined_call_operand.hbm [shape: f32[256,256], index: 1, kind: input, shape index: {}]   ;;  %s18319_s2 = inlined_call_operand.vmem [shape: f32[8,1], index: 2, kind: input, shape index: {}]   ;;  %s18320_s3 = inlined_call_operand.vmem [shape: f32[64,8], index: 3, kind: input, shape index: {}]   ;;  %s18321_s4 = inlined_call_operand.vmem [shape: f32[64,1], index: 4, kind: input, shape index: {}]   ;;  %s18322_s5 = inlined_call_operand.vmem [shape: f32[8,64], index: 5, kind: input, shape index: {}]   ;;  %s18323_s6 = inlined_call_operand.vmem [shape: f32[8,1], index: 6, kind: input, shape index: {}]   ;;  %s18324_s7 = inlined_call_operand.hbm [shape: f32[1,8,8,256], index: 7, kind: output, shape index: {}]  }
   0x1   :  { %13 = vsyncpa [#allocation4], 0  ;;  %s14375_s24 = smov [#allocation2]   ;;  %s14327_s28 = scalar_lea.hbm %s18318_s1, 8192 }
   0x2   :  { %s21_s25 = sshll.u32 %s14375_s24, 4  ;;  %p14328_p0 = scmp.ne.s32.totalorder %s18318_s1, %s14327_s28  ;;  %s22_s25 = int_to_ptr.vmem [resolvable:$true] %s21_s25 }
   0x3   :  { %p14331_p1 = scmp.lt.u32.totalorder %s14327_s28, %s18318_s1 }
   0x5   :  { %p14333_p2 = pnand %p14331_p1, %p14328_p0 }
   0x7   :  { %14336 = shalt.err (!%p14333_p2)
}
   0x8   :  { %s14337_s10 = scalar_lea.vmem %s22_s25, 8192  ;;  %p14342_p4 = scmp.lt.s32.totalorder %s22_s25, %s22_s25 }
   0x9   :  { %p14338_p3 = scmp.ne.s32.totalorder %s22_s25, %s14337_s10  ;;  %p14343_p5 = scmp.lt.s32.totalorder %s14337_s10, %s14337_s10 }
   0xb   :  { %p14344_p6 = por %p14343_p5, %p14342_p4 }
   0xd   :  { %p14345_p7 = pnand %p14344_p6, %p14338_p3 }
   0xf   :  { %14348 = shalt.err (!%p14345_p7)
}
  0x10   :  { %s14376_s11 = smov 256   ;;  %s14377_s12 = smov 16  }
  0x11   :  { %27 = dma.hbm_to_vmem [thread:$0]  %s18318_s1, 8192, %s22_s25, [#allocation3], %s14376_s11, %s14376_s11, %s14377_s12  }
  0x12   :  { %14371 = dma.done.wait [#allocation3], 8192  }
  0x13   :  { %14372 = vsyncadd [#allocation3], 4294959104  ;;  %v18325_v0 = vmov 0.0   ;;  %v14379_v1 = vmov 0   ;;  %v44_v2 = vld [vmem:[#allocation2 + $0x8] sm:$0xff]  ;;  %v46_v3 = vld [vmem:[#allocation2 + $0x18] sm:$0xff] }
  0x14   :  { %346 = vmatprep.mubr.f32.mxu1 %v18325_v0  ;;  %13133 = vset.pattern.permute.xlu0 %v14379_v1  ;;  %v43_v4 = vld [vmem:[#allocation2] sm:$0xff]  ;;  %v14437_v5 = vpack.c.bf16 %v46_v3, %v44_v2  ;;  %v45_v6 = vld [vmem:[#allocation2 + $0x10] sm:$0xff]  ;;  %v48_v7 = vld [vmem:[#allocation2 + $0x28] sm:$0xff]  ;;  %vm239_vm0 = vcmask 64512   ;;  %vm402_vm1 = vcmask 523264  }
  0x15   :  { %13134 = vset.pattern.permute.xlu1 %v14379_v1  ;;  %v50_v8 = vld [vmem:[#allocation2 + $0x38] sm:$0xff]  ;;  %v14439_v9 = vpack.c.bf16 %v45_v6, %v43_v4  ;;  %v47_v11 = vld [vmem:[#allocation2 + $0x20] sm:$0xff]  ;;  %v49_v12 = vld [vmem:[#allocation2 + $0x30] sm:$0xff] }
  0x16   :  { %v14441_v10 = vpack.c.bf16 %v50_v8, %v48_v7  ;;  %v52_v13 = vld [vmem:[#allocation2 + $0x48] sm:$0xff]  ;;  %10326 = vmatprep.subr.bf16.mxu0 %v14437_v5  ;;  %v54_v14 = vld [vmem:[#allocation2 + $0x58] sm:$0xff]  ;;  %v14445_v15 = vpack.c.bf16 %v49_v12, %v47_v11  ;;  %v51_v17 = vld [vmem:[#allocation2 + $0x40] sm:$0xff] }
  0x17   :  { %10328 = vmatpush1.bf16.msra.mxu0 %v14439_v9  ;;  %v14448_v16 = vpack.c.bf16 %v54_v14, %v52_v13  ;;  %v53_v18 = vld [vmem:[#allocation2 + $0x50] sm:$0xff]  ;;  %v56_v19 = vld [vmem:[#allocation2 + $0x68] sm:$0xff]  ;;  %v58_v20 = vld [vmem:[#allocation2 + $0x78] sm:$0xff] }
  0x18   :  { %10330 = vmatprep.subr.bf16.mxu0 %v14441_v10  ;;  %v14451_v21 = vpack.c.bf16 %v53_v18, %v51_v17  ;;  %v14454_v22 = vpack.c.bf16 %v58_v20, %v56_v19  ;;  %v55_v23 = vld [vmem:[#allocation2 + $0x60] sm:$0xff]  ;;  %v57_v24 = vld [vmem:[#allocation2 + $0x70] sm:$0xff]  ;;  %v60_v25 = vld [vmem:[#allocation2 + $0x88] sm:$0xff] }
  0x19   :  { %v62_v26 = vld [vmem:[#allocation2 + $0x98] sm:$0xff]  ;;  %v14457_v27 = vpack.c.bf16 %v57_v24, %v55_v23  ;;  %v59_v29 = vld [vmem:[#allocation2 + $0x80] sm:$0xff]  ;;  %v61_v30 = vld [vmem:[#allocation2 + $0x90] sm:$0xff] }
  0x1a   :  { %v14460_v28 = vpack.c.bf16 %v62_v26, %v60_v25  ;;  %v64_v31 = vld [vmem:[#allocation2 + $0xa8] sm:$0xff]  ;;  %v66_v32 = vld [vmem:[#allocation2 + $0xb8] sm:$0xff]  ;;  %v14463_v33 = vpack.c.bf16 %v61_v30, %v59_v29  ;;  %v63_v34 = vld [vmem:[#allocation2 + $0xa0] sm:$0xff] }
  0x1b   :  { %10332 = vmatpush1.bf16.msra.mxu0 %v14445_v15  ;;  %v14466_v35 = vpack.c.bf16 %v66_v32, %v64_v31  ;;  %v65_v36 = vld [vmem:[#allocation2 + $0xb0] sm:$0xff]  ;;  %v14471_v37 = vld [vmem:[%s18317_s0 + $0x8] sm:$0xff]  ;;  %v14476_v38 = vld [vmem:[%s18317_s0] sm:$0xff] }
  0x1c   :  { %10334 = vmatprep.subr.bf16.mxu0 %v14448_v16  ;;  %v68_v39 = vld [vmem:[#allocation2 + $0xc8] sm:$0xff]  ;;  %v70_v40 = vld [vmem:[#allocation2 + $0xd8] sm:$0xff]  ;;  %127 = vst [vmem:[#allocation5 + $0x8] sm:$0xff] %v14471_v37  ;;  %13125 = vmatprep.subr.mxu1 %v14471_v37  ;;  %126 = vst [vmem:[#allocation5] sm:$0xff] %v14476_v38  ;;  %v14489_v42 = vpack.c.bf16 %v65_v36, %v63_v34 }
  0x1d   :  { %v14484_v41 = vld [vmem:[%s18320_s3 + $0x18] sm:$0xff]  ;;  %192 = vmatprep.mubr.f32.mxu0 %v14471_v37  ;;  %13126 = vmatpush1.msra.mxu1 %v14476_v38  ;;  %v14494_v43 = vpack.c.bf16 %v70_v40, %v68_v39  ;;  %v67_v44 = vld [vmem:[#allocation2 + $0xc0] sm:$0xff]  ;;  %v69_v45 = vld [vmem:[#allocation2 + $0xd0] sm:$0xff] }
  0x1e   :  { %10013 = vmatmul.mubr.msk.f32.vlgmr.msra.gmra.mrb[0].mxu1 %vm239_vm0, %v14484_v41  ;;  %v14500_v46 = vld [vmem:[%s18320_s3 + $0x20] sm:$0xff]  ;;  %v72_v47 = vld [vmem:[#allocation2 + $0xe8] sm:$0xff]  ;;  %v74_v48 = vld [vmem:[#allocation2 + $0xf8] sm:$0xff]  ;;  %v14503_v49 = vpack.c.bf16 %v69_v45, %v67_v44 }
  0x1f   :  { %10336 = vmatpush1.bf16.msra.mxu0 %v14451_v21  ;;  %352 = vmatprep.mubr.f32.mxu1 %v18325_v0  ;;  %v71_v50 = vld [vmem:[#allocation2 + $0xe0] sm:$0xff]  ;;  %v14511_v52 = vpack.c.bf16 %v74_v48, %v72_v47  ;;  %v73_v53 = vld [vmem:[#allocation2 + $0xf0] sm:$0xff]  ;;  %v14517_v54 = vld [vmem:[%s18320_s3 + $0x28] sm:$0xff] }
  0x20   :  { %10338 = vmatprep.subr.bf16.mxu0 %v14454_v22  ;;  %v116_v51 = vld [vmem:[%s18321_s4] sm:$0xff]  ;;  %18594 = vst [vmem:[#allocation8_spill] sm:$0xff] %v14517_v54  ;;  %v118_v55 = vld [vmem:[%s18321_s4 + $0x10] sm:$0xff]  ;;  %v76_v56 = vld [vmem:[#allocation2 + $0x108] sm:$0xff]  ;;  %v14529_v60 = vpack.c.bf16 %v73_v53, %v71_v50 }
  0x21   :  { %v78_v57 = vld [vmem:[#allocation2 + $0x118] sm:$0xff]  ;;  %201 = vperm.xlu0 %13133, %v116_v51   ;;  %211 = vperm.xlu1 %13134, %v118_v55   ;;  %v117_v58 = vld [vmem:[%s18321_s4 + $0x8] sm:$0xff]  ;;  %v75_v62 = vld [vmem:[#allocation2 + $0x100] sm:$0xff] }
  0x22   :  { %10014 = vmatmul.mubr.msk.f32.gmra.mrb[2].mxu1 %vm239_vm0, %v14500_v46  ;;  %v119_v59 = vld [vmem:[%s18321_s4 + $0x18] sm:$0xff]  ;;  %v14534_v61 = vpack.c.bf16 %v78_v57, %v76_v56  ;;  %v77_v63 = vld [vmem:[#allocation2 + $0x110] sm:$0xff]  ;;  %v80_v2 = vld [vmem:[#allocation2 + $0x128] sm:$0xff] }
  0x23   :  { %10340 = vmatpush1.bf16.msra.mxu0 %v14457_v27  ;;  %358 = vmatprep.mubr.f32.mxu1 %v18325_v0  ;;  %v14540_v1 = vld [vmem:[%s18320_s3 + $0x30] sm:$0xff]  ;;  %v82_v3 = vld [vmem:[#allocation2 + $0x138] sm:$0xff]  ;;  %v120_v4 = vld [vmem:[%s18321_s4 + $0x20] sm:$0xff]  ;;  %v14549_v7 = vpack.c.bf16 %v77_v63, %v75_v62 }
  0x24   :  { %10342 = vmatprep.subr.bf16.mxu0 %v14460_v28  ;;  %18595 = vst [vmem:[#allocation9_spill] sm:$0xff] %v14540_v1  ;;  %v121_v6 = vld [vmem:[%s18321_s4 + $0x28] sm:$0xff]  ;;  %v14554_v8 = vpack.c.bf16 %v82_v3, %v80_v2  ;;  %v79_v11 = vld [vmem:[#allocation2 + $0x120] sm:$0xff]  ;;  %v81_v12 = vld [vmem:[#allocation2 + $0x130] sm:$0xff] }
  0x25   :  { %206 = vperm.xlu0 %13133, %v117_v58   ;;  %216 = vperm.xlu1 %13134, %v119_v59   ;;  %v14560_v13 = vld [vmem:[%s18320_s3 + $0x38] sm:$0xff]  ;;  %v84_v14 = vld [vmem:[#allocation2 + $0x148] sm:$0xff]  ;;  %v122_v18 = vld [vmem:[%s18321_s4 + $0x30] sm:$0xff]  ;;  %v14569_v20 = vpack.c.bf16 %v81_v12, %v79_v11 }
  0x26   :  { %10015 = vmatmul.mubr.msk.f32.gmra.mrb[4].mxu1 %vm239_vm0, %v14517_v54  ;;  %18596 = vst [vmem:[#allocation10_spill] sm:$0xff] %v14560_v13  ;;  %v86_v17 = vld [vmem:[#allocation2 + $0x158] sm:$0xff]  ;;  %v83_v24 = vld [vmem:[#allocation2 + $0x140] sm:$0xff]  ;;  %v85_v25 = vld [vmem:[#allocation2 + $0x150] sm:$0xff] }
  0x27   :  { %10344 = vmatpush1.bf16.msra.mxu0 %v14463_v33  ;;  %364 = vmatprep.mubr.f32.mxu1 %v18325_v0  ;;  %v123_v19 = vld [vmem:[%s18321_s4 + $0x38] sm:$0xff]  ;;  %v14574_v23 = vpack.c.bf16 %v86_v17, %v84_v14  ;;  %v88_v26 = vld [vmem:[#allocation2 + $0x168] sm:$0xff]  ;;  %v107_v30 = vld [vmem:[%s18319_s2] sm:$0xff]  ;;  %v14584_v32 = vpack.c.bf16 %v85_v25, %v83_v24 }
  0x28   :  { %10346 = vmatprep.subr.bf16.mxu0 %v14466_v35  ;;  %v90_v29 = vld [vmem:[#allocation2 + $0x178] sm:$0xff]  ;;  %v125_v31 = vld [vmem:[%s18323_s6] sm:$0xff]  ;;  %v89_v39 = vld [vmem:[#allocation2 + $0x170] sm:$0xff] }
  0x29   :  { %221 = vperm.xlu0 %13133, %v120_v4   ;;  %226 = vperm.xlu1 %13134, %v121_v6   ;;  %v14587_v34 = vpack.c.bf16 %v90_v29, %v88_v26  ;;  %v87_v36 = vld [vmem:[#allocation2 + $0x160] sm:$0xff]  ;;  %v92_v40 = vld [vmem:[#allocation2 + $0x188] sm:$0xff]  ;;  %v94_v44 = vld [vmem:[#allocation2 + $0x198] sm:$0xff] }
  0x2a   :  { %10016 = vmatmul.mubr.msk.f32.gmra.mrb[6].mxu1 %vm239_vm0, %v14540_v1  ;;  %v14590_v45 = vpack.c.bf16 %v89_v39, %v87_v36  ;;  %v14593_v47 = vpack.c.bf16 %v94_v44, %v92_v40  ;;  %v91_v48 = vld [vmem:[#allocation2 + $0x180] sm:$0xff]  ;;  %v93_v50 = vld [vmem:[#allocation2 + $0x190] sm:$0xff]  ;;  %v96_v51 = vld [vmem:[#allocation2 + $0x1a8] sm:$0xff] }
  0x2b   :  { %10348 = vmatpush1.bf16.msra.mxu0 %v14489_v42  ;;  %370 = vmatprep.mubr.f32.mxu1 %v18325_v0  ;;  %18597 = vst [vmem:[#allocation11_spill] sm:$0xff] %v14587_v34  ;;  %v98_v53 = vld [vmem:[#allocation2 + $0x1b8] sm:$0xff]  ;;  %v14596_v55 = vpack.c.bf16 %v93_v50, %v91_v48  ;;  %v95_v57 = vld [vmem:[#allocation2 + $0x1a0] sm:$0xff]  ;;  %v97_v58 = vld [vmem:[#allocation2 + $0x1b0] sm:$0xff] }
  0x2c   :  { %10350 = vmatprep.subr.bf16.mxu0 %v14494_v43  ;;  %18598 = vst [vmem:[#allocation12_spill] sm:$0xff] %v14590_v45  ;;  %18599 = vst [vmem:[#allocation13_spill] sm:$0xff] %v14593_v47  ;;  %v14599_v56 = vpack.c.bf16 %v98_v53, %v96_v51  ;;  %v100_v59 = vld [vmem:[#allocation2 + $0x1c8] sm:$0xff]  ;;  %v102_v62 = vld [vmem:[#allocation2 + $0x1d8] sm:$0xff]  ;;  %v14602_v63 = vpack.c.bf16 %v97_v58, %v95_v57 }
  0x2d   :  { %231 = vperm.xlu0 %13133, %v122_v18   ;;  %236 = vperm.xlu1 %13134, %v123_v19   ;;  %18600 = vst [vmem:[#allocation14_spill] sm:$0xff] %v14596_v55  ;;  %v14605_v2 = vpack.c.bf16 %v102_v62, %v100_v59  ;;  %v99_v3 = vld [vmem:[#allocation2 + $0x1c0] sm:$0xff]  ;;  %v101_v4 = vld [vmem:[#allocation2 + $0x1d0] sm:$0xff]  ;;  %v104_v6 = vld [vmem:[#allocation2 + $0x1e8] sm:$0xff] }
  0x2e   :  { %10017 = vmatmul.mubr.msk.f32.gmra.mrb[8].mxu1 %vm239_vm0, %v14560_v13  ;;  %18601 = vst [vmem:[#allocation15_spill] sm:$0xff] %v14599_v56  ;;  %18602 = vst [vmem:[#allocation16_spill] sm:$0xff] %v14602_v63  ;;  %v106_v11 = vld [vmem:[#allocation2 + $0x1f8] sm:$0xff]  ;;  %v14608_v12 = vpack.c.bf16 %v101_v4, %v99_v3  ;;  %v103_v17 = vld [vmem:[#allocation2 + $0x1e0] sm:$0xff] }
  0x2f   :  { %10352 = vmatpush1.bf16.msra.mxu0 %v14503_v49  ;;  %470 = vmatprep.mubr.f32.mxu1 %v18325_v0  ;;  %18603 = vst [vmem:[#allocation17_spill] sm:$0xff] %v14605_v2  ;;  %v14611_v14 = vpack.c.bf16 %v106_v11, %v104_v6  ;;  %v105_v18 = vld [vmem:[#allocation2 + $0x1f0] sm:$0xff]  ;;  %v14625_v24 = vld [vmem:[%s18320_s3] sm:$0xff]  ;;  %v14633_v25 = vld [vmem:[%s18320_s3 + $0x8] sm:$0xff] }
  0x30   :  { %10354 = vmatprep.subr.bf16.mxu0 %v14511_v52  ;;  %18604 = vst [vmem:[#allocation18_spill] sm:$0xff] %v14608_v12  ;;  %v14614_v19 = vpack.c.bf16 %v105_v18, %v103_v17  ;;  %v14641_v26 = vld [vmem:[%s18320_s3 + $0x10] sm:$0xff] }
  0x31   :  { %395 = vperm.xlu0 %13133, %v107_v30   ;;  %481 = vperm.xlu1 %13134, %v125_v31   ;;  %18605 = vst [vmem:[#allocation19_spill] sm:$0xff] %v14611_v14 }
  0x32   :  { %18606 = vst [vmem:[#allocation20_spill] sm:$0xff] %v14614_v19 }
  0x33   :  { %10356 = vmatpush1.bf16.msra.mxu0 %v14529_v60 }
  0x34   :  { %10358 = vmatprep.subr.bf16.mxu0 %v14534_v61 }
  0x37   :  { %10360 = vmatpush1.bf16.msra.mxu0 %v14549_v7 }
  0x38   :  { %10362 = vmatprep.subr.bf16.mxu0 %v14554_v8 }
  0x3b   :  { %10364 = vmatpush1.bf16.msra.mxu0 %v14569_v20 }
  0x3c   :  { %10366 = vmatprep.subr.bf16.mxu0 %v14574_v23 }
  0x3f   :  { %10368 = vmatpush1.bf16.msra.mxu0 %v14584_v32 }
  0x40   :  { %10370 = vmatprep.subr.bf16.mxu0 %v14587_v34 }
  0x43   :  { %10372 = vmatpush1.bf16.msra.mxu0 %v14590_v45 }
  0x44   :  { %10374 = vmatprep.subr.bf16.mxu0 %v14593_v47 }
  0x47   :  { %10376 = vmatpush1.bf16.msra.mxu0 %v14596_v55 }
  0x48   :  { %10378 = vmatprep.subr.bf16.mxu0 %v14599_v56 }
  0x4b   :  { %10380 = vmatpush1.bf16.msra.mxu0 %v14602_v63 }
  0x4c   :  { %10382 = vmatprep.subr.bf16.mxu0 %v14605_v2 }
  0x4f   :  { %10384 = vmatpush1.bf16.msra.mxu0 %v14608_v12 }
  0x50   :  { %10386 = vmatprep.subr.bf16.mxu0 %v14611_v14 }
  0x53   :  { %10388 = vmatpush1.bf16.msra.mxu0 %v14614_v19 }
  0x54   :  { %264 = vmatprep.subr.mxu0 %v14471_v37 }
  0x56   :  { %193 = vmatmul.mubr.f32.vlgmr.msra.gmra.mrb[0].mxu0 %v14476_v38 }
  0x57   :  { %265 = vmatpush1.msra.mxu0 %v14476_v38  ;;  %328 = vmatprep.mubr.f32.mxu0 %v18325_v0 }
  0x5a   :  { %10010 = vmatmul.mubr.msk.f32.vlgmr.msra.gmra.mrb[2].mxu0 %vm239_vm0, %v14625_v24 }
  0x5b   :  { %334 = vmatprep.mubr.f32.mxu0 %v18325_v0 }
  0x5e   :  { %10011 = vmatmul.mubr.msk.f32.gmra.mrb[4].mxu0 %vm239_vm0, %v14633_v25 }
  0x5f   :  { %340 = vmatprep.mubr.f32.mxu0 %v18325_v0 }
  0x62   :  { %10012 = vmatmul.mubr.msk.f32.gmra.mrb[6].mxu0 %vm239_vm0, %v14641_v26 }
  0x63   :  { %621 = vmatprep.mubr.f32.mxu0 %v18325_v0 }
  0xa0   :  { %v14646_v29 = vpop.permute.xlu0 %201  ;;  %v14648_v30 = vpop.permute.xlu1 %211 }
  0xa1   :  { %18607 = vst [vmem:[#allocation21_spill] sm:$0xff] %v14646_v29  ;;  %18608 = vst [vmem:[#allocation22_spill] sm:$0xff] %v14648_v30 }
  0xa4   :  { %v14650_v31 = vpop.permute.xlu0 %206  ;;  %v14652_v40 = vpop.permute.xlu1 %216 }
  0xa5   :  { %18609 = vst [vmem:[#allocation23_spill] sm:$0xff] %v14650_v31  ;;  %18610 = vst [vmem:[#allocation24_spill] sm:$0xff] %v14652_v40 }
  0xa8   :  { %v14654_v44 = vpop.permute.xlu0 %221  ;;  %v14658_v58 = vpop.permute.xlu1 %226 }
  0xa9   :  { %18611 = vst [vmem:[#allocation25_spill] sm:$0xff] %v14654_v44  ;;  %18612 = vst [vmem:[#allocation26_spill] sm:$0xff] %v14658_v58 }
  0xac   :  { %v14662_v4 = vpop.permute.xlu0 %231 }
  0xad   :  { %18613 = vst [vmem:[#allocation27_spill] sm:$0xff] %v14662_v4 }
  0xf1   :  { %v348_v36 = vpop.f32.mrb[0].mxu1 }
  0xf2   :  { %v350_v39 = vpop.f32.mrb[1].mxu1 }
  0xf5   :  { %v354_v48 = vpop.f32.mrb[2].mxu1 }
  0xf6   :  { %v355_v50 = vadd.f32 %v354_v48, %v14654_v44  ;;  %v356_v51 = vpop.f32.mrb[3].mxu1  ;;  %v14666_v48 = vpop.permute.xlu1 %236 }
  0xf7   :  { %v357_v53 = vadd.f32 %v356_v51, %v14654_v44  ;;  %18614 = vst [vmem:[#allocation28_spill] sm:$0xff] %v14666_v48 }
  0xf8   :  { %13135 = vtanh.f32 %v355_v50 }
  0xf9   :  { %v360_v57 = vpop.f32.mrb[4].mxu1  ;;  %13137 = vtanh.f32 %v357_v53 }
  0xfa   :  { %v362_v59 = vpop.f32.mrb[5].mxu1  ;;  %v361_v62 = vadd.f32 %v360_v57, %v14658_v58 }
  0xfb   :  { %v363_v3 = vadd.f32 %v362_v59, %v14658_v58 }
  0xfc   :  { %13139 = vtanh.f32 %v361_v62 }
  0xfd   :  { %13141 = vtanh.f32 %v363_v3  ;;  %v366_v6 = vpop.f32.mrb[6].mxu1 }
  0xfe   :  { %v367_v11 = vadd.f32 %v366_v6, %v14662_v4  ;;  %v368_v17 = vpop.f32.mrb[7].mxu1 }
  0xff   :  { %v369_v18 = vadd.f32 %v368_v17, %v14662_v4 }
 0x100   :  { %13143 = vtanh.f32 %v367_v11 }
 0x101   :  { %v372_v51 = vpop.f32.mrb[8].mxu1  ;;  %13145 = vtanh.f32 %v369_v18 }
 0x102   :  { %v374_v50 = vpop.f32.mrb[9].mxu1  ;;  %v373_v57 = vadd.f32 %v372_v51, %v14666_v48  ;;  %v13136_v59 = vpop.eup %13135 }
 0x103   :  { %v375_v53 = vadd.f32 %v374_v50, %v14666_v48  ;;  %v13138_v62 = vpop.eup %13137 }
 0x104   :  { %13147 = vtanh.f32 %v373_v57 }
 0x105   :  { %13149 = vtanh.f32 %v375_v53 }
 0x106   :  { %v13140_v3 = vpop.eup %13139 }
 0x107   :  { %v13142_v0 = vpop.eup %13141  ;;  %v10399_v6 = vpack.c.bf16 %v13140_v3, %v13136_v59 }
 0x108   :  { %v10397_v58 = vpack.c.bf16 %v13142_v0, %v13138_v62  ;;  %v349_v62 = vadd.f32 %v348_v36, %v14652_v40 }
 0x10a   :  { %v13144_v44 = vpop.eup %13143 }
 0x10b   :  { %v13146_v17 = vpop.eup %13145 }
 0x10e   :  { %v13148_v4 = vpop.eup %13147 }
 0x10f   :  { %v13150_v13 = vpop.eup %13149  ;;  %v10403_v1 = vpack.c.bf16 %v13148_v4, %v13144_v44  ;;  %v351_v44 = vadd.f32 %v350_v39, %v14652_v40 }
 0x110   :  { %v10401_v11 = vpack.c.bf16 %v13150_v13, %v13146_v17 }
 0x129   :  { %v14670_v54 = vpop.f32.mrb[0].mxu0 }
 0x12a   :  { %v14672_v51 = vpop.f32.mrb[1].mxu0 }
 0x12d   :  { %v330_v18 = vpop.f32.mrb[2].mxu0 }
 0x12e   :  { %v331_v50 = vadd.f32 %v330_v18, %v14646_v29  ;;  %v332_v57 = vpop.f32.mrb[3].mxu0 }
 0x12f   :  { %v333_v53 = vadd.f32 %v332_v57, %v14646_v29 }
 0x130   :  { %13151 = vtanh.f32 %v331_v50 }
 0x131   :  { %v336_v48 = vpop.f32.mrb[4].mxu0  ;;  %13153 = vtanh.f32 %v333_v53 }
 0x132   :  { %v337_v0 = vadd.f32 %v336_v48, %v14650_v31  ;;  %v338_v59 = vpop.f32.mrb[5].mxu0 }
 0x133   :  { %v339_v13 = vadd.f32 %v338_v59, %v14650_v31 }
 0x134   :  { %13155 = vtanh.f32 %v337_v0 }
 0x135   :  { %13157 = vtanh.f32 %v339_v13  ;;  %v342_v4 = vpop.f32.mrb[6].mxu0 }
 0x136   :  { %v343_v3 = vadd.f32 %v342_v4, %v14648_v30  ;;  %v344_v17 = vpop.f32.mrb[7].mxu0  ;;  %13159 = vtanh.f32 %v349_v62  ;;  %v14685_v62 = vld [vmem:[%s18322_s5] sm:$0xff] }
 0x137   :  { %13161 = vtanh.f32 %v351_v44  ;;  %v345_v18 = vadd.f32 %v344_v17, %v14648_v30 }
 0x138   :  { %13163 = vtanh.f32 %v343_v3 }
 0x139   :  { %13165 = vtanh.f32 %v345_v18  ;;  %v14730_v18 = vpop.permute.xlu1 %481 }
 0x13a   :  { %v13152_v48 = vpop.eup %13151 }
 0x13b   :  { %v13154_v50 = vpop.eup %13153 }
 0x13e   :  { %v13156_v36 = vpop.eup %13155 }
 0x13f   :  { %v13158_v57 = vpop.eup %13157  ;;  %v10391_v39 = vpack.c.bf16 %v13156_v36, %v13152_v48 }
 0x140   :  { %v13160_v53 = vpop.eup %13159  ;;  %v10389_v40 = vpack.c.bf16 %v13158_v57, %v13154_v50 }
 0x141   :  { %v13162_v59 = vpop.eup %13161 }
 0x142   :  { %v13164_v0 = vpop.eup %13163  ;;  %10390 = vmatprep.subr.bf16.mxu1 %v10389_v40 }
 0x143   :  { %v13166_v13 = vpop.eup %13165  ;;  %10392 = vmatpush1.bf16.msra.mxu1 %v10391_v39  ;;  %v10395_v4 = vpack.c.bf16 %v13160_v53, %v13164_v0 }
 0x144   :  { %v10393_v31 = vpack.c.bf16 %v13162_v59, %v13166_v13 }
 0x146   :  { %10394 = vmatprep.subr.bf16.mxu1 %v10393_v31 }
 0x147   :  { %10396 = vmatpush1.bf16.msra.mxu1 %v10395_v4  ;;  %v18619_v4 = vld [vmem:[#allocation23_spill] sm:$0xff] }
 0x148   :  { %10398 = vmatprep.subr.bf16.mxu1 %v10397_v58 }
 0x14b   :  { %10400 = vmatpush1.bf16.msra.mxu1 %v10399_v6 }
 0x14c   :  { %10402 = vmatprep.subr.bf16.mxu1 %v10401_v11 }
 0x14f   :  { %10404 = vmatpush1.bf16.msra.mxu1 %v10403_v1  ;;  %v14722_v1 = vpop.permute.xlu0 %395 }
 0x150   :  { %10406 = vmatprep.subr.bf16.mxu1 %v14437_v5  ;;  %v398_v31 = vmul.f32 %v14722_v1, %v14670_v54  ;;  %v399_v40 = vmul.f32 %v14722_v1, %v14672_v51  ;;  %v18617_v54 = vld [vmem:[#allocation9_spill] sm:$0xff]  ;;  %v18618_v51 = vld [vmem:[#allocation10_spill] sm:$0xff] }
 0x152   :  { %10018 = vmatmul.mubr.msk.f32.vlgmr.msra.gmra.mrb[10].mxu1 %vm402_vm1, %v14685_v62  ;;  %v400_v58 = vadd.f32 %v398_v31, %v14476_v38  ;;  %v401_v11 = vadd.f32 %v399_v40, %v14471_v37  ;;  %v18615_v37 = vmov 0.0   ;;  %v18616_v38 = vld [vmem:[#allocation8_spill] sm:$0xff] }
 0x153   :  { %10408 = vmatpush1.bf16.msra.mxu1 %v14439_v9 }
 0x154   :  { %10410 = vmatprep.subr.bf16.mxu1 %v14441_v10 }
 0x157   :  { %10412 = vmatpush1.bf16.msra.mxu1 %v14445_v15 }
 0x158   :  { %10414 = vmatprep.subr.bf16.mxu1 %v14448_v16 }
 0x15b   :  { %10416 = vmatpush1.bf16.msra.mxu1 %v14451_v21 }
 0x15c   :  { %10418 = vmatprep.subr.bf16.mxu1 %v14454_v22 }
 0x15f   :  { %10420 = vmatpush1.bf16.msra.mxu1 %v14457_v27 }
 0x160   :  { %10422 = vmatprep.subr.bf16.mxu1 %v14460_v28 }
 0x163   :  { %10424 = vmatpush1.bf16.msra.mxu1 %v14463_v33 }
 0x164   :  { %10426 = vmatprep.subr.bf16.mxu1 %v14466_v35 }
 0x167   :  { %10428 = vmatpush1.bf16.msra.mxu1 %v14489_v42 }
 0x168   :  { %10430 = vmatprep.subr.bf16.mxu1 %v14494_v43 }
 0x16b   :  { %10432 = vmatpush1.bf16.msra.mxu1 %v14503_v49 }
 0x16c   :  { %10434 = vmatprep.subr.bf16.mxu1 %v14511_v52 }
 0x16f   :  { %10436 = vmatpush1.bf16.msra.mxu1 %v14529_v60 }
 0x170   :  { %10438 = vmatprep.subr.bf16.mxu1 %v14534_v61 }
 0x173   :  { %10440 = vmatpush1.bf16.msra.mxu1 %v14549_v7 }
 0x174   :  { %10442 = vmatprep.subr.bf16.mxu1 %v14554_v8 }
 0x177   :  { %10444 = vmatpush1.bf16.msra.mxu1 %v14569_v20 }
 0x178   :  { %10446 = vmatprep.subr.bf16.mxu1 %v14574_v23 }
 0x17b   :  { %10448 = vmatpush1.bf16.msra.mxu1 %v14584_v32 }
 0x17c   :  { %10450 = vmatprep.subr.bf16.mxu1 %v14587_v34 }
 0x17f   :  { %10452 = vmatpush1.bf16.msra.mxu1 %v14590_v45 }
 0x180   :  { %10454 = vmatprep.subr.bf16.mxu1 %v14593_v47 }
 0x183   :  { %10456 = vmatpush1.bf16.msra.mxu1 %v14596_v55 }
 0x184   :  { %10458 = vmatprep.subr.bf16.mxu1 %v14599_v56 }
 0x187   :  { %10460 = vmatpush1.bf16.msra.mxu1 %v14602_v63 }
 0x188   :  { %10462 = vmatprep.subr.bf16.mxu1 %v14605_v2 }
 0x18b   :  { %10464 = vmatpush1.bf16.msra.mxu1 %v14608_v12 }
 0x18c   :  { %10466 = vmatprep.subr.bf16.mxu1 %v14611_v14 }
 0x18f   :  { %10468 = vmatpush1.bf16.msra.mxu1 %v14614_v19 }
 0x190   :  { %10486 = vmatprep.subr.bf16.mxu1 %v14437_v5 }
 0x225   :  { %v472_v6 = vpop.f32.mrb[10].mxu1 }
 0x226   :  { %v477_v44 = vadd.f32 %v472_v6, %v400_v58  ;;  %v474_v3 = vpop.f32.mrb[11].mxu1 }
 0x227   :  { %v478_v17 = vadd.f32 %v474_v3, %v401_v11 }
 0x228   :  { %v14736_v50 = vadd.f32 %v14730_v18, %v477_v44 }
 0x229   :  { %v14733_v48 = vadd.f32 %v14730_v18, %v478_v17 }
 0x22b   :  { %550 = vmatprep.mubr.f32.mxu1 %v14733_v48  ;;  %557 = vmatprep.subr.mxu0 %v14733_v48 }
 0x22c   :  { %551 = vmatmul.mubr.f32.vlgmr.msra.gmra.mrb[12].mxu1 %v14736_v50  ;;  %558 = vmatpush1.msra.mxu0 %v14736_v50 }
 0x22d   :  { %10019 = vmatmul.mubr.msk.f32.vlgmr.msra.gmra.mrb[8].mxu0 %vm239_vm0, %v14625_v24  ;;  %10488 = vmatpush1.bf16.msra.mxu1 %v14439_v9 }
 0x22e   :  { %627 = vmatprep.mubr.f32.mxu0 %v18615_v37  ;;  %10490 = vmatprep.subr.bf16.mxu1 %v14441_v10 }
 0x231   :  { %10020 = vmatmul.mubr.msk.f32.gmra.mrb[10].mxu0 %vm239_vm0, %v14633_v25  ;;  %10492 = vmatpush1.bf16.msra.mxu1 %v14445_v15 }
 0x232   :  { %633 = vmatprep.mubr.f32.mxu0 %v18615_v37  ;;  %10494 = vmatprep.subr.bf16.mxu1 %v14448_v16 }
 0x235   :  { %10021 = vmatmul.mubr.msk.f32.gmra.mrb[12].mxu0 %vm239_vm0, %v14641_v26  ;;  %10496 = vmatpush1.bf16.msra.mxu1 %v14451_v21 }
 0x236   :  { %639 = vmatprep.mubr.f32.mxu0 %v18615_v37  ;;  %10498 = vmatprep.subr.bf16.mxu1 %v14454_v22 }
 0x239   :  { %10022 = vmatmul.mubr.msk.f32.gmra.mrb[14].mxu0 %vm239_vm0, %v14484_v41  ;;  %10500 = vmatpush1.bf16.msra.mxu1 %v14457_v27 }
 0x23a   :  { %645 = vmatprep.mubr.f32.mxu0 %v18615_v37  ;;  %10502 = vmatprep.subr.bf16.mxu1 %v14460_v28 }
 0x23d   :  { %10023 = vmatmul.mubr.msk.f32.gmra.mrb[16].mxu0 %vm239_vm0, %v14500_v46  ;;  %10504 = vmatpush1.bf16.msra.mxu1 %v14463_v33 }
 0x23e   :  { %651 = vmatprep.mubr.f32.mxu0 %v18615_v37  ;;  %10506 = vmatprep.subr.bf16.mxu1 %v14466_v35 }
 0x241   :  { %10024 = vmatmul.mubr.msk.f32.gmra.mrb[18].mxu0 %vm239_vm0, %v18616_v38  ;;  %10508 = vmatpush1.bf16.msra.mxu1 %v14489_v42 }
 0x242   :  { %657 = vmatprep.mubr.f32.mxu0 %v18615_v37  ;;  %10510 = vmatprep.subr.bf16.mxu1 %v14494_v43 }
 0x245   :  { %10025 = vmatmul.mubr.msk.f32.gmra.mrb[20].mxu0 %vm239_vm0, %v18617_v54  ;;  %10512 = vmatpush1.bf16.msra.mxu1 %v14503_v49 }
 0x246   :  { %663 = vmatprep.mubr.f32.mxu0 %v18615_v37  ;;  %10514 = vmatprep.subr.bf16.mxu1 %v14511_v52 }
 0x249   :  { %10026 = vmatmul.mubr.msk.f32.gmra.mrb[22].mxu0 %vm239_vm0, %v18618_v51  ;;  %10516 = vmatpush1.bf16.msra.mxu1 %v14529_v60 }
 0x24a   :  { %754 = vmatprep.mubr.f32.mxu0 %v18615_v37  ;;  %10518 = vmatprep.subr.bf16.mxu1 %v14534_v61 }
 0x24d   :  { %10520 = vmatpush1.bf16.msra.mxu1 %v14549_v7 }
 0x24e   :  { %10522 = vmatprep.subr.bf16.mxu1 %v14554_v8 }
 0x251   :  { %10524 = vmatpush1.bf16.msra.mxu1 %v14569_v20 }
 0x252   :  { %10526 = vmatprep.subr.bf16.mxu1 %v14574_v23 }
 0x255   :  { %10528 = vmatpush1.bf16.msra.mxu1 %v14584_v32 }
 0x256   :  { %10530 = vmatprep.subr.bf16.mxu1 %v14587_v34 }
 0x259   :  { %10532 = vmatpush1.bf16.msra.mxu1 %v14590_v45 }
 0x25a   :  { %10534 = vmatprep.subr.bf16.mxu1 %v14593_v47  ;;  %v18623_v47 = vld [vmem:[#allocation27_spill] sm:$0xff] }
 0x25d   :  { %10536 = vmatpush1.bf16.msra.mxu1 %v14596_v55 }
 0x25e   :  { %10538 = vmatprep.subr.bf16.mxu1 %v14599_v56 }
 0x261   :  { %10540 = vmatpush1.bf16.msra.mxu1 %v14602_v63 }
 0x262   :  { %10542 = vmatprep.subr.bf16.mxu1 %v14605_v2 }
 0x265   :  { %10544 = vmatpush1.bf16.msra.mxu1 %v14608_v12 }
 0x266   :  { %10546 = vmatprep.subr.bf16.mxu1 %v14611_v14 }
 0x269   :  { %10548 = vmatpush1.bf16.msra.mxu1 %v14614_v19 }
 0x2ff   :  { %v14797_v36 = vpop.f32.mrb[12].mxu1 }
 0x300   :  { %v14799_v57 = vpop.f32.mrb[13].mxu1  ;;  %v623_v39 = vpop.f32.mrb[8].mxu0 }
 0x301   :  { %v624_v53 = vadd.f32 %v623_v39, %v14646_v29  ;;  %v625_v59 = vpop.f32.mrb[9].mxu0  ;;  %v18620_v39 = vld [vmem:[#allocation24_spill] sm:$0xff] }
 0x302   :  { %v626_v0 = vadd.f32 %v625_v59, %v14646_v29 }
 0x303   :  { %13167 = vtanh.f32 %v624_v53 }
 0x304   :  { %v629_v13 = vpop.f32.mrb[10].mxu0  ;;  %13169 = vtanh.f32 %v626_v0 }
 0x305   :  { %v630_v31 = vadd.f32 %v629_v13, %v18619_v4  ;;  %v631_v40 = vpop.f32.mrb[11].mxu0 }
 0x306   :  { %v632_v58 = vadd.f32 %v631_v40, %v18619_v4 }
 0x307   :  { %13171 = vtanh.f32 %v630_v31 }
 0x308   :  { %13173 = vtanh.f32 %v632_v58  ;;  %v635_v6 = vpop.f32.mrb[12].mxu0  ;;  %v18621_v58 = vld [vmem:[#allocation25_spill] sm:$0xff] }
 0x309   :  { %v636_v11 = vadd.f32 %v635_v6, %v14648_v30  ;;  %v637_v44 = vpop.f32.mrb[13].mxu0 }
 0x30a   :  { %v638_v3 = vadd.f32 %v637_v44, %v14648_v30 }
 0x30b   :  { %13175 = vtanh.f32 %v636_v11 }
 0x30c   :  { %v641_v17 = vpop.f32.mrb[14].mxu0  ;;  %13177 = vtanh.f32 %v638_v3 }
 0x30d   :  { %v642_v59 = vadd.f32 %v641_v17, %v18620_v39  ;;  %v643_v19 = vpop.f32.mrb[15].mxu0  ;;  %v13168_v13 = vpop.eup %13167  ;;  %v18622_v17 = vld [vmem:[#allocation26_spill] sm:$0xff] }
 0x30e   :  { %v644_v53 = vadd.f32 %v643_v19, %v18620_v39  ;;  %v13170_v0 = vpop.eup %13169 }
 0x30f   :  { %13179 = vtanh.f32 %v642_v59 }
 0x310   :  { %13181 = vtanh.f32 %v644_v53  ;;  %v647_v31 = vpop.f32.mrb[16].mxu0 }
 0x311   :  { %v13172_v40 = vpop.eup %13171  ;;  %v648_v14 = vadd.f32 %v647_v31, %v18621_v58  ;;  %v649_v6 = vpop.f32.mrb[17].mxu0 }
 0x312   :  { %v13174_v12 = vpop.eup %13173  ;;  %v650_v44 = vadd.f32 %v649_v6, %v18621_v58  ;;  %v10471_v2 = vpack.c.bf16 %v13172_v40, %v13168_v13 }
 0x313   :  { %v10469_v11 = vpack.c.bf16 %v13174_v12, %v13170_v0  ;;  %13183 = vtanh.f32 %v648_v14 }
 0x314   :  { %v653_v63 = vpop.f32.mrb[18].mxu0  ;;  %13185 = vtanh.f32 %v650_v44  ;;  %v18624_v44 = vld [vmem:[#allocation28_spill] sm:$0xff] }
 0x315   :  { %v654_v3 = vadd.f32 %v653_v63, %v18622_v17  ;;  %v655_v56 = vpop.f32.mrb[19].mxu0  ;;  %10470 = vmatprep.subr.bf16.mxu0 %v10469_v11  ;;  %v13176_v59 = vpop.eup %13175 }
 0x316   :  { %v656_v19 = vadd.f32 %v655_v56, %v18622_v17  ;;  %10472 = vmatpush1.bf16.msra.mxu0 %v10471_v2  ;;  %v13178_v53 = vpop.eup %13177 }
 0x317   :  { %13187 = vtanh.f32 %v654_v3 }
 0x318   :  { %13189 = vtanh.f32 %v656_v19  ;;  %v659_v31 = vpop.f32.mrb[20].mxu0 }
 0x319   :  { %v13180_v55 = vpop.eup %13179  ;;  %v660_v6 = vadd.f32 %v659_v31, %v18623_v47  ;;  %v661_v13 = vpop.f32.mrb[21].mxu0 }
 0x31a   :  { %v13182_v12 = vpop.eup %13181  ;;  %v662_v14 = vadd.f32 %v661_v13, %v18623_v47  ;;  %v10475_v0 = vpack.c.bf16 %v13180_v55, %v13176_v59 }
 0x31b   :  { %v10473_v63 = vpack.c.bf16 %v13182_v12, %v13178_v53  ;;  %13191 = vtanh.f32 %v660_v6 }
 0x31c   :  { %v665_v40 = vpop.f32.mrb[22].mxu0  ;;  %13193 = vtanh.f32 %v662_v14  ;;  %v686_v14 = vmul.f32 %v14797_v36, %v14722_v1 }
 0x31d   :  { %v666_v11 = vadd.f32 %v665_v40, %v18624_v44  ;;  %v667_v56 = vpop.f32.mrb[23].mxu0  ;;  %10474 = vmatprep.subr.bf16.mxu0 %v10473_v63  ;;  %v13184_v3 = vpop.eup %13183 }
 0x31e   :  { %v668_v2 = vadd.f32 %v667_v56, %v18624_v44  ;;  %10476 = vmatpush1.bf16.msra.mxu0 %v10475_v0  ;;  %v13186_v19 = vpop.eup %13185 }
 0x31f   :  { %13195 = vtanh.f32 %v666_v11 }
 0x320   :  { %13197 = vtanh.f32 %v668_v2 }
 0x321   :  { %v13188_v31 = vpop.eup %13187 }
 0x322   :  { %v13190_v45 = vpop.eup %13189  ;;  %v10479_v34 = vpack.c.bf16 %v13188_v31, %v13184_v3 }
 0x323   :  { %v10477_v13 = vpack.c.bf16 %v13190_v45, %v13186_v19  ;;  %v687_v45 = vmul.f32 %v14799_v57, %v14722_v1 }
 0x325   :  { %10478 = vmatprep.subr.bf16.mxu0 %v10477_v13  ;;  %v13192_v55 = vpop.eup %13191  ;;  %v689_v40 = vadd.f32 %v687_v45, %v14733_v48 }
 0x326   :  { %10480 = vmatpush1.bf16.msra.mxu0 %v10479_v34  ;;  %v13194_v59 = vpop.eup %13193  ;;  %v688_v34 = vadd.f32 %v686_v14, %v14736_v50 }
 0x329   :  { %v13196_v53 = vpop.eup %13195 }
 0x32a   :  { %v13198_v6 = vpop.eup %13197  ;;  %v10483_v12 = vpack.c.bf16 %v13196_v53, %v13192_v55 }
 0x32b   :  { %v10481_v63 = vpack.c.bf16 %v13198_v6, %v13194_v59 }
 0x32d   :  { %10482 = vmatprep.subr.bf16.mxu0 %v10481_v63 }
 0x32e   :  { %10484 = vmatpush1.bf16.msra.mxu0 %v10483_v12 }
 0x331   :  { %10027 = vmatmul.mubr.msk.f32.vlgmr.msra.gmra.mrb[24].mxu0 %vm402_vm1, %v14685_v62 }
 0x332   :  { %900 = vmatprep.mubr.f32.mxu0 %v18615_v37 }
 0x404   :  { %v756_v0 = vpop.f32.mrb[24].mxu0 }
 0x405   :  { %v761_v11 = vadd.f32 %v756_v0, %v688_v34  ;;  %v758_v56 = vpop.f32.mrb[25].mxu0 }
 0x406   :  { %v762_v2 = vadd.f32 %v758_v56, %v689_v40 }
 0x407   :  { %v14830_v19 = vadd.f32 %v761_v11, %v14730_v18 }
 0x408   :  { %v14827_v3 = vadd.f32 %v762_v2, %v14730_v18 }
 0x40a   :  { %829 = vmatprep.mubr.f32.mxu1 %v14827_v3  ;;  %836 = vmatprep.subr.mxu0 %v14827_v3 }
 0x40b   :  { %830 = vmatmul.mubr.f32.vlgmr.msra.gmra.mrb[14].mxu1 %v14830_v19  ;;  %837 = vmatpush1.msra.mxu0 %v14830_v19 }
 0x40c   :  { %10028 = vmatmul.mubr.msk.f32.vlgmr.msra.gmra.mrb[26].mxu0 %vm239_vm0, %v14625_v24  ;;  %1179 = vmatprep.mubr.f32.mxu1 %v18615_v37 }
 0x40d   :  { %906 = vmatprep.mubr.f32.mxu0 %v18615_v37 }
 0x410   :  { %10029 = vmatmul.mubr.msk.f32.gmra.mrb[28].mxu0 %vm239_vm0, %v14633_v25 }
 0x411   :  { %912 = vmatprep.mubr.f32.mxu0 %v18615_v37 }
 0x414   :  { %10030 = vmatmul.mubr.msk.f32.gmra.mrb[30].mxu0 %vm239_vm0, %v14641_v26 }
 0x415   :  { %918 = vmatprep.mubr.f32.mxu0 %v18615_v37 }
 0x418   :  { %10031 = vmatmul.mubr.msk.f32.gmra.mrb[32].mxu0 %vm239_vm0, %v14484_v41 }
 0x419   :  { %924 = vmatprep.mubr.f32.mxu0 %v18615_v37 }
 0x41c   :  { %10032 = vmatmul.mubr.msk.f32.gmra.mrb[34].mxu0 %vm239_vm0, %v14500_v46 }
 0x41d   :  { %930 = vmatprep.mubr.f32.mxu0 %v18615_v37 }
 0x420   :  { %10033 = vmatmul.mubr.msk.f32.gmra.mrb[36].mxu0 %vm239_vm0, %v18616_v38 }
 0x421   :  { %936 = vmatprep.mubr.f32.mxu0 %v18615_v37 }
 0x424   :  { %10034 = vmatmul.mubr.msk.f32.gmra.mrb[38].mxu0 %vm239_vm0, %v18617_v54 }
 0x425   :  { %942 = vmatprep.mubr.f32.mxu0 %v18615_v37 }
 0x428   :  { %10035 = vmatmul.mubr.msk.f32.gmra.mrb[40].mxu0 %vm239_vm0, %v18618_v51 }
 0x429   :  { %1033 = vmatprep.mubr.f32.mxu0 %v18615_v37 }
 0x4de   :  { %v14861_v41 = vpop.f32.mrb[14].mxu1 }
 0x4df   :  { %v14863_v46 = vpop.f32.mrb[15].mxu1  ;;  %v902_v48 = vpop.f32.mrb[26].mxu0 }
 0x4e0   :  { %v903_v50 = vadd.f32 %v902_v48, %v14646_v29  ;;  %v904_v38 = vpop.f32.mrb[27].mxu0 }
 0x4e1   :  { %v905_v36 = vadd.f32 %v904_v38, %v14646_v29 }
 0x4e2   :  { %13199 = vtanh.f32 %v903_v50 }
 0x4e3   :  { %v908_v57 = vpop.f32.mrb[28].mxu0  ;;  %13201 = vtanh.f32 %v905_v36 }
 0x4e4   :  { %v909_v54 = vadd.f32 %v908_v57, %v18619_v4  ;;  %v910_v31 = vpop.f32.mrb[29].mxu0 }
 0x4e5   :  { %v911_v51 = vadd.f32 %v910_v31, %v18619_v4 }
 0x4e6   :  { %13203 = vtanh.f32 %v909_v54 }
 0x4e7   :  { %13205 = vtanh.f32 %v911_v51  ;;  %v914_v13 = vpop.f32.mrb[30].mxu0 }
 0x4e8   :  { %v915_v55 = vadd.f32 %v914_v13, %v14648_v30  ;;  %v916_v59 = vpop.f32.mrb[31].mxu0 }
 0x4e9   :  { %v917_v53 = vadd.f32 %v916_v59, %v14648_v30 }
 0x4ea   :  { %13207 = vtanh.f32 %v915_v55 }
 0x4eb   :  { %v920_v6 = vpop.f32.mrb[32].mxu0  ;;  %13209 = vtanh.f32 %v917_v53 }
 0x4ec   :  { %v921_v12 = vadd.f32 %v920_v6, %v18620_v39  ;;  %v922_v63 = vpop.f32.mrb[33].mxu0  ;;  %v13200_v45 = vpop.eup %13199 }
 0x4ed   :  { %v923_v14 = vadd.f32 %v922_v63, %v18620_v39  ;;  %v13202_v34 = vpop.eup %13201 }
 0x4ee   :  { %13211 = vtanh.f32 %v921_v12 }
 0x4ef   :  { %13213 = vtanh.f32 %v923_v14  ;;  %v926_v0 = vpop.f32.mrb[34].mxu0 }
 0x4f0   :  { %v13204_v40 = vpop.eup %13203  ;;  %v927_v11 = vadd.f32 %v926_v0, %v18621_v58  ;;  %v928_v56 = vpop.f32.mrb[35].mxu0 }
 0x4f1   :  { %v13206_v2 = vpop.eup %13205  ;;  %v929_v48 = vadd.f32 %v928_v56, %v18621_v58  ;;  %v10551_v50 = vpack.c.bf16 %v13204_v40, %v13200_v45 }
 0x4f2   :  { %v10549_v38 = vpack.c.bf16 %v13206_v2, %v13202_v34  ;;  %13215 = vtanh.f32 %v927_v11 }
 0x4f3   :  { %v932_v36 = vpop.f32.mrb[36].mxu0  ;;  %13217 = vtanh.f32 %v929_v48 }
 0x4f4   :  { %v933_v57 = vadd.f32 %v932_v36, %v18622_v17  ;;  %v934_v54 = vpop.f32.mrb[37].mxu0  ;;  %10550 = vmatprep.subr.bf16.mxu0 %v10549_v38  ;;  %v13208_v51 = vpop.eup %13207 }
 0x4f5   :  { %v935_v31 = vadd.f32 %v934_v54, %v18622_v17  ;;  %10552 = vmatpush1.bf16.msra.mxu0 %v10551_v50  ;;  %v13210_v13 = vpop.eup %13209 }
 0x4f6   :  { %13219 = vtanh.f32 %v933_v57 }
 0x4f7   :  { %13221 = vtanh.f32 %v935_v31  ;;  %v938_v55 = vpop.f32.mrb[38].mxu0 }
 0x4f8   :  { %v13212_v59 = vpop.eup %13211  ;;  %v939_v53 = vadd.f32 %v938_v55, %v18623_v47  ;;  %v940_v6 = vpop.f32.mrb[39].mxu0 }
 0x4f9   :  { %v13214_v12 = vpop.eup %13213  ;;  %v941_v63 = vadd.f32 %v940_v6, %v18623_v47  ;;  %v10555_v14 = vpack.c.bf16 %v13212_v59, %v13208_v51  ;;  %v18625_v59 = vld [vmem:[#allocation11_spill] sm:$0xff]  ;;  %v18627_v6 = vld [vmem:[#allocation13_spill] sm:$0xff] }
 0x4fa   :  { %v10553_v45 = vpack.c.bf16 %v13214_v12, %v13210_v13  ;;  %13223 = vtanh.f32 %v939_v53  ;;  %v18626_v53 = vld [vmem:[#allocation12_spill] sm:$0xff]  ;;  %v18628_v12 = vld [vmem:[#allocation14_spill] sm:$0xff] }
 0x4fb   :  { %v944_v34 = vpop.f32.mrb[40].mxu0  ;;  %13225 = vtanh.f32 %v941_v63  ;;  %v18629_v63 = vld [vmem:[#allocation15_spill] sm:$0xff] }
 0x4fc   :  { %v945_v0 = vadd.f32 %v944_v34, %v18624_v44  ;;  %v946_v40 = vpop.f32.mrb[41].mxu0  ;;  %10554 = vmatprep.subr.bf16.mxu0 %v10553_v45  ;;  %v13216_v56 = vpop.eup %13215  ;;  %v18631_v45 = vld [vmem:[#allocation17_spill] sm:$0xff]  ;;  %v18632_v34 = vld [vmem:[#allocation18_spill] sm:$0xff] }
 0x4fd   :  { %v947_v11 = vadd.f32 %v946_v40, %v18624_v44  ;;  %10556 = vmatpush1.bf16.msra.mxu0 %v10555_v14  ;;  %v13218_v2 = vpop.eup %13217  ;;  %v18630_v14 = vld [vmem:[#allocation16_spill] sm:$0xff] }
 0x4fe   :  { %13227 = vtanh.f32 %v945_v0  ;;  %v18633_v0 = vld [vmem:[#allocation19_spill] sm:$0xff]  ;;  %v18634_v40 = vld [vmem:[#allocation20_spill] sm:$0xff] }
 0x4ff   :  { %13229 = vtanh.f32 %v947_v11  ;;  %v965_v11 = vmul.f32 %v14861_v41, %v14722_v1 }
 0x500   :  { %v13220_v48 = vpop.eup %13219 }
 0x501   :  { %v13222_v50 = vpop.eup %13221  ;;  %v10559_v38 = vpack.c.bf16 %v13220_v48, %v13216_v56  ;;  %v966_v56 = vmul.f32 %v14863_v46, %v14722_v1 }
 0x502   :  { %v10557_v36 = vpack.c.bf16 %v13222_v50, %v13218_v2  ;;  %v967_v2 = vadd.f32 %v965_v11, %v14830_v19  ;;  %v14976_v19 = vld [vmem:[%s18320_s3 + $0x38] sm:$0xff] }
 0x503   :  { %v968_v50 = vadd.f32 %v966_v56, %v14827_v3  ;;  %v14944_v3 = vld [vmem:[%s18320_s3 + $0x18] sm:$0xff]  ;;  %18639 = vst [vmem:[#allocation27_spill] sm:$0xff] %v14976_v19 }
 0x504   :  { %10558 = vmatprep.subr.bf16.mxu0 %v10557_v36  ;;  %v13224_v57 = vpop.eup %13223  ;;  %18635 = vst [vmem:[#allocation8_spill] sm:$0xff] %v14944_v3 }
 0x505   :  { %10560 = vmatpush1.bf16.msra.mxu0 %v10559_v38  ;;  %v13226_v54 = vpop.eup %13225 }
 0x508   :  { %v13228_v31 = vpop.eup %13227 }
 0x509   :  { %v13230_v51 = vpop.eup %13229  ;;  %v10563_v13 = vpack.c.bf16 %v13228_v31, %v13224_v57 }
 0x50a   :  { %v10561_v55 = vpack.c.bf16 %v13230_v51, %v13226_v54 }
 0x50c   :  { %10562 = vmatprep.subr.bf16.mxu0 %v10561_v55 }
 0x50d   :  { %10564 = vmatpush1.bf16.msra.mxu0 %v10563_v13 }
 0x50e   :  { %10566 = vmatprep.subr.bf16.mxu0 %v14437_v5 }
 0x510   :  { %10036 = vmatmul.mubr.msk.f32.vlgmr.msra.gmra.mrb[42].mxu0 %vm402_vm1, %v14685_v62 }
 0x511   :  { %10568 = vmatpush1.bf16.msra.mxu0 %v14439_v9 }
 0x512   :  { %10570 = vmatprep.subr.bf16.mxu0 %v14441_v10 }
 0x515   :  { %10572 = vmatpush1.bf16.msra.mxu0 %v14445_v15 }
 0x516   :  { %10574 = vmatprep.subr.bf16.mxu0 %v14448_v16 }
 0x519   :  { %10576 = vmatpush1.bf16.msra.mxu0 %v14451_v21 }
 0x51a   :  { %10578 = vmatprep.subr.bf16.mxu0 %v14454_v22 }
 0x51d   :  { %10580 = vmatpush1.bf16.msra.mxu0 %v14457_v27 }
 0x51e   :  { %10582 = vmatprep.subr.bf16.mxu0 %v14460_v28 }
 0x521   :  { %10584 = vmatpush1.bf16.msra.mxu0 %v14463_v33 }
 0x522   :  { %10586 = vmatprep.subr.bf16.mxu0 %v14466_v35 }
 0x525   :  { %10588 = vmatpush1.bf16.msra.mxu0 %v14489_v42 }
 0x526   :  { %10590 = vmatprep.subr.bf16.mxu0 %v14494_v43 }
 0x529   :  { %10592 = vmatpush1.bf16.msra.mxu0 %v14503_v49 }
 0x52a   :  { %10594 = vmatprep.subr.bf16.mxu0 %v14511_v52 }
 0x52d   :  { %10596 = vmatpush1.bf16.msra.mxu0 %v14529_v60 }
 0x52e   :  { %10598 = vmatprep.subr.bf16.mxu0 %v14534_v61 }
 0x531   :  { %10600 = vmatpush1.bf16.msra.mxu0 %v14549_v7 }
 0x532   :  { %10602 = vmatprep.subr.bf16.mxu0 %v14554_v8 }
 0x535   :  { %10604 = vmatpush1.bf16.msra.mxu0 %v14569_v20 }
 0x536   :  { %10606 = vmatprep.subr.bf16.mxu0 %v14574_v23 }
 0x539   :  { %10608 = vmatpush1.bf16.msra.mxu0 %v14584_v32 }
 0x53a   :  { %10610 = vmatprep.subr.bf16.mxu0 %v18625_v59 }
 0x53d   :  { %10612 = vmatpush1.bf16.msra.mxu0 %v18626_v53 }
 0x53e   :  { %10614 = vmatprep.subr.bf16.mxu0 %v18627_v6 }
 0x541   :  { %10616 = vmatpush1.bf16.msra.mxu0 %v18628_v12 }
 0x542   :  { %10618 = vmatprep.subr.bf16.mxu0 %v18629_v63 }
 0x545   :  { %10620 = vmatpush1.bf16.msra.mxu0 %v18630_v14 }
 0x546   :  { %10622 = vmatprep.subr.bf16.mxu0 %v18631_v45 }
 0x549   :  { %10624 = vmatpush1.bf16.msra.mxu0 %v18632_v34 }
 0x54a   :  { %10626 = vmatprep.subr.bf16.mxu0 %v18633_v0 }
 0x54d   :  { %10628 = vmatpush1.bf16.msra.mxu0 %v18634_v40 }
 0x5e3   :  { %v1035_v48 = vpop.f32.mrb[42].mxu0 }
 0x5e4   :  { %v1040_v38 = vadd.f32 %v1035_v48, %v967_v2  ;;  %v1037_v36 = vpop.f32.mrb[43].mxu0 }
 0x5e5   :  { %v1041_v57 = vadd.f32 %v1037_v36, %v968_v50 }
 0x5e6   :  { %v14925_v31 = vadd.f32 %v1040_v38, %v14730_v18 }
 0x5e7   :  { %v14922_v54 = vadd.f32 %v1041_v57, %v14730_v18 }
 0x5e9   :  { %1108 = vmatprep.mubr.f32.mxu0 %v14922_v54  ;;  %1115 = vmatprep.subr.mxu1 %v14922_v54 }
 0x5ea   :  { %1109 = vmatmul.mubr.f32.vlgmr.msra.gmra.mrb[44].mxu0 %v14925_v31  ;;  %1116 = vmatpush1.msra.mxu1 %v14925_v31 }
 0x5eb   :  { %10037 = vmatmul.mubr.msk.f32.vlgmr.msra.gmra.mrb[16].mxu1 %vm239_vm0, %v14625_v24  ;;  %1458 = vmatprep.mubr.f32.mxu0 %v18615_v37  ;;  %v14952_v24 = vld [vmem:[%s18320_s3 + $0x20] sm:$0xff] }
 0x5ec   :  { %1185 = vmatprep.mubr.f32.mxu1 %v18615_v37  ;;  %18636 = vst [vmem:[#allocation9_spill] sm:$0xff] %v14952_v24 }
 0x5ef   :  { %10038 = vmatmul.mubr.msk.f32.gmra.mrb[18].mxu1 %vm239_vm0, %v14633_v25  ;;  %v14960_v25 = vld [vmem:[%s18320_s3 + $0x28] sm:$0xff] }
 0x5f0   :  { %1191 = vmatprep.mubr.f32.mxu1 %v18615_v37  ;;  %18637 = vst [vmem:[#allocation10_spill] sm:$0xff] %v14960_v25 }
 0x5f3   :  { %10039 = vmatmul.mubr.msk.f32.gmra.mrb[20].mxu1 %vm239_vm0, %v14641_v26  ;;  %v14968_v26 = vld [vmem:[%s18320_s3 + $0x30] sm:$0xff] }
 0x5f4   :  { %1197 = vmatprep.mubr.f32.mxu1 %v18615_v37  ;;  %18638 = vst [vmem:[#allocation25_spill] sm:$0xff] %v14968_v26 }
 0x5f7   :  { %10040 = vmatmul.mubr.msk.f32.gmra.mrb[22].mxu1 %vm239_vm0, %v14944_v3 }
 0x5f8   :  { %1203 = vmatprep.mubr.f32.mxu1 %v18615_v37 }
 0x5fb   :  { %10041 = vmatmul.mubr.msk.f32.gmra.mrb[24].mxu1 %vm239_vm0, %v14952_v24 }
 0x5fc   :  { %1209 = vmatprep.mubr.f32.mxu1 %v18615_v37 }
 0x5ff   :  { %10042 = vmatmul.mubr.msk.f32.gmra.mrb[26].mxu1 %vm239_vm0, %v14960_v25 }
 0x600   :  { %1215 = vmatprep.mubr.f32.mxu1 %v18615_v37 }
 0x603   :  { %10043 = vmatmul.mubr.msk.f32.gmra.mrb[28].mxu1 %vm239_vm0, %v14968_v26 }
 0x604   :  { %1221 = vmatprep.mubr.f32.mxu1 %v18615_v37 }
 0x607   :  { %10044 = vmatmul.mubr.msk.f32.gmra.mrb[30].mxu1 %vm239_vm0, %v14976_v19 }
 0x608   :  { %1312 = vmatprep.mubr.f32.mxu1 %v18615_v37 }
 0x6bd   :  { %v14981_v41 = vpop.f32.mrb[44].mxu0 }
 0x6be   :  { %v14983_v46 = vpop.f32.mrb[45].mxu0  ;;  %v1181_v51 = vpop.f32.mrb[16].mxu1 }
 0x6bf   :  { %v1182_v13 = vadd.f32 %v1181_v51, %v14646_v29  ;;  %v1183_v55 = vpop.f32.mrb[17].mxu1 }
 0x6c0   :  { %v1184_v11 = vadd.f32 %v1183_v55, %v14646_v29 }
 0x6c1   :  { %13231 = vtanh.f32 %v1182_v13 }
 0x6c2   :  { %v1187_v56 = vpop.f32.mrb[18].mxu1  ;;  %13233 = vtanh.f32 %v1184_v11 }
 0x6c3   :  { %v1188_v2 = vadd.f32 %v1187_v56, %v18619_v4  ;;  %v1189_v48 = vpop.f32.mrb[19].mxu1 }
 0x6c4   :  { %v1190_v50 = vadd.f32 %v1189_v48, %v18619_v4 }
 0x6c5   :  { %13235 = vtanh.f32 %v1188_v2 }
 0x6c6   :  { %13237 = vtanh.f32 %v1190_v50  ;;  %v1193_v38 = vpop.f32.mrb[20].mxu1 }
 0x6c7   :  { %v1194_v36 = vadd.f32 %v1193_v38, %v14648_v30  ;;  %v1195_v57 = vpop.f32.mrb[21].mxu1 }
 0x6c8   :  { %v1196_v19 = vadd.f32 %v1195_v57, %v14648_v30 }
 0x6c9   :  { %13239 = vtanh.f32 %v1194_v36 }
 0x6ca   :  { %v1199_v51 = vpop.f32.mrb[22].mxu1  ;;  %13241 = vtanh.f32 %v1196_v19 }
 0x6cb   :  { %v1200_v55 = vadd.f32 %v1199_v51, %v18620_v39  ;;  %v1201_v29 = vpop.f32.mrb[23].mxu1  ;;  %v13232_v56 = vpop.eup %13231 }
 0x6cc   :  { %v1202_v13 = vadd.f32 %v1201_v29, %v18620_v39  ;;  %v13234_v11 = vpop.eup %13233 }
 0x6cd   :  { %13243 = vtanh.f32 %v1200_v55 }
 0x6ce   :  { %13245 = vtanh.f32 %v1202_v13  ;;  %v1205_v2 = vpop.f32.mrb[24].mxu1 }
 0x6cf   :  { %v13236_v48 = vpop.eup %13235  ;;  %v1206_v50 = vadd.f32 %v1205_v2, %v18621_v58  ;;  %v1207_v38 = vpop.f32.mrb[25].mxu1 }
 0x6d0   :  { %v13238_v4 = vpop.eup %13237  ;;  %v1208_v57 = vadd.f32 %v1207_v38, %v18621_v58  ;;  %v10631_v30 = vpack.c.bf16 %v13236_v48, %v13232_v56 }
 0x6d1   :  { %v10629_v36 = vpack.c.bf16 %v13238_v4, %v13234_v11  ;;  %13247 = vtanh.f32 %v1206_v50 }
 0x6d2   :  { %v1211_v26 = vpop.f32.mrb[26].mxu1  ;;  %13249 = vtanh.f32 %v1208_v57 }
 0x6d3   :  { %v1212_v19 = vadd.f32 %v1211_v26, %v18622_v17  ;;  %v1213_v51 = vpop.f32.mrb[27].mxu1  ;;  %10630 = vmatprep.subr.bf16.mxu1 %v10629_v36  ;;  %v13240_v55 = vpop.eup %13239 }
 0x6d4   :  { %v1214_v29 = vadd.f32 %v1213_v51, %v18622_v17  ;;  %10632 = vmatpush1.bf16.msra.mxu1 %v10631_v30  ;;  %v13242_v13 = vpop.eup %13241 }
 0x6d5   :  { %13251 = vtanh.f32 %v1212_v19 }
 0x6d6   :  { %13253 = vtanh.f32 %v1214_v29  ;;  %v1217_v2 = vpop.f32.mrb[28].mxu1 }
 0x6d7   :  { %v13244_v39 = vpop.eup %13243  ;;  %v1218_v38 = vadd.f32 %v1217_v2, %v18623_v47  ;;  %v1219_v56 = vpop.f32.mrb[29].mxu1 }
 0x6d8   :  { %v13246_v4 = vpop.eup %13245  ;;  %v1220_v11 = vadd.f32 %v1219_v56, %v18623_v47  ;;  %v10635_v48 = vpack.c.bf16 %v13244_v39, %v13240_v55 }
 0x6d9   :  { %v10633_v26 = vpack.c.bf16 %v13246_v4, %v13242_v13  ;;  %13255 = vtanh.f32 %v1218_v38 }
 0x6da   :  { %v1223_v50 = vpop.f32.mrb[30].mxu1  ;;  %13257 = vtanh.f32 %v1220_v11 }
 0x6db   :  { %v1224_v57 = vadd.f32 %v1223_v50, %v18624_v44  ;;  %v1225_v36 = vpop.f32.mrb[31].mxu1  ;;  %10634 = vmatprep.subr.bf16.mxu1 %v10633_v26  ;;  %v13248_v19 = vpop.eup %13247 }
 0x6dc   :  { %v1226_v30 = vadd.f32 %v1225_v36, %v18624_v44  ;;  %10636 = vmatpush1.bf16.msra.mxu1 %v10635_v48  ;;  %v13250_v51 = vpop.eup %13249 }
 0x6dd   :  { %13259 = vtanh.f32 %v1224_v57 }
 0x6de   :  { %13261 = vtanh.f32 %v1226_v30 }
 0x6df   :  { %v13252_v29 = vpop.eup %13251 }
 0x6e0   :  { %v13254_v2 = vpop.eup %13253  ;;  %v10639_v17 = vpack.c.bf16 %v13252_v29, %v13248_v19  ;;  %v18641_v29 = vld [vmem:[#allocation27_spill] sm:$0xff] }
 0x6e1   :  { %v10637_v56 = vpack.c.bf16 %v13254_v2, %v13250_v51 }
 0x6e3   :  { %10638 = vmatprep.subr.bf16.mxu1 %v10637_v56  ;;  %v13256_v39 = vpop.eup %13255 }
 0x6e4   :  { %10640 = vmatpush1.bf16.msra.mxu1 %v10639_v17  ;;  %v13258_v55 = vpop.eup %13257  ;;  %v1245_v17 = vmul.f32 %v14983_v46, %v14722_v1  ;;  %v18640_v46 = vld [vmem:[#allocation25_spill] sm:$0xff] }
 0x6e6   :  { %v1247_v50 = vadd.f32 %v1245_v17, %v14922_v54  ;;  %v15054_v54 = vld [vmem:[%s18320_s3] sm:$0xff] }
 0x6e7   :  { %v13260_v13 = vpop.eup %13259 }
 0x6e8   :  { %v13262_v38 = vpop.eup %13261  ;;  %v10643_v4 = vpack.c.bf16 %v13260_v13, %v13256_v39 }
 0x6e9   :  { %v10641_v26 = vpack.c.bf16 %v13262_v38, %v13258_v55  ;;  %v18642_v55 = vld [vmem:[#allocation21_spill] sm:$0xff] }
 0x6eb   :  { %10642 = vmatprep.subr.bf16.mxu1 %v10641_v26 }
 0x6ec   :  { %10644 = vmatpush1.bf16.msra.mxu1 %v10643_v4 }
 0x6ed   :  { %10646 = vmatprep.subr.bf16.mxu1 %v14437_v5 }
 0x6ef   :  { %10045 = vmatmul.mubr.msk.f32.vlgmr.msra.gmra.mrb[32].mxu1 %vm402_vm1, %v14685_v62  ;;  %v1244_v62 = vmul.f32 %v14981_v41, %v14722_v1  ;;  %v15071_v41 = vld [vmem:[%s18320_s3 + $0x10] sm:$0xff] }
 0x6f0   :  { %10648 = vmatpush1.bf16.msra.mxu1 %v14439_v9 }
 0x6f1   :  { %10650 = vmatprep.subr.bf16.mxu1 %v14441_v10  ;;  %v1246_v11 = vadd.f32 %v1244_v62, %v14925_v31  ;;  %v15063_v31 = vld [vmem:[%s18320_s3 + $0x8] sm:$0xff]  ;;  %v18643_v62 = vld [vmem:[#allocation23_spill] sm:$0xff] }
 0x6f4   :  { %10652 = vmatpush1.bf16.msra.mxu1 %v14445_v15 }
 0x6f5   :  { %10654 = vmatprep.subr.bf16.mxu1 %v14448_v16 }
 0x6f8   :  { %10656 = vmatpush1.bf16.msra.mxu1 %v14451_v21 }
 0x6f9   :  { %10658 = vmatprep.subr.bf16.mxu1 %v14454_v22 }
 0x6fc   :  { %10660 = vmatpush1.bf16.msra.mxu1 %v14457_v27 }
 0x6fd   :  { %10662 = vmatprep.subr.bf16.mxu1 %v14460_v28 }
 0x700   :  { %10664 = vmatpush1.bf16.msra.mxu1 %v14463_v33 }
 0x701   :  { %10666 = vmatprep.subr.bf16.mxu1 %v14466_v35 }
 0x704   :  { %10668 = vmatpush1.bf16.msra.mxu1 %v14489_v42 }
 0x705   :  { %10670 = vmatprep.subr.bf16.mxu1 %v14494_v43 }
 0x708   :  { %10672 = vmatpush1.bf16.msra.mxu1 %v14503_v49 }
 0x709   :  { %10674 = vmatprep.subr.bf16.mxu1 %v14511_v52 }
 0x70c   :  { %10676 = vmatpush1.bf16.msra.mxu1 %v14529_v60 }
 0x70d   :  { %10678 = vmatprep.subr.bf16.mxu1 %v14534_v61 }
 0x710   :  { %10680 = vmatpush1.bf16.msra.mxu1 %v14549_v7 }
 0x711   :  { %10682 = vmatprep.subr.bf16.mxu1 %v14554_v8 }
 0x714   :  { %10684 = vmatpush1.bf16.msra.mxu1 %v14569_v20 }
 0x715   :  { %10686 = vmatprep.subr.bf16.mxu1 %v14574_v23 }
 0x718   :  { %10688 = vmatpush1.bf16.msra.mxu1 %v14584_v32 }
 0x719   :  { %10690 = vmatprep.subr.bf16.mxu1 %v18625_v59 }
 0x71c   :  { %10692 = vmatpush1.bf16.msra.mxu1 %v18626_v53 }
 0x71d   :  { %10694 = vmatprep.subr.bf16.mxu1 %v18627_v6 }
 0x720   :  { %10696 = vmatpush1.bf16.msra.mxu1 %v18628_v12 }
 0x721   :  { %10698 = vmatprep.subr.bf16.mxu1 %v18629_v63 }
 0x724   :  { %10700 = vmatpush1.bf16.msra.mxu1 %v18630_v14 }
 0x725   :  { %10702 = vmatprep.subr.bf16.mxu1 %v18631_v45 }
 0x728   :  { %10704 = vmatpush1.bf16.msra.mxu1 %v18632_v34 }
 0x729   :  { %10706 = vmatprep.subr.bf16.mxu1 %v18633_v0 }
 0x72c   :  { %10708 = vmatpush1.bf16.msra.mxu1 %v18634_v40 }
 0x7c2   :  { %v1314_v48 = vpop.f32.mrb[32].mxu1 }
 0x7c3   :  { %v1319_v57 = vadd.f32 %v1314_v48, %v1246_v11  ;;  %v1316_v36 = vpop.f32.mrb[33].mxu1 }
 0x7c4   :  { %v1320_v30 = vadd.f32 %v1316_v36, %v1247_v50 }
 0x7c5   :  { %v15045_v51 = vadd.f32 %v1319_v57, %v14730_v18  ;;  %v18644_v57 = vld [vmem:[#allocation22_spill] sm:$0xff] }
 0x7c6   :  { %v15042_v19 = vadd.f32 %v1320_v30, %v14730_v18 }
 0x7c8   :  { %1387 = vmatprep.mubr.f32.mxu1 %v15042_v19  ;;  %1394 = vmatprep.subr.mxu0 %v15042_v19 }
 0x7c9   :  { %1388 = vmatmul.mubr.f32.vlgmr.msra.gmra.mrb[34].mxu1 %v15045_v51  ;;  %1395 = vmatpush1.msra.mxu0 %v15045_v51 }
 0x7ca   :  { %10046 = vmatmul.mubr.msk.f32.vlgmr.msra.gmra.mrb[46].mxu0 %vm239_vm0, %v15054_v54  ;;  %1740 = vmatprep.mubr.f32.mxu1 %v18615_v37 }
 0x7cb   :  { %1464 = vmatprep.mubr.f32.mxu0 %v18615_v37 }
 0x7ce   :  { %10047 = vmatmul.mubr.msk.f32.gmra.mrb[48].mxu0 %vm239_vm0, %v15063_v31 }
 0x7cf   :  { %1470 = vmatprep.mubr.f32.mxu0 %v18615_v37 }
 0x7d2   :  { %10048 = vmatmul.mubr.msk.f32.gmra.mrb[50].mxu0 %vm239_vm0, %v15071_v41 }
 0x7d3   :  { %1476 = vmatprep.mubr.f32.mxu0 %v18615_v37 }
 0x7d6   :  { %10049 = vmatmul.mubr.msk.f32.gmra.mrb[52].mxu0 %vm239_vm0, %v14944_v3 }
 0x7d7   :  { %1482 = vmatprep.mubr.f32.mxu0 %v18615_v37 }
 0x7da   :  { %10050 = vmatmul.mubr.msk.f32.gmra.mrb[54].mxu0 %vm239_vm0, %v14952_v24 }
 0x7db   :  { %1488 = vmatprep.mubr.f32.mxu0 %v18615_v37 }
 0x7de   :  { %10051 = vmatmul.mubr.msk.f32.gmra.mrb[56].mxu0 %vm239_vm0, %v14960_v25 }
 0x7df   :  { %1494 = vmatprep.mubr.f32.mxu0 %v18615_v37 }
 0x7e2   :  { %10052 = vmatmul.mubr.msk.f32.gmra.mrb[58].mxu0 %vm239_vm0, %v18640_v46  ;;  %v18645_v46 = vld [vmem:[#allocation24_spill] sm:$0xff] }
 0x7e3   :  { %1500 = vmatprep.mubr.f32.mxu0 %v18615_v37 }
 0x7e6   :  { %10053 = vmatmul.mubr.msk.f32.gmra.mrb[60].mxu0 %vm239_vm0, %v18641_v29 }
 0x7e7   :  { %1591 = vmatprep.mubr.f32.mxu0 %v18615_v37 }
 0x89c   :  { %v15091_v2 = vpop.f32.mrb[34].mxu1 }
 0x89d   :  { %v15093_v56 = vpop.f32.mrb[35].mxu1  ;;  %v1460_v39 = vpop.f32.mrb[46].mxu0 }
 0x89e   :  { %v1461_v13 = vadd.f32 %v1460_v39, %v18642_v55  ;;  %v1462_v38 = vpop.f32.mrb[47].mxu0 }
 0x89f   :  { %v1463_v4 = vadd.f32 %v1462_v38, %v18642_v55 }
 0x8a0   :  { %13263 = vtanh.f32 %v1461_v13 }
 0x8a1   :  { %v1466_v26 = vpop.f32.mrb[48].mxu0  ;;  %13265 = vtanh.f32 %v1463_v4 }
 0x8a2   :  { %v1467_v17 = vadd.f32 %v1466_v26, %v18643_v62  ;;  %v1468_v11 = vpop.f32.mrb[49].mxu0 }
 0x8a3   :  { %v1469_v48 = vadd.f32 %v1468_v11, %v18643_v62 }
 0x8a4   :  { %13267 = vtanh.f32 %v1467_v17 }
 0x8a5   :  { %13269 = vtanh.f32 %v1469_v48  ;;  %v1472_v50 = vpop.f32.mrb[50].mxu0 }
 0x8a6   :  { %v1473_v36 = vadd.f32 %v1472_v50, %v18644_v57  ;;  %v1474_v30 = vpop.f32.mrb[51].mxu0 }
 0x8a7   :  { %v1475_v29 = vadd.f32 %v1474_v30, %v18644_v57 }
 0x8a8   :  { %13271 = vtanh.f32 %v1473_v36 }
 0x8a9   :  { %v1478_v39 = vpop.f32.mrb[52].mxu0  ;;  %13273 = vtanh.f32 %v1475_v29 }
 0x8aa   :  { %v1479_v38 = vadd.f32 %v1478_v39, %v18645_v46  ;;  %v1480_v55 = vpop.f32.mrb[53].mxu0  ;;  %v13264_v26 = vpop.eup %13263  ;;  %v18646_v39 = vld [vmem:[#allocation26_spill] sm:$0xff] }
 0x8ab   :  { %v1481_v13 = vadd.f32 %v1480_v55, %v18645_v46  ;;  %v13266_v4 = vpop.eup %13265 }
 0x8ac   :  { %13275 = vtanh.f32 %v1479_v38 }
 0x8ad   :  { %13277 = vtanh.f32 %v1481_v13  ;;  %v1484_v17 = vpop.f32.mrb[54].mxu0 }
 0x8ae   :  { %v13268_v11 = vpop.eup %13267  ;;  %v1485_v48 = vadd.f32 %v1484_v17, %v18621_v58  ;;  %v1486_v50 = vpop.f32.mrb[55].mxu0 }
 0x8af   :  { %v13270_v62 = vpop.eup %13269  ;;  %v1487_v30 = vadd.f32 %v1486_v50, %v18621_v58  ;;  %v10711_v57 = vpack.c.bf16 %v13268_v11, %v13264_v26 }
 0x8b0   :  { %v10709_v36 = vpack.c.bf16 %v13270_v62, %v13266_v4  ;;  %13279 = vtanh.f32 %v1485_v48 }
 0x8b1   :  { %v1490_v25 = vpop.f32.mrb[56].mxu0  ;;  %13281 = vtanh.f32 %v1487_v30 }
 0x8b2   :  { %v1491_v29 = vadd.f32 %v1490_v25, %v18646_v39  ;;  %v1492_v24 = vpop.f32.mrb[57].mxu0  ;;  %10710 = vmatprep.subr.bf16.mxu0 %v10709_v36  ;;  %v13272_v38 = vpop.eup %13271 }
 0x8b3   :  { %v1493_v55 = vadd.f32 %v1492_v24, %v18646_v39  ;;  %10712 = vmatpush1.bf16.msra.mxu0 %v10711_v57  ;;  %v13274_v13 = vpop.eup %13273 }
 0x8b4   :  { %13283 = vtanh.f32 %v1491_v29 }
 0x8b5   :  { %13285 = vtanh.f32 %v1493_v55  ;;  %v1496_v17 = vpop.f32.mrb[58].mxu0 }
 0x8b6   :  { %v13276_v46 = vpop.eup %13275  ;;  %v1497_v50 = vadd.f32 %v1496_v17, %v18623_v47  ;;  %v1498_v26 = vpop.f32.mrb[59].mxu0 }
 0x8b7   :  { %v13278_v62 = vpop.eup %13277  ;;  %v1499_v4 = vadd.f32 %v1498_v26, %v18623_v47  ;;  %v10715_v11 = vpack.c.bf16 %v13276_v46, %v13272_v38 }
 0x8b8   :  { %v10713_v25 = vpack.c.bf16 %v13278_v62, %v13274_v13  ;;  %13287 = vtanh.f32 %v1497_v50 }
 0x8b9   :  { %v1502_v48 = vpop.f32.mrb[60].mxu0  ;;  %13289 = vtanh.f32 %v1499_v4  ;;  %v15115_v4 = vld [vmem:[%s18322_s5] sm:$0xff] }
 0x8ba   :  { %v1503_v30 = vadd.f32 %v1502_v48, %v18624_v44  ;;  %v1504_v24 = vpop.f32.mrb[61].mxu0  ;;  %10714 = vmatprep.subr.bf16.mxu0 %v10713_v25  ;;  %v13280_v36 = vpop.eup %13279 }
 0x8bb   :  { %v1505_v57 = vadd.f32 %v1504_v24, %v18624_v44  ;;  %10716 = vmatpush1.bf16.msra.mxu0 %v10715_v11  ;;  %v13282_v29 = vpop.eup %13281  ;;  %v1524_v11 = vmul.f32 %v15093_v56, %v14722_v1  ;;  %v18650_v56 = vld [vmem:[#allocation27_spill] sm:$0xff] }
 0x8bc   :  { %13291 = vtanh.f32 %v1503_v30 }
 0x8bd   :  { %13293 = vtanh.f32 %v1505_v57  ;;  %v1526_v24 = vadd.f32 %v1524_v11, %v15042_v19  ;;  %v18647_v19 = vld [vmem:[#allocation9_spill] sm:$0xff]  ;;  %v18652_v11 = vld [vmem:[#allocation23_spill] sm:$0xff] }
 0x8be   :  { %v13284_v55 = vpop.eup %13283 }
 0x8bf   :  { %v13286_v17 = vpop.eup %13285  ;;  %v10719_v39 = vpack.c.bf16 %v13284_v55, %v13280_v36 }
 0x8c0   :  { %v10717_v26 = vpack.c.bf16 %v13286_v17, %v13282_v29 }
 0x8c2   :  { %10718 = vmatprep.subr.bf16.mxu0 %v10717_v26  ;;  %v13288_v46 = vpop.eup %13287 }
 0x8c3   :  { %10720 = vmatpush1.bf16.msra.mxu0 %v10719_v39  ;;  %v13290_v38 = vpop.eup %13289  ;;  %v1523_v39 = vmul.f32 %v15091_v2, %v14722_v1  ;;  %v18649_v2 = vld [vmem:[#allocation25_spill] sm:$0xff] }
 0x8c5   :  { %v1525_v48 = vadd.f32 %v1523_v39, %v15045_v51  ;;  %v18648_v51 = vld [vmem:[#allocation10_spill] sm:$0xff] }
 0x8c6   :  { %v13292_v13 = vpop.eup %13291 }
 0x8c7   :  { %v13294_v50 = vpop.eup %13293  ;;  %v10723_v62 = vpack.c.bf16 %v13292_v13, %v13288_v46  ;;  %v18651_v13 = vld [vmem:[#allocation21_spill] sm:$0xff] }
 0x8c8   :  { %v10721_v25 = vpack.c.bf16 %v13294_v50, %v13290_v38 }
 0x8ca   :  { %10722 = vmatprep.subr.bf16.mxu0 %v10721_v25 }
 0x8cb   :  { %10724 = vmatpush1.bf16.msra.mxu0 %v10723_v62 }
 0x8cc   :  { %10726 = vmatprep.subr.bf16.mxu0 %v14437_v5 }
 0x8ce   :  { %10054 = vmatmul.mubr.msk.f32.vlgmr.msra.gmra.mrb[62].mxu0 %vm402_vm1, %v15115_v4 }
 0x8cf   :  { %10728 = vmatpush1.bf16.msra.mxu0 %v14439_v9 }
 0x8d0   :  { %10730 = vmatprep.subr.bf16.mxu0 %v14441_v10 }
 0x8d3   :  { %10732 = vmatpush1.bf16.msra.mxu0 %v14445_v15 }
 0x8d4   :  { %10734 = vmatprep.subr.bf16.mxu0 %v14448_v16 }
 0x8d7   :  { %10736 = vmatpush1.bf16.msra.mxu0 %v14451_v21 }
 0x8d8   :  { %10738 = vmatprep.subr.bf16.mxu0 %v14454_v22 }
 0x8db   :  { %10740 = vmatpush1.bf16.msra.mxu0 %v14457_v27 }
 0x8dc   :  { %10742 = vmatprep.subr.bf16.mxu0 %v14460_v28 }
 0x8df   :  { %10744 = vmatpush1.bf16.msra.mxu0 %v14463_v33 }
 0x8e0   :  { %10746 = vmatprep.subr.bf16.mxu0 %v14466_v35 }
 0x8e3   :  { %10748 = vmatpush1.bf16.msra.mxu0 %v14489_v42 }
 0x8e4   :  { %10750 = vmatprep.subr.bf16.mxu0 %v14494_v43 }
 0x8e7   :  { %10752 = vmatpush1.bf16.msra.mxu0 %v14503_v49 }
 0x8e8   :  { %10754 = vmatprep.subr.bf16.mxu0 %v14511_v52 }
 0x8eb   :  { %10756 = vmatpush1.bf16.msra.mxu0 %v14529_v60 }
 0x8ec   :  { %10758 = vmatprep.subr.bf16.mxu0 %v14534_v61 }
 0x8ef   :  { %10760 = vmatpush1.bf16.msra.mxu0 %v14549_v7 }
 0x8f0   :  { %10762 = vmatprep.subr.bf16.mxu0 %v14554_v8 }
 0x8f3   :  { %10764 = vmatpush1.bf16.msra.mxu0 %v14569_v20 }
 0x8f4   :  { %10766 = vmatprep.subr.bf16.mxu0 %v14574_v23 }
 0x8f7   :  { %10768 = vmatpush1.bf16.msra.mxu0 %v14584_v32 }
 0x8f8   :  { %10770 = vmatprep.subr.bf16.mxu0 %v18625_v59 }
 0x8fb   :  { %10772 = vmatpush1.bf16.msra.mxu0 %v18626_v53 }
 0x8fc   :  { %10774 = vmatprep.subr.bf16.mxu0 %v18627_v6 }
 0x8ff   :  { %10776 = vmatpush1.bf16.msra.mxu0 %v18628_v12 }
 0x900   :  { %10778 = vmatprep.subr.bf16.mxu0 %v18629_v63 }
 0x903   :  { %10780 = vmatpush1.bf16.msra.mxu0 %v18630_v14 }
 0x904   :  { %10782 = vmatprep.subr.bf16.mxu0 %v18631_v45 }
 0x907   :  { %10784 = vmatpush1.bf16.msra.mxu0 %v18632_v34 }
 0x908   :  { %10786 = vmatprep.subr.bf16.mxu0 %v18633_v0 }
 0x90b   :  { %10788 = vmatpush1.bf16.msra.mxu0 %v18634_v40 }
 0x9a1   :  { %v1593_v30 = vpop.f32.mrb[62].mxu0 }
 0x9a2   :  { %v1598_v57 = vadd.f32 %v1593_v30, %v1525_v48  ;;  %v1595_v36 = vpop.f32.mrb[63].mxu0 }
 0x9a3   :  { %v1599_v29 = vadd.f32 %v1595_v36, %v1526_v24  ;;  %v18653_v36 = vld [vmem:[#allocation22_spill] sm:$0xff] }
 0x9a4   :  { %v15157_v55 = vadd.f32 %v1598_v57, %v14730_v18 }
 0x9a5   :  { %v15160_v17 = vadd.f32 %v1599_v29, %v14730_v18 }
 0x9a6   :  { %1603 = vst [vmem:[#allocation5 + $0x10] sm:$0xff] %v15157_v55 }
 0x9a7   :  { %1604 = vst [vmem:[#allocation5 + $0x18] sm:$0xff] %v15160_v17  ;;  %1669 = vmatprep.mubr.f32.mxu0 %v15160_v17  ;;  %1676 = vmatprep.subr.mxu1 %v15160_v17 }
 0x9a8   :  { %1670 = vmatmul.mubr.f32.vlgmr.msra.gmra.mrb[64].mxu0 %v15157_v55  ;;  %1677 = vmatpush1.msra.mxu1 %v15157_v55 }
 0x9a9   :  { %10055 = vmatmul.mubr.msk.f32.vlgmr.msra.gmra.mrb[36].mxu1 %vm239_vm0, %v15054_v54  ;;  %2019 = vmatprep.mubr.f32.mxu0 %v18615_v37 }
 0x9aa   :  { %1746 = vmatprep.mubr.f32.mxu1 %v18615_v37 }
 0x9ad   :  { %10056 = vmatmul.mubr.msk.f32.gmra.mrb[38].mxu1 %vm239_vm0, %v15063_v31 }
 0x9ae   :  { %1752 = vmatprep.mubr.f32.mxu1 %v18615_v37 }
 0x9b1   :  { %10057 = vmatmul.mubr.msk.f32.gmra.mrb[40].mxu1 %vm239_vm0, %v15071_v41 }
 0x9b2   :  { %1758 = vmatprep.mubr.f32.mxu1 %v18615_v37 }
 0x9b5   :  { %10058 = vmatmul.mubr.msk.f32.gmra.mrb[42].mxu1 %vm239_vm0, %v14944_v3 }
 0x9b6   :  { %1764 = vmatprep.mubr.f32.mxu1 %v18615_v37 }
 0x9b9   :  { %10059 = vmatmul.mubr.msk.f32.gmra.mrb[44].mxu1 %vm239_vm0, %v18647_v19 }
 0x9ba   :  { %1770 = vmatprep.mubr.f32.mxu1 %v18615_v37 }
 0x9bd   :  { %10060 = vmatmul.mubr.msk.f32.gmra.mrb[46].mxu1 %vm239_vm0, %v18648_v51  ;;  %v18654_v51 = vld [vmem:[#allocation24_spill] sm:$0xff] }
 0x9be   :  { %1776 = vmatprep.mubr.f32.mxu1 %v18615_v37 }
 0x9c1   :  { %10061 = vmatmul.mubr.msk.f32.gmra.mrb[48].mxu1 %vm239_vm0, %v18649_v2 }
 0x9c2   :  { %1782 = vmatprep.mubr.f32.mxu1 %v18615_v37 }
 0x9c5   :  { %10062 = vmatmul.mubr.msk.f32.gmra.mrb[50].mxu1 %vm239_vm0, %v18650_v56 }
 0x9c6   :  { %1873 = vmatprep.mubr.f32.mxu1 %v18615_v37 }
 0xa7b   :  { %v15193_v26 = vpop.f32.mrb[64].mxu0 }
 0xa7c   :  { %v15195_v46 = vpop.f32.mrb[65].mxu0  ;;  %v1742_v38 = vpop.f32.mrb[36].mxu1 }
 0xa7d   :  { %v1743_v50 = vadd.f32 %v1742_v38, %v18651_v13  ;;  %v1744_v62 = vpop.f32.mrb[37].mxu1 }
 0xa7e   :  { %v1745_v25 = vadd.f32 %v1744_v62, %v18651_v13 }
 0xa7f   :  { %13295 = vtanh.f32 %v1743_v50 }
 0xa80   :  { %v1748_v39 = vpop.f32.mrb[38].mxu1  ;;  %13297 = vtanh.f32 %v1745_v25 }
 0xa81   :  { %v1749_v48 = vadd.f32 %v1748_v39, %v18652_v11  ;;  %v1750_v30 = vpop.f32.mrb[39].mxu1 }
 0xa82   :  { %v1751_v24 = vadd.f32 %v1750_v30, %v18652_v11 }
 0xa83   :  { %13299 = vtanh.f32 %v1749_v48 }
 0xa84   :  { %13301 = vtanh.f32 %v1751_v24  ;;  %v1754_v57 = vpop.f32.mrb[40].mxu1 }
 0xa85   :  { %v1755_v29 = vadd.f32 %v1754_v57, %v18653_v36  ;;  %v1756_v56 = vpop.f32.mrb[41].mxu1 }
 0xa86   :  { %v1757_v2 = vadd.f32 %v1756_v56, %v18653_v36 }
 0xa87   :  { %13303 = vtanh.f32 %v1755_v29 }
 0xa88   :  { %v1760_v38 = vpop.f32.mrb[42].mxu1  ;;  %13305 = vtanh.f32 %v1757_v2 }
 0xa89   :  { %v1761_v62 = vadd.f32 %v1760_v38, %v18654_v51  ;;  %v1762_v13 = vpop.f32.mrb[43].mxu1  ;;  %v13296_v39 = vpop.eup %13295  ;;  %v18655_v38 = vld [vmem:[#allocation26_spill] sm:$0xff] }
 0xa8a   :  { %v1763_v50 = vadd.f32 %v1762_v13, %v18654_v51  ;;  %v13298_v25 = vpop.eup %13297 }
 0xa8b   :  { %13307 = vtanh.f32 %v1761_v62 }
 0xa8c   :  { %13309 = vtanh.f32 %v1763_v50  ;;  %v1766_v48 = vpop.f32.mrb[44].mxu1 }
 0xa8d   :  { %v13300_v30 = vpop.eup %13299  ;;  %v1767_v24 = vadd.f32 %v1766_v48, %v18621_v58  ;;  %v1768_v57 = vpop.f32.mrb[45].mxu1 }
 0xa8e   :  { %v13302_v11 = vpop.eup %13301  ;;  %v1769_v56 = vadd.f32 %v1768_v57, %v18621_v58  ;;  %v10791_v36 = vpack.c.bf16 %v13300_v30, %v13296_v39 }
 0xa8f   :  { %v10789_v29 = vpack.c.bf16 %v13302_v11, %v13298_v25  ;;  %13311 = vtanh.f32 %v1767_v24 }
 0xa90   :  { %v1772_v19 = vpop.f32.mrb[46].mxu1  ;;  %13313 = vtanh.f32 %v1769_v56 }
 0xa91   :  { %v1773_v2 = vadd.f32 %v1772_v19, %v18655_v38  ;;  %v1774_v3 = vpop.f32.mrb[47].mxu1  ;;  %10790 = vmatprep.subr.bf16.mxu1 %v10789_v29  ;;  %v13304_v62 = vpop.eup %13303 }
 0xa92   :  { %v1775_v13 = vadd.f32 %v1774_v3, %v18655_v38  ;;  %10792 = vmatpush1.bf16.msra.mxu1 %v10791_v36  ;;  %v13306_v50 = vpop.eup %13305 }
 0xa93   :  { %13315 = vtanh.f32 %v1773_v2 }
 0xa94   :  { %13317 = vtanh.f32 %v1775_v13  ;;  %v1778_v48 = vpop.f32.mrb[48].mxu1 }
 0xa95   :  { %v13308_v51 = vpop.eup %13307  ;;  %v1779_v57 = vadd.f32 %v1778_v48, %v18623_v47  ;;  %v1780_v39 = vpop.f32.mrb[49].mxu1 }
 0xa96   :  { %v13310_v11 = vpop.eup %13309  ;;  %v1781_v25 = vadd.f32 %v1780_v39, %v18623_v47  ;;  %v10795_v30 = vpack.c.bf16 %v13308_v51, %v13304_v62 }
 0xa97   :  { %v10793_v19 = vpack.c.bf16 %v13310_v11, %v13306_v50  ;;  %13319 = vtanh.f32 %v1779_v57 }
 0xa98   :  { %v1784_v24 = vpop.f32.mrb[50].mxu1  ;;  %13321 = vtanh.f32 %v1781_v25  ;;  %v1806_v25 = vmul.f32 %v15195_v46, %v14722_v1  ;;  %v18659_v46 = vld [vmem:[#allocation25_spill] sm:$0xff] }
 0xa99   :  { %v1785_v56 = vadd.f32 %v1784_v24, %v18624_v44  ;;  %v1786_v3 = vpop.f32.mrb[51].mxu1  ;;  %10794 = vmatprep.subr.bf16.mxu1 %v10793_v19  ;;  %v13312_v29 = vpop.eup %13311 }
 0xa9a   :  { %v1787_v36 = vadd.f32 %v1786_v3, %v18624_v44  ;;  %10796 = vmatpush1.bf16.msra.mxu1 %v10795_v30  ;;  %v13314_v2 = vpop.eup %13313 }
 0xa9b   :  { %13323 = vtanh.f32 %v1785_v56  ;;  %v1808_v56 = vadd.f32 %v1806_v25, %v15160_v17  ;;  %v18657_v17 = vld [vmem:[#allocation9_spill] sm:$0xff]  ;;  %v18662_v25 = vld [vmem:[#allocation23_spill] sm:$0xff] }
 0xa9c   :  { %13325 = vtanh.f32 %v1787_v36 }
 0xa9d   :  { %v13316_v13 = vpop.eup %13315 }
 0xa9e   :  { %v13318_v48 = vpop.eup %13317  ;;  %v10799_v38 = vpack.c.bf16 %v13316_v13, %v13312_v29 }
 0xa9f   :  { %v10797_v39 = vpack.c.bf16 %v13318_v48, %v13314_v2  ;;  %v18660_v48 = vld [vmem:[#allocation27_spill] sm:$0xff] }
 0xaa1   :  { %10798 = vmatprep.subr.bf16.mxu1 %v10797_v39  ;;  %v13320_v51 = vpop.eup %13319 }
 0xaa2   :  { %10800 = vmatpush1.bf16.msra.mxu1 %v10799_v38  ;;  %v13322_v62 = vpop.eup %13321  ;;  %v1805_v38 = vmul.f32 %v15193_v26, %v14722_v1  ;;  %v18658_v26 = vld [vmem:[#allocation10_spill] sm:$0xff] }
 0xaa4   :  { %v1807_v30 = vadd.f32 %v1805_v38, %v15157_v55  ;;  %v18656_v55 = vld [vmem:[#allocation8_spill] sm:$0xff] }
 0xaa5   :  { %v13324_v50 = vpop.eup %13323 }
 0xaa6   :  { %v13326_v57 = vpop.eup %13325  ;;  %v10803_v11 = vpack.c.bf16 %v13324_v50, %v13320_v51  ;;  %v18661_v50 = vld [vmem:[#allocation21_spill] sm:$0xff] }
 0xaa7   :  { %v10801_v19 = vpack.c.bf16 %v13326_v57, %v13322_v62 }
 0xaa9   :  { %10802 = vmatprep.subr.bf16.mxu1 %v10801_v19 }
 0xaaa   :  { %10804 = vmatpush1.bf16.msra.mxu1 %v10803_v11 }
 0xaab   :  { %10806 = vmatprep.subr.bf16.mxu1 %v14437_v5 }
 0xaad   :  { %10063 = vmatmul.mubr.msk.f32.vlgmr.msra.gmra.mrb[52].mxu1 %vm402_vm1, %v15115_v4 }
 0xaae   :  { %10808 = vmatpush1.bf16.msra.mxu1 %v14439_v9 }
 0xaaf   :  { %10810 = vmatprep.subr.bf16.mxu1 %v14441_v10 }
 0xab2   :  { %10812 = vmatpush1.bf16.msra.mxu1 %v14445_v15 }
 0xab3   :  { %10814 = vmatprep.subr.bf16.mxu1 %v14448_v16 }
 0xab6   :  { %10816 = vmatpush1.bf16.msra.mxu1 %v14451_v21 }
 0xab7   :  { %10818 = vmatprep.subr.bf16.mxu1 %v14454_v22 }
 0xaba   :  { %10820 = vmatpush1.bf16.msra.mxu1 %v14457_v27 }
 0xabb   :  { %10822 = vmatprep.subr.bf16.mxu1 %v14460_v28 }
 0xabe   :  { %10824 = vmatpush1.bf16.msra.mxu1 %v14463_v33 }
 0xabf   :  { %10826 = vmatprep.subr.bf16.mxu1 %v14466_v35 }
 0xac2   :  { %10828 = vmatpush1.bf16.msra.mxu1 %v14489_v42 }
 0xac3   :  { %10830 = vmatprep.subr.bf16.mxu1 %v14494_v43 }
 0xac6   :  { %10832 = vmatpush1.bf16.msra.mxu1 %v14503_v49 }
 0xac7   :  { %10834 = vmatprep.subr.bf16.mxu1 %v14511_v52 }
 0xaca   :  { %10836 = vmatpush1.bf16.msra.mxu1 %v14529_v60 }
 0xacb   :  { %10838 = vmatprep.subr.bf16.mxu1 %v14534_v61 }
 0xace   :  { %10840 = vmatpush1.bf16.msra.mxu1 %v14549_v7 }
 0xacf   :  { %10842 = vmatprep.subr.bf16.mxu1 %v14554_v8 }
 0xad2   :  { %10844 = vmatpush1.bf16.msra.mxu1 %v14569_v20 }
 0xad3   :  { %10846 = vmatprep.subr.bf16.mxu1 %v14574_v23 }
 0xad6   :  { %10848 = vmatpush1.bf16.msra.mxu1 %v14584_v32 }
 0xad7   :  { %10850 = vmatprep.subr.bf16.mxu1 %v18625_v59 }
 0xada   :  { %10852 = vmatpush1.bf16.msra.mxu1 %v18626_v53 }
 0xadb   :  { %10854 = vmatprep.subr.bf16.mxu1 %v18627_v6 }
 0xade   :  { %10856 = vmatpush1.bf16.msra.mxu1 %v18628_v12 }
 0xadf   :  { %10858 = vmatprep.subr.bf16.mxu1 %v18629_v63 }
 0xae2   :  { %10860 = vmatpush1.bf16.msra.mxu1 %v18630_v14 }
 0xae3   :  { %10862 = vmatprep.subr.bf16.mxu1 %v18631_v45 }
 0xae6   :  { %10864 = vmatpush1.bf16.msra.mxu1 %v18632_v34 }
 0xae7   :  { %10866 = vmatprep.subr.bf16.mxu1 %v18633_v0 }
 0xaea   :  { %10868 = vmatpush1.bf16.msra.mxu1 %v18634_v40 }
 0xb80   :  { %v1875_v24 = vpop.f32.mrb[52].mxu1 }
 0xb81   :  { %v1880_v3 = vadd.f32 %v1875_v24, %v1807_v30  ;;  %v1877_v36 = vpop.f32.mrb[53].mxu1 }
 0xb82   :  { %v1881_v29 = vadd.f32 %v1877_v36, %v1808_v56  ;;  %v18663_v36 = vld [vmem:[#allocation22_spill] sm:$0xff] }
 0xb83   :  { %v15257_v13 = vadd.f32 %v1880_v3, %v14730_v18 }
 0xb84   :  { %v15254_v2 = vadd.f32 %v1881_v29, %v14730_v18 }
 0xb86   :  { %1948 = vmatprep.mubr.f32.mxu1 %v15254_v2  ;;  %1955 = vmatprep.subr.mxu0 %v15254_v2 }
 0xb87   :  { %1949 = vmatmul.mubr.f32.vlgmr.msra.gmra.mrb[54].mxu1 %v15257_v13  ;;  %1956 = vmatpush1.msra.mxu0 %v15257_v13 }
 0xb88   :  { %10064 = vmatmul.mubr.msk.f32.vlgmr.msra.gmra.mrb[66].mxu0 %vm239_vm0, %v15054_v54  ;;  %2298 = vmatprep.mubr.f32.mxu1 %v18615_v37 }
 0xb89   :  { %2025 = vmatprep.mubr.f32.mxu0 %v18615_v37 }
 0xb8c   :  { %10065 = vmatmul.mubr.msk.f32.gmra.mrb[68].mxu0 %vm239_vm0, %v15063_v31 }
 0xb8d   :  { %2031 = vmatprep.mubr.f32.mxu0 %v18615_v37 }
 0xb90   :  { %10066 = vmatmul.mubr.msk.f32.gmra.mrb[70].mxu0 %vm239_vm0, %v15071_v41 }
 0xb91   :  { %2037 = vmatprep.mubr.f32.mxu0 %v18615_v37 }
 0xb94   :  { %10067 = vmatmul.mubr.msk.f32.gmra.mrb[72].mxu0 %vm239_vm0, %v18656_v55 }
 0xb95   :  { %2043 = vmatprep.mubr.f32.mxu0 %v18615_v37 }
 0xb98   :  { %10068 = vmatmul.mubr.msk.f32.gmra.mrb[74].mxu0 %vm239_vm0, %v18657_v17 }
 0xb99   :  { %2049 = vmatprep.mubr.f32.mxu0 %v18615_v37 }
 0xb9c   :  { %10069 = vmatmul.mubr.msk.f32.gmra.mrb[76].mxu0 %vm239_vm0, %v18658_v26 }
 0xb9d   :  { %2055 = vmatprep.mubr.f32.mxu0 %v18615_v37 }
 0xba0   :  { %10070 = vmatmul.mubr.msk.f32.gmra.mrb[78].mxu0 %vm239_vm0, %v18659_v46  ;;  %v18664_v46 = vld [vmem:[#allocation24_spill] sm:$0xff] }
 0xba1   :  { %2061 = vmatprep.mubr.f32.mxu0 %v18615_v37 }
 0xba4   :  { %10071 = vmatmul.mubr.msk.f32.gmra.mrb[80].mxu0 %vm239_vm0, %v18660_v48 }
 0xba5   :  { %2152 = vmatprep.mubr.f32.mxu0 %v18615_v37 }
 0xc5a   :  { %v15288_v39 = vpop.f32.mrb[54].mxu1 }
 0xc5b   :  { %v15290_v51 = vpop.f32.mrb[55].mxu1  ;;  %v2021_v62 = vpop.f32.mrb[66].mxu0 }
 0xc5c   :  { %v2022_v57 = vadd.f32 %v2021_v62, %v18661_v50  ;;  %v2023_v11 = vpop.f32.mrb[67].mxu0 }
 0xc5d   :  { %v2024_v19 = vadd.f32 %v2023_v11, %v18661_v50 }
 0xc5e   :  { %13327 = vtanh.f32 %v2022_v57 }
 0xc5f   :  { %v2027_v38 = vpop.f32.mrb[68].mxu0  ;;  %13329 = vtanh.f32 %v2024_v19 }
 0xc60   :  { %v2028_v30 = vadd.f32 %v2027_v38, %v18662_v25  ;;  %v2029_v24 = vpop.f32.mrb[69].mxu0 }
 0xc61   :  { %v2030_v56 = vadd.f32 %v2029_v24, %v18662_v25 }
 0xc62   :  { %13331 = vtanh.f32 %v2028_v30 }
 0xc63   :  { %13333 = vtanh.f32 %v2030_v56  ;;  %v2033_v3 = vpop.f32.mrb[70].mxu0 }
 0xc64   :  { %v2034_v29 = vadd.f32 %v2033_v3, %v18663_v36  ;;  %v2035_v55 = vpop.f32.mrb[71].mxu0 }
 0xc65   :  { %v2036_v17 = vadd.f32 %v2035_v55, %v18663_v36 }
 0xc66   :  { %13335 = vtanh.f32 %v2034_v29 }
 0xc67   :  { %v2039_v26 = vpop.f32.mrb[72].mxu0  ;;  %13337 = vtanh.f32 %v2036_v17 }
 0xc68   :  { %v2040_v48 = vadd.f32 %v2039_v26, %v18664_v46  ;;  %v2041_v62 = vpop.f32.mrb[73].mxu0  ;;  %v13328_v11 = vpop.eup %13327  ;;  %v18665_v26 = vld [vmem:[#allocation26_spill] sm:$0xff] }
 0xc69   :  { %v2042_v57 = vadd.f32 %v2041_v62, %v18664_v46  ;;  %v13330_v19 = vpop.eup %13329 }
 0xc6a   :  { %13339 = vtanh.f32 %v2040_v48 }
 0xc6b   :  { %13341 = vtanh.f32 %v2042_v57  ;;  %v2045_v38 = vpop.f32.mrb[74].mxu0 }
 0xc6c   :  { %v13332_v30 = vpop.eup %13331  ;;  %v2046_v24 = vadd.f32 %v2045_v38, %v18621_v58  ;;  %v2047_v56 = vpop.f32.mrb[75].mxu0 }
 0xc6d   :  { %v13334_v3 = vpop.eup %13333  ;;  %v2048_v55 = vadd.f32 %v2047_v56, %v18621_v58  ;;  %v10871_v36 = vpack.c.bf16 %v13332_v30, %v13328_v11 }
 0xc6e   :  { %v10869_v29 = vpack.c.bf16 %v13334_v3, %v13330_v19  ;;  %13343 = vtanh.f32 %v2046_v24 }
 0xc6f   :  { %v2051_v25 = vpop.f32.mrb[76].mxu0  ;;  %13345 = vtanh.f32 %v2048_v55 }
 0xc70   :  { %v2052_v17 = vadd.f32 %v2051_v25, %v18665_v26  ;;  %v2053_v50 = vpop.f32.mrb[77].mxu0  ;;  %10870 = vmatprep.subr.bf16.mxu0 %v10869_v29  ;;  %v13336_v62 = vpop.eup %13335 }
 0xc71   :  { %v2054_v48 = vadd.f32 %v2053_v50, %v18665_v26  ;;  %10872 = vmatpush1.bf16.msra.mxu0 %v10871_v36  ;;  %v13338_v57 = vpop.eup %13337 }
 0xc72   :  { %13347 = vtanh.f32 %v2052_v17 }
 0xc73   :  { %13349 = vtanh.f32 %v2054_v48  ;;  %v2057_v38 = vpop.f32.mrb[78].mxu0 }
 0xc74   :  { %v13340_v46 = vpop.eup %13339  ;;  %v2058_v56 = vadd.f32 %v2057_v38, %v18623_v47  ;;  %v2059_v11 = vpop.f32.mrb[79].mxu0 }
 0xc75   :  { %v13342_v19 = vpop.eup %13341  ;;  %v2060_v30 = vadd.f32 %v2059_v11, %v18623_v47  ;;  %v10875_v24 = vpack.c.bf16 %v13340_v46, %v13336_v62 }
 0xc76   :  { %v10873_v25 = vpack.c.bf16 %v13342_v19, %v13338_v57  ;;  %13351 = vtanh.f32 %v2058_v56 }
 0xc77   :  { %v2063_v3 = vpop.f32.mrb[80].mxu0  ;;  %13353 = vtanh.f32 %v2060_v30  ;;  %v2085_v30 = vmul.f32 %v15290_v51, %v14722_v1 }
 0xc78   :  { %v2064_v55 = vadd.f32 %v2063_v3, %v18624_v44  ;;  %v2065_v50 = vpop.f32.mrb[81].mxu0  ;;  %10874 = vmatprep.subr.bf16.mxu0 %v10873_v25  ;;  %v13344_v29 = vpop.eup %13343 }
 0xc79   :  { %v2066_v36 = vadd.f32 %v2065_v50, %v18624_v44  ;;  %10876 = vmatpush1.bf16.msra.mxu0 %v10875_v24  ;;  %v13346_v17 = vpop.eup %13345 }
 0xc7a   :  { %13355 = vtanh.f32 %v2064_v55  ;;  %v2087_v55 = vadd.f32 %v2085_v30, %v15254_v2  ;;  %v15371_v2 = vld [vmem:[%s18320_s3 + $0x18] sm:$0xff] }
 0xc7b   :  { %13357 = vtanh.f32 %v2066_v36  ;;  %18666 = vst [vmem:[#allocation28_spill] sm:$0xff] %v15371_v2 }
 0xc7c   :  { %v13348_v48 = vpop.eup %13347 }
 0xc7d   :  { %v13350_v38 = vpop.eup %13349  ;;  %v10879_v26 = vpack.c.bf16 %v13348_v48, %v13344_v29 }
 0xc7e   :  { %v10877_v11 = vpack.c.bf16 %v13350_v38, %v13346_v17 }
 0xc80   :  { %10878 = vmatprep.subr.bf16.mxu0 %v10877_v11  ;;  %v13352_v46 = vpop.eup %13351  ;;  %v18671_v11 = vld [vmem:[#allocation21_spill] sm:$0xff] }
 0xc81   :  { %10880 = vmatpush1.bf16.msra.mxu0 %v10879_v26  ;;  %v13354_v62 = vpop.eup %13353  ;;  %v2084_v26 = vmul.f32 %v15288_v39, %v14722_v1 }
 0xc83   :  { %v2086_v24 = vadd.f32 %v2084_v26, %v15257_v13  ;;  %v15403_v13 = vld [vmem:[%s18320_s3 + $0x38] sm:$0xff] }
 0xc84   :  { %v13356_v57 = vpop.eup %13355  ;;  %18670 = vst [vmem:[#allocation14_spill] sm:$0xff] %v15403_v13 }
 0xc85   :  { %v13358_v56 = vpop.eup %13357  ;;  %v10883_v19 = vpack.c.bf16 %v13356_v57, %v13352_v46 }
 0xc86   :  { %v10881_v25 = vpack.c.bf16 %v13358_v56, %v13354_v62 }
 0xc88   :  { %10882 = vmatprep.subr.bf16.mxu0 %v10881_v25 }
 0xc89   :  { %10884 = vmatpush1.bf16.msra.mxu0 %v10883_v19  ;;  %v18672_v19 = vld [vmem:[#allocation23_spill] sm:$0xff] }
 0xc8a   :  { %10886 = vmatprep.subr.bf16.mxu0 %v14437_v5 }
 0xc8c   :  { %10072 = vmatmul.mubr.msk.f32.vlgmr.msra.gmra.mrb[82].mxu0 %vm402_vm1, %v15115_v4 }
 0xc8d   :  { %10888 = vmatpush1.bf16.msra.mxu0 %v14439_v9 }
 0xc8e   :  { %10890 = vmatprep.subr.bf16.mxu0 %v14441_v10 }
 0xc91   :  { %10892 = vmatpush1.bf16.msra.mxu0 %v14445_v15 }
 0xc92   :  { %10894 = vmatprep.subr.bf16.mxu0 %v14448_v16 }
 0xc95   :  { %10896 = vmatpush1.bf16.msra.mxu0 %v14451_v21 }
 0xc96   :  { %10898 = vmatprep.subr.bf16.mxu0 %v14454_v22 }
 0xc99   :  { %10900 = vmatpush1.bf16.msra.mxu0 %v14457_v27 }
 0xc9a   :  { %10902 = vmatprep.subr.bf16.mxu0 %v14460_v28 }
 0xc9d   :  { %10904 = vmatpush1.bf16.msra.mxu0 %v14463_v33 }
 0xc9e   :  { %10906 = vmatprep.subr.bf16.mxu0 %v14466_v35 }
 0xca1   :  { %10908 = vmatpush1.bf16.msra.mxu0 %v14489_v42 }
 0xca2   :  { %10910 = vmatprep.subr.bf16.mxu0 %v14494_v43 }
 0xca5   :  { %10912 = vmatpush1.bf16.msra.mxu0 %v14503_v49 }
 0xca6   :  { %10914 = vmatprep.subr.bf16.mxu0 %v14511_v52 }
 0xca9   :  { %10916 = vmatpush1.bf16.msra.mxu0 %v14529_v60 }
 0xcaa   :  { %10918 = vmatprep.subr.bf16.mxu0 %v14534_v61 }
 0xcad   :  { %10920 = vmatpush1.bf16.msra.mxu0 %v14549_v7 }
 0xcae   :  { %10922 = vmatprep.subr.bf16.mxu0 %v14554_v8 }
 0xcb1   :  { %10924 = vmatpush1.bf16.msra.mxu0 %v14569_v20 }
 0xcb2   :  { %10926 = vmatprep.subr.bf16.mxu0 %v14574_v23 }
 0xcb5   :  { %10928 = vmatpush1.bf16.msra.mxu0 %v14584_v32 }
 0xcb6   :  { %10930 = vmatprep.subr.bf16.mxu0 %v18625_v59 }
 0xcb9   :  { %10932 = vmatpush1.bf16.msra.mxu0 %v18626_v53 }
 0xcba   :  { %10934 = vmatprep.subr.bf16.mxu0 %v18627_v6 }
 0xcbd   :  { %10936 = vmatpush1.bf16.msra.mxu0 %v18628_v12 }
 0xcbe   :  { %10938 = vmatprep.subr.bf16.mxu0 %v18629_v63 }
 0xcc1   :  { %10940 = vmatpush1.bf16.msra.mxu0 %v18630_v14 }
 0xcc2   :  { %10942 = vmatprep.subr.bf16.mxu0 %v18631_v45 }
 0xcc5   :  { %10944 = vmatpush1.bf16.msra.mxu0 %v18632_v34 }
 0xcc6   :  { %10946 = vmatprep.subr.bf16.mxu0 %v18633_v0 }
 0xcc9   :  { %10948 = vmatpush1.bf16.msra.mxu0 %v18634_v40 }
 0xd5f   :  { %v2154_v3 = vpop.f32.mrb[82].mxu0 }
 0xd60   :  { %v2159_v50 = vadd.f32 %v2154_v3, %v2086_v24  ;;  %v2156_v36 = vpop.f32.mrb[83].mxu0  ;;  %v18673_v3 = vld [vmem:[#allocation22_spill] sm:$0xff] }
 0xd61   :  { %v2160_v29 = vadd.f32 %v2156_v36, %v2087_v55 }
 0xd62   :  { %v15352_v48 = vadd.f32 %v2159_v50, %v14730_v18 }
 0xd63   :  { %v15349_v17 = vadd.f32 %v2160_v29, %v14730_v18 }
 0xd65   :  { %2227 = vmatprep.mubr.f32.mxu0 %v15349_v17  ;;  %2234 = vmatprep.subr.mxu1 %v15349_v17 }
 0xd66   :  { %2228 = vmatmul.mubr.f32.vlgmr.msra.gmra.mrb[84].mxu0 %v15352_v48  ;;  %2235 = vmatpush1.msra.mxu1 %v15352_v48 }
 0xd67   :  { %10073 = vmatmul.mubr.msk.f32.vlgmr.msra.gmra.mrb[56].mxu1 %vm239_vm0, %v15054_v54  ;;  %2577 = vmatprep.mubr.f32.mxu0 %v18615_v37  ;;  %v15379_v54 = vld [vmem:[%s18320_s3 + $0x20] sm:$0xff] }
 0xd68   :  { %2304 = vmatprep.mubr.f32.mxu1 %v18615_v37  ;;  %18667 = vst [vmem:[#allocation11_spill] sm:$0xff] %v15379_v54 }
 0xd6b   :  { %10074 = vmatmul.mubr.msk.f32.gmra.mrb[58].mxu1 %vm239_vm0, %v15063_v31  ;;  %v15387_v31 = vld [vmem:[%s18320_s3 + $0x28] sm:$0xff] }
 0xd6c   :  { %2310 = vmatprep.mubr.f32.mxu1 %v18615_v37  ;;  %18668 = vst [vmem:[#allocation12_spill] sm:$0xff] %v15387_v31 }
 0xd6f   :  { %10075 = vmatmul.mubr.msk.f32.gmra.mrb[60].mxu1 %vm239_vm0, %v15071_v41  ;;  %v15395_v41 = vld [vmem:[%s18320_s3 + $0x30] sm:$0xff] }
 0xd70   :  { %2316 = vmatprep.mubr.f32.mxu1 %v18615_v37  ;;  %18669 = vst [vmem:[#allocation13_spill] sm:$0xff] %v15395_v41 }
 0xd73   :  { %10076 = vmatmul.mubr.msk.f32.gmra.mrb[62].mxu1 %vm239_vm0, %v15371_v2 }
 0xd74   :  { %2322 = vmatprep.mubr.f32.mxu1 %v18615_v37 }
 0xd77   :  { %10077 = vmatmul.mubr.msk.f32.gmra.mrb[64].mxu1 %vm239_vm0, %v15379_v54 }
 0xd78   :  { %2328 = vmatprep.mubr.f32.mxu1 %v18615_v37 }
 0xd7b   :  { %10078 = vmatmul.mubr.msk.f32.gmra.mrb[66].mxu1 %vm239_vm0, %v15387_v31 }
 0xd7c   :  { %2334 = vmatprep.mubr.f32.mxu1 %v18615_v37 }
 0xd7f   :  { %10079 = vmatmul.mubr.msk.f32.gmra.mrb[68].mxu1 %vm239_vm0, %v15395_v41 }
 0xd80   :  { %2340 = vmatprep.mubr.f32.mxu1 %v18615_v37 }
 0xd83   :  { %10080 = vmatmul.mubr.msk.f32.gmra.mrb[70].mxu1 %vm239_vm0, %v15403_v13 }
 0xd84   :  { %2431 = vmatprep.mubr.f32.mxu1 %v18615_v37 }
 0xe39   :  { %v15408_v39 = vpop.f32.mrb[84].mxu0 }
 0xe3a   :  { %v15410_v51 = vpop.f32.mrb[85].mxu0  ;;  %v2300_v38 = vpop.f32.mrb[56].mxu1 }
 0xe3b   :  { %v2301_v46 = vadd.f32 %v2300_v38, %v18671_v11  ;;  %v2302_v62 = vpop.f32.mrb[57].mxu1  ;;  %v18674_v38 = vld [vmem:[#allocation24_spill] sm:$0xff] }
 0xe3c   :  { %v2303_v57 = vadd.f32 %v2302_v62, %v18671_v11 }
 0xe3d   :  { %13359 = vtanh.f32 %v2301_v46 }
 0xe3e   :  { %v2306_v56 = vpop.f32.mrb[58].mxu1  ;;  %13361 = vtanh.f32 %v2303_v57 }
 0xe3f   :  { %v2307_v25 = vadd.f32 %v2306_v56, %v18672_v19  ;;  %v2308_v26 = vpop.f32.mrb[59].mxu1 }
 0xe40   :  { %v2309_v30 = vadd.f32 %v2308_v26, %v18672_v19 }
 0xe41   :  { %13363 = vtanh.f32 %v2307_v25 }
 0xe42   :  { %13365 = vtanh.f32 %v2309_v30  ;;  %v2312_v24 = vpop.f32.mrb[60].mxu1 }
 0xe43   :  { %v2313_v55 = vadd.f32 %v2312_v24, %v18673_v3  ;;  %v2314_v50 = vpop.f32.mrb[61].mxu1 }
 0xe44   :  { %v2315_v36 = vadd.f32 %v2314_v50, %v18673_v3 }
 0xe45   :  { %13367 = vtanh.f32 %v2313_v55 }
 0xe46   :  { %v2318_v29 = vpop.f32.mrb[62].mxu1  ;;  %13369 = vtanh.f32 %v2315_v36 }
 0xe47   :  { %v2319_v62 = vadd.f32 %v2318_v29, %v18674_v38  ;;  %v2320_v11 = vpop.f32.mrb[63].mxu1  ;;  %v13360_v56 = vpop.eup %13359  ;;  %v18675_v29 = vld [vmem:[#allocation26_spill] sm:$0xff] }
 0xe48   :  { %v2321_v46 = vadd.f32 %v2320_v11, %v18674_v38  ;;  %v13362_v57 = vpop.eup %13361 }
 0xe49   :  { %13371 = vtanh.f32 %v2319_v62 }
 0xe4a   :  { %13373 = vtanh.f32 %v2321_v46  ;;  %v2324_v25 = vpop.f32.mrb[64].mxu1 }
 0xe4b   :  { %v13364_v26 = vpop.eup %13363  ;;  %v2325_v30 = vadd.f32 %v2324_v25, %v18621_v58  ;;  %v2326_v24 = vpop.f32.mrb[65].mxu1 }
 0xe4c   :  { %v13366_v19 = vpop.eup %13365  ;;  %v2327_v50 = vadd.f32 %v2326_v24, %v18621_v58  ;;  %v10951_v3 = vpack.c.bf16 %v13364_v26, %v13360_v56 }
 0xe4d   :  { %v10949_v55 = vpack.c.bf16 %v13366_v19, %v13362_v57  ;;  %13375 = vtanh.f32 %v2325_v30 }
 0xe4e   :  { %v2330_v13 = vpop.f32.mrb[66].mxu1  ;;  %13377 = vtanh.f32 %v2327_v50 }
 0xe4f   :  { %v2331_v36 = vadd.f32 %v2330_v13, %v18675_v29  ;;  %v2332_v41 = vpop.f32.mrb[67].mxu1  ;;  %10950 = vmatprep.subr.bf16.mxu1 %v10949_v55  ;;  %v13368_v62 = vpop.eup %13367 }
 0xe50   :  { %v2333_v11 = vadd.f32 %v2332_v41, %v18675_v29  ;;  %10952 = vmatpush1.bf16.msra.mxu1 %v10951_v3  ;;  %v13370_v46 = vpop.eup %13369 }
 0xe51   :  { %13379 = vtanh.f32 %v2331_v36 }
 0xe52   :  { %13381 = vtanh.f32 %v2333_v11  ;;  %v2336_v25 = vpop.f32.mrb[68].mxu1 }
 0xe53   :  { %v13372_v38 = vpop.eup %13371  ;;  %v2337_v24 = vadd.f32 %v2336_v25, %v18623_v47  ;;  %v2338_v56 = vpop.f32.mrb[69].mxu1 }
 0xe54   :  { %v13374_v19 = vpop.eup %13373  ;;  %v2339_v57 = vadd.f32 %v2338_v56, %v18623_v47  ;;  %v10955_v26 = vpack.c.bf16 %v13372_v38, %v13368_v62 }
 0xe55   :  { %v10953_v13 = vpack.c.bf16 %v13374_v19, %v13370_v46  ;;  %13383 = vtanh.f32 %v2337_v24 }
 0xe56   :  { %v2342_v30 = vpop.f32.mrb[70].mxu1  ;;  %13385 = vtanh.f32 %v2339_v57 }
 0xe57   :  { %v2343_v50 = vadd.f32 %v2342_v30, %v18624_v44  ;;  %v2344_v41 = vpop.f32.mrb[71].mxu1  ;;  %10954 = vmatprep.subr.bf16.mxu1 %v10953_v13  ;;  %v13376_v55 = vpop.eup %13375 }
 0xe58   :  { %v2345_v3 = vadd.f32 %v2344_v41, %v18624_v44  ;;  %10956 = vmatpush1.bf16.msra.mxu1 %v10955_v26  ;;  %v13378_v36 = vpop.eup %13377 }
 0xe59   :  { %13387 = vtanh.f32 %v2343_v50 }
 0xe5a   :  { %13389 = vtanh.f32 %v2345_v3 }
 0xe5b   :  { %v13380_v11 = vpop.eup %13379 }
 0xe5c   :  { %v13382_v25 = vpop.eup %13381  ;;  %v10959_v29 = vpack.c.bf16 %v13380_v11, %v13376_v55  ;;  %v18677_v11 = vld [vmem:[#allocation14_spill] sm:$0xff] }
 0xe5d   :  { %v10957_v56 = vpack.c.bf16 %v13382_v25, %v13378_v36 }
 0xe5f   :  { %10958 = vmatprep.subr.bf16.mxu1 %v10957_v56  ;;  %v13384_v38 = vpop.eup %13383 }
 0xe60   :  { %10960 = vmatpush1.bf16.msra.mxu1 %v10959_v29  ;;  %v13386_v62 = vpop.eup %13385  ;;  %v2364_v29 = vmul.f32 %v15410_v51, %v14722_v1  ;;  %v18676_v51 = vld [vmem:[#allocation13_spill] sm:$0xff] }
 0xe62   :  { %v2366_v30 = vadd.f32 %v2364_v29, %v15349_v17  ;;  %v15481_v17 = vld [vmem:[%s18320_s3] sm:$0xff] }
 0xe63   :  { %v13388_v46 = vpop.eup %13387 }
 0xe64   :  { %v13390_v24 = vpop.eup %13389  ;;  %v10963_v19 = vpack.c.bf16 %v13388_v46, %v13384_v38 }
 0xe65   :  { %v10961_v13 = vpack.c.bf16 %v13390_v24, %v13386_v62  ;;  %v18678_v62 = vld [vmem:[#allocation21_spill] sm:$0xff] }
 0xe67   :  { %10962 = vmatprep.subr.bf16.mxu1 %v10961_v13 }
 0xe68   :  { %10964 = vmatpush1.bf16.msra.mxu1 %v10963_v19 }
 0xe69   :  { %10966 = vmatprep.subr.bf16.mxu1 %v14437_v5 }
 0xe6b   :  { %10081 = vmatmul.mubr.msk.f32.vlgmr.msra.gmra.mrb[72].mxu1 %vm402_vm1, %v15115_v4  ;;  %v2363_v4 = vmul.f32 %v15408_v39, %v14722_v1  ;;  %v15498_v39 = vld [vmem:[%s18320_s3 + $0x10] sm:$0xff] }
 0xe6c   :  { %10968 = vmatpush1.bf16.msra.mxu1 %v14439_v9 }
 0xe6d   :  { %10970 = vmatprep.subr.bf16.mxu1 %v14441_v10  ;;  %v2365_v57 = vadd.f32 %v2363_v4, %v15352_v48  ;;  %v15490_v48 = vld [vmem:[%s18320_s3 + $0x8] sm:$0xff]  ;;  %v18679_v4 = vld [vmem:[#allocation23_spill] sm:$0xff] }
 0xe70   :  { %10972 = vmatpush1.bf16.msra.mxu1 %v14445_v15 }
 0xe71   :  { %10974 = vmatprep.subr.bf16.mxu1 %v14448_v16 }
 0xe74   :  { %10976 = vmatpush1.bf16.msra.mxu1 %v14451_v21 }
 0xe75   :  { %10978 = vmatprep.subr.bf16.mxu1 %v14454_v22 }
 0xe78   :  { %10980 = vmatpush1.bf16.msra.mxu1 %v14457_v27 }
 0xe79   :  { %10982 = vmatprep.subr.bf16.mxu1 %v14460_v28 }
 0xe7c   :  { %10984 = vmatpush1.bf16.msra.mxu1 %v14463_v33 }
 0xe7d   :  { %10986 = vmatprep.subr.bf16.mxu1 %v14466_v35 }
 0xe80   :  { %10988 = vmatpush1.bf16.msra.mxu1 %v14489_v42 }
 0xe81   :  { %10990 = vmatprep.subr.bf16.mxu1 %v14494_v43 }
 0xe84   :  { %10992 = vmatpush1.bf16.msra.mxu1 %v14503_v49 }
 0xe85   :  { %10994 = vmatprep.subr.bf16.mxu1 %v14511_v52 }
 0xe88   :  { %10996 = vmatpush1.bf16.msra.mxu1 %v14529_v60 }
 0xe89   :  { %10998 = vmatprep.subr.bf16.mxu1 %v14534_v61 }
 0xe8c   :  { %11000 = vmatpush1.bf16.msra.mxu1 %v14549_v7 }
 0xe8d   :  { %11002 = vmatprep.subr.bf16.mxu1 %v14554_v8 }
 0xe90   :  { %11004 = vmatpush1.bf16.msra.mxu1 %v14569_v20 }
 0xe91   :  { %11006 = vmatprep.subr.bf16.mxu1 %v14574_v23 }
 0xe94   :  { %11008 = vmatpush1.bf16.msra.mxu1 %v14584_v32 }
 0xe95   :  { %11010 = vmatprep.subr.bf16.mxu1 %v18625_v59 }
 0xe98   :  { %11012 = vmatpush1.bf16.msra.mxu1 %v18626_v53 }
 0xe99   :  { %11014 = vmatprep.subr.bf16.mxu1 %v18627_v6 }
 0xe9c   :  { %11016 = vmatpush1.bf16.msra.mxu1 %v18628_v12 }
 0xe9d   :  { %11018 = vmatprep.subr.bf16.mxu1 %v18629_v63 }
 0xea0   :  { %11020 = vmatpush1.bf16.msra.mxu1 %v18630_v14 }
 0xea1   :  { %11022 = vmatprep.subr.bf16.mxu1 %v18631_v45 }
 0xea4   :  { %11024 = vmatpush1.bf16.msra.mxu1 %v18632_v34 }
 0xea5   :  { %11026 = vmatprep.subr.bf16.mxu1 %v18633_v0 }
 0xea8   :  { %11028 = vmatpush1.bf16.msra.mxu1 %v18634_v40 }
 0xf3e   :  { %v2433_v26 = vpop.f32.mrb[72].mxu1 }
 0xf3f   :  { %v2438_v50 = vadd.f32 %v2433_v26, %v2365_v57  ;;  %v2435_v41 = vpop.f32.mrb[73].mxu1 }
 0xf40   :  { %v2439_v3 = vadd.f32 %v2435_v41, %v2366_v30 }
 0xf41   :  { %v15472_v36 = vadd.f32 %v2438_v50, %v14730_v18  ;;  %v18680_v50 = vld [vmem:[#allocation22_spill] sm:$0xff] }
 0xf42   :  { %v15469_v55 = vadd.f32 %v2439_v3, %v14730_v18 }
 0xf44   :  { %2506 = vmatprep.mubr.f32.mxu1 %v15469_v55  ;;  %2513 = vmatprep.subr.mxu0 %v15469_v55 }
 0xf45   :  { %2507 = vmatmul.mubr.f32.vlgmr.msra.gmra.mrb[74].mxu1 %v15472_v36  ;;  %2514 = vmatpush1.msra.mxu0 %v15472_v36 }
 0xf46   :  { %10082 = vmatmul.mubr.msk.f32.vlgmr.msra.gmra.mrb[86].mxu0 %vm239_vm0, %v15481_v17  ;;  %2856 = vmatprep.mubr.f32.mxu1 %v18615_v37 }
 0xf47   :  { %2583 = vmatprep.mubr.f32.mxu0 %v18615_v37 }
 0xf4a   :  { %10083 = vmatmul.mubr.msk.f32.gmra.mrb[88].mxu0 %vm239_vm0, %v15490_v48 }
 0xf4b   :  { %2589 = vmatprep.mubr.f32.mxu0 %v18615_v37 }
 0xf4e   :  { %10084 = vmatmul.mubr.msk.f32.gmra.mrb[90].mxu0 %vm239_vm0, %v15498_v39 }
 0xf4f   :  { %2595 = vmatprep.mubr.f32.mxu0 %v18615_v37 }
 0xf52   :  { %10085 = vmatmul.mubr.msk.f32.gmra.mrb[92].mxu0 %vm239_vm0, %v15371_v2 }
 0xf53   :  { %2601 = vmatprep.mubr.f32.mxu0 %v18615_v37 }
 0xf56   :  { %10086 = vmatmul.mubr.msk.f32.gmra.mrb[94].mxu0 %vm239_vm0, %v15379_v54 }
 0xf57   :  { %2607 = vmatprep.mubr.f32.mxu0 %v18615_v37 }
 0xf5a   :  { %10087 = vmatmul.mubr.msk.f32.gmra.mrb[96].mxu0 %vm239_vm0, %v15387_v31 }
 0xf5b   :  { %2613 = vmatprep.mubr.f32.mxu0 %v18615_v37 }
 0xf5e   :  { %10088 = vmatmul.mubr.msk.f32.gmra.mrb[98].mxu0 %vm239_vm0, %v18676_v51  ;;  %v18681_v51 = vld [vmem:[#allocation24_spill] sm:$0xff] }
 0xf5f   :  { %2619 = vmatprep.mubr.f32.mxu0 %v18615_v37 }
 0xf62   :  { %10089 = vmatmul.mubr.msk.f32.gmra.mrb[100].mxu0 %vm239_vm0, %v18677_v11 }
 0xf63   :  { %2710 = vmatprep.mubr.f32.mxu0 %v18615_v37 }
0x1018   :  { %v15518_v25 = vpop.f32.mrb[74].mxu1 }
0x1019   :  { %v15520_v56 = vpop.f32.mrb[75].mxu1  ;;  %v2579_v38 = vpop.f32.mrb[86].mxu0 }
0x101a   :  { %v2580_v46 = vadd.f32 %v2579_v38, %v18678_v62  ;;  %v2581_v24 = vpop.f32.mrb[87].mxu0 }
0x101b   :  { %v2582_v19 = vadd.f32 %v2581_v24, %v18678_v62 }
0x101c   :  { %13391 = vtanh.f32 %v2580_v46 }
0x101d   :  { %v2585_v13 = vpop.f32.mrb[88].mxu0  ;;  %13393 = vtanh.f32 %v2582_v19 }
0x101e   :  { %v2586_v29 = vadd.f32 %v2585_v13, %v18679_v4  ;;  %v2587_v57 = vpop.f32.mrb[89].mxu0 }
0x101f   :  { %v2588_v26 = vadd.f32 %v2587_v57, %v18679_v4 }
0x1020   :  { %13395 = vtanh.f32 %v2586_v29 }
0x1021   :  { %13397 = vtanh.f32 %v2588_v26  ;;  %v2591_v30 = vpop.f32.mrb[90].mxu0 }
0x1022   :  { %v2592_v41 = vadd.f32 %v2591_v30, %v18680_v50  ;;  %v2593_v3 = vpop.f32.mrb[91].mxu0 }
0x1023   :  { %v2594_v11 = vadd.f32 %v2593_v3, %v18680_v50 }
0x1024   :  { %13399 = vtanh.f32 %v2592_v41 }
0x1025   :  { %v2597_v38 = vpop.f32.mrb[92].mxu0  ;;  %13401 = vtanh.f32 %v2594_v11 }
0x1026   :  { %v2598_v24 = vadd.f32 %v2597_v38, %v18681_v51  ;;  %v2599_v62 = vpop.f32.mrb[93].mxu0  ;;  %v13392_v13 = vpop.eup %13391  ;;  %v18682_v38 = vld [vmem:[#allocation26_spill] sm:$0xff] }
0x1027   :  { %v2600_v46 = vadd.f32 %v2599_v62, %v18681_v51  ;;  %v13394_v19 = vpop.eup %13393 }
0x1028   :  { %13403 = vtanh.f32 %v2598_v24 }
0x1029   :  { %13405 = vtanh.f32 %v2600_v46  ;;  %v2603_v29 = vpop.f32.mrb[94].mxu0 }
0x102a   :  { %v13396_v57 = vpop.eup %13395  ;;  %v2604_v26 = vadd.f32 %v2603_v29, %v18621_v58  ;;  %v2605_v30 = vpop.f32.mrb[95].mxu0 }
0x102b   :  { %v13398_v4 = vpop.eup %13397  ;;  %v2606_v3 = vadd.f32 %v2605_v30, %v18621_v58  ;;  %v11031_v50 = vpack.c.bf16 %v13396_v57, %v13392_v13 }
0x102c   :  { %v11029_v41 = vpack.c.bf16 %v13398_v4, %v13394_v19  ;;  %13407 = vtanh.f32 %v2604_v26 }
0x102d   :  { %v2609_v31 = vpop.f32.mrb[96].mxu0  ;;  %13409 = vtanh.f32 %v2606_v3 }
0x102e   :  { %v2610_v11 = vadd.f32 %v2609_v31, %v18682_v38  ;;  %v2611_v54 = vpop.f32.mrb[97].mxu0  ;;  %11030 = vmatprep.subr.bf16.mxu0 %v11029_v41  ;;  %v13400_v24 = vpop.eup %13399 }
0x102f   :  { %v2612_v62 = vadd.f32 %v2611_v54, %v18682_v38  ;;  %11032 = vmatpush1.bf16.msra.mxu0 %v11031_v50  ;;  %v13402_v46 = vpop.eup %13401 }
0x1030   :  { %13411 = vtanh.f32 %v2610_v11 }
0x1031   :  { %13413 = vtanh.f32 %v2612_v62  ;;  %v2615_v29 = vpop.f32.mrb[98].mxu0 }
0x1032   :  { %v13404_v51 = vpop.eup %13403  ;;  %v2616_v30 = vadd.f32 %v2615_v29, %v18623_v47  ;;  %v2617_v13 = vpop.f32.mrb[99].mxu0 }
0x1033   :  { %v13406_v4 = vpop.eup %13405  ;;  %v2618_v19 = vadd.f32 %v2617_v13, %v18623_v47  ;;  %v11035_v57 = vpack.c.bf16 %v13404_v51, %v13400_v24 }
0x1034   :  { %v11033_v31 = vpack.c.bf16 %v13406_v4, %v13402_v46  ;;  %13415 = vtanh.f32 %v2616_v30 }
0x1035   :  { %v2621_v26 = vpop.f32.mrb[100].mxu0  ;;  %13417 = vtanh.f32 %v2618_v19  ;;  %v15542_v19 = vld [vmem:[%s18322_s5] sm:$0xff] }
0x1036   :  { %v2622_v3 = vadd.f32 %v2621_v26, %v18624_v44  ;;  %v2623_v54 = vpop.f32.mrb[101].mxu0  ;;  %11034 = vmatprep.subr.bf16.mxu0 %v11033_v31  ;;  %v13408_v41 = vpop.eup %13407 }
0x1037   :  { %v2624_v50 = vadd.f32 %v2623_v54, %v18624_v44  ;;  %11036 = vmatpush1.bf16.msra.mxu0 %v11035_v57  ;;  %v13410_v11 = vpop.eup %13409  ;;  %v2643_v57 = vmul.f32 %v15520_v56, %v14722_v1  ;;  %v18686_v56 = vld [vmem:[#allocation14_spill] sm:$0xff] }
0x1038   :  { %13419 = vtanh.f32 %v2622_v3 }
0x1039   :  { %13421 = vtanh.f32 %v2624_v50  ;;  %v2645_v54 = vadd.f32 %v2643_v57, %v15469_v55  ;;  %v18683_v55 = vld [vmem:[#allocation11_spill] sm:$0xff] }
0x103a   :  { %v13412_v62 = vpop.eup %13411  ;;  %v18688_v57 = vld [vmem:[#allocation23_spill] sm:$0xff] }
0x103b   :  { %v13414_v29 = vpop.eup %13413  ;;  %v11039_v38 = vpack.c.bf16 %v13412_v62, %v13408_v41 }
0x103c   :  { %v11037_v13 = vpack.c.bf16 %v13414_v29, %v13410_v11 }
0x103e   :  { %11038 = vmatprep.subr.bf16.mxu0 %v11037_v13  ;;  %v13416_v51 = vpop.eup %13415 }
0x103f   :  { %11040 = vmatpush1.bf16.msra.mxu0 %v11039_v38  ;;  %v13418_v24 = vpop.eup %13417  ;;  %v2642_v38 = vmul.f32 %v15518_v25, %v14722_v1  ;;  %v18685_v25 = vld [vmem:[#allocation13_spill] sm:$0xff] }
0x1041   :  { %v2644_v26 = vadd.f32 %v2642_v38, %v15472_v36  ;;  %v18684_v36 = vld [vmem:[#allocation12_spill] sm:$0xff] }
0x1042   :  { %v13420_v46 = vpop.eup %13419 }
0x1043   :  { %v13422_v30 = vpop.eup %13421  ;;  %v11043_v4 = vpack.c.bf16 %v13420_v46, %v13416_v51  ;;  %v18687_v46 = vld [vmem:[#allocation21_spill] sm:$0xff] }
0x1044   :  { %v11041_v31 = vpack.c.bf16 %v13422_v30, %v13418_v24 }
0x1046   :  { %11042 = vmatprep.subr.bf16.mxu0 %v11041_v31 }
0x1047   :  { %11044 = vmatpush1.bf16.msra.mxu0 %v11043_v4 }
0x1048   :  { %11046 = vmatprep.subr.bf16.mxu0 %v14437_v5 }
0x104a   :  { %10090 = vmatmul.mubr.msk.f32.vlgmr.msra.gmra.mrb[102].mxu0 %vm402_vm1, %v15542_v19 }
0x104b   :  { %11048 = vmatpush1.bf16.msra.mxu0 %v14439_v9 }
0x104c   :  { %11050 = vmatprep.subr.bf16.mxu0 %v14441_v10 }
0x104f   :  { %11052 = vmatpush1.bf16.msra.mxu0 %v14445_v15 }
0x1050   :  { %11054 = vmatprep.subr.bf16.mxu0 %v14448_v16 }
0x1053   :  { %11056 = vmatpush1.bf16.msra.mxu0 %v14451_v21 }
0x1054   :  { %11058 = vmatprep.subr.bf16.mxu0 %v14454_v22 }
0x1057   :  { %11060 = vmatpush1.bf16.msra.mxu0 %v14457_v27 }
0x1058   :  { %11062 = vmatprep.subr.bf16.mxu0 %v14460_v28 }
0x105b   :  { %11064 = vmatpush1.bf16.msra.mxu0 %v14463_v33 }
0x105c   :  { %11066 = vmatprep.subr.bf16.mxu0 %v14466_v35 }
0x105f   :  { %11068 = vmatpush1.bf16.msra.mxu0 %v14489_v42 }
0x1060   :  { %11070 = vmatprep.subr.bf16.mxu0 %v14494_v43 }
0x1063   :  { %11072 = vmatpush1.bf16.msra.mxu0 %v14503_v49 }
0x1064   :  { %11074 = vmatprep.subr.bf16.mxu0 %v14511_v52 }
0x1067   :  { %11076 = vmatpush1.bf16.msra.mxu0 %v14529_v60 }
0x1068   :  { %11078 = vmatprep.subr.bf16.mxu0 %v14534_v61 }
0x106b   :  { %11080 = vmatpush1.bf16.msra.mxu0 %v14549_v7 }
0x106c   :  { %11082 = vmatprep.subr.bf16.mxu0 %v14554_v8 }
0x106f   :  { %11084 = vmatpush1.bf16.msra.mxu0 %v14569_v20 }
0x1070   :  { %11086 = vmatprep.subr.bf16.mxu0 %v14574_v23 }
0x1073   :  { %11088 = vmatpush1.bf16.msra.mxu0 %v14584_v32 }
0x1074   :  { %11090 = vmatprep.subr.bf16.mxu0 %v18625_v59 }
0x1077   :  { %11092 = vmatpush1.bf16.msra.mxu0 %v18626_v53 }
0x1078   :  { %11094 = vmatprep.subr.bf16.mxu0 %v18627_v6 }
0x107b   :  { %11096 = vmatpush1.bf16.msra.mxu0 %v18628_v12 }
0x107c   :  { %11098 = vmatprep.subr.bf16.mxu0 %v18629_v63 }
0x107f   :  { %11100 = vmatpush1.bf16.msra.mxu0 %v18630_v14 }
0x1080   :  { %11102 = vmatprep.subr.bf16.mxu0 %v18631_v45 }
0x1083   :  { %11104 = vmatpush1.bf16.msra.mxu0 %v18632_v34 }
0x1084   :  { %11106 = vmatprep.subr.bf16.mxu0 %v18633_v0 }
0x1087   :  { %11108 = vmatpush1.bf16.msra.mxu0 %v18634_v40 }
0x111d   :  { %v2712_v3 = vpop.f32.mrb[102].mxu0 }
0x111e   :  { %v2717_v50 = vadd.f32 %v2712_v3, %v2644_v26  ;;  %v2714_v41 = vpop.f32.mrb[103].mxu0 }
0x111f   :  { %v2718_v11 = vadd.f32 %v2714_v41, %v2645_v54  ;;  %v18689_v41 = vld [vmem:[#allocation22_spill] sm:$0xff] }
0x1120   :  { %v15587_v29 = vadd.f32 %v2717_v50, %v14730_v18 }
0x1121   :  { %v15584_v62 = vadd.f32 %v2718_v11, %v14730_v18 }
0x1123   :  { %2785 = vmatprep.mubr.f32.mxu0 %v15584_v62  ;;  %2792 = vmatprep.subr.mxu1 %v15584_v62 }
0x1124   :  { %2786 = vmatmul.mubr.f32.vlgmr.msra.gmra.mrb[104].mxu0 %v15587_v29  ;;  %2793 = vmatpush1.msra.mxu1 %v15587_v29 }
0x1125   :  { %10091 = vmatmul.mubr.msk.f32.vlgmr.msra.gmra.mrb[76].mxu1 %vm239_vm0, %v15481_v17  ;;  %3138 = vmatprep.mubr.f32.mxu0 %v18615_v37 }
0x1126   :  { %2862 = vmatprep.mubr.f32.mxu1 %v18615_v37 }
0x1129   :  { %10092 = vmatmul.mubr.msk.f32.gmra.mrb[78].mxu1 %vm239_vm0, %v15490_v48 }
0x112a   :  { %2868 = vmatprep.mubr.f32.mxu1 %v18615_v37 }
0x112d   :  { %10093 = vmatmul.mubr.msk.f32.gmra.mrb[80].mxu1 %vm239_vm0, %v15498_v39 }
0x112e   :  { %2874 = vmatprep.mubr.f32.mxu1 %v18615_v37 }
0x1131   :  { %10094 = vmatmul.mubr.msk.f32.gmra.mrb[82].mxu1 %vm239_vm0, %v15371_v2 }
0x1132   :  { %2880 = vmatprep.mubr.f32.mxu1 %v18615_v37 }
0x1135   :  { %10095 = vmatmul.mubr.msk.f32.gmra.mrb[84].mxu1 %vm239_vm0, %v18683_v55 }
0x1136   :  { %2886 = vmatprep.mubr.f32.mxu1 %v18615_v37 }
0x1139   :  { %10096 = vmatmul.mubr.msk.f32.gmra.mrb[86].mxu1 %vm239_vm0, %v18684_v36  ;;  %v18690_v36 = vld [vmem:[#allocation24_spill] sm:$0xff] }
0x113a   :  { %2892 = vmatprep.mubr.f32.mxu1 %v18615_v37 }
0x113d   :  { %10097 = vmatmul.mubr.msk.f32.gmra.mrb[88].mxu1 %vm239_vm0, %v18685_v25 }
0x113e   :  { %2898 = vmatprep.mubr.f32.mxu1 %v18615_v37 }
0x1141   :  { %10098 = vmatmul.mubr.msk.f32.gmra.mrb[90].mxu1 %vm239_vm0, %v18686_v56 }
0x1142   :  { %2989 = vmatprep.mubr.f32.mxu1 %v18615_v37 }
0x11f7   :  { %v15618_v13 = vpop.f32.mrb[104].mxu0 }
0x11f8   :  { %v15620_v51 = vpop.f32.mrb[105].mxu0  ;;  %v2858_v24 = vpop.f32.mrb[76].mxu1 }
0x11f9   :  { %v2859_v30 = vadd.f32 %v2858_v24, %v18687_v46  ;;  %v2860_v4 = vpop.f32.mrb[77].mxu1 }
0x11fa   :  { %v2861_v31 = vadd.f32 %v2860_v4, %v18687_v46 }
0x11fb   :  { %13423 = vtanh.f32 %v2859_v30 }
0x11fc   :  { %v2864_v38 = vpop.f32.mrb[78].mxu1  ;;  %13425 = vtanh.f32 %v2861_v31 }
0x11fd   :  { %v2865_v26 = vadd.f32 %v2864_v38, %v18688_v57  ;;  %v2866_v3 = vpop.f32.mrb[79].mxu1 }
0x11fe   :  { %v2867_v54 = vadd.f32 %v2866_v3, %v18688_v57 }
0x11ff   :  { %13427 = vtanh.f32 %v2865_v26 }
0x1200   :  { %13429 = vtanh.f32 %v2867_v54  ;;  %v2870_v50 = vpop.f32.mrb[80].mxu1 }
0x1201   :  { %v2871_v11 = vadd.f32 %v2870_v50, %v18689_v41  ;;  %v2872_v56 = vpop.f32.mrb[81].mxu1 }
0x1202   :  { %v2873_v25 = vadd.f32 %v2872_v56, %v18689_v41 }
0x1203   :  { %13431 = vtanh.f32 %v2871_v11 }
0x1204   :  { %v2876_v24 = vpop.f32.mrb[82].mxu1  ;;  %13433 = vtanh.f32 %v2873_v25 }
0x1205   :  { %v2877_v4 = vadd.f32 %v2876_v24, %v18690_v36  ;;  %v2878_v46 = vpop.f32.mrb[83].mxu1  ;;  %v13424_v38 = vpop.eup %13423  ;;  %v18691_v24 = vld [vmem:[#allocation26_spill] sm:$0xff] }
0x1206   :  { %v2879_v30 = vadd.f32 %v2878_v46, %v18690_v36  ;;  %v13426_v31 = vpop.eup %13425 }
0x1207   :  { %13435 = vtanh.f32 %v2877_v4 }
0x1208   :  { %13437 = vtanh.f32 %v2879_v30  ;;  %v2882_v26 = vpop.f32.mrb[84].mxu1 }
0x1209   :  { %v13428_v3 = vpop.eup %13427  ;;  %v2883_v54 = vadd.f32 %v2882_v26, %v18621_v58  ;;  %v2884_v50 = vpop.f32.mrb[85].mxu1 }
0x120a   :  { %v13430_v57 = vpop.eup %13429  ;;  %v2885_v56 = vadd.f32 %v2884_v50, %v18621_v58  ;;  %v11111_v41 = vpack.c.bf16 %v13428_v3, %v13424_v38 }
0x120b   :  { %v11109_v11 = vpack.c.bf16 %v13430_v57, %v13426_v31  ;;  %13439 = vtanh.f32 %v2883_v54 }
0x120c   :  { %v2888_v55 = vpop.f32.mrb[86].mxu1  ;;  %13441 = vtanh.f32 %v2885_v56 }
0x120d   :  { %v2889_v25 = vadd.f32 %v2888_v55, %v18691_v24  ;;  %v2890_v2 = vpop.f32.mrb[87].mxu1  ;;  %11110 = vmatprep.subr.bf16.mxu1 %v11109_v11  ;;  %v13432_v4 = vpop.eup %13431 }
0x120e   :  { %v2891_v46 = vadd.f32 %v2890_v2, %v18691_v24  ;;  %11112 = vmatpush1.bf16.msra.mxu1 %v11111_v41  ;;  %v13434_v30 = vpop.eup %13433 }
0x120f   :  { %13443 = vtanh.f32 %v2889_v25 }
0x1210   :  { %13445 = vtanh.f32 %v2891_v46  ;;  %v2894_v26 = vpop.f32.mrb[88].mxu1 }
0x1211   :  { %v13436_v36 = vpop.eup %13435  ;;  %v2895_v50 = vadd.f32 %v2894_v26, %v18623_v47  ;;  %v2896_v38 = vpop.f32.mrb[89].mxu1 }
0x1212   :  { %v13438_v57 = vpop.eup %13437  ;;  %v2897_v31 = vadd.f32 %v2896_v38, %v18623_v47  ;;  %v11115_v3 = vpack.c.bf16 %v13436_v36, %v13432_v4 }
0x1213   :  { %v11113_v55 = vpack.c.bf16 %v13438_v57, %v13434_v30  ;;  %13447 = vtanh.f32 %v2895_v50 }
0x1214   :  { %v2900_v54 = vpop.f32.mrb[90].mxu1  ;;  %13449 = vtanh.f32 %v2897_v31  ;;  %v2922_v31 = vmul.f32 %v15620_v51, %v14722_v1  ;;  %v18695_v51 = vld [vmem:[#allocation13_spill] sm:$0xff] }
0x1215   :  { %v2901_v56 = vadd.f32 %v2900_v54, %v18624_v44  ;;  %v2902_v2 = vpop.f32.mrb[91].mxu1  ;;  %11114 = vmatprep.subr.bf16.mxu1 %v11113_v55  ;;  %v13440_v11 = vpop.eup %13439 }
0x1216   :  { %v2903_v41 = vadd.f32 %v2902_v2, %v18624_v44  ;;  %11116 = vmatpush1.bf16.msra.mxu1 %v11115_v3  ;;  %v13442_v25 = vpop.eup %13441 }
0x1217   :  { %13451 = vtanh.f32 %v2901_v56  ;;  %v2924_v56 = vadd.f32 %v2922_v31, %v15584_v62  ;;  %v18692_v62 = vld [vmem:[#allocation28_spill] sm:$0xff]  ;;  %v18698_v31 = vld [vmem:[#allocation23_spill] sm:$0xff] }
0x1218   :  { %13453 = vtanh.f32 %v2903_v41 }
0x1219   :  { %v13444_v46 = vpop.eup %13443 }
0x121a   :  { %v13446_v26 = vpop.eup %13445  ;;  %v11119_v24 = vpack.c.bf16 %v13444_v46, %v13440_v11 }
0x121b   :  { %v11117_v38 = vpack.c.bf16 %v13446_v26, %v13442_v25  ;;  %v18696_v26 = vld [vmem:[#allocation14_spill] sm:$0xff] }
0x121d   :  { %11118 = vmatprep.subr.bf16.mxu1 %v11117_v38  ;;  %v13448_v36 = vpop.eup %13447 }
0x121e   :  { %11120 = vmatpush1.bf16.msra.mxu1 %v11119_v24  ;;  %v13450_v4 = vpop.eup %13449  ;;  %v2921_v24 = vmul.f32 %v15618_v13, %v14722_v1  ;;  %v18694_v13 = vld [vmem:[#allocation12_spill] sm:$0xff] }
0x1220   :  { %v2923_v3 = vadd.f32 %v2921_v24, %v15587_v29  ;;  %v18693_v29 = vld [vmem:[#allocation11_spill] sm:$0xff] }
0x1221   :  { %v13452_v30 = vpop.eup %13451 }
0x1222   :  { %v13454_v50 = vpop.eup %13453  ;;  %v11123_v57 = vpack.c.bf16 %v13452_v30, %v13448_v36  ;;  %v18697_v30 = vld [vmem:[#allocation21_spill] sm:$0xff] }
0x1223   :  { %v11121_v55 = vpack.c.bf16 %v13454_v50, %v13450_v4 }
0x1225   :  { %11122 = vmatprep.subr.bf16.mxu1 %v11121_v55 }
0x1226   :  { %11124 = vmatpush1.bf16.msra.mxu1 %v11123_v57 }
0x1227   :  { %11126 = vmatprep.subr.bf16.mxu1 %v14437_v5 }
0x1229   :  { %10099 = vmatmul.mubr.msk.f32.vlgmr.msra.gmra.mrb[92].mxu1 %vm402_vm1, %v15542_v19 }
0x122a   :  { %11128 = vmatpush1.bf16.msra.mxu1 %v14439_v9 }
0x122b   :  { %11130 = vmatprep.subr.bf16.mxu1 %v14441_v10 }
0x122e   :  { %11132 = vmatpush1.bf16.msra.mxu1 %v14445_v15 }
0x122f   :  { %11134 = vmatprep.subr.bf16.mxu1 %v14448_v16 }
0x1232   :  { %11136 = vmatpush1.bf16.msra.mxu1 %v14451_v21 }
0x1233   :  { %11138 = vmatprep.subr.bf16.mxu1 %v14454_v22 }
0x1236   :  { %11140 = vmatpush1.bf16.msra.mxu1 %v14457_v27 }
0x1237   :  { %11142 = vmatprep.subr.bf16.mxu1 %v14460_v28 }
0x123a   :  { %11144 = vmatpush1.bf16.msra.mxu1 %v14463_v33 }
0x123b   :  { %11146 = vmatprep.subr.bf16.mxu1 %v14466_v35 }
0x123e   :  { %11148 = vmatpush1.bf16.msra.mxu1 %v14489_v42 }
0x123f   :  { %11150 = vmatprep.subr.bf16.mxu1 %v14494_v43 }
0x1242   :  { %11152 = vmatpush1.bf16.msra.mxu1 %v14503_v49 }
0x1243   :  { %11154 = vmatprep.subr.bf16.mxu1 %v14511_v52 }
0x1246   :  { %11156 = vmatpush1.bf16.msra.mxu1 %v14529_v60 }
0x1247   :  { %11158 = vmatprep.subr.bf16.mxu1 %v14534_v61 }
0x124a   :  { %11160 = vmatpush1.bf16.msra.mxu1 %v14549_v7 }
0x124b   :  { %11162 = vmatprep.subr.bf16.mxu1 %v14554_v8 }
0x124e   :  { %11164 = vmatpush1.bf16.msra.mxu1 %v14569_v20 }
0x124f   :  { %11166 = vmatprep.subr.bf16.mxu1 %v14574_v23 }
0x1252   :  { %11168 = vmatpush1.bf16.msra.mxu1 %v14584_v32 }
0x1253   :  { %11170 = vmatprep.subr.bf16.mxu1 %v18625_v59 }
0x1256   :  { %11172 = vmatpush1.bf16.msra.mxu1 %v18626_v53 }
0x1257   :  { %11174 = vmatprep.subr.bf16.mxu1 %v18627_v6 }
0x125a   :  { %11176 = vmatpush1.bf16.msra.mxu1 %v18628_v12 }
0x125b   :  { %11178 = vmatprep.subr.bf16.mxu1 %v18629_v63 }
0x125e   :  { %11180 = vmatpush1.bf16.msra.mxu1 %v18630_v14 }
0x125f   :  { %11182 = vmatprep.subr.bf16.mxu1 %v18631_v45 }
0x1262   :  { %11184 = vmatpush1.bf16.msra.mxu1 %v18632_v34 }
0x1263   :  { %11186 = vmatprep.subr.bf16.mxu1 %v18633_v0 }
0x1266   :  { %11188 = vmatpush1.bf16.msra.mxu1 %v18634_v40 }
0x12fc   :  { %v2991_v54 = vpop.f32.mrb[92].mxu1 }
0x12fd   :  { %v2996_v2 = vadd.f32 %v2991_v54, %v2923_v3  ;;  %v2993_v41 = vpop.f32.mrb[93].mxu1 }
0x12fe   :  { %v2997_v11 = vadd.f32 %v2993_v41, %v2924_v56  ;;  %v18699_v41 = vld [vmem:[#allocation22_spill] sm:$0xff] }
0x12ff   :  { %v15679_v25 = vadd.f32 %v2996_v2, %v14730_v18 }
0x1300   :  { %v15682_v46 = vadd.f32 %v2997_v11, %v14730_v18 }
0x1301   :  { %3001 = vst [vmem:[#allocation5 + $0x20] sm:$0xff] %v15679_v25 }
0x1302   :  { %3002 = vst [vmem:[#allocation5 + $0x28] sm:$0xff] %v15682_v46  ;;  %3067 = vmatprep.mubr.f32.mxu1 %v15682_v46  ;;  %3074 = vmatprep.subr.mxu0 %v15682_v46 }
0x1303   :  { %3068 = vmatmul.mubr.f32.vlgmr.msra.gmra.mrb[94].mxu1 %v15679_v25  ;;  %3075 = vmatpush1.msra.mxu0 %v15679_v25 }
0x1304   :  { %10100 = vmatmul.mubr.msk.f32.vlgmr.msra.gmra.mrb[106].mxu0 %vm239_vm0, %v15481_v17  ;;  %3417 = vmatprep.mubr.f32.mxu1 %v18615_v37 }
0x1305   :  { %3144 = vmatprep.mubr.f32.mxu0 %v18615_v37 }
0x1308   :  { %10101 = vmatmul.mubr.msk.f32.gmra.mrb[108].mxu0 %vm239_vm0, %v15490_v48 }
0x1309   :  { %3150 = vmatprep.mubr.f32.mxu0 %v18615_v37 }
0x130c   :  { %10102 = vmatmul.mubr.msk.f32.gmra.mrb[110].mxu0 %vm239_vm0, %v15498_v39 }
0x130d   :  { %3156 = vmatprep.mubr.f32.mxu0 %v18615_v37 }
0x1310   :  { %10103 = vmatmul.mubr.msk.f32.gmra.mrb[112].mxu0 %vm239_vm0, %v18692_v62 }
0x1311   :  { %3162 = vmatprep.mubr.f32.mxu0 %v18615_v37 }
0x1314   :  { %10104 = vmatmul.mubr.msk.f32.gmra.mrb[114].mxu0 %vm239_vm0, %v18693_v29 }
0x1315   :  { %3168 = vmatprep.mubr.f32.mxu0 %v18615_v37 }
0x1318   :  { %10105 = vmatmul.mubr.msk.f32.gmra.mrb[116].mxu0 %vm239_vm0, %v18694_v13 }
0x1319   :  { %3174 = vmatprep.mubr.f32.mxu0 %v18615_v37 }
0x131c   :  { %10106 = vmatmul.mubr.msk.f32.gmra.mrb[118].mxu0 %vm239_vm0, %v18695_v51  ;;  %v18700_v51 = vld [vmem:[#allocation24_spill] sm:$0xff] }
0x131d   :  { %3180 = vmatprep.mubr.f32.mxu0 %v18615_v37 }
0x1320   :  { %10107 = vmatmul.mubr.msk.f32.gmra.mrb[120].mxu0 %vm239_vm0, %v18696_v26 }
0x1321   :  { %3271 = vmatprep.mubr.f32.mxu0 %v18615_v37 }
0x13d6   :  { %v15715_v38 = vpop.f32.mrb[94].mxu1 }
0x13d7   :  { %v15717_v36 = vpop.f32.mrb[95].mxu1  ;;  %v3140_v4 = vpop.f32.mrb[106].mxu0 }
0x13d8   :  { %v3141_v50 = vadd.f32 %v3140_v4, %v18697_v30  ;;  %v3142_v57 = vpop.f32.mrb[107].mxu0 }
0x13d9   :  { %v3143_v55 = vadd.f32 %v3142_v57, %v18697_v30 }
0x13da   :  { %13455 = vtanh.f32 %v3141_v50 }
0x13db   :  { %v3146_v24 = vpop.f32.mrb[108].mxu0  ;;  %13457 = vtanh.f32 %v3143_v55 }
0x13dc   :  { %v3147_v3 = vadd.f32 %v3146_v24, %v18698_v31  ;;  %v3148_v54 = vpop.f32.mrb[109].mxu0 }
0x13dd   :  { %v3149_v56 = vadd.f32 %v3148_v54, %v18698_v31 }
0x13de   :  { %13459 = vtanh.f32 %v3147_v3 }
0x13df   :  { %13461 = vtanh.f32 %v3149_v56  ;;  %v3152_v2 = vpop.f32.mrb[110].mxu0 }
0x13e0   :  { %v3153_v11 = vadd.f32 %v3152_v2, %v18699_v41  ;;  %v3154_v62 = vpop.f32.mrb[111].mxu0 }
0x13e1   :  { %v3155_v29 = vadd.f32 %v3154_v62, %v18699_v41 }
0x13e2   :  { %13463 = vtanh.f32 %v3153_v11 }
0x13e3   :  { %v3158_v13 = vpop.f32.mrb[112].mxu0  ;;  %13465 = vtanh.f32 %v3155_v29 }
0x13e4   :  { %v3159_v26 = vadd.f32 %v3158_v13, %v18700_v51  ;;  %v3160_v4 = vpop.f32.mrb[113].mxu0  ;;  %v13456_v57 = vpop.eup %13455  ;;  %v18701_v13 = vld [vmem:[#allocation26_spill] sm:$0xff] }
0x13e5   :  { %v3161_v50 = vadd.f32 %v3160_v4, %v18700_v51  ;;  %v13458_v55 = vpop.eup %13457 }
0x13e6   :  { %13467 = vtanh.f32 %v3159_v26 }
0x13e7   :  { %13469 = vtanh.f32 %v3161_v50  ;;  %v3164_v24 = vpop.f32.mrb[114].mxu0 }
0x13e8   :  { %v13460_v3 = vpop.eup %13459  ;;  %v3165_v54 = vadd.f32 %v3164_v24, %v18621_v58  ;;  %v3166_v56 = vpop.f32.mrb[115].mxu0 }
0x13e9   :  { %v13462_v2 = vpop.eup %13461  ;;  %v3167_v62 = vadd.f32 %v3166_v56, %v18621_v58  ;;  %v11191_v41 = vpack.c.bf16 %v13460_v3, %v13456_v57 }
0x13ea   :  { %v11189_v11 = vpack.c.bf16 %v13462_v2, %v13458_v55  ;;  %13471 = vtanh.f32 %v3165_v54 }
0x13eb   :  { %v3170_v31 = vpop.f32.mrb[116].mxu0  ;;  %13473 = vtanh.f32 %v3167_v62 }
0x13ec   :  { %v3171_v29 = vadd.f32 %v3170_v31, %v18701_v13  ;;  %v3172_v30 = vpop.f32.mrb[117].mxu0  ;;  %11190 = vmatprep.subr.bf16.mxu0 %v11189_v11  ;;  %v13464_v4 = vpop.eup %13463 }
0x13ed   :  { %v3173_v26 = vadd.f32 %v3172_v30, %v18701_v13  ;;  %11192 = vmatpush1.bf16.msra.mxu0 %v11191_v41  ;;  %v13466_v50 = vpop.eup %13465 }
0x13ee   :  { %13475 = vtanh.f32 %v3171_v29 }
0x13ef   :  { %13477 = vtanh.f32 %v3173_v26  ;;  %v3176_v24 = vpop.f32.mrb[118].mxu0 }
0x13f0   :  { %v13468_v51 = vpop.eup %13467  ;;  %v3177_v56 = vadd.f32 %v3176_v24, %v18623_v47  ;;  %v3178_v57 = vpop.f32.mrb[119].mxu0 }
0x13f1   :  { %v13470_v55 = vpop.eup %13469  ;;  %v3179_v3 = vadd.f32 %v3178_v57, %v18623_v47  ;;  %v11195_v54 = vpack.c.bf16 %v13468_v51, %v13464_v4 }
0x13f2   :  { %v11193_v31 = vpack.c.bf16 %v13470_v55, %v13466_v50  ;;  %13479 = vtanh.f32 %v3177_v56 }
0x13f3   :  { %v3182_v2 = vpop.f32.mrb[120].mxu0  ;;  %13481 = vtanh.f32 %v3179_v3  ;;  %v3204_v3 = vmul.f32 %v15717_v36, %v14722_v1 }
0x13f4   :  { %v3183_v62 = vadd.f32 %v3182_v2, %v18624_v44  ;;  %v3184_v30 = vpop.f32.mrb[121].mxu0  ;;  %11194 = vmatprep.subr.bf16.mxu0 %v11193_v31  ;;  %v13472_v11 = vpop.eup %13471 }
0x13f5   :  { %v3185_v41 = vadd.f32 %v3184_v30, %v18624_v44  ;;  %11196 = vmatpush1.bf16.msra.mxu0 %v11195_v54  ;;  %v13474_v29 = vpop.eup %13473 }
0x13f6   :  { %13483 = vtanh.f32 %v3183_v62  ;;  %v3206_v62 = vadd.f32 %v3204_v3, %v15682_v46  ;;  %v15830_v46 = vld [vmem:[%s18320_s3 + $0x38] sm:$0xff] }
0x13f7   :  { %13485 = vtanh.f32 %v3185_v41  ;;  %18706 = vst [vmem:[#allocation19_spill] sm:$0xff] %v15830_v46 }
0x13f8   :  { %v13476_v26 = vpop.eup %13475 }
0x13f9   :  { %v13478_v24 = vpop.eup %13477  ;;  %v11199_v13 = vpack.c.bf16 %v13476_v26, %v13472_v11 }
0x13fa   :  { %v11197_v57 = vpack.c.bf16 %v13478_v24, %v13474_v29 }
0x13fc   :  { %11198 = vmatprep.subr.bf16.mxu0 %v11197_v57  ;;  %v13480_v51 = vpop.eup %13479  ;;  %v18707_v57 = vld [vmem:[#allocation21_spill] sm:$0xff] }
0x13fd   :  { %11200 = vmatpush1.bf16.msra.mxu0 %v11199_v13  ;;  %v13482_v4 = vpop.eup %13481  ;;  %v3203_v13 = vmul.f32 %v15715_v38, %v14722_v1 }
0x13ff   :  { %v3205_v54 = vadd.f32 %v3203_v13, %v15679_v25  ;;  %v15798_v25 = vld [vmem:[%s18320_s3 + $0x18] sm:$0xff] }
0x1400   :  { %v13484_v50 = vpop.eup %13483  ;;  %18702 = vst [vmem:[#allocation15_spill] sm:$0xff] %v15798_v25 }
0x1401   :  { %v13486_v56 = vpop.eup %13485  ;;  %v11203_v55 = vpack.c.bf16 %v13484_v50, %v13480_v51 }
0x1402   :  { %v11201_v31 = vpack.c.bf16 %v13486_v56, %v13482_v4 }
0x1404   :  { %11202 = vmatprep.subr.bf16.mxu0 %v11201_v31 }
0x1405   :  { %11204 = vmatpush1.bf16.msra.mxu0 %v11203_v55  ;;  %v18708_v55 = vld [vmem:[#allocation23_spill] sm:$0xff] }
0x1406   :  { %11206 = vmatprep.subr.bf16.mxu0 %v14437_v5 }
0x1408   :  { %10108 = vmatmul.mubr.msk.f32.vlgmr.msra.gmra.mrb[122].mxu0 %vm402_vm1, %v15542_v19 }
0x1409   :  { %11208 = vmatpush1.bf16.msra.mxu0 %v14439_v9 }
0x140a   :  { %11210 = vmatprep.subr.bf16.mxu0 %v14441_v10 }
0x140d   :  { %11212 = vmatpush1.bf16.msra.mxu0 %v14445_v15 }
0x140e   :  { %11214 = vmatprep.subr.bf16.mxu0 %v14448_v16 }
0x1411   :  { %11216 = vmatpush1.bf16.msra.mxu0 %v14451_v21 }
0x1412   :  { %11218 = vmatprep.subr.bf16.mxu0 %v14454_v22 }
0x1415   :  { %11220 = vmatpush1.bf16.msra.mxu0 %v14457_v27 }
0x1416   :  { %11222 = vmatprep.subr.bf16.mxu0 %v14460_v28 }
0x1419   :  { %11224 = vmatpush1.bf16.msra.mxu0 %v14463_v33 }
0x141a   :  { %11226 = vmatprep.subr.bf16.mxu0 %v14466_v35 }
0x141d   :  { %11228 = vmatpush1.bf16.msra.mxu0 %v14489_v42 }
0x141e   :  { %11230 = vmatprep.subr.bf16.mxu0 %v14494_v43 }
0x1421   :  { %11232 = vmatpush1.bf16.msra.mxu0 %v14503_v49 }
0x1422   :  { %11234 = vmatprep.subr.bf16.mxu0 %v14511_v52 }
0x1425   :  { %11236 = vmatpush1.bf16.msra.mxu0 %v14529_v60 }
0x1426   :  { %11238 = vmatprep.subr.bf16.mxu0 %v14534_v61 }
0x1429   :  { %11240 = vmatpush1.bf16.msra.mxu0 %v14549_v7 }
0x142a   :  { %11242 = vmatprep.subr.bf16.mxu0 %v14554_v8 }
0x142d   :  { %11244 = vmatpush1.bf16.msra.mxu0 %v14569_v20 }
0x142e   :  { %11246 = vmatprep.subr.bf16.mxu0 %v14574_v23 }
0x1431   :  { %11248 = vmatpush1.bf16.msra.mxu0 %v14584_v32 }
0x1432   :  { %11250 = vmatprep.subr.bf16.mxu0 %v18625_v59 }
0x1435   :  { %11252 = vmatpush1.bf16.msra.mxu0 %v18626_v53 }
0x1436   :  { %11254 = vmatprep.subr.bf16.mxu0 %v18627_v6 }
0x1439   :  { %11256 = vmatpush1.bf16.msra.mxu0 %v18628_v12 }
0x143a   :  { %11258 = vmatprep.subr.bf16.mxu0 %v18629_v63 }
0x143d   :  { %11260 = vmatpush1.bf16.msra.mxu0 %v18630_v14 }
0x143e   :  { %11262 = vmatprep.subr.bf16.mxu0 %v18631_v45 }
0x1441   :  { %11264 = vmatpush1.bf16.msra.mxu0 %v18632_v34 }
0x1442   :  { %11266 = vmatprep.subr.bf16.mxu0 %v18633_v0 }
0x1445   :  { %11268 = vmatpush1.bf16.msra.mxu0 %v18634_v40 }
0x14db   :  { %v3273_v2 = vpop.f32.mrb[122].mxu0 }
0x14dc   :  { %v3278_v30 = vadd.f32 %v3273_v2, %v3205_v54  ;;  %v3275_v41 = vpop.f32.mrb[123].mxu0  ;;  %v18709_v2 = vld [vmem:[#allocation22_spill] sm:$0xff] }
0x14dd   :  { %v3279_v11 = vadd.f32 %v3275_v41, %v3206_v62 }
0x14de   :  { %v15779_v26 = vadd.f32 %v3278_v30, %v14730_v18 }
0x14df   :  { %v15776_v29 = vadd.f32 %v3279_v11, %v14730_v18 }
0x14e1   :  { %3346 = vmatprep.mubr.f32.mxu0 %v15776_v29  ;;  %3353 = vmatprep.subr.mxu1 %v15776_v29 }
0x14e2   :  { %3347 = vmatmul.mubr.f32.vlgmr.msra.gmra.mrb[124].mxu0 %v15779_v26  ;;  %3354 = vmatpush1.msra.mxu1 %v15779_v26 }
0x14e3   :  { %10109 = vmatmul.mubr.msk.f32.vlgmr.msra.gmra.mrb[96].mxu1 %vm239_vm0, %v15481_v17  ;;  %3696 = vmatprep.mubr.f32.mxu0 %v18615_v37  ;;  %v15806_v17 = vld [vmem:[%s18320_s3 + $0x20] sm:$0xff] }
0x14e4   :  { %3423 = vmatprep.mubr.f32.mxu1 %v18615_v37  ;;  %18703 = vst [vmem:[#allocation16_spill] sm:$0xff] %v15806_v17 }
0x14e7   :  { %10110 = vmatmul.mubr.msk.f32.gmra.mrb[98].mxu1 %vm239_vm0, %v15490_v48  ;;  %v15814_v48 = vld [vmem:[%s18320_s3 + $0x28] sm:$0xff] }
0x14e8   :  { %3429 = vmatprep.mubr.f32.mxu1 %v18615_v37  ;;  %18704 = vst [vmem:[#allocation17_spill] sm:$0xff] %v15814_v48 }
0x14eb   :  { %10111 = vmatmul.mubr.msk.f32.gmra.mrb[100].mxu1 %vm239_vm0, %v15498_v39  ;;  %v15822_v39 = vld [vmem:[%s18320_s3 + $0x30] sm:$0xff] }
0x14ec   :  { %3435 = vmatprep.mubr.f32.mxu1 %v18615_v37  ;;  %18705 = vst [vmem:[#allocation18_spill] sm:$0xff] %v15822_v39 }
0x14ef   :  { %10112 = vmatmul.mubr.msk.f32.gmra.mrb[102].mxu1 %vm239_vm0, %v15798_v25 }
0x14f0   :  { %3441 = vmatprep.mubr.f32.mxu1 %v18615_v37 }
0x14f3   :  { %10113 = vmatmul.mubr.msk.f32.gmra.mrb[104].mxu1 %vm239_vm0, %v15806_v17 }
0x14f4   :  { %3447 = vmatprep.mubr.f32.mxu1 %v18615_v37 }
0x14f7   :  { %10114 = vmatmul.mubr.msk.f32.gmra.mrb[106].mxu1 %vm239_vm0, %v15814_v48 }
0x14f8   :  { %3453 = vmatprep.mubr.f32.mxu1 %v18615_v37 }
0x14fb   :  { %10115 = vmatmul.mubr.msk.f32.gmra.mrb[108].mxu1 %vm239_vm0, %v15822_v39 }
0x14fc   :  { %3459 = vmatprep.mubr.f32.mxu1 %v18615_v37 }
0x14ff   :  { %10116 = vmatmul.mubr.msk.f32.gmra.mrb[110].mxu1 %vm239_vm0, %v15830_v46 }
0x1500   :  { %3550 = vmatprep.mubr.f32.mxu1 %v18615_v37 }
0x15b5   :  { %v15835_v38 = vpop.f32.mrb[124].mxu0 }
0x15b6   :  { %v15837_v36 = vpop.f32.mrb[125].mxu0  ;;  %v3419_v24 = vpop.f32.mrb[96].mxu1 }
0x15b7   :  { %v3420_v51 = vadd.f32 %v3419_v24, %v18707_v57  ;;  %v3421_v4 = vpop.f32.mrb[97].mxu1  ;;  %v18710_v24 = vld [vmem:[#allocation24_spill] sm:$0xff] }
0x15b8   :  { %v3422_v50 = vadd.f32 %v3421_v4, %v18707_v57 }
0x15b9   :  { %13487 = vtanh.f32 %v3420_v51 }
0x15ba   :  { %v3425_v56 = vpop.f32.mrb[98].mxu1  ;;  %13489 = vtanh.f32 %v3422_v50 }
0x15bb   :  { %v3426_v31 = vadd.f32 %v3425_v56, %v18708_v55  ;;  %v3427_v13 = vpop.f32.mrb[99].mxu1 }
0x15bc   :  { %v3428_v3 = vadd.f32 %v3427_v13, %v18708_v55 }
0x15bd   :  { %13491 = vtanh.f32 %v3426_v31 }
0x15be   :  { %13493 = vtanh.f32 %v3428_v3  ;;  %v3431_v54 = vpop.f32.mrb[100].mxu1 }
0x15bf   :  { %v3432_v62 = vadd.f32 %v3431_v54, %v18709_v2  ;;  %v3433_v30 = vpop.f32.mrb[101].mxu1 }
0x15c0   :  { %v3434_v41 = vadd.f32 %v3433_v30, %v18709_v2 }
0x15c1   :  { %13495 = vtanh.f32 %v3432_v62 }
0x15c2   :  { %v3437_v11 = vpop.f32.mrb[102].mxu1  ;;  %13497 = vtanh.f32 %v3434_v41 }
0x15c3   :  { %v3438_v4 = vadd.f32 %v3437_v11, %v18710_v24  ;;  %v3439_v57 = vpop.f32.mrb[103].mxu1  ;;  %v13488_v56 = vpop.eup %13487  ;;  %v18711_v11 = vld [vmem:[#allocation26_spill] sm:$0xff] }
0x15c4   :  { %v3440_v51 = vadd.f32 %v3439_v57, %v18710_v24  ;;  %v13490_v50 = vpop.eup %13489 }
0x15c5   :  { %13499 = vtanh.f32 %v3438_v4 }
0x15c6   :  { %13501 = vtanh.f32 %v3440_v51  ;;  %v3443_v31 = vpop.f32.mrb[104].mxu1 }
0x15c7   :  { %v13492_v13 = vpop.eup %13491  ;;  %v3444_v3 = vadd.f32 %v3443_v31, %v18621_v58  ;;  %v3445_v54 = vpop.f32.mrb[105].mxu1 }
0x15c8   :  { %v13494_v55 = vpop.eup %13493  ;;  %v3446_v30 = vadd.f32 %v3445_v54, %v18621_v58  ;;  %v11271_v2 = vpack.c.bf16 %v13492_v13, %v13488_v56 }
0x15c9   :  { %v11269_v62 = vpack.c.bf16 %v13494_v55, %v13490_v50  ;;  %13503 = vtanh.f32 %v3444_v3 }
0x15ca   :  { %v3449_v46 = vpop.f32.mrb[106].mxu1  ;;  %13505 = vtanh.f32 %v3446_v30 }
0x15cb   :  { %v3450_v41 = vadd.f32 %v3449_v46, %v18711_v11  ;;  %v3451_v39 = vpop.f32.mrb[107].mxu1  ;;  %11270 = vmatprep.subr.bf16.mxu1 %v11269_v62  ;;  %v13496_v4 = vpop.eup %13495 }
0x15cc   :  { %v3452_v57 = vadd.f32 %v3451_v39, %v18711_v11  ;;  %11272 = vmatpush1.bf16.msra.mxu1 %v11271_v2  ;;  %v13498_v51 = vpop.eup %13497 }
0x15cd   :  { %13507 = vtanh.f32 %v3450_v41 }
0x15ce   :  { %13509 = vtanh.f32 %v3452_v57  ;;  %v3455_v31 = vpop.f32.mrb[108].mxu1 }
0x15cf   :  { %v13500_v24 = vpop.eup %13499  ;;  %v3456_v54 = vadd.f32 %v3455_v31, %v18623_v47  ;;  %v3457_v56 = vpop.f32.mrb[109].mxu1 }
0x15d0   :  { %v13502_v55 = vpop.eup %13501  ;;  %v3458_v50 = vadd.f32 %v3457_v56, %v18623_v47  ;;  %v11275_v13 = vpack.c.bf16 %v13500_v24, %v13496_v4 }
0x15d1   :  { %v11273_v46 = vpack.c.bf16 %v13502_v55, %v13498_v51  ;;  %13511 = vtanh.f32 %v3456_v54 }
0x15d2   :  { %v3461_v3 = vpop.f32.mrb[110].mxu1  ;;  %13513 = vtanh.f32 %v3458_v50 }
0x15d3   :  { %v3462_v30 = vadd.f32 %v3461_v3, %v18624_v44  ;;  %v3463_v39 = vpop.f32.mrb[111].mxu1  ;;  %11274 = vmatprep.subr.bf16.mxu1 %v11273_v46  ;;  %v13504_v62 = vpop.eup %13503 }
0x15d4   :  { %v3464_v2 = vadd.f32 %v3463_v39, %v18624_v44  ;;  %11276 = vmatpush1.bf16.msra.mxu1 %v11275_v13  ;;  %v13506_v41 = vpop.eup %13505 }
0x15d5   :  { %13515 = vtanh.f32 %v3462_v30 }
0x15d6   :  { %13517 = vtanh.f32 %v3464_v2 }
0x15d7   :  { %v13508_v57 = vpop.eup %13507 }
0x15d8   :  { %v13510_v31 = vpop.eup %13509  ;;  %v11279_v11 = vpack.c.bf16 %v13508_v57, %v13504_v62  ;;  %v18713_v57 = vld [vmem:[#allocation19_spill] sm:$0xff] }
0x15d9   :  { %v11277_v56 = vpack.c.bf16 %v13510_v31, %v13506_v41 }
0x15db   :  { %11278 = vmatprep.subr.bf16.mxu1 %v11277_v56  ;;  %v13512_v24 = vpop.eup %13511 }
0x15dc   :  { %11280 = vmatpush1.bf16.msra.mxu1 %v11279_v11  ;;  %v13514_v4 = vpop.eup %13513  ;;  %v3483_v11 = vmul.f32 %v15837_v36, %v14722_v1  ;;  %v18712_v36 = vld [vmem:[#allocation18_spill] sm:$0xff] }
0x15de   :  { %v3485_v3 = vadd.f32 %v3483_v11, %v15776_v29  ;;  %v15908_v29 = vld [vmem:[%s18320_s3] sm:$0xff] }
0x15df   :  { %v13516_v51 = vpop.eup %13515 }
0x15e0   :  { %v13518_v54 = vpop.eup %13517  ;;  %v11283_v55 = vpack.c.bf16 %v13516_v51, %v13512_v24 }
0x15e1   :  { %v11281_v46 = vpack.c.bf16 %v13518_v54, %v13514_v4  ;;  %v18714_v4 = vld [vmem:[#allocation21_spill] sm:$0xff] }
0x15e3   :  { %11282 = vmatprep.subr.bf16.mxu1 %v11281_v46 }
0x15e4   :  { %11284 = vmatpush1.bf16.msra.mxu1 %v11283_v55 }
0x15e5   :  { %11286 = vmatprep.subr.bf16.mxu1 %v14437_v5 }
0x15e7   :  { %10117 = vmatmul.mubr.msk.f32.vlgmr.msra.gmra.mrb[112].mxu1 %vm402_vm1, %v15542_v19  ;;  %v3482_v19 = vmul.f32 %v15835_v38, %v14722_v1  ;;  %v15925_v38 = vld [vmem:[%s18320_s3 + $0x10] sm:$0xff] }
0x15e8   :  { %11288 = vmatpush1.bf16.msra.mxu1 %v14439_v9 }
0x15e9   :  { %11290 = vmatprep.subr.bf16.mxu1 %v14441_v10  ;;  %v3484_v50 = vadd.f32 %v3482_v19, %v15779_v26  ;;  %v15917_v26 = vld [vmem:[%s18320_s3 + $0x8] sm:$0xff]  ;;  %v18715_v19 = vld [vmem:[#allocation23_spill] sm:$0xff] }
0x15ec   :  { %11292 = vmatpush1.bf16.msra.mxu1 %v14445_v15 }
0x15ed   :  { %11294 = vmatprep.subr.bf16.mxu1 %v14448_v16 }
0x15f0   :  { %11296 = vmatpush1.bf16.msra.mxu1 %v14451_v21 }
0x15f1   :  { %11298 = vmatprep.subr.bf16.mxu1 %v14454_v22 }
0x15f4   :  { %11300 = vmatpush1.bf16.msra.mxu1 %v14457_v27 }
0x15f5   :  { %11302 = vmatprep.subr.bf16.mxu1 %v14460_v28 }
0x15f8   :  { %11304 = vmatpush1.bf16.msra.mxu1 %v14463_v33 }
0x15f9   :  { %11306 = vmatprep.subr.bf16.mxu1 %v14466_v35 }
0x15fc   :  { %11308 = vmatpush1.bf16.msra.mxu1 %v14489_v42 }
0x15fd   :  { %11310 = vmatprep.subr.bf16.mxu1 %v14494_v43 }
0x1600   :  { %11312 = vmatpush1.bf16.msra.mxu1 %v14503_v49 }
0x1601   :  { %11314 = vmatprep.subr.bf16.mxu1 %v14511_v52 }
0x1604   :  { %11316 = vmatpush1.bf16.msra.mxu1 %v14529_v60 }
0x1605   :  { %11318 = vmatprep.subr.bf16.mxu1 %v14534_v61 }
0x1608   :  { %11320 = vmatpush1.bf16.msra.mxu1 %v14549_v7 }
0x1609   :  { %11322 = vmatprep.subr.bf16.mxu1 %v14554_v8 }
0x160c   :  { %11324 = vmatpush1.bf16.msra.mxu1 %v14569_v20 }
0x160d   :  { %11326 = vmatprep.subr.bf16.mxu1 %v14574_v23 }
0x1610   :  { %11328 = vmatpush1.bf16.msra.mxu1 %v14584_v32 }
0x1611   :  { %11330 = vmatprep.subr.bf16.mxu1 %v18625_v59 }
0x1614   :  { %11332 = vmatpush1.bf16.msra.mxu1 %v18626_v53 }
0x1615   :  { %11334 = vmatprep.subr.bf16.mxu1 %v18627_v6 }
0x1618   :  { %11336 = vmatpush1.bf16.msra.mxu1 %v18628_v12 }
0x1619   :  { %11338 = vmatprep.subr.bf16.mxu1 %v18629_v63 }
0x161c   :  { %11340 = vmatpush1.bf16.msra.mxu1 %v18630_v14 }
0x161d   :  { %11342 = vmatprep.subr.bf16.mxu1 %v18631_v45 }
0x1620   :  { %11344 = vmatpush1.bf16.msra.mxu1 %v18632_v34 }
0x1621   :  { %11346 = vmatprep.subr.bf16.mxu1 %v18633_v0 }
0x1624   :  { %11348 = vmatpush1.bf16.msra.mxu1 %v18634_v40 }
0x16ba   :  { %v3552_v13 = vpop.f32.mrb[112].mxu1 }
0x16bb   :  { %v3557_v30 = vadd.f32 %v3552_v13, %v3484_v50  ;;  %v3554_v39 = vpop.f32.mrb[113].mxu1 }
0x16bc   :  { %v3558_v2 = vadd.f32 %v3554_v39, %v3485_v3 }
0x16bd   :  { %v15899_v41 = vadd.f32 %v3557_v30, %v14730_v18  ;;  %v18716_v30 = vld [vmem:[#allocation22_spill] sm:$0xff] }
0x16be   :  { %v15896_v62 = vadd.f32 %v3558_v2, %v14730_v18 }
0x16c0   :  { %3625 = vmatprep.mubr.f32.mxu1 %v15896_v62  ;;  %3632 = vmatprep.subr.mxu0 %v15896_v62 }
0x16c1   :  { %3626 = vmatmul.mubr.f32.vlgmr.msra.gmra.mrb[114].mxu1 %v15899_v41  ;;  %3633 = vmatpush1.msra.mxu0 %v15899_v41 }
0x16c2   :  { %10118 = vmatmul.mubr.msk.f32.vlgmr.msra.gmra.mrb[126].mxu0 %vm239_vm0, %v15908_v29  ;;  %3975 = vmatprep.mubr.f32.mxu1 %v18615_v37 }
0x16c3   :  { %3702 = vmatprep.mubr.f32.mxu0 %v18615_v37 }
0x16c6   :  { %10119 = vmatmul.mubr.msk.f32.gmra.mrb[128].mxu0 %vm239_vm0, %v15917_v26 }
0x16c7   :  { %3708 = vmatprep.mubr.f32.mxu0 %v18615_v37 }
0x16ca   :  { %10120 = vmatmul.mubr.msk.f32.gmra.mrb[130].mxu0 %vm239_vm0, %v15925_v38 }
0x16cb   :  { %3714 = vmatprep.mubr.f32.mxu0 %v18615_v37 }
0x16ce   :  { %10121 = vmatmul.mubr.msk.f32.gmra.mrb[132].mxu0 %vm239_vm0, %v15798_v25 }
0x16cf   :  { %3720 = vmatprep.mubr.f32.mxu0 %v18615_v37 }
0x16d2   :  { %10122 = vmatmul.mubr.msk.f32.gmra.mrb[134].mxu0 %vm239_vm0, %v15806_v17 }
0x16d3   :  { %3726 = vmatprep.mubr.f32.mxu0 %v18615_v37 }
0x16d6   :  { %10123 = vmatmul.mubr.msk.f32.gmra.mrb[136].mxu0 %vm239_vm0, %v15814_v48 }
0x16d7   :  { %3732 = vmatprep.mubr.f32.mxu0 %v18615_v37 }
0x16da   :  { %10124 = vmatmul.mubr.msk.f32.gmra.mrb[138].mxu0 %vm239_vm0, %v18712_v36  ;;  %v18717_v36 = vld [vmem:[#allocation24_spill] sm:$0xff] }
0x16db   :  { %3738 = vmatprep.mubr.f32.mxu0 %v18615_v37 }
0x16de   :  { %10125 = vmatmul.mubr.msk.f32.gmra.mrb[140].mxu0 %vm239_vm0, %v18713_v57 }
0x16df   :  { %3829 = vmatprep.mubr.f32.mxu0 %v18615_v37 }
0x1794   :  { %v15945_v31 = vpop.f32.mrb[114].mxu1 }
0x1795   :  { %v15947_v56 = vpop.f32.mrb[115].mxu1  ;;  %v3698_v24 = vpop.f32.mrb[126].mxu0 }
0x1796   :  { %v3699_v51 = vadd.f32 %v3698_v24, %v18714_v4  ;;  %v3700_v54 = vpop.f32.mrb[127].mxu0 }
0x1797   :  { %v3701_v55 = vadd.f32 %v3700_v54, %v18714_v4 }
0x1798   :  { %13519 = vtanh.f32 %v3699_v51 }
0x1799   :  { %v3704_v46 = vpop.f32.mrb[128].mxu0  ;;  %13521 = vtanh.f32 %v3701_v55 }
0x179a   :  { %v3705_v11 = vadd.f32 %v3704_v46, %v18715_v19  ;;  %v3706_v50 = vpop.f32.mrb[129].mxu0 }
0x179b   :  { %v3707_v13 = vadd.f32 %v3706_v50, %v18715_v19 }
0x179c   :  { %13523 = vtanh.f32 %v3705_v11 }
0x179d   :  { %13525 = vtanh.f32 %v3707_v13  ;;  %v3710_v3 = vpop.f32.mrb[130].mxu0 }
0x179e   :  { %v3711_v39 = vadd.f32 %v3710_v3, %v18716_v30  ;;  %v3712_v2 = vpop.f32.mrb[131].mxu0 }
0x179f   :  { %v3713_v57 = vadd.f32 %v3712_v2, %v18716_v30 }
0x17a0   :  { %13527 = vtanh.f32 %v3711_v39 }
0x17a1   :  { %v3716_v24 = vpop.f32.mrb[132].mxu0  ;;  %13529 = vtanh.f32 %v3713_v57 }
0x17a2   :  { %v3717_v54 = vadd.f32 %v3716_v24, %v18717_v36  ;;  %v3718_v4 = vpop.f32.mrb[133].mxu0  ;;  %v13520_v46 = vpop.eup %13519  ;;  %v18718_v24 = vld [vmem:[#allocation26_spill] sm:$0xff] }
0x17a3   :  { %v3719_v51 = vadd.f32 %v3718_v4, %v18717_v36  ;;  %v13522_v55 = vpop.eup %13521 }
0x17a4   :  { %13531 = vtanh.f32 %v3717_v54 }
0x17a5   :  { %13533 = vtanh.f32 %v3719_v51  ;;  %v3722_v11 = vpop.f32.mrb[134].mxu0 }
0x17a6   :  { %v13524_v50 = vpop.eup %13523  ;;  %v3723_v13 = vadd.f32 %v3722_v11, %v18621_v58  ;;  %v3724_v3 = vpop.f32.mrb[135].mxu0 }
0x17a7   :  { %v13526_v19 = vpop.eup %13525  ;;  %v3725_v2 = vadd.f32 %v3724_v3, %v18621_v58  ;;  %v11351_v30 = vpack.c.bf16 %v13524_v50, %v13520_v46 }
0x17a8   :  { %v11349_v39 = vpack.c.bf16 %v13526_v19, %v13522_v55  ;;  %13535 = vtanh.f32 %v3723_v13 }
0x17a9   :  { %v3728_v48 = vpop.f32.mrb[136].mxu0  ;;  %13537 = vtanh.f32 %v3725_v2 }
0x17aa   :  { %v3729_v57 = vadd.f32 %v3728_v48, %v18718_v24  ;;  %v3730_v17 = vpop.f32.mrb[137].mxu0  ;;  %11350 = vmatprep.subr.bf16.mxu0 %v11349_v39  ;;  %v13528_v54 = vpop.eup %13527 }
0x17ab   :  { %v3731_v4 = vadd.f32 %v3730_v17, %v18718_v24  ;;  %11352 = vmatpush1.bf16.msra.mxu0 %v11351_v30  ;;  %v13530_v51 = vpop.eup %13529 }
0x17ac   :  { %13539 = vtanh.f32 %v3729_v57 }
0x17ad   :  { %13541 = vtanh.f32 %v3731_v4  ;;  %v3734_v11 = vpop.f32.mrb[138].mxu0 }
0x17ae   :  { %v13532_v36 = vpop.eup %13531  ;;  %v3735_v3 = vadd.f32 %v3734_v11, %v18623_v47  ;;  %v3736_v46 = vpop.f32.mrb[139].mxu0 }
0x17af   :  { %v13534_v19 = vpop.eup %13533  ;;  %v3737_v55 = vadd.f32 %v3736_v46, %v18623_v47  ;;  %v11355_v50 = vpack.c.bf16 %v13532_v36, %v13528_v54 }
0x17b0   :  { %v11353_v48 = vpack.c.bf16 %v13534_v19, %v13530_v51  ;;  %13543 = vtanh.f32 %v3735_v3 }
0x17b1   :  { %v3740_v13 = vpop.f32.mrb[140].mxu0  ;;  %13545 = vtanh.f32 %v3737_v55  ;;  %v15969_v55 = vld [vmem:[%s18322_s5] sm:$0xff] }
0x17b2   :  { %v3741_v2 = vadd.f32 %v3740_v13, %v18624_v44  ;;  %v3742_v17 = vpop.f32.mrb[141].mxu0  ;;  %11354 = vmatprep.subr.bf16.mxu0 %v11353_v48  ;;  %v13536_v39 = vpop.eup %13535 }
0x17b3   :  { %v3743_v30 = vadd.f32 %v3742_v17, %v18624_v44  ;;  %11356 = vmatpush1.bf16.msra.mxu0 %v11355_v50  ;;  %v13538_v57 = vpop.eup %13537  ;;  %v3762_v50 = vmul.f32 %v15947_v56, %v14722_v1  ;;  %v18722_v56 = vld [vmem:[#allocation19_spill] sm:$0xff] }
0x17b4   :  { %13547 = vtanh.f32 %v3741_v2 }
0x17b5   :  { %13549 = vtanh.f32 %v3743_v30  ;;  %v3764_v17 = vadd.f32 %v3762_v50, %v15896_v62  ;;  %v18719_v62 = vld [vmem:[#allocation16_spill] sm:$0xff]  ;;  %v18724_v50 = vld [vmem:[#allocation23_spill] sm:$0xff] }
0x17b6   :  { %v13540_v4 = vpop.eup %13539 }
0x17b7   :  { %v13542_v11 = vpop.eup %13541  ;;  %v11359_v24 = vpack.c.bf16 %v13540_v4, %v13536_v39 }
0x17b8   :  { %v11357_v46 = vpack.c.bf16 %v13542_v11, %v13538_v57 }
0x17ba   :  { %11358 = vmatprep.subr.bf16.mxu0 %v11357_v46  ;;  %v13544_v36 = vpop.eup %13543 }
0x17bb   :  { %11360 = vmatpush1.bf16.msra.mxu0 %v11359_v24  ;;  %v13546_v54 = vpop.eup %13545  ;;  %v3761_v24 = vmul.f32 %v15945_v31, %v14722_v1  ;;  %v18721_v31 = vld [vmem:[#allocation18_spill] sm:$0xff] }
0x17bd   :  { %v3763_v13 = vadd.f32 %v3761_v24, %v15899_v41  ;;  %v18720_v41 = vld [vmem:[#allocation17_spill] sm:$0xff] }
0x17be   :  { %v13548_v51 = vpop.eup %13547 }
0x17bf   :  { %v13550_v3 = vpop.eup %13549  ;;  %v11363_v19 = vpack.c.bf16 %v13548_v51, %v13544_v36  ;;  %v18723_v51 = vld [vmem:[#allocation21_spill] sm:$0xff] }
0x17c0   :  { %v11361_v48 = vpack.c.bf16 %v13550_v3, %v13546_v54 }
0x17c2   :  { %11362 = vmatprep.subr.bf16.mxu0 %v11361_v48 }
0x17c3   :  { %11364 = vmatpush1.bf16.msra.mxu0 %v11363_v19 }
0x17c4   :  { %11366 = vmatprep.subr.bf16.mxu0 %v14437_v5 }
0x17c6   :  { %10126 = vmatmul.mubr.msk.f32.vlgmr.msra.gmra.mrb[142].mxu0 %vm402_vm1, %v15969_v55 }
0x17c7   :  { %11368 = vmatpush1.bf16.msra.mxu0 %v14439_v9 }
0x17c8   :  { %11370 = vmatprep.subr.bf16.mxu0 %v14441_v10 }
0x17cb   :  { %11372 = vmatpush1.bf16.msra.mxu0 %v14445_v15 }
0x17cc   :  { %11374 = vmatprep.subr.bf16.mxu0 %v14448_v16 }
0x17cf   :  { %11376 = vmatpush1.bf16.msra.mxu0 %v14451_v21 }
0x17d0   :  { %11378 = vmatprep.subr.bf16.mxu0 %v14454_v22 }
0x17d3   :  { %11380 = vmatpush1.bf16.msra.mxu0 %v14457_v27 }
0x17d4   :  { %11382 = vmatprep.subr.bf16.mxu0 %v14460_v28 }
0x17d7   :  { %11384 = vmatpush1.bf16.msra.mxu0 %v14463_v33 }
0x17d8   :  { %11386 = vmatprep.subr.bf16.mxu0 %v14466_v35 }
0x17db   :  { %11388 = vmatpush1.bf16.msra.mxu0 %v14489_v42 }
0x17dc   :  { %11390 = vmatprep.subr.bf16.mxu0 %v14494_v43 }
0x17df   :  { %11392 = vmatpush1.bf16.msra.mxu0 %v14503_v49 }
0x17e0   :  { %11394 = vmatprep.subr.bf16.mxu0 %v14511_v52 }
0x17e3   :  { %11396 = vmatpush1.bf16.msra.mxu0 %v14529_v60 }
0x17e4   :  { %11398 = vmatprep.subr.bf16.mxu0 %v14534_v61 }
0x17e7   :  { %11400 = vmatpush1.bf16.msra.mxu0 %v14549_v7 }
0x17e8   :  { %11402 = vmatprep.subr.bf16.mxu0 %v14554_v8 }
0x17eb   :  { %11404 = vmatpush1.bf16.msra.mxu0 %v14569_v20 }
0x17ec   :  { %11406 = vmatprep.subr.bf16.mxu0 %v14574_v23 }
0x17ef   :  { %11408 = vmatpush1.bf16.msra.mxu0 %v14584_v32 }
0x17f0   :  { %11410 = vmatprep.subr.bf16.mxu0 %v18625_v59 }
0x17f3   :  { %11412 = vmatpush1.bf16.msra.mxu0 %v18626_v53 }
0x17f4   :  { %11414 = vmatprep.subr.bf16.mxu0 %v18627_v6 }
0x17f7   :  { %11416 = vmatpush1.bf16.msra.mxu0 %v18628_v12 }
0x17f8   :  { %11418 = vmatprep.subr.bf16.mxu0 %v18629_v63 }
0x17fb   :  { %11420 = vmatpush1.bf16.msra.mxu0 %v18630_v14 }
0x17fc   :  { %11422 = vmatprep.subr.bf16.mxu0 %v18631_v45 }
0x17ff   :  { %11424 = vmatpush1.bf16.msra.mxu0 %v18632_v34 }
0x1800   :  { %11426 = vmatprep.subr.bf16.mxu0 %v18633_v0 }
0x1803   :  { %11428 = vmatpush1.bf16.msra.mxu0 %v18634_v40 }
0x1899   :  { %v3831_v2 = vpop.f32.mrb[142].mxu0 }
0x189a   :  { %v3836_v30 = vadd.f32 %v3831_v2, %v3763_v13  ;;  %v3833_v39 = vpop.f32.mrb[143].mxu0 }
0x189b   :  { %v3837_v57 = vadd.f32 %v3833_v39, %v3764_v17  ;;  %v18725_v39 = vld [vmem:[#allocation22_spill] sm:$0xff] }
0x189c   :  { %v16014_v11 = vadd.f32 %v3836_v30, %v14730_v18 }
0x189d   :  { %v16011_v4 = vadd.f32 %v3837_v57, %v14730_v18 }
0x189f   :  { %3904 = vmatprep.mubr.f32.mxu0 %v16011_v4  ;;  %3911 = vmatprep.subr.mxu1 %v16011_v4 }
0x18a0   :  { %3905 = vmatmul.mubr.f32.vlgmr.msra.gmra.mrb[144].mxu0 %v16014_v11  ;;  %3912 = vmatpush1.msra.mxu1 %v16014_v11 }
0x18a1   :  { %10127 = vmatmul.mubr.msk.f32.vlgmr.msra.gmra.mrb[116].mxu1 %vm239_vm0, %v15908_v29  ;;  %4254 = vmatprep.mubr.f32.mxu0 %v18615_v37 }
0x18a2   :  { %3981 = vmatprep.mubr.f32.mxu1 %v18615_v37 }
0x18a5   :  { %10128 = vmatmul.mubr.msk.f32.gmra.mrb[118].mxu1 %vm239_vm0, %v15917_v26 }
0x18a6   :  { %3987 = vmatprep.mubr.f32.mxu1 %v18615_v37 }
0x18a9   :  { %10129 = vmatmul.mubr.msk.f32.gmra.mrb[120].mxu1 %vm239_vm0, %v15925_v38 }
0x18aa   :  { %3993 = vmatprep.mubr.f32.mxu1 %v18615_v37 }
0x18ad   :  { %10130 = vmatmul.mubr.msk.f32.gmra.mrb[122].mxu1 %vm239_vm0, %v15798_v25 }
0x18ae   :  { %3999 = vmatprep.mubr.f32.mxu1 %v18615_v37 }
0x18b1   :  { %10131 = vmatmul.mubr.msk.f32.gmra.mrb[124].mxu1 %vm239_vm0, %v18719_v62 }
0x18b2   :  { %4005 = vmatprep.mubr.f32.mxu1 %v18615_v37 }
0x18b5   :  { %10132 = vmatmul.mubr.msk.f32.gmra.mrb[126].mxu1 %vm239_vm0, %v18720_v41  ;;  %v18726_v41 = vld [vmem:[#allocation24_spill] sm:$0xff] }
0x18b6   :  { %4011 = vmatprep.mubr.f32.mxu1 %v18615_v37 }
0x18b9   :  { %10133 = vmatmul.mubr.msk.f32.gmra.mrb[128].mxu1 %vm239_vm0, %v18721_v31 }
0x18ba   :  { %4017 = vmatprep.mubr.f32.mxu1 %v18615_v37 }
0x18bd   :  { %10134 = vmatmul.mubr.msk.f32.gmra.mrb[130].mxu1 %vm239_vm0, %v18722_v56 }
0x18be   :  { %4108 = vmatprep.mubr.f32.mxu1 %v18615_v37 }
0x1973   :  { %v16045_v46 = vpop.f32.mrb[144].mxu0 }
0x1974   :  { %v16047_v36 = vpop.f32.mrb[145].mxu0  ;;  %v3977_v54 = vpop.f32.mrb[116].mxu1 }
0x1975   :  { %v3978_v3 = vadd.f32 %v3977_v54, %v18723_v51  ;;  %v3979_v19 = vpop.f32.mrb[117].mxu1 }
0x1976   :  { %v3980_v48 = vadd.f32 %v3979_v19, %v18723_v51 }
0x1977   :  { %13551 = vtanh.f32 %v3978_v3 }
0x1978   :  { %v3983_v24 = vpop.f32.mrb[118].mxu1  ;;  %13553 = vtanh.f32 %v3980_v48 }
0x1979   :  { %v3984_v13 = vadd.f32 %v3983_v24, %v18724_v50  ;;  %v3985_v2 = vpop.f32.mrb[119].mxu1 }
0x197a   :  { %v3986_v17 = vadd.f32 %v3985_v2, %v18724_v50 }
0x197b   :  { %13555 = vtanh.f32 %v3984_v13 }
0x197c   :  { %13557 = vtanh.f32 %v3986_v17  ;;  %v3989_v30 = vpop.f32.mrb[120].mxu1 }
0x197d   :  { %v3990_v57 = vadd.f32 %v3989_v30, %v18725_v39  ;;  %v3991_v56 = vpop.f32.mrb[121].mxu1 }
0x197e   :  { %v3992_v31 = vadd.f32 %v3991_v56, %v18725_v39 }
0x197f   :  { %13559 = vtanh.f32 %v3990_v57 }
0x1980   :  { %v3995_v54 = vpop.f32.mrb[122].mxu1  ;;  %13561 = vtanh.f32 %v3992_v31 }
0x1981   :  { %v3996_v19 = vadd.f32 %v3995_v54, %v18726_v41  ;;  %v3997_v51 = vpop.f32.mrb[123].mxu1  ;;  %v13552_v24 = vpop.eup %13551  ;;  %v18727_v54 = vld [vmem:[#allocation26_spill] sm:$0xff] }
0x1982   :  { %v3998_v3 = vadd.f32 %v3997_v51, %v18726_v41  ;;  %v13554_v48 = vpop.eup %13553 }
0x1983   :  { %13563 = vtanh.f32 %v3996_v19 }
0x1984   :  { %13565 = vtanh.f32 %v3998_v3  ;;  %v4001_v13 = vpop.f32.mrb[124].mxu1 }
0x1985   :  { %v13556_v2 = vpop.eup %13555  ;;  %v4002_v17 = vadd.f32 %v4001_v13, %v18621_v58  ;;  %v4003_v30 = vpop.f32.mrb[125].mxu1 }
0x1986   :  { %v13558_v50 = vpop.eup %13557  ;;  %v4004_v56 = vadd.f32 %v4003_v30, %v18621_v58  ;;  %v11431_v39 = vpack.c.bf16 %v13556_v2, %v13552_v24 }
0x1987   :  { %v11429_v57 = vpack.c.bf16 %v13558_v50, %v13554_v48  ;;  %13567 = vtanh.f32 %v4002_v17 }
0x1988   :  { %v4007_v62 = vpop.f32.mrb[126].mxu1  ;;  %13569 = vtanh.f32 %v4004_v56 }
0x1989   :  { %v4008_v31 = vadd.f32 %v4007_v62, %v18727_v54  ;;  %v4009_v25 = vpop.f32.mrb[127].mxu1  ;;  %11430 = vmatprep.subr.bf16.mxu1 %v11429_v57  ;;  %v13560_v19 = vpop.eup %13559 }
0x198a   :  { %v4010_v51 = vadd.f32 %v4009_v25, %v18727_v54  ;;  %11432 = vmatpush1.bf16.msra.mxu1 %v11431_v39  ;;  %v13562_v3 = vpop.eup %13561 }
0x198b   :  { %13571 = vtanh.f32 %v4008_v31 }
0x198c   :  { %13573 = vtanh.f32 %v4010_v51  ;;  %v4013_v13 = vpop.f32.mrb[128].mxu1 }
0x198d   :  { %v13564_v41 = vpop.eup %13563  ;;  %v4014_v30 = vadd.f32 %v4013_v13, %v18623_v47  ;;  %v4015_v24 = vpop.f32.mrb[129].mxu1 }
0x198e   :  { %v13566_v50 = vpop.eup %13565  ;;  %v4016_v48 = vadd.f32 %v4015_v24, %v18623_v47  ;;  %v11435_v2 = vpack.c.bf16 %v13564_v41, %v13560_v19 }
0x198f   :  { %v11433_v62 = vpack.c.bf16 %v13566_v50, %v13562_v3  ;;  %13575 = vtanh.f32 %v4014_v30 }
0x1990   :  { %v4019_v17 = vpop.f32.mrb[130].mxu1  ;;  %13577 = vtanh.f32 %v4016_v48  ;;  %v4041_v48 = vmul.f32 %v16047_v36, %v14722_v1  ;;  %v18731_v36 = vld [vmem:[#allocation18_spill] sm:$0xff] }
0x1991   :  { %v4020_v56 = vadd.f32 %v4019_v17, %v18624_v44  ;;  %v4021_v25 = vpop.f32.mrb[131].mxu1  ;;  %11434 = vmatprep.subr.bf16.mxu1 %v11433_v62  ;;  %v13568_v57 = vpop.eup %13567 }
0x1992   :  { %v4022_v39 = vadd.f32 %v4021_v25, %v18624_v44  ;;  %11436 = vmatpush1.bf16.msra.mxu1 %v11435_v2  ;;  %v13570_v31 = vpop.eup %13569 }
0x1993   :  { %13579 = vtanh.f32 %v4020_v56  ;;  %v4043_v56 = vadd.f32 %v4041_v48, %v16011_v4  ;;  %v18728_v4 = vld [vmem:[#allocation15_spill] sm:$0xff] }
0x1994   :  { %13581 = vtanh.f32 %v4022_v39  ;;  %v18734_v48 = vld [vmem:[#allocation23_spill] sm:$0xff] }
0x1995   :  { %v13572_v51 = vpop.eup %13571 }
0x1996   :  { %v13574_v13 = vpop.eup %13573  ;;  %v11439_v54 = vpack.c.bf16 %v13572_v51, %v13568_v57 }
0x1997   :  { %v11437_v24 = vpack.c.bf16 %v13574_v13, %v13570_v31  ;;  %v18732_v13 = vld [vmem:[#allocation19_spill] sm:$0xff] }
0x1999   :  { %11438 = vmatprep.subr.bf16.mxu1 %v11437_v24  ;;  %v13576_v41 = vpop.eup %13575 }
0x199a   :  { %11440 = vmatpush1.bf16.msra.mxu1 %v11439_v54  ;;  %v13578_v19 = vpop.eup %13577  ;;  %v4040_v54 = vmul.f32 %v16045_v46, %v14722_v1  ;;  %v18730_v46 = vld [vmem:[#allocation17_spill] sm:$0xff] }
0x199c   :  { %v4042_v2 = vadd.f32 %v4040_v54, %v16014_v11  ;;  %v18729_v11 = vld [vmem:[#allocation16_spill] sm:$0xff] }
0x199d   :  { %v13580_v3 = vpop.eup %13579 }
0x199e   :  { %v13582_v30 = vpop.eup %13581  ;;  %v11443_v50 = vpack.c.bf16 %v13580_v3, %v13576_v41  ;;  %v18733_v3 = vld [vmem:[#allocation21_spill] sm:$0xff] }
0x199f   :  { %v11441_v62 = vpack.c.bf16 %v13582_v30, %v13578_v19 }
0x19a1   :  { %11442 = vmatprep.subr.bf16.mxu1 %v11441_v62 }
0x19a2   :  { %11444 = vmatpush1.bf16.msra.mxu1 %v11443_v50 }
0x19a3   :  { %11446 = vmatprep.subr.bf16.mxu1 %v14437_v5 }
0x19a5   :  { %10135 = vmatmul.mubr.msk.f32.vlgmr.msra.gmra.mrb[132].mxu1 %vm402_vm1, %v15969_v55 }
0x19a6   :  { %11448 = vmatpush1.bf16.msra.mxu1 %v14439_v9 }
0x19a7   :  { %11450 = vmatprep.subr.bf16.mxu1 %v14441_v10 }
0x19aa   :  { %11452 = vmatpush1.bf16.msra.mxu1 %v14445_v15 }
0x19ab   :  { %11454 = vmatprep.subr.bf16.mxu1 %v14448_v16 }
0x19ae   :  { %11456 = vmatpush1.bf16.msra.mxu1 %v14451_v21 }
0x19af   :  { %11458 = vmatprep.subr.bf16.mxu1 %v14454_v22 }
0x19b2   :  { %11460 = vmatpush1.bf16.msra.mxu1 %v14457_v27 }
0x19b3   :  { %11462 = vmatprep.subr.bf16.mxu1 %v14460_v28 }
0x19b6   :  { %11464 = vmatpush1.bf16.msra.mxu1 %v14463_v33 }
0x19b7   :  { %11466 = vmatprep.subr.bf16.mxu1 %v14466_v35 }
0x19ba   :  { %11468 = vmatpush1.bf16.msra.mxu1 %v14489_v42 }
0x19bb   :  { %11470 = vmatprep.subr.bf16.mxu1 %v14494_v43 }
0x19be   :  { %11472 = vmatpush1.bf16.msra.mxu1 %v14503_v49 }
0x19bf   :  { %11474 = vmatprep.subr.bf16.mxu1 %v14511_v52 }
0x19c2   :  { %11476 = vmatpush1.bf16.msra.mxu1 %v14529_v60 }
0x19c3   :  { %11478 = vmatprep.subr.bf16.mxu1 %v14534_v61 }
0x19c6   :  { %11480 = vmatpush1.bf16.msra.mxu1 %v14549_v7 }
0x19c7   :  { %11482 = vmatprep.subr.bf16.mxu1 %v14554_v8 }
0x19ca   :  { %11484 = vmatpush1.bf16.msra.mxu1 %v14569_v20 }
0x19cb   :  { %11486 = vmatprep.subr.bf16.mxu1 %v14574_v23 }
0x19ce   :  { %11488 = vmatpush1.bf16.msra.mxu1 %v14584_v32 }
0x19cf   :  { %11490 = vmatprep.subr.bf16.mxu1 %v18625_v59 }
0x19d2   :  { %11492 = vmatpush1.bf16.msra.mxu1 %v18626_v53 }
0x19d3   :  { %11494 = vmatprep.subr.bf16.mxu1 %v18627_v6 }
0x19d6   :  { %11496 = vmatpush1.bf16.msra.mxu1 %v18628_v12 }
0x19d7   :  { %11498 = vmatprep.subr.bf16.mxu1 %v18629_v63 }
0x19da   :  { %11500 = vmatpush1.bf16.msra.mxu1 %v18630_v14 }
0x19db   :  { %11502 = vmatprep.subr.bf16.mxu1 %v18631_v45 }
0x19de   :  { %11504 = vmatpush1.bf16.msra.mxu1 %v18632_v34 }
0x19df   :  { %11506 = vmatprep.subr.bf16.mxu1 %v18633_v0 }
0x19e2   :  { %11508 = vmatpush1.bf16.msra.mxu1 %v18634_v40 }
0x1a78   :  { %v4110_v17 = vpop.f32.mrb[132].mxu1 }
0x1a79   :  { %v4115_v25 = vadd.f32 %v4110_v17, %v4042_v2  ;;  %v4112_v39 = vpop.f32.mrb[133].mxu1 }
0x1a7a   :  { %v4116_v57 = vadd.f32 %v4112_v39, %v4043_v56  ;;  %v18735_v39 = vld [vmem:[#allocation22_spill] sm:$0xff] }
0x1a7b   :  { %v16109_v51 = vadd.f32 %v4115_v25, %v14730_v18 }
0x1a7c   :  { %v16106_v31 = vadd.f32 %v4116_v57, %v14730_v18 }
0x1a7e   :  { %4183 = vmatprep.mubr.f32.mxu1 %v16106_v31  ;;  %4190 = vmatprep.subr.mxu0 %v16106_v31 }
0x1a7f   :  { %4184 = vmatmul.mubr.f32.vlgmr.msra.gmra.mrb[134].mxu1 %v16109_v51  ;;  %4191 = vmatpush1.msra.mxu0 %v16109_v51 }
0x1a80   :  { %10136 = vmatmul.mubr.msk.f32.vlgmr.msra.gmra.mrb[146].mxu0 %vm239_vm0, %v15908_v29  ;;  %4536 = vmatprep.mubr.f32.mxu1 %v18615_v37 }
0x1a81   :  { %4260 = vmatprep.mubr.f32.mxu0 %v18615_v37 }
0x1a84   :  { %10137 = vmatmul.mubr.msk.f32.gmra.mrb[148].mxu0 %vm239_vm0, %v15917_v26 }
0x1a85   :  { %4266 = vmatprep.mubr.f32.mxu0 %v18615_v37 }
0x1a88   :  { %10138 = vmatmul.mubr.msk.f32.gmra.mrb[150].mxu0 %vm239_vm0, %v15925_v38 }
0x1a89   :  { %4272 = vmatprep.mubr.f32.mxu0 %v18615_v37 }
0x1a8c   :  { %10139 = vmatmul.mubr.msk.f32.gmra.mrb[152].mxu0 %vm239_vm0, %v18728_v4 }
0x1a8d   :  { %4278 = vmatprep.mubr.f32.mxu0 %v18615_v37 }
0x1a90   :  { %10140 = vmatmul.mubr.msk.f32.gmra.mrb[154].mxu0 %vm239_vm0, %v18729_v11 }
0x1a91   :  { %4284 = vmatprep.mubr.f32.mxu0 %v18615_v37 }
0x1a94   :  { %10141 = vmatmul.mubr.msk.f32.gmra.mrb[156].mxu0 %vm239_vm0, %v18730_v46 }
0x1a95   :  { %4290 = vmatprep.mubr.f32.mxu0 %v18615_v37 }
0x1a98   :  { %10142 = vmatmul.mubr.msk.f32.gmra.mrb[158].mxu0 %vm239_vm0, %v18731_v36  ;;  %v18736_v36 = vld [vmem:[#allocation24_spill] sm:$0xff] }
0x1a99   :  { %4296 = vmatprep.mubr.f32.mxu0 %v18615_v37 }
0x1a9c   :  { %10143 = vmatmul.mubr.msk.f32.gmra.mrb[160].mxu0 %vm239_vm0, %v18732_v13 }
0x1a9d   :  { %4387 = vmatprep.mubr.f32.mxu0 %v18615_v37 }
0x1b52   :  { %v16140_v24 = vpop.f32.mrb[134].mxu1 }
0x1b53   :  { %v16142_v41 = vpop.f32.mrb[135].mxu1  ;;  %v4256_v19 = vpop.f32.mrb[146].mxu0 }
0x1b54   :  { %v4257_v30 = vadd.f32 %v4256_v19, %v18733_v3  ;;  %v4258_v50 = vpop.f32.mrb[147].mxu0 }
0x1b55   :  { %v4259_v62 = vadd.f32 %v4258_v50, %v18733_v3 }
0x1b56   :  { %13583 = vtanh.f32 %v4257_v30 }
0x1b57   :  { %v4262_v54 = vpop.f32.mrb[148].mxu0  ;;  %13585 = vtanh.f32 %v4259_v62 }
0x1b58   :  { %v4263_v2 = vadd.f32 %v4262_v54, %v18734_v48  ;;  %v4264_v17 = vpop.f32.mrb[149].mxu0 }
0x1b59   :  { %v4265_v56 = vadd.f32 %v4264_v17, %v18734_v48 }
0x1b5a   :  { %13587 = vtanh.f32 %v4263_v2 }
0x1b5b   :  { %13589 = vtanh.f32 %v4265_v56  ;;  %v4268_v25 = vpop.f32.mrb[150].mxu0 }
0x1b5c   :  { %v4269_v57 = vadd.f32 %v4268_v25, %v18735_v39  ;;  %v4270_v4 = vpop.f32.mrb[151].mxu0 }
0x1b5d   :  { %v4271_v11 = vadd.f32 %v4270_v4, %v18735_v39 }
0x1b5e   :  { %13591 = vtanh.f32 %v4269_v57 }
0x1b5f   :  { %v4274_v46 = vpop.f32.mrb[152].mxu0  ;;  %13593 = vtanh.f32 %v4271_v11 }
0x1b60   :  { %v4275_v13 = vadd.f32 %v4274_v46, %v18736_v36  ;;  %v4276_v19 = vpop.f32.mrb[153].mxu0  ;;  %v13584_v50 = vpop.eup %13583  ;;  %v18737_v46 = vld [vmem:[#allocation26_spill] sm:$0xff] }
0x1b61   :  { %v4277_v30 = vadd.f32 %v4276_v19, %v18736_v36  ;;  %v13586_v62 = vpop.eup %13585 }
0x1b62   :  { %13595 = vtanh.f32 %v4275_v13 }
0x1b63   :  { %13597 = vtanh.f32 %v4277_v30  ;;  %v4280_v54 = vpop.f32.mrb[154].mxu0 }
0x1b64   :  { %v13588_v2 = vpop.eup %13587  ;;  %v4281_v17 = vadd.f32 %v4280_v54, %v18621_v58  ;;  %v4282_v56 = vpop.f32.mrb[155].mxu0 }
0x1b65   :  { %v13590_v25 = vpop.eup %13589  ;;  %v4283_v4 = vadd.f32 %v4282_v56, %v18621_v58  ;;  %v11511_v39 = vpack.c.bf16 %v13588_v2, %v13584_v50 }
0x1b66   :  { %v11509_v57 = vpack.c.bf16 %v13590_v25, %v13586_v62  ;;  %13599 = vtanh.f32 %v4281_v17 }
0x1b67   :  { %v4286_v48 = vpop.f32.mrb[156].mxu0  ;;  %13601 = vtanh.f32 %v4283_v4 }
0x1b68   :  { %v4287_v11 = vadd.f32 %v4286_v48, %v18737_v46  ;;  %v4288_v3 = vpop.f32.mrb[157].mxu0  ;;  %11510 = vmatprep.subr.bf16.mxu0 %v11509_v57  ;;  %v13592_v19 = vpop.eup %13591 }
0x1b69   :  { %v4289_v13 = vadd.f32 %v4288_v3, %v18737_v46  ;;  %11512 = vmatpush1.bf16.msra.mxu0 %v11511_v39  ;;  %v13594_v30 = vpop.eup %13593 }
0x1b6a   :  { %13603 = vtanh.f32 %v4287_v11 }
0x1b6b   :  { %13605 = vtanh.f32 %v4289_v13  ;;  %v4292_v54 = vpop.f32.mrb[158].mxu0 }
0x1b6c   :  { %v13596_v36 = vpop.eup %13595  ;;  %v4293_v56 = vadd.f32 %v4292_v54, %v18623_v47  ;;  %v4294_v50 = vpop.f32.mrb[159].mxu0 }
0x1b6d   :  { %v13598_v62 = vpop.eup %13597  ;;  %v4295_v2 = vadd.f32 %v4294_v50, %v18623_v47  ;;  %v11515_v17 = vpack.c.bf16 %v13596_v36, %v13592_v19 }
0x1b6e   :  { %v11513_v48 = vpack.c.bf16 %v13598_v62, %v13594_v30  ;;  %13607 = vtanh.f32 %v4293_v56 }
0x1b6f   :  { %v4298_v25 = vpop.f32.mrb[160].mxu0  ;;  %13609 = vtanh.f32 %v4295_v2  ;;  %v4320_v2 = vmul.f32 %v16142_v41, %v14722_v1 }
0x1b70   :  { %v4299_v4 = vadd.f32 %v4298_v25, %v18624_v44  ;;  %v4300_v3 = vpop.f32.mrb[161].mxu0  ;;  %11514 = vmatprep.subr.bf16.mxu0 %v11513_v48  ;;  %v13600_v57 = vpop.eup %13599 }
0x1b71   :  { %v4301_v39 = vadd.f32 %v4300_v3, %v18624_v44  ;;  %11516 = vmatpush1.bf16.msra.mxu0 %v11515_v17  ;;  %v13602_v11 = vpop.eup %13601 }
0x1b72   :  { %13611 = vtanh.f32 %v4299_v4  ;;  %v4322_v4 = vadd.f32 %v4320_v2, %v16106_v31  ;;  %v16225_v31 = vld [vmem:[%s18320_s3 + $0x18] sm:$0xff] }
0x1b73   :  { %13613 = vtanh.f32 %v4301_v39  ;;  %18738 = vst [vmem:[#allocation20_spill] sm:$0xff] %v16225_v31 }
0x1b74   :  { %v13604_v13 = vpop.eup %13603 }
0x1b75   :  { %v13606_v54 = vpop.eup %13605  ;;  %v11519_v46 = vpack.c.bf16 %v13604_v13, %v13600_v57 }
0x1b76   :  { %v11517_v50 = vpack.c.bf16 %v13606_v54, %v13602_v11 }
0x1b78   :  { %11518 = vmatprep.subr.bf16.mxu0 %v11517_v50  ;;  %v13608_v36 = vpop.eup %13607  ;;  %v18743_v50 = vld [vmem:[#allocation21_spill] sm:$0xff] }
0x1b79   :  { %11520 = vmatpush1.bf16.msra.mxu0 %v11519_v46  ;;  %v13610_v19 = vpop.eup %13609  ;;  %v4319_v46 = vmul.f32 %v16140_v24, %v14722_v1 }
0x1b7b   :  { %v4321_v17 = vadd.f32 %v4319_v46, %v16109_v51  ;;  %v16257_v51 = vld [vmem:[%s18320_s3 + $0x38] sm:$0xff] }
0x1b7c   :  { %v13612_v30 = vpop.eup %13611  ;;  %18742 = vst [vmem:[#allocation25_spill] sm:$0xff] %v16257_v51 }
0x1b7d   :  { %v13614_v56 = vpop.eup %13613  ;;  %v11523_v62 = vpack.c.bf16 %v13612_v30, %v13608_v36 }
0x1b7e   :  { %v11521_v48 = vpack.c.bf16 %v13614_v56, %v13610_v19 }
0x1b80   :  { %11522 = vmatprep.subr.bf16.mxu0 %v11521_v48 }
0x1b81   :  { %11524 = vmatpush1.bf16.msra.mxu0 %v11523_v62  ;;  %v18744_v62 = vld [vmem:[#allocation23_spill] sm:$0xff] }
0x1b82   :  { %11526 = vmatprep.subr.bf16.mxu0 %v14437_v5 }
0x1b84   :  { %10144 = vmatmul.mubr.msk.f32.vlgmr.msra.gmra.mrb[162].mxu0 %vm402_vm1, %v15969_v55 }
0x1b85   :  { %11528 = vmatpush1.bf16.msra.mxu0 %v14439_v9 }
0x1b86   :  { %11530 = vmatprep.subr.bf16.mxu0 %v14441_v10 }
0x1b89   :  { %11532 = vmatpush1.bf16.msra.mxu0 %v14445_v15 }
0x1b8a   :  { %11534 = vmatprep.subr.bf16.mxu0 %v14448_v16 }
0x1b8d   :  { %11536 = vmatpush1.bf16.msra.mxu0 %v14451_v21 }
0x1b8e   :  { %11538 = vmatprep.subr.bf16.mxu0 %v14454_v22 }
0x1b91   :  { %11540 = vmatpush1.bf16.msra.mxu0 %v14457_v27 }
0x1b92   :  { %11542 = vmatprep.subr.bf16.mxu0 %v14460_v28 }
0x1b95   :  { %11544 = vmatpush1.bf16.msra.mxu0 %v14463_v33 }
0x1b96   :  { %11546 = vmatprep.subr.bf16.mxu0 %v14466_v35 }
0x1b99   :  { %11548 = vmatpush1.bf16.msra.mxu0 %v14489_v42 }
0x1b9a   :  { %11550 = vmatprep.subr.bf16.mxu0 %v14494_v43 }
0x1b9d   :  { %11552 = vmatpush1.bf16.msra.mxu0 %v14503_v49 }
0x1b9e   :  { %11554 = vmatprep.subr.bf16.mxu0 %v14511_v52 }
0x1ba1   :  { %11556 = vmatpush1.bf16.msra.mxu0 %v14529_v60 }
0x1ba2   :  { %11558 = vmatprep.subr.bf16.mxu0 %v14534_v61 }
0x1ba5   :  { %11560 = vmatpush1.bf16.msra.mxu0 %v14549_v7 }
0x1ba6   :  { %11562 = vmatprep.subr.bf16.mxu0 %v14554_v8 }
0x1ba9   :  { %11564 = vmatpush1.bf16.msra.mxu0 %v14569_v20 }
0x1baa   :  { %11566 = vmatprep.subr.bf16.mxu0 %v14574_v23 }
0x1bad   :  { %11568 = vmatpush1.bf16.msra.mxu0 %v14584_v32 }
0x1bae   :  { %11570 = vmatprep.subr.bf16.mxu0 %v18625_v59 }
0x1bb1   :  { %11572 = vmatpush1.bf16.msra.mxu0 %v18626_v53 }
0x1bb2   :  { %11574 = vmatprep.subr.bf16.mxu0 %v18627_v6 }
0x1bb5   :  { %11576 = vmatpush1.bf16.msra.mxu0 %v18628_v12 }
0x1bb6   :  { %11578 = vmatprep.subr.bf16.mxu0 %v18629_v63 }
0x1bb9   :  { %11580 = vmatpush1.bf16.msra.mxu0 %v18630_v14 }
0x1bba   :  { %11582 = vmatprep.subr.bf16.mxu0 %v18631_v45 }
0x1bbd   :  { %11584 = vmatpush1.bf16.msra.mxu0 %v18632_v34 }
0x1bbe   :  { %11586 = vmatprep.subr.bf16.mxu0 %v18633_v0 }
0x1bc1   :  { %11588 = vmatpush1.bf16.msra.mxu0 %v18634_v40 }
0x1c57   :  { %v4389_v25 = vpop.f32.mrb[162].mxu0 }
0x1c58   :  { %v4394_v3 = vadd.f32 %v4389_v25, %v4321_v17  ;;  %v4391_v39 = vpop.f32.mrb[163].mxu0  ;;  %v18745_v25 = vld [vmem:[#allocation22_spill] sm:$0xff] }
0x1c59   :  { %v4395_v57 = vadd.f32 %v4391_v39, %v4322_v4 }
0x1c5a   :  { %v16201_v11 = vadd.f32 %v4394_v3, %v14730_v18 }
0x1c5b   :  { %v16204_v13 = vadd.f32 %v4395_v57, %v14730_v18 }
0x1c5c   :  { %4399 = vst [vmem:[#allocation5 + $0x30] sm:$0xff] %v16201_v11 }
0x1c5d   :  { %4400 = vst [vmem:[#allocation5 + $0x38] sm:$0xff] %v16204_v13  ;;  %4465 = vmatprep.mubr.f32.mxu0 %v16204_v13  ;;  %4472 = vmatprep.subr.mxu1 %v16204_v13 }
0x1c5e   :  { %4466 = vmatmul.mubr.f32.vlgmr.msra.gmra.mrb[164].mxu0 %v16201_v11  ;;  %4473 = vmatpush1.msra.mxu1 %v16201_v11 }
0x1c5f   :  { %10145 = vmatmul.mubr.msk.f32.vlgmr.msra.gmra.mrb[136].mxu1 %vm239_vm0, %v15908_v29  ;;  %4815 = vmatprep.mubr.f32.mxu0 %v18615_v37  ;;  %v16233_v29 = vld [vmem:[%s18320_s3 + $0x20] sm:$0xff] }
0x1c60   :  { %4542 = vmatprep.mubr.f32.mxu1 %v18615_v37  ;;  %18739 = vst [vmem:[#allocation8_spill] sm:$0xff] %v16233_v29 }
0x1c63   :  { %10146 = vmatmul.mubr.msk.f32.gmra.mrb[138].mxu1 %vm239_vm0, %v15917_v26  ;;  %v16241_v26 = vld [vmem:[%s18320_s3 + $0x28] sm:$0xff] }
0x1c64   :  { %4548 = vmatprep.mubr.f32.mxu1 %v18615_v37  ;;  %18740 = vst [vmem:[#allocation9_spill] sm:$0xff] %v16241_v26 }
0x1c67   :  { %10147 = vmatmul.mubr.msk.f32.gmra.mrb[140].mxu1 %vm239_vm0, %v15925_v38  ;;  %v16249_v38 = vld [vmem:[%s18320_s3 + $0x30] sm:$0xff] }
0x1c68   :  { %4554 = vmatprep.mubr.f32.mxu1 %v18615_v37  ;;  %18741 = vst [vmem:[#allocation10_spill] sm:$0xff] %v16249_v38 }
0x1c6b   :  { %10148 = vmatmul.mubr.msk.f32.gmra.mrb[142].mxu1 %vm239_vm0, %v16225_v31 }
0x1c6c   :  { %4560 = vmatprep.mubr.f32.mxu1 %v18615_v37 }
0x1c6f   :  { %10149 = vmatmul.mubr.msk.f32.gmra.mrb[144].mxu1 %vm239_vm0, %v16233_v29 }
0x1c70   :  { %4566 = vmatprep.mubr.f32.mxu1 %v18615_v37 }
0x1c73   :  { %10150 = vmatmul.mubr.msk.f32.gmra.mrb[146].mxu1 %vm239_vm0, %v16241_v26 }
0x1c74   :  { %4572 = vmatprep.mubr.f32.mxu1 %v18615_v37 }
0x1c77   :  { %10151 = vmatmul.mubr.msk.f32.gmra.mrb[148].mxu1 %vm239_vm0, %v16249_v38 }
0x1c78   :  { %4578 = vmatprep.mubr.f32.mxu1 %v18615_v37 }
0x1c7b   :  { %10152 = vmatmul.mubr.msk.f32.gmra.mrb[150].mxu1 %vm239_vm0, %v16257_v51 }
0x1c7c   :  { %4669 = vmatprep.mubr.f32.mxu1 %v18615_v37 }
0x1d31   :  { %v16262_v24 = vpop.f32.mrb[164].mxu0 }
0x1d32   :  { %v16264_v41 = vpop.f32.mrb[165].mxu0  ;;  %v4538_v54 = vpop.f32.mrb[136].mxu1 }
0x1d33   :  { %v4539_v36 = vadd.f32 %v4538_v54, %v18743_v50  ;;  %v4540_v19 = vpop.f32.mrb[137].mxu1  ;;  %v18746_v54 = vld [vmem:[#allocation24_spill] sm:$0xff] }
0x1d34   :  { %v4541_v30 = vadd.f32 %v4540_v19, %v18743_v50 }
0x1d35   :  { %13615 = vtanh.f32 %v4539_v36 }
0x1d36   :  { %v4544_v56 = vpop.f32.mrb[138].mxu1  ;;  %13617 = vtanh.f32 %v4541_v30 }
0x1d37   :  { %v4545_v48 = vadd.f32 %v4544_v56, %v18744_v62  ;;  %v4546_v46 = vpop.f32.mrb[139].mxu1 }
0x1d38   :  { %v4547_v2 = vadd.f32 %v4546_v46, %v18744_v62 }
0x1d39   :  { %13619 = vtanh.f32 %v4545_v48 }
0x1d3a   :  { %13621 = vtanh.f32 %v4547_v2  ;;  %v4550_v17 = vpop.f32.mrb[140].mxu1 }
0x1d3b   :  { %v4551_v4 = vadd.f32 %v4550_v17, %v18745_v25  ;;  %v4552_v3 = vpop.f32.mrb[141].mxu1 }
0x1d3c   :  { %v4553_v39 = vadd.f32 %v4552_v3, %v18745_v25 }
0x1d3d   :  { %13623 = vtanh.f32 %v4551_v4 }
0x1d3e   :  { %v4556_v57 = vpop.f32.mrb[142].mxu1  ;;  %13625 = vtanh.f32 %v4553_v39 }
0x1d3f   :  { %v4557_v19 = vadd.f32 %v4556_v57, %v18746_v54  ;;  %v4558_v50 = vpop.f32.mrb[143].mxu1  ;;  %v13616_v56 = vpop.eup %13615  ;;  %v18747_v57 = vld [vmem:[#allocation26_spill] sm:$0xff] }
0x1d40   :  { %v4559_v36 = vadd.f32 %v4558_v50, %v18746_v54  ;;  %v13618_v30 = vpop.eup %13617 }
0x1d41   :  { %13627 = vtanh.f32 %v4557_v19 }
0x1d42   :  { %13629 = vtanh.f32 %v4559_v36  ;;  %v4562_v48 = vpop.f32.mrb[144].mxu1 }
0x1d43   :  { %v13620_v46 = vpop.eup %13619  ;;  %v4563_v2 = vadd.f32 %v4562_v48, %v18621_v58  ;;  %v4564_v17 = vpop.f32.mrb[145].mxu1 }
0x1d44   :  { %v13622_v62 = vpop.eup %13621  ;;  %v4565_v3 = vadd.f32 %v4564_v17, %v18621_v58  ;;  %v11591_v25 = vpack.c.bf16 %v13620_v46, %v13616_v56 }
0x1d45   :  { %v11589_v4 = vpack.c.bf16 %v13622_v62, %v13618_v30  ;;  %13631 = vtanh.f32 %v4563_v2 }
0x1d46   :  { %v4568_v51 = vpop.f32.mrb[146].mxu1  ;;  %13633 = vtanh.f32 %v4565_v3 }
0x1d47   :  { %v4569_v39 = vadd.f32 %v4568_v51, %v18747_v57  ;;  %v4570_v38 = vpop.f32.mrb[147].mxu1  ;;  %11590 = vmatprep.subr.bf16.mxu1 %v11589_v4  ;;  %v13624_v19 = vpop.eup %13623 }
0x1d48   :  { %v4571_v50 = vadd.f32 %v4570_v38, %v18747_v57  ;;  %11592 = vmatpush1.bf16.msra.mxu1 %v11591_v25  ;;  %v13626_v36 = vpop.eup %13625 }
0x1d49   :  { %13635 = vtanh.f32 %v4569_v39 }
0x1d4a   :  { %13637 = vtanh.f32 %v4571_v50  ;;  %v4574_v48 = vpop.f32.mrb[148].mxu1 }
0x1d4b   :  { %v13628_v54 = vpop.eup %13627  ;;  %v4575_v17 = vadd.f32 %v4574_v48, %v18623_v47  ;;  %v4576_v56 = vpop.f32.mrb[149].mxu1 }
0x1d4c   :  { %v13630_v62 = vpop.eup %13629  ;;  %v4577_v30 = vadd.f32 %v4576_v56, %v18623_v47  ;;  %v11595_v46 = vpack.c.bf16 %v13628_v54, %v13624_v19 }
0x1d4d   :  { %v11593_v51 = vpack.c.bf16 %v13630_v62, %v13626_v36  ;;  %13639 = vtanh.f32 %v4575_v17 }
0x1d4e   :  { %v4580_v2 = vpop.f32.mrb[150].mxu1  ;;  %13641 = vtanh.f32 %v4577_v30 }
0x1d4f   :  { %v4581_v3 = vadd.f32 %v4580_v2, %v18624_v44  ;;  %v4582_v38 = vpop.f32.mrb[151].mxu1  ;;  %11594 = vmatprep.subr.bf16.mxu1 %v11593_v51  ;;  %v13632_v4 = vpop.eup %13631 }
0x1d50   :  { %v4583_v25 = vadd.f32 %v4582_v38, %v18624_v44  ;;  %11596 = vmatpush1.bf16.msra.mxu1 %v11595_v46  ;;  %v13634_v39 = vpop.eup %13633 }
0x1d51   :  { %13643 = vtanh.f32 %v4581_v3 }
0x1d52   :  { %13645 = vtanh.f32 %v4583_v25 }
0x1d53   :  { %v13636_v50 = vpop.eup %13635 }
0x1d54   :  { %v13638_v48 = vpop.eup %13637  ;;  %v11599_v57 = vpack.c.bf16 %v13636_v50, %v13632_v4  ;;  %v18749_v50 = vld [vmem:[#allocation25_spill] sm:$0xff] }
0x1d55   :  { %v11597_v56 = vpack.c.bf16 %v13638_v48, %v13634_v39 }
0x1d57   :  { %11598 = vmatprep.subr.bf16.mxu1 %v11597_v56  ;;  %v13640_v54 = vpop.eup %13639 }
0x1d58   :  { %11600 = vmatpush1.bf16.msra.mxu1 %v11599_v57  ;;  %v13642_v19 = vpop.eup %13641  ;;  %v4602_v57 = vmul.f32 %v16264_v41, %v14722_v1  ;;  %v18748_v41 = vld [vmem:[#allocation10_spill] sm:$0xff] }
0x1d5a   :  { %v4604_v2 = vadd.f32 %v4602_v57, %v16204_v13  ;;  %v16344_v13 = vld [vmem:[%s18320_s3 + $0x8] sm:$0xff] }
0x1d5b   :  { %v13644_v36 = vpop.eup %13643 }
0x1d5c   :  { %v13646_v17 = vpop.eup %13645  ;;  %v11603_v62 = vpack.c.bf16 %v13644_v36, %v13640_v54 }
0x1d5d   :  { %v11601_v51 = vpack.c.bf16 %v13646_v17, %v13642_v19  ;;  %v18750_v19 = vld [vmem:[#allocation21_spill] sm:$0xff] }
0x1d5f   :  { %11602 = vmatprep.subr.bf16.mxu1 %v11601_v51 }
0x1d60   :  { %11604 = vmatpush1.bf16.msra.mxu1 %v11603_v62 }
0x1d61   :  { %11606 = vmatprep.subr.bf16.mxu1 %v14437_v5 }
0x1d63   :  { %10153 = vmatmul.mubr.msk.f32.vlgmr.msra.gmra.mrb[152].mxu1 %vm402_vm1, %v15969_v55  ;;  %v4601_v55 = vmul.f32 %v16262_v24, %v14722_v1  ;;  %v16352_v24 = vld [vmem:[%s18320_s3 + $0x10] sm:$0xff] }
0x1d64   :  { %11608 = vmatpush1.bf16.msra.mxu1 %v14439_v9 }
0x1d65   :  { %11610 = vmatprep.subr.bf16.mxu1 %v14441_v10  ;;  %v4603_v30 = vadd.f32 %v4601_v55, %v16201_v11  ;;  %v16335_v11 = vld [vmem:[%s18320_s3] sm:$0xff]  ;;  %v18751_v55 = vld [vmem:[#allocation23_spill] sm:$0xff] }
0x1d68   :  { %11612 = vmatpush1.bf16.msra.mxu1 %v14445_v15 }
0x1d69   :  { %11614 = vmatprep.subr.bf16.mxu1 %v14448_v16 }
0x1d6c   :  { %11616 = vmatpush1.bf16.msra.mxu1 %v14451_v21 }
0x1d6d   :  { %11618 = vmatprep.subr.bf16.mxu1 %v14454_v22 }
0x1d70   :  { %11620 = vmatpush1.bf16.msra.mxu1 %v14457_v27 }
0x1d71   :  { %11622 = vmatprep.subr.bf16.mxu1 %v14460_v28 }
0x1d74   :  { %11624 = vmatpush1.bf16.msra.mxu1 %v14463_v33 }
0x1d75   :  { %11626 = vmatprep.subr.bf16.mxu1 %v14466_v35 }
0x1d78   :  { %11628 = vmatpush1.bf16.msra.mxu1 %v14489_v42 }
0x1d79   :  { %11630 = vmatprep.subr.bf16.mxu1 %v14494_v43 }
0x1d7c   :  { %11632 = vmatpush1.bf16.msra.mxu1 %v14503_v49 }
0x1d7d   :  { %11634 = vmatprep.subr.bf16.mxu1 %v14511_v52 }
0x1d80   :  { %11636 = vmatpush1.bf16.msra.mxu1 %v14529_v60 }
0x1d81   :  { %11638 = vmatprep.subr.bf16.mxu1 %v14534_v61 }
0x1d84   :  { %11640 = vmatpush1.bf16.msra.mxu1 %v14549_v7 }
0x1d85   :  { %11642 = vmatprep.subr.bf16.mxu1 %v14554_v8 }
0x1d88   :  { %11644 = vmatpush1.bf16.msra.mxu1 %v14569_v20 }
0x1d89   :  { %11646 = vmatprep.subr.bf16.mxu1 %v14574_v23 }
0x1d8c   :  { %11648 = vmatpush1.bf16.msra.mxu1 %v14584_v32 }
0x1d8d   :  { %11650 = vmatprep.subr.bf16.mxu1 %v18625_v59 }
0x1d90   :  { %11652 = vmatpush1.bf16.msra.mxu1 %v18626_v53 }
0x1d91   :  { %11654 = vmatprep.subr.bf16.mxu1 %v18627_v6 }
0x1d94   :  { %11656 = vmatpush1.bf16.msra.mxu1 %v18628_v12 }
0x1d95   :  { %11658 = vmatprep.subr.bf16.mxu1 %v18629_v63 }
0x1d98   :  { %11660 = vmatpush1.bf16.msra.mxu1 %v18630_v14 }
0x1d99   :  { %11662 = vmatprep.subr.bf16.mxu1 %v18631_v45 }
0x1d9c   :  { %11664 = vmatpush1.bf16.msra.mxu1 %v18632_v34 }
0x1d9d   :  { %11666 = vmatprep.subr.bf16.mxu1 %v18633_v0 }
0x1da0   :  { %11668 = vmatpush1.bf16.msra.mxu1 %v18634_v40 }
0x1e36   :  { %v4671_v46 = vpop.f32.mrb[152].mxu1 }
0x1e37   :  { %v4676_v3 = vadd.f32 %v4671_v46, %v4603_v30  ;;  %v4673_v38 = vpop.f32.mrb[153].mxu1 }
0x1e38   :  { %v4677_v25 = vadd.f32 %v4673_v38, %v4604_v2 }
0x1e39   :  { %v16326_v39 = vadd.f32 %v4676_v3, %v14730_v18  ;;  %v18752_v3 = vld [vmem:[#allocation22_spill] sm:$0xff] }
0x1e3a   :  { %v16323_v4 = vadd.f32 %v4677_v25, %v14730_v18 }
0x1e3c   :  { %4744 = vmatprep.mubr.f32.mxu1 %v16323_v4  ;;  %4751 = vmatprep.subr.mxu0 %v16323_v4 }
0x1e3d   :  { %4745 = vmatmul.mubr.f32.vlgmr.msra.gmra.mrb[154].mxu1 %v16326_v39  ;;  %4752 = vmatpush1.msra.mxu0 %v16326_v39 }
0x1e3e   :  { %10154 = vmatmul.mubr.msk.f32.vlgmr.msra.gmra.mrb[166].mxu0 %vm239_vm0, %v16335_v11  ;;  %5094 = vmatprep.mubr.f32.mxu1 %v18615_v37 }
0x1e3f   :  { %4821 = vmatprep.mubr.f32.mxu0 %v18615_v37 }
0x1e42   :  { %10155 = vmatmul.mubr.msk.f32.gmra.mrb[168].mxu0 %vm239_vm0, %v16344_v13 }
0x1e43   :  { %4827 = vmatprep.mubr.f32.mxu0 %v18615_v37 }
0x1e46   :  { %10156 = vmatmul.mubr.msk.f32.gmra.mrb[170].mxu0 %vm239_vm0, %v16352_v24 }
0x1e47   :  { %4833 = vmatprep.mubr.f32.mxu0 %v18615_v37 }
0x1e4a   :  { %10157 = vmatmul.mubr.msk.f32.gmra.mrb[172].mxu0 %vm239_vm0, %v16225_v31 }
0x1e4b   :  { %4839 = vmatprep.mubr.f32.mxu0 %v18615_v37 }
0x1e4e   :  { %10158 = vmatmul.mubr.msk.f32.gmra.mrb[174].mxu0 %vm239_vm0, %v16233_v29 }
0x1e4f   :  { %4845 = vmatprep.mubr.f32.mxu0 %v18615_v37 }
0x1e52   :  { %10159 = vmatmul.mubr.msk.f32.gmra.mrb[176].mxu0 %vm239_vm0, %v16241_v26 }
0x1e53   :  { %4851 = vmatprep.mubr.f32.mxu0 %v18615_v37 }
0x1e56   :  { %10160 = vmatmul.mubr.msk.f32.gmra.mrb[178].mxu0 %vm239_vm0, %v18748_v41  ;;  %v18753_v41 = vld [vmem:[#allocation24_spill] sm:$0xff] }
0x1e57   :  { %4857 = vmatprep.mubr.f32.mxu0 %v18615_v37 }
0x1e5a   :  { %10161 = vmatmul.mubr.msk.f32.gmra.mrb[180].mxu0 %vm239_vm0, %v18749_v50 }
0x1e5b   :  { %4948 = vmatprep.mubr.f32.mxu0 %v18615_v37 }
0x1f10   :  { %v16372_v48 = vpop.f32.mrb[154].mxu1 }
0x1f11   :  { %v16374_v56 = vpop.f32.mrb[155].mxu1  ;;  %v4817_v54 = vpop.f32.mrb[166].mxu0 }
0x1f12   :  { %v4818_v36 = vadd.f32 %v4817_v54, %v18750_v19  ;;  %v4819_v17 = vpop.f32.mrb[167].mxu0 }
0x1f13   :  { %v4820_v62 = vadd.f32 %v4819_v17, %v18750_v19 }
0x1f14   :  { %13647 = vtanh.f32 %v4818_v36 }
0x1f15   :  { %v4823_v51 = vpop.f32.mrb[168].mxu0  ;;  %13649 = vtanh.f32 %v4820_v62 }
0x1f16   :  { %v4824_v57 = vadd.f32 %v4823_v51, %v18751_v55  ;;  %v4825_v30 = vpop.f32.mrb[169].mxu0 }
0x1f17   :  { %v4826_v46 = vadd.f32 %v4825_v30, %v18751_v55 }
0x1f18   :  { %13651 = vtanh.f32 %v4824_v57 }
0x1f19   :  { %13653 = vtanh.f32 %v4826_v46  ;;  %v4829_v2 = vpop.f32.mrb[170].mxu0 }
0x1f1a   :  { %v4830_v38 = vadd.f32 %v4829_v2, %v18752_v3  ;;  %v4831_v25 = vpop.f32.mrb[171].mxu0 }
0x1f1b   :  { %v4832_v50 = vadd.f32 %v4831_v25, %v18752_v3 }
0x1f1c   :  { %13655 = vtanh.f32 %v4830_v38 }
0x1f1d   :  { %v4835_v54 = vpop.f32.mrb[172].mxu0  ;;  %13657 = vtanh.f32 %v4832_v50 }
0x1f1e   :  { %v4836_v17 = vadd.f32 %v4835_v54, %v18753_v41  ;;  %v4837_v19 = vpop.f32.mrb[173].mxu0  ;;  %v13648_v51 = vpop.eup %13647  ;;  %v18754_v54 = vld [vmem:[#allocation26_spill] sm:$0xff] }
0x1f1f   :  { %v4838_v36 = vadd.f32 %v4837_v19, %v18753_v41  ;;  %v13650_v62 = vpop.eup %13649 }
0x1f20   :  { %13659 = vtanh.f32 %v4836_v17 }
0x1f21   :  { %13661 = vtanh.f32 %v4838_v36  ;;  %v4841_v57 = vpop.f32.mrb[174].mxu0 }
0x1f22   :  { %v13652_v30 = vpop.eup %13651  ;;  %v4842_v46 = vadd.f32 %v4841_v57, %v18621_v58  ;;  %v4843_v2 = vpop.f32.mrb[175].mxu0 }
0x1f23   :  { %v13654_v55 = vpop.eup %13653  ;;  %v4844_v25 = vadd.f32 %v4843_v2, %v18621_v58  ;;  %v11671_v3 = vpack.c.bf16 %v13652_v30, %v13648_v51 }
0x1f24   :  { %v11669_v38 = vpack.c.bf16 %v13654_v55, %v13650_v62  ;;  %13663 = vtanh.f32 %v4842_v46 }
0x1f25   :  { %v4847_v26 = vpop.f32.mrb[176].mxu0  ;;  %13665 = vtanh.f32 %v4844_v25 }
0x1f26   :  { %v4848_v50 = vadd.f32 %v4847_v26, %v18754_v54  ;;  %v4849_v29 = vpop.f32.mrb[177].mxu0  ;;  %11670 = vmatprep.subr.bf16.mxu0 %v11669_v38  ;;  %v13656_v17 = vpop.eup %13655 }
0x1f27   :  { %v4850_v19 = vadd.f32 %v4849_v29, %v18754_v54  ;;  %11672 = vmatpush1.bf16.msra.mxu0 %v11671_v3  ;;  %v13658_v36 = vpop.eup %13657 }
0x1f28   :  { %13667 = vtanh.f32 %v4848_v50 }
0x1f29   :  { %13669 = vtanh.f32 %v4850_v19  ;;  %v4853_v57 = vpop.f32.mrb[178].mxu0 }
0x1f2a   :  { %v13660_v41 = vpop.eup %13659  ;;  %v4854_v2 = vadd.f32 %v4853_v57, %v18623_v47  ;;  %v4855_v51 = vpop.f32.mrb[179].mxu0 }
0x1f2b   :  { %v13662_v55 = vpop.eup %13661  ;;  %v4856_v62 = vadd.f32 %v4855_v51, %v18623_v47  ;;  %v11675_v30 = vpack.c.bf16 %v13660_v41, %v13656_v17 }
0x1f2c   :  { %v11673_v26 = vpack.c.bf16 %v13662_v55, %v13658_v36  ;;  %13671 = vtanh.f32 %v4854_v2 }
0x1f2d   :  { %v4859_v46 = vpop.f32.mrb[180].mxu0  ;;  %13673 = vtanh.f32 %v4856_v62  ;;  %v16396_v62 = vld [vmem:[%s18322_s5] sm:$0xff] }
0x1f2e   :  { %v4860_v25 = vadd.f32 %v4859_v46, %v18624_v44  ;;  %v4861_v29 = vpop.f32.mrb[181].mxu0  ;;  %11674 = vmatprep.subr.bf16.mxu0 %v11673_v26  ;;  %v13664_v38 = vpop.eup %13663 }
0x1f2f   :  { %v4862_v3 = vadd.f32 %v4861_v29, %v18624_v44  ;;  %11676 = vmatpush1.bf16.msra.mxu0 %v11675_v30  ;;  %v13666_v50 = vpop.eup %13665  ;;  %v4881_v30 = vmul.f32 %v16374_v56, %v14722_v1  ;;  %v18758_v56 = vld [vmem:[#allocation25_spill] sm:$0xff] }
0x1f30   :  { %13675 = vtanh.f32 %v4860_v25 }
0x1f31   :  { %13677 = vtanh.f32 %v4862_v3  ;;  %v4883_v29 = vadd.f32 %v4881_v30, %v16323_v4  ;;  %v18755_v4 = vld [vmem:[#allocation8_spill] sm:$0xff]  ;;  %v18760_v30 = vld [vmem:[#allocation23_spill] sm:$0xff] }
0x1f32   :  { %v13668_v19 = vpop.eup %13667 }
0x1f33   :  { %v13670_v57 = vpop.eup %13669  ;;  %v11679_v54 = vpack.c.bf16 %v13668_v19, %v13664_v38 }
0x1f34   :  { %v11677_v51 = vpack.c.bf16 %v13670_v57, %v13666_v50 }
0x1f36   :  { %11678 = vmatprep.subr.bf16.mxu0 %v11677_v51  ;;  %v13672_v41 = vpop.eup %13671 }
0x1f37   :  { %11680 = vmatpush1.bf16.msra.mxu0 %v11679_v54  ;;  %v13674_v17 = vpop.eup %13673  ;;  %v4880_v54 = vmul.f32 %v16372_v48, %v14722_v1  ;;  %v18757_v48 = vld [vmem:[#allocation10_spill] sm:$0xff] }
0x1f39   :  { %v4882_v46 = vadd.f32 %v4880_v54, %v16326_v39  ;;  %v18756_v39 = vld [vmem:[#allocation9_spill] sm:$0xff] }
0x1f3a   :  { %v13676_v36 = vpop.eup %13675 }
0x1f3b   :  { %v13678_v2 = vpop.eup %13677  ;;  %v11683_v55 = vpack.c.bf16 %v13676_v36, %v13672_v41  ;;  %v18759_v36 = vld [vmem:[#allocation21_spill] sm:$0xff] }
0x1f3c   :  { %v11681_v26 = vpack.c.bf16 %v13678_v2, %v13674_v17 }
0x1f3e   :  { %11682 = vmatprep.subr.bf16.mxu0 %v11681_v26 }
0x1f3f   :  { %11684 = vmatpush1.bf16.msra.mxu0 %v11683_v55 }
0x1f40   :  { %11686 = vmatprep.subr.bf16.mxu0 %v14437_v5 }
0x1f42   :  { %10162 = vmatmul.mubr.msk.f32.vlgmr.msra.gmra.mrb[182].mxu0 %vm402_vm1, %v16396_v62 }
0x1f43   :  { %11688 = vmatpush1.bf16.msra.mxu0 %v14439_v9 }
0x1f44   :  { %11690 = vmatprep.subr.bf16.mxu0 %v14441_v10 }
0x1f47   :  { %11692 = vmatpush1.bf16.msra.mxu0 %v14445_v15 }
0x1f48   :  { %11694 = vmatprep.subr.bf16.mxu0 %v14448_v16 }
0x1f4b   :  { %11696 = vmatpush1.bf16.msra.mxu0 %v14451_v21 }
0x1f4c   :  { %11698 = vmatprep.subr.bf16.mxu0 %v14454_v22 }
0x1f4f   :  { %11700 = vmatpush1.bf16.msra.mxu0 %v14457_v27 }
0x1f50   :  { %11702 = vmatprep.subr.bf16.mxu0 %v14460_v28 }
0x1f53   :  { %11704 = vmatpush1.bf16.msra.mxu0 %v14463_v33 }
0x1f54   :  { %11706 = vmatprep.subr.bf16.mxu0 %v14466_v35 }
0x1f57   :  { %11708 = vmatpush1.bf16.msra.mxu0 %v14489_v42 }
0x1f58   :  { %11710 = vmatprep.subr.bf16.mxu0 %v14494_v43 }
0x1f5b   :  { %11712 = vmatpush1.bf16.msra.mxu0 %v14503_v49 }
0x1f5c   :  { %11714 = vmatprep.subr.bf16.mxu0 %v14511_v52 }
0x1f5f   :  { %11716 = vmatpush1.bf16.msra.mxu0 %v14529_v60 }
0x1f60   :  { %11718 = vmatprep.subr.bf16.mxu0 %v14534_v61 }
0x1f63   :  { %11720 = vmatpush1.bf16.msra.mxu0 %v14549_v7 }
0x1f64   :  { %11722 = vmatprep.subr.bf16.mxu0 %v14554_v8 }
0x1f67   :  { %11724 = vmatpush1.bf16.msra.mxu0 %v14569_v20 }
0x1f68   :  { %11726 = vmatprep.subr.bf16.mxu0 %v14574_v23 }
0x1f6b   :  { %11728 = vmatpush1.bf16.msra.mxu0 %v14584_v32 }
0x1f6c   :  { %11730 = vmatprep.subr.bf16.mxu0 %v18625_v59 }
0x1f6f   :  { %11732 = vmatpush1.bf16.msra.mxu0 %v18626_v53 }
0x1f70   :  { %11734 = vmatprep.subr.bf16.mxu0 %v18627_v6 }
0x1f73   :  { %11736 = vmatpush1.bf16.msra.mxu0 %v18628_v12 }
0x1f74   :  { %11738 = vmatprep.subr.bf16.mxu0 %v18629_v63 }
0x1f77   :  { %11740 = vmatpush1.bf16.msra.mxu0 %v18630_v14 }
0x1f78   :  { %11742 = vmatprep.subr.bf16.mxu0 %v18631_v45 }
0x1f7b   :  { %11744 = vmatpush1.bf16.msra.mxu0 %v18632_v34 }
0x1f7c   :  { %11746 = vmatprep.subr.bf16.mxu0 %v18633_v0 }
0x1f7f   :  { %11748 = vmatpush1.bf16.msra.mxu0 %v18634_v40 }
0x2015   :  { %v4950_v25 = vpop.f32.mrb[182].mxu0 }
0x2016   :  { %v4955_v3 = vadd.f32 %v4950_v25, %v4882_v46  ;;  %v4952_v38 = vpop.f32.mrb[183].mxu0 }
0x2017   :  { %v4956_v50 = vadd.f32 %v4952_v38, %v4883_v29  ;;  %v18761_v38 = vld [vmem:[#allocation22_spill] sm:$0xff] }
0x2018   :  { %v16441_v57 = vadd.f32 %v4955_v3, %v14730_v18 }
0x2019   :  { %v16438_v19 = vadd.f32 %v4956_v50, %v14730_v18 }
0x201b   :  { %5023 = vmatprep.mubr.f32.mxu0 %v16438_v19  ;;  %5030 = vmatprep.subr.mxu1 %v16438_v19 }
0x201c   :  { %5024 = vmatmul.mubr.f32.vlgmr.msra.gmra.mrb[184].mxu0 %v16441_v57  ;;  %5031 = vmatpush1.msra.mxu1 %v16441_v57 }
0x201d   :  { %10163 = vmatmul.mubr.msk.f32.vlgmr.msra.gmra.mrb[156].mxu1 %vm239_vm0, %v16335_v11  ;;  %5373 = vmatprep.mubr.f32.mxu0 %v18615_v37 }
0x201e   :  { %5100 = vmatprep.mubr.f32.mxu1 %v18615_v37 }
0x2021   :  { %10164 = vmatmul.mubr.msk.f32.gmra.mrb[158].mxu1 %vm239_vm0, %v16344_v13 }
0x2022   :  { %5106 = vmatprep.mubr.f32.mxu1 %v18615_v37 }
0x2025   :  { %10165 = vmatmul.mubr.msk.f32.gmra.mrb[160].mxu1 %vm239_vm0, %v16352_v24 }
0x2026   :  { %5112 = vmatprep.mubr.f32.mxu1 %v18615_v37 }
0x2029   :  { %10166 = vmatmul.mubr.msk.f32.gmra.mrb[162].mxu1 %vm239_vm0, %v16225_v31 }
0x202a   :  { %5118 = vmatprep.mubr.f32.mxu1 %v18615_v37 }
0x202d   :  { %10167 = vmatmul.mubr.msk.f32.gmra.mrb[164].mxu1 %vm239_vm0, %v18755_v4 }
0x202e   :  { %5124 = vmatprep.mubr.f32.mxu1 %v18615_v37 }
0x2031   :  { %10168 = vmatmul.mubr.msk.f32.gmra.mrb[166].mxu1 %vm239_vm0, %v18756_v39  ;;  %v18762_v39 = vld [vmem:[#allocation24_spill] sm:$0xff] }
0x2032   :  { %5130 = vmatprep.mubr.f32.mxu1 %v18615_v37 }
0x2035   :  { %10169 = vmatmul.mubr.msk.f32.gmra.mrb[168].mxu1 %vm239_vm0, %v18757_v48 }
0x2036   :  { %5136 = vmatprep.mubr.f32.mxu1 %v18615_v37 }
0x2039   :  { %10170 = vmatmul.mubr.msk.f32.gmra.mrb[170].mxu1 %vm239_vm0, %v18758_v56 }
0x203a   :  { %5227 = vmatprep.mubr.f32.mxu1 %v18615_v37 }
0x20ef   :  { %v16472_v51 = vpop.f32.mrb[184].mxu0 }
0x20f0   :  { %v16474_v41 = vpop.f32.mrb[185].mxu0  ;;  %v5096_v17 = vpop.f32.mrb[156].mxu1 }
0x20f1   :  { %v5097_v2 = vadd.f32 %v5096_v17, %v18759_v36  ;;  %v5098_v55 = vpop.f32.mrb[157].mxu1 }
0x20f2   :  { %v5099_v26 = vadd.f32 %v5098_v55, %v18759_v36 }
0x20f3   :  { %13679 = vtanh.f32 %v5097_v2 }
0x20f4   :  { %v5102_v54 = vpop.f32.mrb[158].mxu1  ;;  %13681 = vtanh.f32 %v5099_v26 }
0x20f5   :  { %v5103_v46 = vadd.f32 %v5102_v54, %v18760_v30  ;;  %v5104_v25 = vpop.f32.mrb[159].mxu1 }
0x20f6   :  { %v5105_v29 = vadd.f32 %v5104_v25, %v18760_v30 }
0x20f7   :  { %13683 = vtanh.f32 %v5103_v46 }
0x20f8   :  { %13685 = vtanh.f32 %v5105_v29  ;;  %v5108_v3 = vpop.f32.mrb[160].mxu1 }
0x20f9   :  { %v5109_v50 = vadd.f32 %v5108_v3, %v18761_v38  ;;  %v5110_v56 = vpop.f32.mrb[161].mxu1 }
0x20fa   :  { %v5111_v48 = vadd.f32 %v5110_v56, %v18761_v38 }
0x20fb   :  { %13687 = vtanh.f32 %v5109_v50 }
0x20fc   :  { %v5114_v17 = vpop.f32.mrb[162].mxu1  ;;  %13689 = vtanh.f32 %v5111_v48 }
0x20fd   :  { %v5115_v55 = vadd.f32 %v5114_v17, %v18762_v39  ;;  %v5116_v36 = vpop.f32.mrb[163].mxu1  ;;  %v13680_v54 = vpop.eup %13679  ;;  %v18763_v17 = vld [vmem:[#allocation26_spill] sm:$0xff] }
0x20fe   :  { %v5117_v2 = vadd.f32 %v5116_v36, %v18762_v39  ;;  %v13682_v26 = vpop.eup %13681 }
0x20ff   :  { %13691 = vtanh.f32 %v5115_v55 }
0x2100   :  { %13693 = vtanh.f32 %v5117_v2  ;;  %v5120_v46 = vpop.f32.mrb[164].mxu1 }
0x2101   :  { %v13684_v25 = vpop.eup %13683  ;;  %v5121_v29 = vadd.f32 %v5120_v46, %v18621_v58  ;;  %v5122_v3 = vpop.f32.mrb[165].mxu1 }
0x2102   :  { %v13686_v30 = vpop.eup %13685  ;;  %v5123_v56 = vadd.f32 %v5122_v3, %v18621_v58  ;;  %v11751_v38 = vpack.c.bf16 %v13684_v25, %v13680_v54 }
0x2103   :  { %v11749_v50 = vpack.c.bf16 %v13686_v30, %v13682_v26  ;;  %13695 = vtanh.f32 %v5121_v29 }
0x2104   :  { %v5126_v4 = vpop.f32.mrb[166].mxu1  ;;  %13697 = vtanh.f32 %v5123_v56 }
0x2105   :  { %v5127_v48 = vadd.f32 %v5126_v4, %v18763_v17  ;;  %v5128_v31 = vpop.f32.mrb[167].mxu1  ;;  %11750 = vmatprep.subr.bf16.mxu1 %v11749_v50  ;;  %v13688_v55 = vpop.eup %13687 }
0x2106   :  { %v5129_v36 = vadd.f32 %v5128_v31, %v18763_v17  ;;  %11752 = vmatpush1.bf16.msra.mxu1 %v11751_v38  ;;  %v13690_v2 = vpop.eup %13689 }
0x2107   :  { %13699 = vtanh.f32 %v5127_v48 }
0x2108   :  { %13701 = vtanh.f32 %v5129_v36  ;;  %v5132_v46 = vpop.f32.mrb[168].mxu1 }
0x2109   :  { %v13692_v39 = vpop.eup %13691  ;;  %v5133_v3 = vadd.f32 %v5132_v46, %v18623_v47  ;;  %v5134_v54 = vpop.f32.mrb[169].mxu1 }
0x210a   :  { %v13694_v30 = vpop.eup %13693  ;;  %v5135_v26 = vadd.f32 %v5134_v54, %v18623_v47  ;;  %v11755_v25 = vpack.c.bf16 %v13692_v39, %v13688_v55 }
0x210b   :  { %v11753_v4 = vpack.c.bf16 %v13694_v30, %v13690_v2  ;;  %13703 = vtanh.f32 %v5133_v3 }
0x210c   :  { %v5138_v29 = vpop.f32.mrb[170].mxu1  ;;  %13705 = vtanh.f32 %v5135_v26  ;;  %v5160_v26 = vmul.f32 %v16474_v41, %v14722_v1  ;;  %v18767_v41 = vld [vmem:[#allocation10_spill] sm:$0xff] }
0x210d   :  { %v5139_v56 = vadd.f32 %v5138_v29, %v18624_v44  ;;  %v5140_v31 = vpop.f32.mrb[171].mxu1  ;;  %11754 = vmatprep.subr.bf16.mxu1 %v11753_v4  ;;  %v13696_v50 = vpop.eup %13695 }
0x210e   :  { %v5141_v38 = vadd.f32 %v5140_v31, %v18624_v44  ;;  %11756 = vmatpush1.bf16.msra.mxu1 %v11755_v25  ;;  %v13698_v48 = vpop.eup %13697 }
0x210f   :  { %13707 = vtanh.f32 %v5139_v56  ;;  %v5162_v56 = vadd.f32 %v5160_v26, %v16438_v19  ;;  %v18764_v19 = vld [vmem:[#allocation20_spill] sm:$0xff]  ;;  %v18770_v26 = vld [vmem:[#allocation23_spill] sm:$0xff] }
0x2110   :  { %13709 = vtanh.f32 %v5141_v38 }
0x2111   :  { %v13700_v36 = vpop.eup %13699 }
0x2112   :  { %v13702_v46 = vpop.eup %13701  ;;  %v11759_v17 = vpack.c.bf16 %v13700_v36, %v13696_v50 }
0x2113   :  { %v11757_v54 = vpack.c.bf16 %v13702_v46, %v13698_v48  ;;  %v18768_v46 = vld [vmem:[#allocation25_spill] sm:$0xff] }
0x2115   :  { %11758 = vmatprep.subr.bf16.mxu1 %v11757_v54  ;;  %v13704_v39 = vpop.eup %13703 }
0x2116   :  { %11760 = vmatpush1.bf16.msra.mxu1 %v11759_v17  ;;  %v13706_v55 = vpop.eup %13705  ;;  %v5159_v17 = vmul.f32 %v16472_v51, %v14722_v1  ;;  %v18766_v51 = vld [vmem:[#allocation9_spill] sm:$0xff] }
0x2118   :  { %v5161_v25 = vadd.f32 %v5159_v17, %v16441_v57  ;;  %v18765_v57 = vld [vmem:[#allocation8_spill] sm:$0xff] }
0x2119   :  { %v13708_v2 = vpop.eup %13707 }
0x211a   :  { %v13710_v3 = vpop.eup %13709  ;;  %v11763_v30 = vpack.c.bf16 %v13708_v2, %v13704_v39  ;;  %v18769_v2 = vld [vmem:[#allocation21_spill] sm:$0xff] }
0x211b   :  { %v11761_v4 = vpack.c.bf16 %v13710_v3, %v13706_v55 }
0x211d   :  { %11762 = vmatprep.subr.bf16.mxu1 %v11761_v4 }
0x211e   :  { %11764 = vmatpush1.bf16.msra.mxu1 %v11763_v30 }
0x211f   :  { %11766 = vmatprep.subr.bf16.mxu1 %v14437_v5 }
0x2121   :  { %10171 = vmatmul.mubr.msk.f32.vlgmr.msra.gmra.mrb[172].mxu1 %vm402_vm1, %v16396_v62 }
0x2122   :  { %11768 = vmatpush1.bf16.msra.mxu1 %v14439_v9 }
0x2123   :  { %11770 = vmatprep.subr.bf16.mxu1 %v14441_v10 }
0x2126   :  { %11772 = vmatpush1.bf16.msra.mxu1 %v14445_v15 }
0x2127   :  { %11774 = vmatprep.subr.bf16.mxu1 %v14448_v16 }
0x212a   :  { %11776 = vmatpush1.bf16.msra.mxu1 %v14451_v21 }
0x212b   :  { %11778 = vmatprep.subr.bf16.mxu1 %v14454_v22 }
0x212e   :  { %11780 = vmatpush1.bf16.msra.mxu1 %v14457_v27 }
0x212f   :  { %11782 = vmatprep.subr.bf16.mxu1 %v14460_v28 }
0x2132   :  { %11784 = vmatpush1.bf16.msra.mxu1 %v14463_v33 }
0x2133   :  { %11786 = vmatprep.subr.bf16.mxu1 %v14466_v35 }
0x2136   :  { %11788 = vmatpush1.bf16.msra.mxu1 %v14489_v42 }
0x2137   :  { %11790 = vmatprep.subr.bf16.mxu1 %v14494_v43 }
0x213a   :  { %11792 = vmatpush1.bf16.msra.mxu1 %v14503_v49 }
0x213b   :  { %11794 = vmatprep.subr.bf16.mxu1 %v14511_v52 }
0x213e   :  { %11796 = vmatpush1.bf16.msra.mxu1 %v14529_v60 }
0x213f   :  { %11798 = vmatprep.subr.bf16.mxu1 %v14534_v61 }
0x2142   :  { %11800 = vmatpush1.bf16.msra.mxu1 %v14549_v7 }
0x2143   :  { %11802 = vmatprep.subr.bf16.mxu1 %v14554_v8 }
0x2146   :  { %11804 = vmatpush1.bf16.msra.mxu1 %v14569_v20 }
0x2147   :  { %11806 = vmatprep.subr.bf16.mxu1 %v14574_v23 }
0x214a   :  { %11808 = vmatpush1.bf16.msra.mxu1 %v14584_v32 }
0x214b   :  { %11810 = vmatprep.subr.bf16.mxu1 %v18625_v59 }
0x214e   :  { %11812 = vmatpush1.bf16.msra.mxu1 %v18626_v53 }
0x214f   :  { %11814 = vmatprep.subr.bf16.mxu1 %v18627_v6 }
0x2152   :  { %11816 = vmatpush1.bf16.msra.mxu1 %v18628_v12 }
0x2153   :  { %11818 = vmatprep.subr.bf16.mxu1 %v18629_v63 }
0x2156   :  { %11820 = vmatpush1.bf16.msra.mxu1 %v18630_v14 }
0x2157   :  { %11822 = vmatprep.subr.bf16.mxu1 %v18631_v45 }
0x215a   :  { %11824 = vmatpush1.bf16.msra.mxu1 %v18632_v34 }
0x215b   :  { %11826 = vmatprep.subr.bf16.mxu1 %v18633_v0 }
0x215e   :  { %11828 = vmatpush1.bf16.msra.mxu1 %v18634_v40 }
0x21f4   :  { %v5229_v29 = vpop.f32.mrb[172].mxu1 }
0x21f5   :  { %v5234_v31 = vadd.f32 %v5229_v29, %v5161_v25  ;;  %v5231_v38 = vpop.f32.mrb[173].mxu1 }
0x21f6   :  { %v5235_v50 = vadd.f32 %v5231_v38, %v5162_v56  ;;  %v18771_v38 = vld [vmem:[#allocation22_spill] sm:$0xff] }
0x21f7   :  { %v16536_v36 = vadd.f32 %v5234_v31, %v14730_v18 }
0x21f8   :  { %v16533_v48 = vadd.f32 %v5235_v50, %v14730_v18 }
0x21fa   :  { %5302 = vmatprep.mubr.f32.mxu1 %v16533_v48  ;;  %5309 = vmatprep.subr.mxu0 %v16533_v48 }
0x21fb   :  { %5303 = vmatmul.mubr.f32.vlgmr.msra.gmra.mrb[174].mxu1 %v16536_v36  ;;  %5310 = vmatpush1.msra.mxu0 %v16536_v36 }
0x21fc   :  { %10172 = vmatmul.mubr.msk.f32.vlgmr.msra.gmra.mrb[186].mxu0 %vm239_vm0, %v16335_v11  ;;  %5652 = vmatprep.mubr.f32.mxu1 %v18615_v37 }
0x21fd   :  { %5379 = vmatprep.mubr.f32.mxu0 %v18615_v37 }
0x2200   :  { %10173 = vmatmul.mubr.msk.f32.gmra.mrb[188].mxu0 %vm239_vm0, %v16344_v13 }
0x2201   :  { %5385 = vmatprep.mubr.f32.mxu0 %v18615_v37 }
0x2204   :  { %10174 = vmatmul.mubr.msk.f32.gmra.mrb[190].mxu0 %vm239_vm0, %v16352_v24 }
0x2205   :  { %5391 = vmatprep.mubr.f32.mxu0 %v18615_v37 }
0x2208   :  { %10175 = vmatmul.mubr.msk.f32.gmra.mrb[192].mxu0 %vm239_vm0, %v18764_v19 }
0x2209   :  { %5397 = vmatprep.mubr.f32.mxu0 %v18615_v37 }
0x220c   :  { %10176 = vmatmul.mubr.msk.f32.gmra.mrb[194].mxu0 %vm239_vm0, %v18765_v57 }
0x220d   :  { %5403 = vmatprep.mubr.f32.mxu0 %v18615_v37 }
0x2210   :  { %10177 = vmatmul.mubr.msk.f32.gmra.mrb[196].mxu0 %vm239_vm0, %v18766_v51 }
0x2211   :  { %5409 = vmatprep.mubr.f32.mxu0 %v18615_v37 }
0x2214   :  { %10178 = vmatmul.mubr.msk.f32.gmra.mrb[198].mxu0 %vm239_vm0, %v18767_v41  ;;  %v18772_v41 = vld [vmem:[#allocation24_spill] sm:$0xff] }
0x2215   :  { %5415 = vmatprep.mubr.f32.mxu0 %v18615_v37 }
0x2218   :  { %10179 = vmatmul.mubr.msk.f32.gmra.mrb[200].mxu0 %vm239_vm0, %v18768_v46 }
0x2219   :  { %5506 = vmatprep.mubr.f32.mxu0 %v18615_v37 }
0x22ce   :  { %v16567_v54 = vpop.f32.mrb[174].mxu1 }
0x22cf   :  { %v16569_v39 = vpop.f32.mrb[175].mxu1  ;;  %v5375_v55 = vpop.f32.mrb[186].mxu0 }
0x22d0   :  { %v5376_v3 = vadd.f32 %v5375_v55, %v18769_v2  ;;  %v5377_v30 = vpop.f32.mrb[187].mxu0 }
0x22d1   :  { %v5378_v4 = vadd.f32 %v5377_v30, %v18769_v2 }
0x22d2   :  { %13711 = vtanh.f32 %v5376_v3 }
0x22d3   :  { %v5381_v17 = vpop.f32.mrb[188].mxu0  ;;  %13713 = vtanh.f32 %v5378_v4 }
0x22d4   :  { %v5382_v25 = vadd.f32 %v5381_v17, %v18770_v26  ;;  %v5383_v29 = vpop.f32.mrb[189].mxu0 }
0x22d5   :  { %v5384_v56 = vadd.f32 %v5383_v29, %v18770_v26 }
0x22d6   :  { %13715 = vtanh.f32 %v5382_v25 }
0x22d7   :  { %13717 = vtanh.f32 %v5384_v56  ;;  %v5387_v31 = vpop.f32.mrb[190].mxu0 }
0x22d8   :  { %v5388_v50 = vadd.f32 %v5387_v31, %v18771_v38  ;;  %v5389_v19 = vpop.f32.mrb[191].mxu0 }
0x22d9   :  { %v5390_v57 = vadd.f32 %v5389_v19, %v18771_v38 }
0x22da   :  { %13719 = vtanh.f32 %v5388_v50 }
0x22db   :  { %v5393_v51 = vpop.f32.mrb[192].mxu0  ;;  %13721 = vtanh.f32 %v5390_v57 }
0x22dc   :  { %v5394_v46 = vadd.f32 %v5393_v51, %v18772_v41  ;;  %v5395_v55 = vpop.f32.mrb[193].mxu0  ;;  %v13712_v30 = vpop.eup %13711  ;;  %v18773_v51 = vld [vmem:[#allocation26_spill] sm:$0xff] }
0x22dd   :  { %v5396_v3 = vadd.f32 %v5395_v55, %v18772_v41  ;;  %v13714_v4 = vpop.eup %13713 }
0x22de   :  { %13723 = vtanh.f32 %v5394_v46 }
0x22df   :  { %13725 = vtanh.f32 %v5396_v3  ;;  %v5399_v17 = vpop.f32.mrb[194].mxu0 }
0x22e0   :  { %v13716_v25 = vpop.eup %13715  ;;  %v5400_v29 = vadd.f32 %v5399_v17, %v18621_v58  ;;  %v5401_v56 = vpop.f32.mrb[195].mxu0 }
0x22e1   :  { %v13718_v31 = vpop.eup %13717  ;;  %v5402_v19 = vadd.f32 %v5401_v56, %v18621_v58  ;;  %v11831_v38 = vpack.c.bf16 %v13716_v25, %v13712_v30 }
0x22e2   :  { %v11829_v50 = vpack.c.bf16 %v13718_v31, %v13714_v4  ;;  %13727 = vtanh.f32 %v5400_v29 }
0x22e3   :  { %v5405_v26 = vpop.f32.mrb[196].mxu0  ;;  %13729 = vtanh.f32 %v5402_v19 }
0x22e4   :  { %v5406_v57 = vadd.f32 %v5405_v26, %v18773_v51  ;;  %v5407_v2 = vpop.f32.mrb[197].mxu0  ;;  %11830 = vmatprep.subr.bf16.mxu0 %v11829_v50  ;;  %v13720_v55 = vpop.eup %13719 }
0x22e5   :  { %v5408_v46 = vadd.f32 %v5407_v2, %v18773_v51  ;;  %11832 = vmatpush1.bf16.msra.mxu0 %v11831_v38  ;;  %v13722_v3 = vpop.eup %13721 }
0x22e6   :  { %13731 = vtanh.f32 %v5406_v57 }
0x22e7   :  { %13733 = vtanh.f32 %v5408_v46  ;;  %v5411_v17 = vpop.f32.mrb[198].mxu0 }
0x22e8   :  { %v13724_v41 = vpop.eup %13723  ;;  %v5412_v56 = vadd.f32 %v5411_v17, %v18623_v47  ;;  %v5413_v30 = vpop.f32.mrb[199].mxu0 }
0x22e9   :  { %v13726_v4 = vpop.eup %13725  ;;  %v5414_v25 = vadd.f32 %v5413_v30, %v18623_v47  ;;  %v11835_v29 = vpack.c.bf16 %v13724_v41, %v13720_v55 }
0x22ea   :  { %v11833_v26 = vpack.c.bf16 %v13726_v4, %v13722_v3  ;;  %13735 = vtanh.f32 %v5412_v56 }
0x22eb   :  { %v5417_v31 = vpop.f32.mrb[200].mxu0  ;;  %13737 = vtanh.f32 %v5414_v25  ;;  %v5439_v25 = vmul.f32 %v16569_v39, %v14722_v1 }
0x22ec   :  { %v5418_v19 = vadd.f32 %v5417_v31, %v18624_v44  ;;  %v5419_v2 = vpop.f32.mrb[201].mxu0  ;;  %11834 = vmatprep.subr.bf16.mxu0 %v11833_v26  ;;  %v13728_v50 = vpop.eup %13727 }
0x22ed   :  { %v5420_v38 = vadd.f32 %v5419_v2, %v18624_v44  ;;  %11836 = vmatpush1.bf16.msra.mxu0 %v11835_v29  ;;  %v13730_v57 = vpop.eup %13729 }
0x22ee   :  { %13739 = vtanh.f32 %v5418_v19  ;;  %v5441_v19 = vadd.f32 %v5439_v25, %v16533_v48  ;;  %v16650_v48 = vld [vmem:[%s18320_s3 + $0x18] sm:$0xff] }
0x22ef   :  { %13741 = vtanh.f32 %v5420_v38  ;;  %18774 = vst [vmem:[#allocation27_spill] sm:$0xff] %v16650_v48 }
0x22f0   :  { %v13732_v46 = vpop.eup %13731 }
0x22f1   :  { %v13734_v17 = vpop.eup %13733  ;;  %v11839_v51 = vpack.c.bf16 %v13732_v46, %v13728_v50 }
0x22f2   :  { %v11837_v30 = vpack.c.bf16 %v13734_v17, %v13730_v57 }
0x22f4   :  { %11838 = vmatprep.subr.bf16.mxu0 %v11837_v30  ;;  %v13736_v41 = vpop.eup %13735  ;;  %v18779_v30 = vld [vmem:[#allocation21_spill] sm:$0xff] }
0x22f5   :  { %11840 = vmatpush1.bf16.msra.mxu0 %v11839_v51  ;;  %v13738_v55 = vpop.eup %13737  ;;  %v5438_v51 = vmul.f32 %v16567_v54, %v14722_v1 }
0x22f7   :  { %v5440_v29 = vadd.f32 %v5438_v51, %v16536_v36  ;;  %v16682_v36 = vld [vmem:[%s18320_s3 + $0x38] sm:$0xff] }
0x22f8   :  { %v13740_v3 = vpop.eup %13739  ;;  %18778 = vst [vmem:[#allocation13_spill] sm:$0xff] %v16682_v36 }
0x22f9   :  { %v13742_v56 = vpop.eup %13741  ;;  %v11843_v4 = vpack.c.bf16 %v13740_v3, %v13736_v41 }
0x22fa   :  { %v11841_v26 = vpack.c.bf16 %v13742_v56, %v13738_v55 }
0x22fc   :  { %11842 = vmatprep.subr.bf16.mxu0 %v11841_v26 }
0x22fd   :  { %11844 = vmatpush1.bf16.msra.mxu0 %v11843_v4  ;;  %v18780_v4 = vld [vmem:[#allocation23_spill] sm:$0xff] }
0x22fe   :  { %11846 = vmatprep.subr.bf16.mxu0 %v14437_v5 }
0x2300   :  { %10180 = vmatmul.mubr.msk.f32.vlgmr.msra.gmra.mrb[202].mxu0 %vm402_vm1, %v16396_v62 }
0x2301   :  { %11848 = vmatpush1.bf16.msra.mxu0 %v14439_v9 }
0x2302   :  { %11850 = vmatprep.subr.bf16.mxu0 %v14441_v10 }
0x2305   :  { %11852 = vmatpush1.bf16.msra.mxu0 %v14445_v15 }
0x2306   :  { %11854 = vmatprep.subr.bf16.mxu0 %v14448_v16 }
0x2309   :  { %11856 = vmatpush1.bf16.msra.mxu0 %v14451_v21 }
0x230a   :  { %11858 = vmatprep.subr.bf16.mxu0 %v14454_v22 }
0x230d   :  { %11860 = vmatpush1.bf16.msra.mxu0 %v14457_v27 }
0x230e   :  { %11862 = vmatprep.subr.bf16.mxu0 %v14460_v28 }
0x2311   :  { %11864 = vmatpush1.bf16.msra.mxu0 %v14463_v33 }
0x2312   :  { %11866 = vmatprep.subr.bf16.mxu0 %v14466_v35 }
0x2315   :  { %11868 = vmatpush1.bf16.msra.mxu0 %v14489_v42 }
0x2316   :  { %11870 = vmatprep.subr.bf16.mxu0 %v14494_v43 }
0x2319   :  { %11872 = vmatpush1.bf16.msra.mxu0 %v14503_v49 }
0x231a   :  { %11874 = vmatprep.subr.bf16.mxu0 %v14511_v52 }
0x231d   :  { %11876 = vmatpush1.bf16.msra.mxu0 %v14529_v60 }
0x231e   :  { %11878 = vmatprep.subr.bf16.mxu0 %v14534_v61 }
0x2321   :  { %11880 = vmatpush1.bf16.msra.mxu0 %v14549_v7 }
0x2322   :  { %11882 = vmatprep.subr.bf16.mxu0 %v14554_v8 }
0x2325   :  { %11884 = vmatpush1.bf16.msra.mxu0 %v14569_v20 }
0x2326   :  { %11886 = vmatprep.subr.bf16.mxu0 %v14574_v23 }
0x2329   :  { %11888 = vmatpush1.bf16.msra.mxu0 %v14584_v32 }
0x232a   :  { %11890 = vmatprep.subr.bf16.mxu0 %v18625_v59 }
0x232d   :  { %11892 = vmatpush1.bf16.msra.mxu0 %v18626_v53 }
0x232e   :  { %11894 = vmatprep.subr.bf16.mxu0 %v18627_v6 }
0x2331   :  { %11896 = vmatpush1.bf16.msra.mxu0 %v18628_v12 }
0x2332   :  { %11898 = vmatprep.subr.bf16.mxu0 %v18629_v63 }
0x2335   :  { %11900 = vmatpush1.bf16.msra.mxu0 %v18630_v14 }
0x2336   :  { %11902 = vmatprep.subr.bf16.mxu0 %v18631_v45 }
0x2339   :  { %11904 = vmatpush1.bf16.msra.mxu0 %v18632_v34 }
0x233a   :  { %11906 = vmatprep.subr.bf16.mxu0 %v18633_v0 }
0x233d   :  { %11908 = vmatpush1.bf16.msra.mxu0 %v18634_v40 }
0x23d3   :  { %v5508_v31 = vpop.f32.mrb[202].mxu0 }
0x23d4   :  { %v5513_v2 = vadd.f32 %v5508_v31, %v5440_v29  ;;  %v5510_v38 = vpop.f32.mrb[203].mxu0  ;;  %v18781_v31 = vld [vmem:[#allocation22_spill] sm:$0xff] }
0x23d5   :  { %v5514_v50 = vadd.f32 %v5510_v38, %v5441_v19 }
0x23d6   :  { %v16631_v46 = vadd.f32 %v5513_v2, %v14730_v18 }
0x23d7   :  { %v16628_v57 = vadd.f32 %v5514_v50, %v14730_v18 }
0x23d9   :  { %5581 = vmatprep.mubr.f32.mxu0 %v16628_v57  ;;  %5588 = vmatprep.subr.mxu1 %v16628_v57 }
0x23da   :  { %5582 = vmatmul.mubr.f32.vlgmr.msra.gmra.mrb[204].mxu0 %v16631_v46  ;;  %5589 = vmatpush1.msra.mxu1 %v16631_v46 }
0x23db   :  { %10181 = vmatmul.mubr.msk.f32.vlgmr.msra.gmra.mrb[176].mxu1 %vm239_vm0, %v16335_v11  ;;  %5934 = vmatprep.mubr.f32.mxu0 %v18615_v37  ;;  %v16658_v11 = vld [vmem:[%s18320_s3 + $0x20] sm:$0xff] }
0x23dc   :  { %5658 = vmatprep.mubr.f32.mxu1 %v18615_v37  ;;  %18775 = vst [vmem:[#allocation28_spill] sm:$0xff] %v16658_v11 }
0x23df   :  { %10182 = vmatmul.mubr.msk.f32.gmra.mrb[178].mxu1 %vm239_vm0, %v16344_v13  ;;  %v16666_v13 = vld [vmem:[%s18320_s3 + $0x28] sm:$0xff] }
0x23e0   :  { %5664 = vmatprep.mubr.f32.mxu1 %v18615_v37  ;;  %18776 = vst [vmem:[#allocation11_spill] sm:$0xff] %v16666_v13 }
0x23e3   :  { %10183 = vmatmul.mubr.msk.f32.gmra.mrb[180].mxu1 %vm239_vm0, %v16352_v24  ;;  %v16674_v24 = vld [vmem:[%s18320_s3 + $0x30] sm:$0xff] }
0x23e4   :  { %5670 = vmatprep.mubr.f32.mxu1 %v18615_v37  ;;  %18777 = vst [vmem:[#allocation12_spill] sm:$0xff] %v16674_v24 }
0x23e7   :  { %10184 = vmatmul.mubr.msk.f32.gmra.mrb[182].mxu1 %vm239_vm0, %v16650_v48 }
0x23e8   :  { %5676 = vmatprep.mubr.f32.mxu1 %v18615_v37 }
0x23eb   :  { %10185 = vmatmul.mubr.msk.f32.gmra.mrb[184].mxu1 %vm239_vm0, %v16658_v11 }
0x23ec   :  { %5682 = vmatprep.mubr.f32.mxu1 %v18615_v37 }
0x23ef   :  { %10186 = vmatmul.mubr.msk.f32.gmra.mrb[186].mxu1 %vm239_vm0, %v16666_v13 }
0x23f0   :  { %5688 = vmatprep.mubr.f32.mxu1 %v18615_v37 }
0x23f3   :  { %10187 = vmatmul.mubr.msk.f32.gmra.mrb[188].mxu1 %vm239_vm0, %v16674_v24 }
0x23f4   :  { %5694 = vmatprep.mubr.f32.mxu1 %v18615_v37 }
0x23f7   :  { %10188 = vmatmul.mubr.msk.f32.gmra.mrb[190].mxu1 %vm239_vm0, %v16682_v36 }
0x23f8   :  { %5785 = vmatprep.mubr.f32.mxu1 %v18615_v37 }
0x24ad   :  { %v16687_v54 = vpop.f32.mrb[204].mxu0 }
0x24ae   :  { %v16689_v39 = vpop.f32.mrb[205].mxu0  ;;  %v5654_v17 = vpop.f32.mrb[176].mxu1 }
0x24af   :  { %v5655_v41 = vadd.f32 %v5654_v17, %v18779_v30  ;;  %v5656_v55 = vpop.f32.mrb[177].mxu1  ;;  %v18782_v17 = vld [vmem:[#allocation24_spill] sm:$0xff] }
0x24b0   :  { %v5657_v3 = vadd.f32 %v5656_v55, %v18779_v30 }
0x24b1   :  { %13743 = vtanh.f32 %v5655_v41 }
0x24b2   :  { %v5660_v56 = vpop.f32.mrb[178].mxu1  ;;  %13745 = vtanh.f32 %v5657_v3 }
0x24b3   :  { %v5661_v26 = vadd.f32 %v5660_v56, %v18780_v4  ;;  %v5662_v51 = vpop.f32.mrb[179].mxu1 }
0x24b4   :  { %v5663_v25 = vadd.f32 %v5662_v51, %v18780_v4 }
0x24b5   :  { %13747 = vtanh.f32 %v5661_v26 }
0x24b6   :  { %13749 = vtanh.f32 %v5663_v25  ;;  %v5666_v29 = vpop.f32.mrb[180].mxu1 }
0x24b7   :  { %v5667_v19 = vadd.f32 %v5666_v29, %v18781_v31  ;;  %v5668_v2 = vpop.f32.mrb[181].mxu1 }
0x24b8   :  { %v5669_v38 = vadd.f32 %v5668_v2, %v18781_v31 }
0x24b9   :  { %13751 = vtanh.f32 %v5667_v19 }
0x24ba   :  { %v5672_v50 = vpop.f32.mrb[182].mxu1  ;;  %13753 = vtanh.f32 %v5669_v38 }
0x24bb   :  { %v5673_v55 = vadd.f32 %v5672_v50, %v18782_v17  ;;  %v5674_v30 = vpop.f32.mrb[183].mxu1  ;;  %v13744_v56 = vpop.eup %13743  ;;  %v18783_v50 = vld [vmem:[#allocation26_spill] sm:$0xff] }
0x24bc   :  { %v5675_v41 = vadd.f32 %v5674_v30, %v18782_v17  ;;  %v13746_v3 = vpop.eup %13745 }
0x24bd   :  { %13755 = vtanh.f32 %v5673_v55 }
0x24be   :  { %13757 = vtanh.f32 %v5675_v41  ;;  %v5678_v26 = vpop.f32.mrb[184].mxu1 }
0x24bf   :  { %v13748_v51 = vpop.eup %13747  ;;  %v5679_v25 = vadd.f32 %v5678_v26, %v18621_v58  ;;  %v5680_v29 = vpop.f32.mrb[185].mxu1 }
0x24c0   :  { %v13750_v4 = vpop.eup %13749  ;;  %v5681_v2 = vadd.f32 %v5680_v29, %v18621_v58  ;;  %v11911_v31 = vpack.c.bf16 %v13748_v51, %v13744_v56 }
0x24c1   :  { %v11909_v19 = vpack.c.bf16 %v13750_v4, %v13746_v3  ;;  %13759 = vtanh.f32 %v5679_v25 }
0x24c2   :  { %v5684_v36 = vpop.f32.mrb[186].mxu1  ;;  %13761 = vtanh.f32 %v5681_v2 }
0x24c3   :  { %v5685_v38 = vadd.f32 %v5684_v36, %v18783_v50  ;;  %v5686_v24 = vpop.f32.mrb[187].mxu1  ;;  %11910 = vmatprep.subr.bf16.mxu1 %v11909_v19  ;;  %v13752_v55 = vpop.eup %13751 }
0x24c4   :  { %v5687_v30 = vadd.f32 %v5686_v24, %v18783_v50  ;;  %11912 = vmatpush1.bf16.msra.mxu1 %v11911_v31  ;;  %v13754_v41 = vpop.eup %13753 }
0x24c5   :  { %13763 = vtanh.f32 %v5685_v38 }
0x24c6   :  { %13765 = vtanh.f32 %v5687_v30  ;;  %v5690_v26 = vpop.f32.mrb[188].mxu1 }
0x24c7   :  { %v13756_v17 = vpop.eup %13755  ;;  %v5691_v29 = vadd.f32 %v5690_v26, %v18623_v47  ;;  %v5692_v56 = vpop.f32.mrb[189].mxu1 }
0x24c8   :  { %v13758_v4 = vpop.eup %13757  ;;  %v5693_v3 = vadd.f32 %v5692_v56, %v18623_v47  ;;  %v11915_v51 = vpack.c.bf16 %v13756_v17, %v13752_v55 }
0x24c9   :  { %v11913_v36 = vpack.c.bf16 %v13758_v4, %v13754_v41  ;;  %13767 = vtanh.f32 %v5691_v29 }
0x24ca   :  { %v5696_v25 = vpop.f32.mrb[190].mxu1  ;;  %13769 = vtanh.f32 %v5693_v3 }
0x24cb   :  { %v5697_v2 = vadd.f32 %v5696_v25, %v18624_v44  ;;  %v5698_v24 = vpop.f32.mrb[191].mxu1  ;;  %11914 = vmatprep.subr.bf16.mxu1 %v11913_v36  ;;  %v13760_v19 = vpop.eup %13759 }
0x24cc   :  { %v5699_v31 = vadd.f32 %v5698_v24, %v18624_v44  ;;  %11916 = vmatpush1.bf16.msra.mxu1 %v11915_v51  ;;  %v13762_v38 = vpop.eup %13761 }
0x24cd   :  { %13771 = vtanh.f32 %v5697_v2 }
0x24ce   :  { %13773 = vtanh.f32 %v5699_v31 }
0x24cf   :  { %v13764_v30 = vpop.eup %13763 }
0x24d0   :  { %v13766_v26 = vpop.eup %13765  ;;  %v11919_v50 = vpack.c.bf16 %v13764_v30, %v13760_v19  ;;  %v18785_v30 = vld [vmem:[#allocation13_spill] sm:$0xff] }
0x24d1   :  { %v11917_v56 = vpack.c.bf16 %v13766_v26, %v13762_v38 }
0x24d3   :  { %11918 = vmatprep.subr.bf16.mxu1 %v11917_v56  ;;  %v13768_v17 = vpop.eup %13767 }
0x24d4   :  { %11920 = vmatpush1.bf16.msra.mxu1 %v11919_v50  ;;  %v13770_v55 = vpop.eup %13769  ;;  %v5718_v50 = vmul.f32 %v16689_v39, %v14722_v1  ;;  %v18784_v39 = vld [vmem:[#allocation12_spill] sm:$0xff] }
0x24d6   :  { %v5720_v25 = vadd.f32 %v5718_v50, %v16628_v57  ;;  %v16762_v57 = vld [vmem:[%s18320_s3] sm:$0xff] }
0x24d7   :  { %v13772_v41 = vpop.eup %13771 }
0x24d8   :  { %v13774_v29 = vpop.eup %13773  ;;  %v11923_v4 = vpack.c.bf16 %v13772_v41, %v13768_v17 }
0x24d9   :  { %v11921_v36 = vpack.c.bf16 %v13774_v29, %v13770_v55  ;;  %v18786_v55 = vld [vmem:[#allocation21_spill] sm:$0xff] }
0x24db   :  { %11922 = vmatprep.subr.bf16.mxu1 %v11921_v36 }
0x24dc   :  { %11924 = vmatpush1.bf16.msra.mxu1 %v11923_v4 }
0x24dd   :  { %11926 = vmatprep.subr.bf16.mxu1 %v14437_v5 }
0x24df   :  { %10189 = vmatmul.mubr.msk.f32.vlgmr.msra.gmra.mrb[192].mxu1 %vm402_vm1, %v16396_v62  ;;  %v5717_v62 = vmul.f32 %v16687_v54, %v14722_v1  ;;  %v16779_v54 = vld [vmem:[%s18320_s3 + $0x10] sm:$0xff] }
0x24e0   :  { %11928 = vmatpush1.bf16.msra.mxu1 %v14439_v9 }
0x24e1   :  { %11930 = vmatprep.subr.bf16.mxu1 %v14441_v10  ;;  %v5719_v3 = vadd.f32 %v5717_v62, %v16631_v46  ;;  %v16771_v46 = vld [vmem:[%s18320_s3 + $0x8] sm:$0xff]  ;;  %v18787_v62 = vld [vmem:[#allocation23_spill] sm:$0xff] }
0x24e4   :  { %11932 = vmatpush1.bf16.msra.mxu1 %v14445_v15 }
0x24e5   :  { %11934 = vmatprep.subr.bf16.mxu1 %v14448_v16 }
0x24e8   :  { %11936 = vmatpush1.bf16.msra.mxu1 %v14451_v21 }
0x24e9   :  { %11938 = vmatprep.subr.bf16.mxu1 %v14454_v22 }
0x24ec   :  { %11940 = vmatpush1.bf16.msra.mxu1 %v14457_v27 }
0x24ed   :  { %11942 = vmatprep.subr.bf16.mxu1 %v14460_v28 }
0x24f0   :  { %11944 = vmatpush1.bf16.msra.mxu1 %v14463_v33 }
0x24f1   :  { %11946 = vmatprep.subr.bf16.mxu1 %v14466_v35 }
0x24f4   :  { %11948 = vmatpush1.bf16.msra.mxu1 %v14489_v42 }
0x24f5   :  { %11950 = vmatprep.subr.bf16.mxu1 %v14494_v43 }
0x24f8   :  { %11952 = vmatpush1.bf16.msra.mxu1 %v14503_v49 }
0x24f9   :  { %11954 = vmatprep.subr.bf16.mxu1 %v14511_v52 }
0x24fc   :  { %11956 = vmatpush1.bf16.msra.mxu1 %v14529_v60 }
0x24fd   :  { %11958 = vmatprep.subr.bf16.mxu1 %v14534_v61 }
0x2500   :  { %11960 = vmatpush1.bf16.msra.mxu1 %v14549_v7 }
0x2501   :  { %11962 = vmatprep.subr.bf16.mxu1 %v14554_v8 }
0x2504   :  { %11964 = vmatpush1.bf16.msra.mxu1 %v14569_v20 }
0x2505   :  { %11966 = vmatprep.subr.bf16.mxu1 %v14574_v23 }
0x2508   :  { %11968 = vmatpush1.bf16.msra.mxu1 %v14584_v32 }
0x2509   :  { %11970 = vmatprep.subr.bf16.mxu1 %v18625_v59 }
0x250c   :  { %11972 = vmatpush1.bf16.msra.mxu1 %v18626_v53 }
0x250d   :  { %11974 = vmatprep.subr.bf16.mxu1 %v18627_v6 }
0x2510   :  { %11976 = vmatpush1.bf16.msra.mxu1 %v18628_v12 }
0x2511   :  { %11978 = vmatprep.subr.bf16.mxu1 %v18629_v63 }
0x2514   :  { %11980 = vmatpush1.bf16.msra.mxu1 %v18630_v14 }
0x2515   :  { %11982 = vmatprep.subr.bf16.mxu1 %v18631_v45 }
0x2518   :  { %11984 = vmatpush1.bf16.msra.mxu1 %v18632_v34 }
0x2519   :  { %11986 = vmatprep.subr.bf16.mxu1 %v18633_v0 }
0x251c   :  { %11988 = vmatpush1.bf16.msra.mxu1 %v18634_v40 }
0x25b2   :  { %v5787_v51 = vpop.f32.mrb[192].mxu1 }
0x25b3   :  { %v5792_v2 = vadd.f32 %v5787_v51, %v5719_v3  ;;  %v5789_v24 = vpop.f32.mrb[193].mxu1 }
0x25b4   :  { %v5793_v31 = vadd.f32 %v5789_v24, %v5720_v25 }
0x25b5   :  { %v16748_v19 = vadd.f32 %v5792_v2, %v14730_v18  ;;  %v18788_v2 = vld [vmem:[#allocation22_spill] sm:$0xff] }
0x25b6   :  { %v16751_v38 = vadd.f32 %v5793_v31, %v14730_v18 }
0x25b7   :  { %5797 = vst [vmem:[#allocation5 + $0x40] sm:$0xff] %v16748_v19 }
0x25b8   :  { %5798 = vst [vmem:[#allocation5 + $0x48] sm:$0xff] %v16751_v38  ;;  %5863 = vmatprep.mubr.f32.mxu1 %v16751_v38  ;;  %5870 = vmatprep.subr.mxu0 %v16751_v38 }
0x25b9   :  { %5864 = vmatmul.mubr.f32.vlgmr.msra.gmra.mrb[194].mxu1 %v16748_v19  ;;  %5871 = vmatpush1.msra.mxu0 %v16748_v19 }
0x25ba   :  { %10190 = vmatmul.mubr.msk.f32.vlgmr.msra.gmra.mrb[206].mxu0 %vm239_vm0, %v16762_v57  ;;  %6213 = vmatprep.mubr.f32.mxu1 %v18615_v37 }
0x25bb   :  { %5940 = vmatprep.mubr.f32.mxu0 %v18615_v37 }
0x25be   :  { %10191 = vmatmul.mubr.msk.f32.gmra.mrb[208].mxu0 %vm239_vm0, %v16771_v46 }
0x25bf   :  { %5946 = vmatprep.mubr.f32.mxu0 %v18615_v37 }
0x25c2   :  { %10192 = vmatmul.mubr.msk.f32.gmra.mrb[210].mxu0 %vm239_vm0, %v16779_v54 }
0x25c3   :  { %5952 = vmatprep.mubr.f32.mxu0 %v18615_v37 }
0x25c6   :  { %10193 = vmatmul.mubr.msk.f32.gmra.mrb[212].mxu0 %vm239_vm0, %v16650_v48 }
0x25c7   :  { %5958 = vmatprep.mubr.f32.mxu0 %v18615_v37 }
0x25ca   :  { %10194 = vmatmul.mubr.msk.f32.gmra.mrb[214].mxu0 %vm239_vm0, %v16658_v11 }
0x25cb   :  { %5964 = vmatprep.mubr.f32.mxu0 %v18615_v37 }
0x25ce   :  { %10195 = vmatmul.mubr.msk.f32.gmra.mrb[216].mxu0 %vm239_vm0, %v16666_v13 }
0x25cf   :  { %5970 = vmatprep.mubr.f32.mxu0 %v18615_v37 }
0x25d2   :  { %10196 = vmatmul.mubr.msk.f32.gmra.mrb[218].mxu0 %vm239_vm0, %v18784_v39  ;;  %v18789_v39 = vld [vmem:[#allocation24_spill] sm:$0xff] }
0x25d3   :  { %5976 = vmatprep.mubr.f32.mxu0 %v18615_v37 }
0x25d6   :  { %10197 = vmatmul.mubr.msk.f32.gmra.mrb[220].mxu0 %vm239_vm0, %v18785_v30 }
0x25d7   :  { %6067 = vmatprep.mubr.f32.mxu0 %v18615_v37 }
0x268c   :  { %v16799_v26 = vpop.f32.mrb[194].mxu1 }
0x268d   :  { %v16801_v56 = vpop.f32.mrb[195].mxu1  ;;  %v5936_v17 = vpop.f32.mrb[206].mxu0 }
0x268e   :  { %v5937_v41 = vadd.f32 %v5936_v17, %v18786_v55  ;;  %v5938_v29 = vpop.f32.mrb[207].mxu0 }
0x268f   :  { %v5939_v4 = vadd.f32 %v5938_v29, %v18786_v55 }
0x2690   :  { %13775 = vtanh.f32 %v5937_v41 }
0x2691   :  { %v5942_v36 = vpop.f32.mrb[208].mxu0  ;;  %13777 = vtanh.f32 %v5939_v4 }
0x2692   :  { %v5943_v50 = vadd.f32 %v5942_v36, %v18787_v62  ;;  %v5944_v3 = vpop.f32.mrb[209].mxu0 }
0x2693   :  { %v5945_v51 = vadd.f32 %v5944_v3, %v18787_v62 }
0x2694   :  { %13779 = vtanh.f32 %v5943_v50 }
0x2695   :  { %13781 = vtanh.f32 %v5945_v51  ;;  %v5948_v25 = vpop.f32.mrb[210].mxu0 }
0x2696   :  { %v5949_v24 = vadd.f32 %v5948_v25, %v18788_v2  ;;  %v5950_v31 = vpop.f32.mrb[211].mxu0 }
0x2697   :  { %v5951_v30 = vadd.f32 %v5950_v31, %v18788_v2 }
0x2698   :  { %13783 = vtanh.f32 %v5949_v24 }
0x2699   :  { %v5954_v17 = vpop.f32.mrb[212].mxu0  ;;  %13785 = vtanh.f32 %v5951_v30 }
0x269a   :  { %v5955_v29 = vadd.f32 %v5954_v17, %v18789_v39  ;;  %v5956_v55 = vpop.f32.mrb[213].mxu0  ;;  %v13776_v36 = vpop.eup %13775  ;;  %v18790_v17 = vld [vmem:[#allocation26_spill] sm:$0xff] }
0x269b   :  { %v5957_v41 = vadd.f32 %v5956_v55, %v18789_v39  ;;  %v13778_v4 = vpop.eup %13777 }
0x269c   :  { %13787 = vtanh.f32 %v5955_v29 }
0x269d   :  { %13789 = vtanh.f32 %v5957_v41  ;;  %v5960_v50 = vpop.f32.mrb[214].mxu0 }
0x269e   :  { %v13780_v3 = vpop.eup %13779  ;;  %v5961_v51 = vadd.f32 %v5960_v50, %v18621_v58  ;;  %v5962_v25 = vpop.f32.mrb[215].mxu0 }
0x269f   :  { %v13782_v62 = vpop.eup %13781  ;;  %v5963_v31 = vadd.f32 %v5962_v25, %v18621_v58  ;;  %v11991_v2 = vpack.c.bf16 %v13780_v3, %v13776_v36 }
0x26a0   :  { %v11989_v24 = vpack.c.bf16 %v13782_v62, %v13778_v4  ;;  %13791 = vtanh.f32 %v5961_v51 }
0x26a1   :  { %v5966_v13 = vpop.f32.mrb[216].mxu0  ;;  %13793 = vtanh.f32 %v5963_v31 }
0x26a2   :  { %v5967_v30 = vadd.f32 %v5966_v13, %v18790_v17  ;;  %v5968_v11 = vpop.f32.mrb[217].mxu0  ;;  %11990 = vmatprep.subr.bf16.mxu0 %v11989_v24  ;;  %v13784_v29 = vpop.eup %13783 }
0x26a3   :  { %v5969_v55 = vadd.f32 %v5968_v11, %v18790_v17  ;;  %11992 = vmatpush1.bf16.msra.mxu0 %v11991_v2  ;;  %v13786_v41 = vpop.eup %13785 }
0x26a4   :  { %13795 = vtanh.f32 %v5967_v30 }
0x26a5   :  { %13797 = vtanh.f32 %v5969_v55  ;;  %v5972_v50 = vpop.f32.mrb[218].mxu0 }
0x26a6   :  { %v13788_v39 = vpop.eup %13787  ;;  %v5973_v25 = vadd.f32 %v5972_v50, %v18623_v47  ;;  %v5974_v36 = vpop.f32.mrb[219].mxu0 }
0x26a7   :  { %v13790_v62 = vpop.eup %13789  ;;  %v5975_v4 = vadd.f32 %v5974_v36, %v18623_v47  ;;  %v11995_v3 = vpack.c.bf16 %v13788_v39, %v13784_v29 }
0x26a8   :  { %v11993_v13 = vpack.c.bf16 %v13790_v62, %v13786_v41  ;;  %13799 = vtanh.f32 %v5973_v25 }
0x26a9   :  { %v5978_v51 = vpop.f32.mrb[220].mxu0  ;;  %13801 = vtanh.f32 %v5975_v4  ;;  %v16823_v4 = vld [vmem:[%s18322_s5] sm:$0xff] }
0x26aa   :  { %v5979_v31 = vadd.f32 %v5978_v51, %v18624_v44  ;;  %v5980_v11 = vpop.f32.mrb[221].mxu0  ;;  %11994 = vmatprep.subr.bf16.mxu0 %v11993_v13  ;;  %v13792_v24 = vpop.eup %13791 }
0x26ab   :  { %v5981_v2 = vadd.f32 %v5980_v11, %v18624_v44  ;;  %11996 = vmatpush1.bf16.msra.mxu0 %v11995_v3  ;;  %v13794_v30 = vpop.eup %13793  ;;  %v6000_v3 = vmul.f32 %v16801_v56, %v14722_v1  ;;  %v18794_v56 = vld [vmem:[#allocation13_spill] sm:$0xff] }
0x26ac   :  { %13803 = vtanh.f32 %v5979_v31 }
0x26ad   :  { %13805 = vtanh.f32 %v5981_v2  ;;  %v6002_v11 = vadd.f32 %v6000_v3, %v16751_v38  ;;  %v18792_v38 = vld [vmem:[#allocation11_spill] sm:$0xff] }
0x26ae   :  { %v13796_v55 = vpop.eup %13795  ;;  %v18796_v3 = vld [vmem:[#allocation23_spill] sm:$0xff] }
0x26af   :  { %v13798_v50 = vpop.eup %13797  ;;  %v11999_v17 = vpack.c.bf16 %v13796_v55, %v13792_v24 }
0x26b0   :  { %v11997_v36 = vpack.c.bf16 %v13798_v50, %v13794_v30 }
0x26b2   :  { %11998 = vmatprep.subr.bf16.mxu0 %v11997_v36  ;;  %v13800_v39 = vpop.eup %13799 }
0x26b3   :  { %12000 = vmatpush1.bf16.msra.mxu0 %v11999_v17  ;;  %v13802_v29 = vpop.eup %13801  ;;  %v5999_v17 = vmul.f32 %v16799_v26, %v14722_v1  ;;  %v18793_v26 = vld [vmem:[#allocation12_spill] sm:$0xff] }
0x26b5   :  { %v6001_v51 = vadd.f32 %v5999_v17, %v16748_v19  ;;  %v18791_v19 = vld [vmem:[#allocation28_spill] sm:$0xff] }
0x26b6   :  { %v13804_v41 = vpop.eup %13803 }
0x26b7   :  { %v13806_v25 = vpop.eup %13805  ;;  %v12003_v62 = vpack.c.bf16 %v13804_v41, %v13800_v39  ;;  %v18795_v41 = vld [vmem:[#allocation21_spill] sm:$0xff] }
0x26b8   :  { %v12001_v13 = vpack.c.bf16 %v13806_v25, %v13802_v29 }
0x26ba   :  { %12002 = vmatprep.subr.bf16.mxu0 %v12001_v13 }
0x26bb   :  { %12004 = vmatpush1.bf16.msra.mxu0 %v12003_v62 }
0x26bc   :  { %12006 = vmatprep.subr.bf16.mxu0 %v14437_v5 }
0x26be   :  { %10198 = vmatmul.mubr.msk.f32.vlgmr.msra.gmra.mrb[222].mxu0 %vm402_vm1, %v16823_v4 }
0x26bf   :  { %12008 = vmatpush1.bf16.msra.mxu0 %v14439_v9 }
0x26c0   :  { %12010 = vmatprep.subr.bf16.mxu0 %v14441_v10 }
0x26c3   :  { %12012 = vmatpush1.bf16.msra.mxu0 %v14445_v15 }
0x26c4   :  { %12014 = vmatprep.subr.bf16.mxu0 %v14448_v16 }
0x26c7   :  { %12016 = vmatpush1.bf16.msra.mxu0 %v14451_v21 }
0x26c8   :  { %12018 = vmatprep.subr.bf16.mxu0 %v14454_v22 }
0x26cb   :  { %12020 = vmatpush1.bf16.msra.mxu0 %v14457_v27 }
0x26cc   :  { %12022 = vmatprep.subr.bf16.mxu0 %v14460_v28 }
0x26cf   :  { %12024 = vmatpush1.bf16.msra.mxu0 %v14463_v33 }
0x26d0   :  { %12026 = vmatprep.subr.bf16.mxu0 %v14466_v35 }
0x26d3   :  { %12028 = vmatpush1.bf16.msra.mxu0 %v14489_v42 }
0x26d4   :  { %12030 = vmatprep.subr.bf16.mxu0 %v14494_v43 }
0x26d7   :  { %12032 = vmatpush1.bf16.msra.mxu0 %v14503_v49 }
0x26d8   :  { %12034 = vmatprep.subr.bf16.mxu0 %v14511_v52 }
0x26db   :  { %12036 = vmatpush1.bf16.msra.mxu0 %v14529_v60 }
0x26dc   :  { %12038 = vmatprep.subr.bf16.mxu0 %v14534_v61 }
0x26df   :  { %12040 = vmatpush1.bf16.msra.mxu0 %v14549_v7 }
0x26e0   :  { %12042 = vmatprep.subr.bf16.mxu0 %v14554_v8 }
0x26e3   :  { %12044 = vmatpush1.bf16.msra.mxu0 %v14569_v20 }
0x26e4   :  { %12046 = vmatprep.subr.bf16.mxu0 %v14574_v23 }
0x26e7   :  { %12048 = vmatpush1.bf16.msra.mxu0 %v14584_v32 }
0x26e8   :  { %12050 = vmatprep.subr.bf16.mxu0 %v18625_v59 }
0x26eb   :  { %12052 = vmatpush1.bf16.msra.mxu0 %v18626_v53 }
0x26ec   :  { %12054 = vmatprep.subr.bf16.mxu0 %v18627_v6 }
0x26ef   :  { %12056 = vmatpush1.bf16.msra.mxu0 %v18628_v12 }
0x26f0   :  { %12058 = vmatprep.subr.bf16.mxu0 %v18629_v63 }
0x26f3   :  { %12060 = vmatpush1.bf16.msra.mxu0 %v18630_v14 }
0x26f4   :  { %12062 = vmatprep.subr.bf16.mxu0 %v18631_v45 }
0x26f7   :  { %12064 = vmatpush1.bf16.msra.mxu0 %v18632_v34 }
0x26f8   :  { %12066 = vmatprep.subr.bf16.mxu0 %v18633_v0 }
0x26fb   :  { %12068 = vmatpush1.bf16.msra.mxu0 %v18634_v40 }
0x2791   :  { %v6069_v31 = vpop.f32.mrb[222].mxu0 }
0x2792   :  { %v6074_v2 = vadd.f32 %v6069_v31, %v6001_v51  ;;  %v6071_v24 = vpop.f32.mrb[223].mxu0 }
0x2793   :  { %v6075_v30 = vadd.f32 %v6071_v24, %v6002_v11  ;;  %v18797_v24 = vld [vmem:[#allocation22_spill] sm:$0xff] }
0x2794   :  { %v16868_v50 = vadd.f32 %v6074_v2, %v14730_v18 }
0x2795   :  { %v16865_v55 = vadd.f32 %v6075_v30, %v14730_v18 }
0x2797   :  { %6142 = vmatprep.mubr.f32.mxu0 %v16865_v55  ;;  %6149 = vmatprep.subr.mxu1 %v16865_v55 }
0x2798   :  { %6143 = vmatmul.mubr.f32.vlgmr.msra.gmra.mrb[224].mxu0 %v16868_v50  ;;  %6150 = vmatpush1.msra.mxu1 %v16868_v50 }
0x2799   :  { %10199 = vmatmul.mubr.msk.f32.vlgmr.msra.gmra.mrb[196].mxu1 %vm239_vm0, %v16762_v57  ;;  %6492 = vmatprep.mubr.f32.mxu0 %v18615_v37 }
0x279a   :  { %6219 = vmatprep.mubr.f32.mxu1 %v18615_v37 }
0x279d   :  { %10200 = vmatmul.mubr.msk.f32.gmra.mrb[198].mxu1 %vm239_vm0, %v16771_v46 }
0x279e   :  { %6225 = vmatprep.mubr.f32.mxu1 %v18615_v37 }
0x27a1   :  { %10201 = vmatmul.mubr.msk.f32.gmra.mrb[200].mxu1 %vm239_vm0, %v16779_v54 }
0x27a2   :  { %6231 = vmatprep.mubr.f32.mxu1 %v18615_v37 }
0x27a5   :  { %10202 = vmatmul.mubr.msk.f32.gmra.mrb[202].mxu1 %vm239_vm0, %v16650_v48 }
0x27a6   :  { %6237 = vmatprep.mubr.f32.mxu1 %v18615_v37 }
0x27a9   :  { %10203 = vmatmul.mubr.msk.f32.gmra.mrb[204].mxu1 %vm239_vm0, %v18791_v19 }
0x27aa   :  { %6243 = vmatprep.mubr.f32.mxu1 %v18615_v37 }
0x27ad   :  { %10204 = vmatmul.mubr.msk.f32.gmra.mrb[206].mxu1 %vm239_vm0, %v18792_v38  ;;  %v18798_v38 = vld [vmem:[#allocation24_spill] sm:$0xff] }
0x27ae   :  { %6249 = vmatprep.mubr.f32.mxu1 %v18615_v37 }
0x27b1   :  { %10205 = vmatmul.mubr.msk.f32.gmra.mrb[208].mxu1 %vm239_vm0, %v18793_v26 }
0x27b2   :  { %6255 = vmatprep.mubr.f32.mxu1 %v18615_v37 }
0x27b5   :  { %10206 = vmatmul.mubr.msk.f32.gmra.mrb[210].mxu1 %vm239_vm0, %v18794_v56 }
0x27b6   :  { %6346 = vmatprep.mubr.f32.mxu1 %v18615_v37 }
0x286b   :  { %v16899_v36 = vpop.f32.mrb[224].mxu0 }
0x286c   :  { %v16901_v39 = vpop.f32.mrb[225].mxu0  ;;  %v6215_v29 = vpop.f32.mrb[196].mxu1 }
0x286d   :  { %v6216_v25 = vadd.f32 %v6215_v29, %v18795_v41  ;;  %v6217_v62 = vpop.f32.mrb[197].mxu1 }
0x286e   :  { %v6218_v13 = vadd.f32 %v6217_v62, %v18795_v41 }
0x286f   :  { %13807 = vtanh.f32 %v6216_v25 }
0x2870   :  { %v6221_v17 = vpop.f32.mrb[198].mxu1  ;;  %13809 = vtanh.f32 %v6218_v13 }
0x2871   :  { %v6222_v51 = vadd.f32 %v6221_v17, %v18796_v3  ;;  %v6223_v31 = vpop.f32.mrb[199].mxu1 }
0x2872   :  { %v6224_v11 = vadd.f32 %v6223_v31, %v18796_v3 }
0x2873   :  { %13811 = vtanh.f32 %v6222_v51 }
0x2874   :  { %13813 = vtanh.f32 %v6224_v11  ;;  %v6227_v2 = vpop.f32.mrb[200].mxu1 }
0x2875   :  { %v6228_v30 = vadd.f32 %v6227_v2, %v18797_v24  ;;  %v6229_v56 = vpop.f32.mrb[201].mxu1 }
0x2876   :  { %v6230_v26 = vadd.f32 %v6229_v56, %v18797_v24 }
0x2877   :  { %13815 = vtanh.f32 %v6228_v30 }
0x2878   :  { %v6233_v29 = vpop.f32.mrb[202].mxu1  ;;  %13817 = vtanh.f32 %v6230_v26 }
0x2879   :  { %v6234_v62 = vadd.f32 %v6233_v29, %v18798_v38  ;;  %v6235_v41 = vpop.f32.mrb[203].mxu1  ;;  %v13808_v17 = vpop.eup %13807  ;;  %v18799_v29 = vld [vmem:[#allocation26_spill] sm:$0xff] }
0x287a   :  { %v6236_v25 = vadd.f32 %v6235_v41, %v18798_v38  ;;  %v13810_v13 = vpop.eup %13809 }
0x287b   :  { %13819 = vtanh.f32 %v6234_v62 }
0x287c   :  { %13821 = vtanh.f32 %v6236_v25  ;;  %v6239_v51 = vpop.f32.mrb[204].mxu1 }
0x287d   :  { %v13812_v31 = vpop.eup %13811  ;;  %v6240_v11 = vadd.f32 %v6239_v51, %v18621_v58  ;;  %v6241_v2 = vpop.f32.mrb[205].mxu1 }
0x287e   :  { %v13814_v3 = vpop.eup %13813  ;;  %v6242_v56 = vadd.f32 %v6241_v2, %v18621_v58  ;;  %v12071_v24 = vpack.c.bf16 %v13812_v31, %v13808_v17 }
0x287f   :  { %v12069_v30 = vpack.c.bf16 %v13814_v3, %v13810_v13  ;;  %13823 = vtanh.f32 %v6240_v11 }
0x2880   :  { %v6245_v19 = vpop.f32.mrb[206].mxu1  ;;  %13825 = vtanh.f32 %v6242_v56 }
0x2881   :  { %v6246_v26 = vadd.f32 %v6245_v19, %v18799_v29  ;;  %v6247_v48 = vpop.f32.mrb[207].mxu1  ;;  %12070 = vmatprep.subr.bf16.mxu1 %v12069_v30  ;;  %v13816_v62 = vpop.eup %13815 }
0x2882   :  { %v6248_v41 = vadd.f32 %v6247_v48, %v18799_v29  ;;  %12072 = vmatpush1.bf16.msra.mxu1 %v12071_v24  ;;  %v13818_v25 = vpop.eup %13817 }
0x2883   :  { %13827 = vtanh.f32 %v6246_v26 }
0x2884   :  { %13829 = vtanh.f32 %v6248_v41  ;;  %v6251_v51 = vpop.f32.mrb[208].mxu1 }
0x2885   :  { %v13820_v38 = vpop.eup %13819  ;;  %v6252_v2 = vadd.f32 %v6251_v51, %v18623_v47  ;;  %v6253_v17 = vpop.f32.mrb[209].mxu1 }
0x2886   :  { %v13822_v3 = vpop.eup %13821  ;;  %v6254_v13 = vadd.f32 %v6253_v17, %v18623_v47  ;;  %v12075_v31 = vpack.c.bf16 %v13820_v38, %v13816_v62 }
0x2887   :  { %v12073_v19 = vpack.c.bf16 %v13822_v3, %v13818_v25  ;;  %13831 = vtanh.f32 %v6252_v2 }
0x2888   :  { %v6257_v11 = vpop.f32.mrb[210].mxu1  ;;  %13833 = vtanh.f32 %v6254_v13  ;;  %v6279_v13 = vmul.f32 %v16901_v39, %v14722_v1  ;;  %v18803_v39 = vld [vmem:[#allocation12_spill] sm:$0xff] }
0x2889   :  { %v6258_v56 = vadd.f32 %v6257_v11, %v18624_v44  ;;  %v6259_v48 = vpop.f32.mrb[211].mxu1  ;;  %12074 = vmatprep.subr.bf16.mxu1 %v12073_v19  ;;  %v13824_v30 = vpop.eup %13823 }
0x288a   :  { %v6260_v24 = vadd.f32 %v6259_v48, %v18624_v44  ;;  %12076 = vmatpush1.bf16.msra.mxu1 %v12075_v31  ;;  %v13826_v26 = vpop.eup %13825 }
0x288b   :  { %13835 = vtanh.f32 %v6258_v56  ;;  %v6281_v56 = vadd.f32 %v6279_v13, %v16865_v55  ;;  %v18800_v55 = vld [vmem:[#allocation27_spill] sm:$0xff] }
0x288c   :  { %13837 = vtanh.f32 %v6260_v24  ;;  %v18806_v13 = vld [vmem:[#allocation23_spill] sm:$0xff] }
0x288d   :  { %v13828_v41 = vpop.eup %13827 }
0x288e   :  { %v13830_v51 = vpop.eup %13829  ;;  %v12079_v29 = vpack.c.bf16 %v13828_v41, %v13824_v30 }
0x288f   :  { %v12077_v17 = vpack.c.bf16 %v13830_v51, %v13826_v26  ;;  %v18804_v51 = vld [vmem:[#allocation13_spill] sm:$0xff] }
0x2891   :  { %12078 = vmatprep.subr.bf16.mxu1 %v12077_v17  ;;  %v13832_v38 = vpop.eup %13831 }
0x2892   :  { %12080 = vmatpush1.bf16.msra.mxu1 %v12079_v29  ;;  %v13834_v62 = vpop.eup %13833  ;;  %v6278_v29 = vmul.f32 %v16899_v36, %v14722_v1  ;;  %v18802_v36 = vld [vmem:[#allocation11_spill] sm:$0xff] }
0x2894   :  { %v6280_v31 = vadd.f32 %v6278_v29, %v16868_v50  ;;  %v18801_v50 = vld [vmem:[#allocation28_spill] sm:$0xff] }
0x2895   :  { %v13836_v25 = vpop.eup %13835 }
0x2896   :  { %v13838_v2 = vpop.eup %13837  ;;  %v12083_v3 = vpack.c.bf16 %v13836_v25, %v13832_v38  ;;  %v18805_v25 = vld [vmem:[#allocation21_spill] sm:$0xff] }
0x2897   :  { %v12081_v19 = vpack.c.bf16 %v13838_v2, %v13834_v62 }
0x2899   :  { %12082 = vmatprep.subr.bf16.mxu1 %v12081_v19 }
0x289a   :  { %12084 = vmatpush1.bf16.msra.mxu1 %v12083_v3 }
0x289b   :  { %12086 = vmatprep.subr.bf16.mxu1 %v14437_v5 }
0x289d   :  { %10207 = vmatmul.mubr.msk.f32.vlgmr.msra.gmra.mrb[212].mxu1 %vm402_vm1, %v16823_v4 }
0x289e   :  { %12088 = vmatpush1.bf16.msra.mxu1 %v14439_v9 }
0x289f   :  { %12090 = vmatprep.subr.bf16.mxu1 %v14441_v10 }
0x28a2   :  { %12092 = vmatpush1.bf16.msra.mxu1 %v14445_v15 }
0x28a3   :  { %12094 = vmatprep.subr.bf16.mxu1 %v14448_v16 }
0x28a6   :  { %12096 = vmatpush1.bf16.msra.mxu1 %v14451_v21 }
0x28a7   :  { %12098 = vmatprep.subr.bf16.mxu1 %v14454_v22 }
0x28aa   :  { %12100 = vmatpush1.bf16.msra.mxu1 %v14457_v27 }
0x28ab   :  { %12102 = vmatprep.subr.bf16.mxu1 %v14460_v28 }
0x28ae   :  { %12104 = vmatpush1.bf16.msra.mxu1 %v14463_v33 }
0x28af   :  { %12106 = vmatprep.subr.bf16.mxu1 %v14466_v35 }
0x28b2   :  { %12108 = vmatpush1.bf16.msra.mxu1 %v14489_v42 }
0x28b3   :  { %12110 = vmatprep.subr.bf16.mxu1 %v14494_v43 }
0x28b6   :  { %12112 = vmatpush1.bf16.msra.mxu1 %v14503_v49 }
0x28b7   :  { %12114 = vmatprep.subr.bf16.mxu1 %v14511_v52 }
0x28ba   :  { %12116 = vmatpush1.bf16.msra.mxu1 %v14529_v60 }
0x28bb   :  { %12118 = vmatprep.subr.bf16.mxu1 %v14534_v61 }
0x28be   :  { %12120 = vmatpush1.bf16.msra.mxu1 %v14549_v7 }
0x28bf   :  { %12122 = vmatprep.subr.bf16.mxu1 %v14554_v8 }
0x28c2   :  { %12124 = vmatpush1.bf16.msra.mxu1 %v14569_v20 }
0x28c3   :  { %12126 = vmatprep.subr.bf16.mxu1 %v14574_v23 }
0x28c6   :  { %12128 = vmatpush1.bf16.msra.mxu1 %v14584_v32 }
0x28c7   :  { %12130 = vmatprep.subr.bf16.mxu1 %v18625_v59 }
0x28ca   :  { %12132 = vmatpush1.bf16.msra.mxu1 %v18626_v53 }
0x28cb   :  { %12134 = vmatprep.subr.bf16.mxu1 %v18627_v6 }
0x28ce   :  { %12136 = vmatpush1.bf16.msra.mxu1 %v18628_v12 }
0x28cf   :  { %12138 = vmatprep.subr.bf16.mxu1 %v18629_v63 }
0x28d2   :  { %12140 = vmatpush1.bf16.msra.mxu1 %v18630_v14 }
0x28d3   :  { %12142 = vmatprep.subr.bf16.mxu1 %v18631_v45 }
0x28d6   :  { %12144 = vmatpush1.bf16.msra.mxu1 %v18632_v34 }
0x28d7   :  { %12146 = vmatprep.subr.bf16.mxu1 %v18633_v0 }
0x28da   :  { %12148 = vmatpush1.bf16.msra.mxu1 %v18634_v40 }
0x2970   :  { %v6348_v11 = vpop.f32.mrb[212].mxu1 }
0x2971   :  { %v6353_v48 = vadd.f32 %v6348_v11, %v6280_v31  ;;  %v6350_v24 = vpop.f32.mrb[213].mxu1 }
0x2972   :  { %v6354_v30 = vadd.f32 %v6350_v24, %v6281_v56  ;;  %v18807_v24 = vld [vmem:[#allocation22_spill] sm:$0xff] }
0x2973   :  { %v16963_v41 = vadd.f32 %v6353_v48, %v14730_v18 }
0x2974   :  { %v16960_v26 = vadd.f32 %v6354_v30, %v14730_v18 }
0x2976   :  { %6421 = vmatprep.mubr.f32.mxu1 %v16960_v26  ;;  %6428 = vmatprep.subr.mxu0 %v16960_v26 }
0x2977   :  { %6422 = vmatmul.mubr.f32.vlgmr.msra.gmra.mrb[214].mxu1 %v16963_v41  ;;  %6429 = vmatpush1.msra.mxu0 %v16963_v41 }
0x2978   :  { %10208 = vmatmul.mubr.msk.f32.vlgmr.msra.gmra.mrb[226].mxu0 %vm239_vm0, %v16762_v57  ;;  %6771 = vmatprep.mubr.f32.mxu1 %v18615_v37 }
0x2979   :  { %6498 = vmatprep.mubr.f32.mxu0 %v18615_v37 }
0x297c   :  { %10209 = vmatmul.mubr.msk.f32.gmra.mrb[228].mxu0 %vm239_vm0, %v16771_v46 }
0x297d   :  { %6504 = vmatprep.mubr.f32.mxu0 %v18615_v37 }
0x2980   :  { %10210 = vmatmul.mubr.msk.f32.gmra.mrb[230].mxu0 %vm239_vm0, %v16779_v54 }
0x2981   :  { %6510 = vmatprep.mubr.f32.mxu0 %v18615_v37 }
0x2984   :  { %10211 = vmatmul.mubr.msk.f32.gmra.mrb[232].mxu0 %vm239_vm0, %v18800_v55 }
0x2985   :  { %6516 = vmatprep.mubr.f32.mxu0 %v18615_v37 }
0x2988   :  { %10212 = vmatmul.mubr.msk.f32.gmra.mrb[234].mxu0 %vm239_vm0, %v18801_v50 }
0x2989   :  { %6522 = vmatprep.mubr.f32.mxu0 %v18615_v37 }
0x298c   :  { %10213 = vmatmul.mubr.msk.f32.gmra.mrb[236].mxu0 %vm239_vm0, %v18802_v36 }
0x298d   :  { %6528 = vmatprep.mubr.f32.mxu0 %v18615_v37 }
0x2990   :  { %10214 = vmatmul.mubr.msk.f32.gmra.mrb[238].mxu0 %vm239_vm0, %v18803_v39  ;;  %v18808_v39 = vld [vmem:[#allocation24_spill] sm:$0xff] }
0x2991   :  { %6534 = vmatprep.mubr.f32.mxu0 %v18615_v37 }
0x2994   :  { %10215 = vmatmul.mubr.msk.f32.gmra.mrb[240].mxu0 %vm239_vm0, %v18804_v51 }
0x2995   :  { %6625 = vmatprep.mubr.f32.mxu0 %v18615_v37 }
0x2a4a   :  { %v16994_v17 = vpop.f32.mrb[214].mxu1 }
0x2a4b   :  { %v16996_v38 = vpop.f32.mrb[215].mxu1  ;;  %v6494_v62 = vpop.f32.mrb[226].mxu0 }
0x2a4c   :  { %v6495_v2 = vadd.f32 %v6494_v62, %v18805_v25  ;;  %v6496_v3 = vpop.f32.mrb[227].mxu0 }
0x2a4d   :  { %v6497_v19 = vadd.f32 %v6496_v3, %v18805_v25 }
0x2a4e   :  { %13839 = vtanh.f32 %v6495_v2 }
0x2a4f   :  { %v6500_v29 = vpop.f32.mrb[228].mxu0  ;;  %13841 = vtanh.f32 %v6497_v19 }
0x2a50   :  { %v6501_v31 = vadd.f32 %v6500_v29, %v18806_v13  ;;  %v6502_v11 = vpop.f32.mrb[229].mxu0 }
0x2a51   :  { %v6503_v56 = vadd.f32 %v6502_v11, %v18806_v13 }
0x2a52   :  { %13843 = vtanh.f32 %v6501_v31 }
0x2a53   :  { %13845 = vtanh.f32 %v6503_v56  ;;  %v6506_v48 = vpop.f32.mrb[230].mxu0 }
0x2a54   :  { %v6507_v30 = vadd.f32 %v6506_v48, %v18807_v24  ;;  %v6508_v55 = vpop.f32.mrb[231].mxu0 }
0x2a55   :  { %v6509_v50 = vadd.f32 %v6508_v55, %v18807_v24 }
0x2a56   :  { %13847 = vtanh.f32 %v6507_v30 }
0x2a57   :  { %v6512_v36 = vpop.f32.mrb[232].mxu0  ;;  %13849 = vtanh.f32 %v6509_v50 }
0x2a58   :  { %v6513_v51 = vadd.f32 %v6512_v36, %v18808_v39  ;;  %v6514_v62 = vpop.f32.mrb[233].mxu0  ;;  %v13840_v3 = vpop.eup %13839  ;;  %v18809_v36 = vld [vmem:[#allocation26_spill] sm:$0xff] }
0x2a59   :  { %v6515_v2 = vadd.f32 %v6514_v62, %v18808_v39  ;;  %v13842_v19 = vpop.eup %13841 }
0x2a5a   :  { %13851 = vtanh.f32 %v6513_v51 }
0x2a5b   :  { %13853 = vtanh.f32 %v6515_v2  ;;  %v6518_v29 = vpop.f32.mrb[234].mxu0 }
0x2a5c   :  { %v13844_v31 = vpop.eup %13843  ;;  %v6519_v11 = vadd.f32 %v6518_v29, %v18621_v58  ;;  %v6520_v56 = vpop.f32.mrb[235].mxu0 }
0x2a5d   :  { %v13846_v48 = vpop.eup %13845  ;;  %v6521_v55 = vadd.f32 %v6520_v56, %v18621_v58  ;;  %v12151_v24 = vpack.c.bf16 %v13844_v31, %v13840_v3 }
0x2a5e   :  { %v12149_v30 = vpack.c.bf16 %v13846_v48, %v13842_v19  ;;  %13855 = vtanh.f32 %v6519_v11 }
0x2a5f   :  { %v6524_v13 = vpop.f32.mrb[236].mxu0  ;;  %13857 = vtanh.f32 %v6521_v55 }
0x2a60   :  { %v6525_v50 = vadd.f32 %v6524_v13, %v18809_v36  ;;  %v6526_v25 = vpop.f32.mrb[237].mxu0  ;;  %12150 = vmatprep.subr.bf16.mxu0 %v12149_v30  ;;  %v13848_v62 = vpop.eup %13847 }
0x2a61   :  { %v6527_v51 = vadd.f32 %v6526_v25, %v18809_v36  ;;  %12152 = vmatpush1.bf16.msra.mxu0 %v12151_v24  ;;  %v13850_v2 = vpop.eup %13849 }
0x2a62   :  { %13859 = vtanh.f32 %v6525_v50 }
0x2a63   :  { %13861 = vtanh.f32 %v6527_v51  ;;  %v6530_v29 = vpop.f32.mrb[238].mxu0 }
0x2a64   :  { %v13852_v39 = vpop.eup %13851  ;;  %v6531_v56 = vadd.f32 %v6530_v29, %v18623_v47  ;;  %v6532_v3 = vpop.f32.mrb[239].mxu0 }
0x2a65   :  { %v13854_v19 = vpop.eup %13853  ;;  %v6533_v31 = vadd.f32 %v6532_v3, %v18623_v47  ;;  %v12155_v11 = vpack.c.bf16 %v13852_v39, %v13848_v62 }
0x2a66   :  { %v12153_v13 = vpack.c.bf16 %v13854_v19, %v13850_v2  ;;  %13863 = vtanh.f32 %v6531_v56 }
0x2a67   :  { %v6536_v48 = vpop.f32.mrb[240].mxu0  ;;  %13865 = vtanh.f32 %v6533_v31  ;;  %v6558_v31 = vmul.f32 %v16996_v38, %v14722_v1 }
0x2a68   :  { %v6537_v55 = vadd.f32 %v6536_v48, %v18624_v44  ;;  %v6538_v25 = vpop.f32.mrb[241].mxu0  ;;  %12154 = vmatprep.subr.bf16.mxu0 %v12153_v13  ;;  %v13856_v30 = vpop.eup %13855 }
0x2a69   :  { %v6539_v24 = vadd.f32 %v6538_v25, %v18624_v44  ;;  %12156 = vmatpush1.bf16.msra.mxu0 %v12155_v11  ;;  %v13858_v50 = vpop.eup %13857 }
0x2a6a   :  { %13867 = vtanh.f32 %v6537_v55  ;;  %v6560_v55 = vadd.f32 %v6558_v31, %v16960_v26  ;;  %v17077_v26 = vld [vmem:[%s18320_s3 + $0x18] sm:$0xff] }
0x2a6b   :  { %13869 = vtanh.f32 %v6539_v24  ;;  %18810 = vst [vmem:[#allocation14_spill] sm:$0xff] %v17077_v26 }
0x2a6c   :  { %v13860_v51 = vpop.eup %13859 }
0x2a6d   :  { %v13862_v29 = vpop.eup %13861  ;;  %v12159_v36 = vpack.c.bf16 %v13860_v51, %v13856_v30 }
0x2a6e   :  { %v12157_v3 = vpack.c.bf16 %v13862_v29, %v13858_v50 }
0x2a70   :  { %12158 = vmatprep.subr.bf16.mxu0 %v12157_v3  ;;  %v13864_v39 = vpop.eup %13863  ;;  %v18815_v3 = vld [vmem:[#allocation21_spill] sm:$0xff] }
0x2a71   :  { %12160 = vmatpush1.bf16.msra.mxu0 %v12159_v36  ;;  %v13866_v62 = vpop.eup %13865  ;;  %v6557_v36 = vmul.f32 %v16994_v17, %v14722_v1 }
0x2a73   :  { %v6559_v11 = vadd.f32 %v6557_v36, %v16963_v41  ;;  %v17109_v41 = vld [vmem:[%s18320_s3 + $0x38] sm:$0xff] }
0x2a74   :  { %v13868_v2 = vpop.eup %13867  ;;  %18814 = vst [vmem:[#allocation18_spill] sm:$0xff] %v17109_v41 }
0x2a75   :  { %v13870_v56 = vpop.eup %13869  ;;  %v12163_v19 = vpack.c.bf16 %v13868_v2, %v13864_v39 }
0x2a76   :  { %v12161_v13 = vpack.c.bf16 %v13870_v56, %v13866_v62 }
0x2a78   :  { %12162 = vmatprep.subr.bf16.mxu0 %v12161_v13 }
0x2a79   :  { %12164 = vmatpush1.bf16.msra.mxu0 %v12163_v19  ;;  %v18816_v19 = vld [vmem:[#allocation23_spill] sm:$0xff] }
0x2a7a   :  { %12166 = vmatprep.subr.bf16.mxu0 %v14437_v5 }
0x2a7c   :  { %10216 = vmatmul.mubr.msk.f32.vlgmr.msra.gmra.mrb[242].mxu0 %vm402_vm1, %v16823_v4 }
0x2a7d   :  { %12168 = vmatpush1.bf16.msra.mxu0 %v14439_v9 }
0x2a7e   :  { %12170 = vmatprep.subr.bf16.mxu0 %v14441_v10 }
0x2a81   :  { %12172 = vmatpush1.bf16.msra.mxu0 %v14445_v15 }
0x2a82   :  { %12174 = vmatprep.subr.bf16.mxu0 %v14448_v16 }
0x2a85   :  { %12176 = vmatpush1.bf16.msra.mxu0 %v14451_v21 }
0x2a86   :  { %12178 = vmatprep.subr.bf16.mxu0 %v14454_v22 }
0x2a89   :  { %12180 = vmatpush1.bf16.msra.mxu0 %v14457_v27 }
0x2a8a   :  { %12182 = vmatprep.subr.bf16.mxu0 %v14460_v28 }
0x2a8d   :  { %12184 = vmatpush1.bf16.msra.mxu0 %v14463_v33 }
0x2a8e   :  { %12186 = vmatprep.subr.bf16.mxu0 %v14466_v35 }
0x2a91   :  { %12188 = vmatpush1.bf16.msra.mxu0 %v14489_v42 }
0x2a92   :  { %12190 = vmatprep.subr.bf16.mxu0 %v14494_v43 }
0x2a95   :  { %12192 = vmatpush1.bf16.msra.mxu0 %v14503_v49 }
0x2a96   :  { %12194 = vmatprep.subr.bf16.mxu0 %v14511_v52 }
0x2a99   :  { %12196 = vmatpush1.bf16.msra.mxu0 %v14529_v60 }
0x2a9a   :  { %12198 = vmatprep.subr.bf16.mxu0 %v14534_v61 }
0x2a9d   :  { %12200 = vmatpush1.bf16.msra.mxu0 %v14549_v7 }
0x2a9e   :  { %12202 = vmatprep.subr.bf16.mxu0 %v14554_v8 }
0x2aa1   :  { %12204 = vmatpush1.bf16.msra.mxu0 %v14569_v20 }
0x2aa2   :  { %12206 = vmatprep.subr.bf16.mxu0 %v14574_v23 }
0x2aa5   :  { %12208 = vmatpush1.bf16.msra.mxu0 %v14584_v32 }
0x2aa6   :  { %12210 = vmatprep.subr.bf16.mxu0 %v18625_v59 }
0x2aa9   :  { %12212 = vmatpush1.bf16.msra.mxu0 %v18626_v53 }
0x2aaa   :  { %12214 = vmatprep.subr.bf16.mxu0 %v18627_v6 }
0x2aad   :  { %12216 = vmatpush1.bf16.msra.mxu0 %v18628_v12 }
0x2aae   :  { %12218 = vmatprep.subr.bf16.mxu0 %v18629_v63 }
0x2ab1   :  { %12220 = vmatpush1.bf16.msra.mxu0 %v18630_v14 }
0x2ab2   :  { %12222 = vmatprep.subr.bf16.mxu0 %v18631_v45 }
0x2ab5   :  { %12224 = vmatpush1.bf16.msra.mxu0 %v18632_v34 }
0x2ab6   :  { %12226 = vmatprep.subr.bf16.mxu0 %v18633_v0 }
0x2ab9   :  { %12228 = vmatpush1.bf16.msra.mxu0 %v18634_v40 }
0x2b4f   :  { %v6627_v48 = vpop.f32.mrb[242].mxu0 }
0x2b50   :  { %v6632_v25 = vadd.f32 %v6627_v48, %v6559_v11  ;;  %v6629_v24 = vpop.f32.mrb[243].mxu0  ;;  %v18817_v48 = vld [vmem:[#allocation22_spill] sm:$0xff] }
0x2b51   :  { %v6633_v30 = vadd.f32 %v6629_v24, %v6560_v55 }
0x2b52   :  { %v17058_v51 = vadd.f32 %v6632_v25, %v14730_v18 }
0x2b53   :  { %v17055_v50 = vadd.f32 %v6633_v30, %v14730_v18 }
0x2b55   :  { %6700 = vmatprep.mubr.f32.mxu0 %v17055_v50  ;;  %6707 = vmatprep.subr.mxu1 %v17055_v50 }
0x2b56   :  { %6701 = vmatmul.mubr.f32.vlgmr.msra.gmra.mrb[244].mxu0 %v17058_v51  ;;  %6708 = vmatpush1.msra.mxu1 %v17058_v51 }
0x2b57   :  { %10217 = vmatmul.mubr.msk.f32.vlgmr.msra.gmra.mrb[216].mxu1 %vm239_vm0, %v16762_v57  ;;  %7050 = vmatprep.mubr.f32.mxu0 %v18615_v37  ;;  %v17085_v57 = vld [vmem:[%s18320_s3 + $0x20] sm:$0xff] }
0x2b58   :  { %6777 = vmatprep.mubr.f32.mxu1 %v18615_v37  ;;  %18811 = vst [vmem:[#allocation15_spill] sm:$0xff] %v17085_v57 }
0x2b5b   :  { %10218 = vmatmul.mubr.msk.f32.gmra.mrb[218].mxu1 %vm239_vm0, %v16771_v46  ;;  %v17093_v46 = vld [vmem:[%s18320_s3 + $0x28] sm:$0xff] }
0x2b5c   :  { %6783 = vmatprep.mubr.f32.mxu1 %v18615_v37  ;;  %18812 = vst [vmem:[#allocation16_spill] sm:$0xff] %v17093_v46 }
0x2b5f   :  { %10219 = vmatmul.mubr.msk.f32.gmra.mrb[220].mxu1 %vm239_vm0, %v16779_v54  ;;  %v17101_v54 = vld [vmem:[%s18320_s3 + $0x30] sm:$0xff] }
0x2b60   :  { %6789 = vmatprep.mubr.f32.mxu1 %v18615_v37  ;;  %18813 = vst [vmem:[#allocation17_spill] sm:$0xff] %v17101_v54 }
0x2b63   :  { %10220 = vmatmul.mubr.msk.f32.gmra.mrb[222].mxu1 %vm239_vm0, %v17077_v26 }
0x2b64   :  { %6795 = vmatprep.mubr.f32.mxu1 %v18615_v37 }
0x2b67   :  { %10221 = vmatmul.mubr.msk.f32.gmra.mrb[224].mxu1 %vm239_vm0, %v17085_v57 }
0x2b68   :  { %6801 = vmatprep.mubr.f32.mxu1 %v18615_v37 }
0x2b6b   :  { %10222 = vmatmul.mubr.msk.f32.gmra.mrb[226].mxu1 %vm239_vm0, %v17093_v46 }
0x2b6c   :  { %6807 = vmatprep.mubr.f32.mxu1 %v18615_v37 }
0x2b6f   :  { %10223 = vmatmul.mubr.msk.f32.gmra.mrb[228].mxu1 %vm239_vm0, %v17101_v54 }
0x2b70   :  { %6813 = vmatprep.mubr.f32.mxu1 %v18615_v37 }
0x2b73   :  { %10224 = vmatmul.mubr.msk.f32.gmra.mrb[230].mxu1 %vm239_vm0, %v17109_v41 }
0x2b74   :  { %6904 = vmatprep.mubr.f32.mxu1 %v18615_v37 }
0x2c29   :  { %v17114_v17 = vpop.f32.mrb[244].mxu0 }
0x2c2a   :  { %v17116_v38 = vpop.f32.mrb[245].mxu0  ;;  %v6773_v29 = vpop.f32.mrb[216].mxu1 }
0x2c2b   :  { %v6774_v39 = vadd.f32 %v6773_v29, %v18815_v3  ;;  %v6775_v62 = vpop.f32.mrb[217].mxu1  ;;  %v18818_v29 = vld [vmem:[#allocation24_spill] sm:$0xff] }
0x2c2c   :  { %v6776_v2 = vadd.f32 %v6775_v62, %v18815_v3 }
0x2c2d   :  { %13871 = vtanh.f32 %v6774_v39 }
0x2c2e   :  { %v6779_v56 = vpop.f32.mrb[218].mxu1  ;;  %13873 = vtanh.f32 %v6776_v2 }
0x2c2f   :  { %v6780_v13 = vadd.f32 %v6779_v56, %v18816_v19  ;;  %v6781_v36 = vpop.f32.mrb[219].mxu1 }
0x2c30   :  { %v6782_v31 = vadd.f32 %v6781_v36, %v18816_v19 }
0x2c31   :  { %13875 = vtanh.f32 %v6780_v13 }
0x2c32   :  { %13877 = vtanh.f32 %v6782_v31  ;;  %v6785_v11 = vpop.f32.mrb[220].mxu1 }
0x2c33   :  { %v6786_v55 = vadd.f32 %v6785_v11, %v18817_v48  ;;  %v6787_v25 = vpop.f32.mrb[221].mxu1 }
0x2c34   :  { %v6788_v24 = vadd.f32 %v6787_v25, %v18817_v48 }
0x2c35   :  { %13879 = vtanh.f32 %v6786_v55 }
0x2c36   :  { %v6791_v30 = vpop.f32.mrb[222].mxu1  ;;  %13881 = vtanh.f32 %v6788_v24 }
0x2c37   :  { %v6792_v62 = vadd.f32 %v6791_v30, %v18818_v29  ;;  %v6793_v3 = vpop.f32.mrb[223].mxu1  ;;  %v13872_v56 = vpop.eup %13871  ;;  %v18819_v30 = vld [vmem:[#allocation26_spill] sm:$0xff] }
0x2c38   :  { %v6794_v39 = vadd.f32 %v6793_v3, %v18818_v29  ;;  %v13874_v2 = vpop.eup %13873 }
0x2c39   :  { %13883 = vtanh.f32 %v6792_v62 }
0x2c3a   :  { %13885 = vtanh.f32 %v6794_v39  ;;  %v6797_v13 = vpop.f32.mrb[224].mxu1 }
0x2c3b   :  { %v13876_v36 = vpop.eup %13875  ;;  %v6798_v31 = vadd.f32 %v6797_v13, %v18621_v58  ;;  %v6799_v11 = vpop.f32.mrb[225].mxu1 }
0x2c3c   :  { %v13878_v19 = vpop.eup %13877  ;;  %v6800_v25 = vadd.f32 %v6799_v11, %v18621_v58  ;;  %v12231_v48 = vpack.c.bf16 %v13876_v36, %v13872_v56 }
0x2c3d   :  { %v12229_v55 = vpack.c.bf16 %v13878_v19, %v13874_v2  ;;  %13887 = vtanh.f32 %v6798_v31 }
0x2c3e   :  { %v6803_v41 = vpop.f32.mrb[226].mxu1  ;;  %13889 = vtanh.f32 %v6800_v25 }
0x2c3f   :  { %v6804_v24 = vadd.f32 %v6803_v41, %v18819_v30  ;;  %v6805_v54 = vpop.f32.mrb[227].mxu1  ;;  %12230 = vmatprep.subr.bf16.mxu1 %v12229_v55  ;;  %v13880_v62 = vpop.eup %13879 }
0x2c40   :  { %v6806_v3 = vadd.f32 %v6805_v54, %v18819_v30  ;;  %12232 = vmatpush1.bf16.msra.mxu1 %v12231_v48  ;;  %v13882_v39 = vpop.eup %13881 }
0x2c41   :  { %13891 = vtanh.f32 %v6804_v24 }
0x2c42   :  { %13893 = vtanh.f32 %v6806_v3  ;;  %v6809_v13 = vpop.f32.mrb[228].mxu1 }
0x2c43   :  { %v13884_v29 = vpop.eup %13883  ;;  %v6810_v11 = vadd.f32 %v6809_v13, %v18623_v47  ;;  %v6811_v56 = vpop.f32.mrb[229].mxu1 }
0x2c44   :  { %v13886_v19 = vpop.eup %13885  ;;  %v6812_v2 = vadd.f32 %v6811_v56, %v18623_v47  ;;  %v12235_v36 = vpack.c.bf16 %v13884_v29, %v13880_v62 }
0x2c45   :  { %v12233_v41 = vpack.c.bf16 %v13886_v19, %v13882_v39  ;;  %13895 = vtanh.f32 %v6810_v11 }
0x2c46   :  { %v6815_v31 = vpop.f32.mrb[230].mxu1  ;;  %13897 = vtanh.f32 %v6812_v2 }
0x2c47   :  { %v6816_v25 = vadd.f32 %v6815_v31, %v18624_v44  ;;  %v6817_v54 = vpop.f32.mrb[231].mxu1  ;;  %12234 = vmatprep.subr.bf16.mxu1 %v12233_v41  ;;  %v13888_v55 = vpop.eup %13887 }
0x2c48   :  { %v6818_v48 = vadd.f32 %v6817_v54, %v18624_v44  ;;  %12236 = vmatpush1.bf16.msra.mxu1 %v12235_v36  ;;  %v13890_v24 = vpop.eup %13889 }
0x2c49   :  { %13899 = vtanh.f32 %v6816_v25 }
0x2c4a   :  { %13901 = vtanh.f32 %v6818_v48 }
0x2c4b   :  { %v13892_v3 = vpop.eup %13891 }
0x2c4c   :  { %v13894_v13 = vpop.eup %13893  ;;  %v12239_v30 = vpack.c.bf16 %v13892_v3, %v13888_v55  ;;  %v18821_v3 = vld [vmem:[#allocation18_spill] sm:$0xff] }
0x2c4d   :  { %v12237_v56 = vpack.c.bf16 %v13894_v13, %v13890_v24 }
0x2c4f   :  { %12238 = vmatprep.subr.bf16.mxu1 %v12237_v56  ;;  %v13896_v29 = vpop.eup %13895 }
0x2c50   :  { %12240 = vmatpush1.bf16.msra.mxu1 %v12239_v30  ;;  %v13898_v62 = vpop.eup %13897  ;;  %v6837_v30 = vmul.f32 %v17116_v38, %v14722_v1  ;;  %v18820_v38 = vld [vmem:[#allocation17_spill] sm:$0xff] }
0x2c52   :  { %v6839_v31 = vadd.f32 %v6837_v30, %v17055_v50  ;;  %v17187_v50 = vld [vmem:[%s18320_s3] sm:$0xff] }
0x2c53   :  { %v13900_v39 = vpop.eup %13899 }
0x2c54   :  { %v13902_v11 = vpop.eup %13901  ;;  %v12243_v19 = vpack.c.bf16 %v13900_v39, %v13896_v29 }
0x2c55   :  { %v12241_v41 = vpack.c.bf16 %v13902_v11, %v13898_v62  ;;  %v18822_v62 = vld [vmem:[#allocation21_spill] sm:$0xff] }
0x2c57   :  { %12242 = vmatprep.subr.bf16.mxu1 %v12241_v41 }
0x2c58   :  { %12244 = vmatpush1.bf16.msra.mxu1 %v12243_v19 }
0x2c59   :  { %12246 = vmatprep.subr.bf16.mxu1 %v14437_v5 }
0x2c5b   :  { %10225 = vmatmul.mubr.msk.f32.vlgmr.msra.gmra.mrb[232].mxu1 %vm402_vm1, %v16823_v4  ;;  %v6836_v4 = vmul.f32 %v17114_v17, %v14722_v1  ;;  %v17204_v17 = vld [vmem:[%s18320_s3 + $0x10] sm:$0xff] }
0x2c5c   :  { %12248 = vmatpush1.bf16.msra.mxu1 %v14439_v9 }
0x2c5d   :  { %12250 = vmatprep.subr.bf16.mxu1 %v14441_v10  ;;  %v6838_v2 = vadd.f32 %v6836_v4, %v17058_v51  ;;  %v17196_v51 = vld [vmem:[%s18320_s3 + $0x8] sm:$0xff]  ;;  %v18823_v4 = vld [vmem:[#allocation23_spill] sm:$0xff] }
0x2c60   :  { %12252 = vmatpush1.bf16.msra.mxu1 %v14445_v15 }
0x2c61   :  { %12254 = vmatprep.subr.bf16.mxu1 %v14448_v16 }
0x2c64   :  { %12256 = vmatpush1.bf16.msra.mxu1 %v14451_v21 }
0x2c65   :  { %12258 = vmatprep.subr.bf16.mxu1 %v14454_v22 }
0x2c68   :  { %12260 = vmatpush1.bf16.msra.mxu1 %v14457_v27 }
0x2c69   :  { %12262 = vmatprep.subr.bf16.mxu1 %v14460_v28 }
0x2c6c   :  { %12264 = vmatpush1.bf16.msra.mxu1 %v14463_v33 }
0x2c6d   :  { %12266 = vmatprep.subr.bf16.mxu1 %v14466_v35 }
0x2c70   :  { %12268 = vmatpush1.bf16.msra.mxu1 %v14489_v42 }
0x2c71   :  { %12270 = vmatprep.subr.bf16.mxu1 %v14494_v43 }
0x2c74   :  { %12272 = vmatpush1.bf16.msra.mxu1 %v14503_v49 }
0x2c75   :  { %12274 = vmatprep.subr.bf16.mxu1 %v14511_v52 }
0x2c78   :  { %12276 = vmatpush1.bf16.msra.mxu1 %v14529_v60 }
0x2c79   :  { %12278 = vmatprep.subr.bf16.mxu1 %v14534_v61 }
0x2c7c   :  { %12280 = vmatpush1.bf16.msra.mxu1 %v14549_v7 }
0x2c7d   :  { %12282 = vmatprep.subr.bf16.mxu1 %v14554_v8 }
0x2c80   :  { %12284 = vmatpush1.bf16.msra.mxu1 %v14569_v20 }
0x2c81   :  { %12286 = vmatprep.subr.bf16.mxu1 %v14574_v23 }
0x2c84   :  { %12288 = vmatpush1.bf16.msra.mxu1 %v14584_v32 }
0x2c85   :  { %12290 = vmatprep.subr.bf16.mxu1 %v18625_v59 }
0x2c88   :  { %12292 = vmatpush1.bf16.msra.mxu1 %v18626_v53 }
0x2c89   :  { %12294 = vmatprep.subr.bf16.mxu1 %v18627_v6 }
0x2c8c   :  { %12296 = vmatpush1.bf16.msra.mxu1 %v18628_v12 }
0x2c8d   :  { %12298 = vmatprep.subr.bf16.mxu1 %v18629_v63 }
0x2c90   :  { %12300 = vmatpush1.bf16.msra.mxu1 %v18630_v14 }
0x2c91   :  { %12302 = vmatprep.subr.bf16.mxu1 %v18631_v45 }
0x2c94   :  { %12304 = vmatpush1.bf16.msra.mxu1 %v18632_v34 }
0x2c95   :  { %12306 = vmatprep.subr.bf16.mxu1 %v18633_v0 }
0x2c98   :  { %12308 = vmatpush1.bf16.msra.mxu1 %v18634_v40 }
0x2d2e   :  { %v6906_v36 = vpop.f32.mrb[232].mxu1 }
0x2d2f   :  { %v6911_v25 = vadd.f32 %v6906_v36, %v6838_v2  ;;  %v6908_v54 = vpop.f32.mrb[233].mxu1 }
0x2d30   :  { %v6912_v48 = vadd.f32 %v6908_v54, %v6839_v31 }
0x2d31   :  { %v17178_v24 = vadd.f32 %v6911_v25, %v14730_v18  ;;  %v18824_v25 = vld [vmem:[#allocation22_spill] sm:$0xff] }
0x2d32   :  { %v17175_v55 = vadd.f32 %v6912_v48, %v14730_v18 }
0x2d34   :  { %6979 = vmatprep.mubr.f32.mxu1 %v17175_v55  ;;  %6986 = vmatprep.subr.mxu0 %v17175_v55 }
0x2d35   :  { %6980 = vmatmul.mubr.f32.vlgmr.msra.gmra.mrb[234].mxu1 %v17178_v24  ;;  %6987 = vmatpush1.msra.mxu0 %v17178_v24 }
0x2d36   :  { %10226 = vmatmul.mubr.msk.f32.vlgmr.msra.gmra.mrb[246].mxu0 %vm239_vm0, %v17187_v50  ;;  %7332 = vmatprep.mubr.f32.mxu1 %v18615_v37 }
0x2d37   :  { %7056 = vmatprep.mubr.f32.mxu0 %v18615_v37 }
0x2d3a   :  { %10227 = vmatmul.mubr.msk.f32.gmra.mrb[248].mxu0 %vm239_vm0, %v17196_v51 }
0x2d3b   :  { %7062 = vmatprep.mubr.f32.mxu0 %v18615_v37 }
0x2d3e   :  { %10228 = vmatmul.mubr.msk.f32.gmra.mrb[250].mxu0 %vm239_vm0, %v17204_v17 }
0x2d3f   :  { %7068 = vmatprep.mubr.f32.mxu0 %v18615_v37 }
0x2d42   :  { %10229 = vmatmul.mubr.msk.f32.gmra.mrb[252].mxu0 %vm239_vm0, %v17077_v26 }
0x2d43   :  { %7074 = vmatprep.mubr.f32.mxu0 %v18615_v37 }
0x2d46   :  { %10230 = vmatmul.mubr.msk.f32.gmra.mrb[254].mxu0 %vm239_vm0, %v17085_v57 }
0x2d47   :  { %7080 = vmatprep.mubr.f32.mxu0 %v18615_v37 }
0x2d4a   :  { %10231 = vmatmul.mubr.msk.f32.gmra.mrb[0].mxu0 %vm239_vm0, %v17093_v46 }
0x2d4b   :  { %7086 = vmatprep.mubr.f32.mxu0 %v18615_v37 }
0x2d4e   :  { %10232 = vmatmul.mubr.msk.f32.gmra.mrb[2].mxu0 %vm239_vm0, %v18820_v38  ;;  %v18825_v38 = vld [vmem:[#allocation24_spill] sm:$0xff] }
0x2d4f   :  { %7092 = vmatprep.mubr.f32.mxu0 %v18615_v37 }
0x2d52   :  { %10233 = vmatmul.mubr.msk.f32.gmra.mrb[4].mxu0 %vm239_vm0, %v18821_v3 }
0x2d53   :  { %7183 = vmatprep.mubr.f32.mxu0 %v18615_v37 }
0x2e08   :  { %v17224_v13 = vpop.f32.mrb[234].mxu1 }
0x2e09   :  { %v17226_v56 = vpop.f32.mrb[235].mxu1  ;;  %v7052_v29 = vpop.f32.mrb[246].mxu0 }
0x2e0a   :  { %v7053_v39 = vadd.f32 %v7052_v29, %v18822_v62  ;;  %v7054_v11 = vpop.f32.mrb[247].mxu0 }
0x2e0b   :  { %v7055_v19 = vadd.f32 %v7054_v11, %v18822_v62 }
0x2e0c   :  { %13903 = vtanh.f32 %v7053_v39 }
0x2e0d   :  { %v7058_v41 = vpop.f32.mrb[248].mxu0  ;;  %13905 = vtanh.f32 %v7055_v19 }
0x2e0e   :  { %v7059_v30 = vadd.f32 %v7058_v41, %v18823_v4  ;;  %v7060_v2 = vpop.f32.mrb[249].mxu0 }
0x2e0f   :  { %v7061_v36 = vadd.f32 %v7060_v2, %v18823_v4 }
0x2e10   :  { %13907 = vtanh.f32 %v7059_v30 }
0x2e11   :  { %13909 = vtanh.f32 %v7061_v36  ;;  %v7064_v31 = vpop.f32.mrb[250].mxu0 }
0x2e12   :  { %v7065_v54 = vadd.f32 %v7064_v31, %v18824_v25  ;;  %v7066_v48 = vpop.f32.mrb[251].mxu0 }
0x2e13   :  { %v7067_v3 = vadd.f32 %v7066_v48, %v18824_v25 }
0x2e14   :  { %13911 = vtanh.f32 %v7065_v54 }
0x2e15   :  { %v7070_v29 = vpop.f32.mrb[252].mxu0  ;;  %13913 = vtanh.f32 %v7067_v3 }
0x2e16   :  { %v7071_v11 = vadd.f32 %v7070_v29, %v18825_v38  ;;  %v7072_v62 = vpop.f32.mrb[253].mxu0  ;;  %v13904_v41 = vpop.eup %13903  ;;  %v18826_v29 = vld [vmem:[#allocation26_spill] sm:$0xff] }
0x2e17   :  { %v7073_v39 = vadd.f32 %v7072_v62, %v18825_v38  ;;  %v13906_v19 = vpop.eup %13905 }
0x2e18   :  { %13915 = vtanh.f32 %v7071_v11 }
0x2e19   :  { %13917 = vtanh.f32 %v7073_v39  ;;  %v7076_v30 = vpop.f32.mrb[254].mxu0 }
0x2e1a   :  { %v13908_v2 = vpop.eup %13907  ;;  %v7077_v36 = vadd.f32 %v7076_v30, %v18621_v58  ;;  %v7078_v31 = vpop.f32.mrb[255].mxu0 }
0x2e1b   :  { %v13910_v4 = vpop.eup %13909  ;;  %v7079_v48 = vadd.f32 %v7078_v31, %v18621_v58  ;;  %v12311_v25 = vpack.c.bf16 %v13908_v2, %v13904_v41 }
0x2e1c   :  { %v12309_v54 = vpack.c.bf16 %v13910_v4, %v13906_v19  ;;  %13919 = vtanh.f32 %v7077_v36 }
0x2e1d   :  { %v7082_v46 = vpop.f32.mrb[0].mxu0  ;;  %13921 = vtanh.f32 %v7079_v48 }
0x2e1e   :  { %v7083_v3 = vadd.f32 %v7082_v46, %v18826_v29  ;;  %v7084_v57 = vpop.f32.mrb[1].mxu0  ;;  %12310 = vmatprep.subr.bf16.mxu0 %v12309_v54  ;;  %v13912_v11 = vpop.eup %13911 }
0x2e1f   :  { %v7085_v62 = vadd.f32 %v7084_v57, %v18826_v29  ;;  %12312 = vmatpush1.bf16.msra.mxu0 %v12311_v25  ;;  %v13914_v39 = vpop.eup %13913 }
0x2e20   :  { %13923 = vtanh.f32 %v7083_v3 }
0x2e21   :  { %13925 = vtanh.f32 %v7085_v62  ;;  %v7088_v30 = vpop.f32.mrb[2].mxu0 }
0x2e22   :  { %v13916_v38 = vpop.eup %13915  ;;  %v7089_v31 = vadd.f32 %v7088_v30, %v18623_v47  ;;  %v7090_v41 = vpop.f32.mrb[3].mxu0 }
0x2e23   :  { %v13918_v4 = vpop.eup %13917  ;;  %v7091_v19 = vadd.f32 %v7090_v41, %v18623_v47  ;;  %v12315_v2 = vpack.c.bf16 %v13916_v38, %v13912_v11 }
0x2e24   :  { %v12313_v46 = vpack.c.bf16 %v13918_v4, %v13914_v39  ;;  %13927 = vtanh.f32 %v7089_v31 }
0x2e25   :  { %v7094_v36 = vpop.f32.mrb[4].mxu0  ;;  %13929 = vtanh.f32 %v7091_v19  ;;  %v17248_v19 = vld [vmem:[%s18322_s5] sm:$0xff] }
0x2e26   :  { %v7095_v48 = vadd.f32 %v7094_v36, %v18624_v44  ;;  %v7096_v57 = vpop.f32.mrb[5].mxu0  ;;  %12314 = vmatprep.subr.bf16.mxu0 %v12313_v46  ;;  %v13920_v54 = vpop.eup %13919 }
0x2e27   :  { %v7097_v25 = vadd.f32 %v7096_v57, %v18624_v44  ;;  %12316 = vmatpush1.bf16.msra.mxu0 %v12315_v2  ;;  %v13922_v3 = vpop.eup %13921  ;;  %v7116_v2 = vmul.f32 %v17226_v56, %v14722_v1  ;;  %v18830_v56 = vld [vmem:[#allocation18_spill] sm:$0xff] }
0x2e28   :  { %13931 = vtanh.f32 %v7095_v48 }
0x2e29   :  { %13933 = vtanh.f32 %v7097_v25  ;;  %v7118_v57 = vadd.f32 %v7116_v2, %v17175_v55  ;;  %v18827_v55 = vld [vmem:[#allocation15_spill] sm:$0xff] }
0x2e2a   :  { %v13924_v62 = vpop.eup %13923  ;;  %v18832_v2 = vld [vmem:[#allocation23_spill] sm:$0xff] }
0x2e2b   :  { %v13926_v30 = vpop.eup %13925  ;;  %v12319_v29 = vpack.c.bf16 %v13924_v62, %v13920_v54 }
0x2e2c   :  { %v12317_v41 = vpack.c.bf16 %v13926_v30, %v13922_v3 }
0x2e2e   :  { %12318 = vmatprep.subr.bf16.mxu0 %v12317_v41  ;;  %v13928_v38 = vpop.eup %13927 }
0x2e2f   :  { %12320 = vmatpush1.bf16.msra.mxu0 %v12319_v29  ;;  %v13930_v11 = vpop.eup %13929  ;;  %v7115_v29 = vmul.f32 %v17224_v13, %v14722_v1  ;;  %v18829_v13 = vld [vmem:[#allocation17_spill] sm:$0xff] }
0x2e31   :  { %v7117_v36 = vadd.f32 %v7115_v29, %v17178_v24  ;;  %v18828_v24 = vld [vmem:[#allocation16_spill] sm:$0xff] }
0x2e32   :  { %v13932_v39 = vpop.eup %13931 }
0x2e33   :  { %v13934_v31 = vpop.eup %13933  ;;  %v12323_v4 = vpack.c.bf16 %v13932_v39, %v13928_v38  ;;  %v18831_v39 = vld [vmem:[#allocation21_spill] sm:$0xff] }
0x2e34   :  { %v12321_v46 = vpack.c.bf16 %v13934_v31, %v13930_v11 }
0x2e36   :  { %12322 = vmatprep.subr.bf16.mxu0 %v12321_v46 }
0x2e37   :  { %12324 = vmatpush1.bf16.msra.mxu0 %v12323_v4 }
0x2e38   :  { %12326 = vmatprep.subr.bf16.mxu0 %v14437_v5 }
0x2e3a   :  { %10234 = vmatmul.mubr.msk.f32.vlgmr.msra.gmra.mrb[6].mxu0 %vm402_vm1, %v17248_v19 }
0x2e3b   :  { %12328 = vmatpush1.bf16.msra.mxu0 %v14439_v9 }
0x2e3c   :  { %12330 = vmatprep.subr.bf16.mxu0 %v14441_v10 }
0x2e3f   :  { %12332 = vmatpush1.bf16.msra.mxu0 %v14445_v15 }
0x2e40   :  { %12334 = vmatprep.subr.bf16.mxu0 %v14448_v16 }
0x2e43   :  { %12336 = vmatpush1.bf16.msra.mxu0 %v14451_v21 }
0x2e44   :  { %12338 = vmatprep.subr.bf16.mxu0 %v14454_v22 }
0x2e47   :  { %12340 = vmatpush1.bf16.msra.mxu0 %v14457_v27 }
0x2e48   :  { %12342 = vmatprep.subr.bf16.mxu0 %v14460_v28 }
0x2e4b   :  { %12344 = vmatpush1.bf16.msra.mxu0 %v14463_v33 }
0x2e4c   :  { %12346 = vmatprep.subr.bf16.mxu0 %v14466_v35 }
0x2e4f   :  { %12348 = vmatpush1.bf16.msra.mxu0 %v14489_v42 }
0x2e50   :  { %12350 = vmatprep.subr.bf16.mxu0 %v14494_v43 }
0x2e53   :  { %12352 = vmatpush1.bf16.msra.mxu0 %v14503_v49 }
0x2e54   :  { %12354 = vmatprep.subr.bf16.mxu0 %v14511_v52 }
0x2e57   :  { %12356 = vmatpush1.bf16.msra.mxu0 %v14529_v60 }
0x2e58   :  { %12358 = vmatprep.subr.bf16.mxu0 %v14534_v61 }
0x2e5b   :  { %12360 = vmatpush1.bf16.msra.mxu0 %v14549_v7 }
0x2e5c   :  { %12362 = vmatprep.subr.bf16.mxu0 %v14554_v8 }
0x2e5f   :  { %12364 = vmatpush1.bf16.msra.mxu0 %v14569_v20 }
0x2e60   :  { %12366 = vmatprep.subr.bf16.mxu0 %v14574_v23 }
0x2e63   :  { %12368 = vmatpush1.bf16.msra.mxu0 %v14584_v32 }
0x2e64   :  { %12370 = vmatprep.subr.bf16.mxu0 %v18625_v59 }
0x2e67   :  { %12372 = vmatpush1.bf16.msra.mxu0 %v18626_v53 }
0x2e68   :  { %12374 = vmatprep.subr.bf16.mxu0 %v18627_v6 }
0x2e6b   :  { %12376 = vmatpush1.bf16.msra.mxu0 %v18628_v12 }
0x2e6c   :  { %12378 = vmatprep.subr.bf16.mxu0 %v18629_v63 }
0x2e6f   :  { %12380 = vmatpush1.bf16.msra.mxu0 %v18630_v14 }
0x2e70   :  { %12382 = vmatprep.subr.bf16.mxu0 %v18631_v45 }
0x2e73   :  { %12384 = vmatpush1.bf16.msra.mxu0 %v18632_v34 }
0x2e74   :  { %12386 = vmatprep.subr.bf16.mxu0 %v18633_v0 }
0x2e77   :  { %12388 = vmatpush1.bf16.msra.mxu0 %v18634_v40 }
0x2f0d   :  { %v7185_v48 = vpop.f32.mrb[6].mxu0 }
0x2f0e   :  { %v7190_v25 = vadd.f32 %v7185_v48, %v7117_v36  ;;  %v7187_v54 = vpop.f32.mrb[7].mxu0 }
0x2f0f   :  { %v7191_v3 = vadd.f32 %v7187_v54, %v7118_v57  ;;  %v18833_v54 = vld [vmem:[#allocation22_spill] sm:$0xff] }
0x2f10   :  { %v17290_v62 = vadd.f32 %v7190_v25, %v14730_v18 }
0x2f11   :  { %v17293_v30 = vadd.f32 %v7191_v3, %v14730_v18 }
0x2f12   :  { %7195 = vst [vmem:[#allocation5 + $0x50] sm:$0xff] %v17290_v62 }
0x2f13   :  { %7196 = vst [vmem:[#allocation5 + $0x58] sm:$0xff] %v17293_v30  ;;  %7261 = vmatprep.mubr.f32.mxu0 %v17293_v30  ;;  %7268 = vmatprep.subr.mxu1 %v17293_v30 }
0x2f14   :  { %7262 = vmatmul.mubr.f32.vlgmr.msra.gmra.mrb[8].mxu0 %v17290_v62  ;;  %7269 = vmatpush1.msra.mxu1 %v17290_v62 }
0x2f15   :  { %10235 = vmatmul.mubr.msk.f32.vlgmr.msra.gmra.mrb[236].mxu1 %vm239_vm0, %v17187_v50  ;;  %7611 = vmatprep.mubr.f32.mxu0 %v18615_v37 }
0x2f16   :  { %7338 = vmatprep.mubr.f32.mxu1 %v18615_v37 }
0x2f19   :  { %10236 = vmatmul.mubr.msk.f32.gmra.mrb[238].mxu1 %vm239_vm0, %v17196_v51 }
0x2f1a   :  { %7344 = vmatprep.mubr.f32.mxu1 %v18615_v37 }
0x2f1d   :  { %10237 = vmatmul.mubr.msk.f32.gmra.mrb[240].mxu1 %vm239_vm0, %v17204_v17 }
0x2f1e   :  { %7350 = vmatprep.mubr.f32.mxu1 %v18615_v37 }
0x2f21   :  { %10238 = vmatmul.mubr.msk.f32.gmra.mrb[242].mxu1 %vm239_vm0, %v17077_v26 }
0x2f22   :  { %7356 = vmatprep.mubr.f32.mxu1 %v18615_v37 }
0x2f25   :  { %10239 = vmatmul.mubr.msk.f32.gmra.mrb[244].mxu1 %vm239_vm0, %v18827_v55 }
0x2f26   :  { %7362 = vmatprep.mubr.f32.mxu1 %v18615_v37 }
0x2f29   :  { %10240 = vmatmul.mubr.msk.f32.gmra.mrb[246].mxu1 %vm239_vm0, %v18828_v24  ;;  %v18834_v24 = vld [vmem:[#allocation24_spill] sm:$0xff] }
0x2f2a   :  { %7368 = vmatprep.mubr.f32.mxu1 %v18615_v37 }
0x2f2d   :  { %10241 = vmatmul.mubr.msk.f32.gmra.mrb[248].mxu1 %vm239_vm0, %v18829_v13 }
0x2f2e   :  { %7374 = vmatprep.mubr.f32.mxu1 %v18615_v37 }
0x2f31   :  { %10242 = vmatmul.mubr.msk.f32.gmra.mrb[250].mxu1 %vm239_vm0, %v18830_v56 }
0x2f32   :  { %7465 = vmatprep.mubr.f32.mxu1 %v18615_v37 }
0x2fe7   :  { %v17326_v41 = vpop.f32.mrb[8].mxu0 }
0x2fe8   :  { %v17328_v38 = vpop.f32.mrb[9].mxu0  ;;  %v7334_v11 = vpop.f32.mrb[236].mxu1 }
0x2fe9   :  { %v7335_v31 = vadd.f32 %v7334_v11, %v18831_v39  ;;  %v7336_v4 = vpop.f32.mrb[237].mxu1 }
0x2fea   :  { %v7337_v46 = vadd.f32 %v7336_v4, %v18831_v39 }
0x2feb   :  { %13935 = vtanh.f32 %v7335_v31 }
0x2fec   :  { %v7340_v29 = vpop.f32.mrb[238].mxu1  ;;  %13937 = vtanh.f32 %v7337_v46 }
0x2fed   :  { %v7341_v36 = vadd.f32 %v7340_v29, %v18832_v2  ;;  %v7342_v48 = vpop.f32.mrb[239].mxu1 }
0x2fee   :  { %v7343_v57 = vadd.f32 %v7342_v48, %v18832_v2 }
0x2fef   :  { %13939 = vtanh.f32 %v7341_v36 }
0x2ff0   :  { %13941 = vtanh.f32 %v7343_v57  ;;  %v7346_v25 = vpop.f32.mrb[240].mxu1 }
0x2ff1   :  { %v7347_v3 = vadd.f32 %v7346_v25, %v18833_v54  ;;  %v7348_v56 = vpop.f32.mrb[241].mxu1 }
0x2ff2   :  { %v7349_v13 = vadd.f32 %v7348_v56, %v18833_v54 }
0x2ff3   :  { %13943 = vtanh.f32 %v7347_v3 }
0x2ff4   :  { %v7352_v11 = vpop.f32.mrb[242].mxu1  ;;  %13945 = vtanh.f32 %v7349_v13 }
0x2ff5   :  { %v7353_v4 = vadd.f32 %v7352_v11, %v18834_v24  ;;  %v7354_v39 = vpop.f32.mrb[243].mxu1  ;;  %v13936_v29 = vpop.eup %13935  ;;  %v18835_v11 = vld [vmem:[#allocation26_spill] sm:$0xff] }
0x2ff6   :  { %v7355_v31 = vadd.f32 %v7354_v39, %v18834_v24  ;;  %v13938_v46 = vpop.eup %13937 }
0x2ff7   :  { %13947 = vtanh.f32 %v7353_v4 }
0x2ff8   :  { %13949 = vtanh.f32 %v7355_v31  ;;  %v7358_v36 = vpop.f32.mrb[244].mxu1 }
0x2ff9   :  { %v13940_v48 = vpop.eup %13939  ;;  %v7359_v57 = vadd.f32 %v7358_v36, %v18621_v58  ;;  %v7360_v25 = vpop.f32.mrb[245].mxu1 }
0x2ffa   :  { %v13942_v2 = vpop.eup %13941  ;;  %v7361_v56 = vadd.f32 %v7360_v25, %v18621_v58  ;;  %v12391_v54 = vpack.c.bf16 %v13940_v48, %v13936_v29 }
0x2ffb   :  { %v12389_v3 = vpack.c.bf16 %v13942_v2, %v13938_v46  ;;  %13951 = vtanh.f32 %v7359_v57 }
0x2ffc   :  { %v7364_v55 = vpop.f32.mrb[246].mxu1  ;;  %13953 = vtanh.f32 %v7361_v56 }
0x2ffd   :  { %v7365_v13 = vadd.f32 %v7364_v55, %v18835_v11  ;;  %v7366_v26 = vpop.f32.mrb[247].mxu1  ;;  %12390 = vmatprep.subr.bf16.mxu1 %v12389_v3  ;;  %v13944_v4 = vpop.eup %13943 }
0x2ffe   :  { %v7367_v39 = vadd.f32 %v7366_v26, %v18835_v11  ;;  %12392 = vmatpush1.bf16.msra.mxu1 %v12391_v54  ;;  %v13946_v31 = vpop.eup %13945 }
0x2fff   :  { %13955 = vtanh.f32 %v7365_v13 }
0x3000   :  { %13957 = vtanh.f32 %v7367_v39  ;;  %v7370_v36 = vpop.f32.mrb[248].mxu1 }
0x3001   :  { %v13948_v24 = vpop.eup %13947  ;;  %v7371_v25 = vadd.f32 %v7370_v36, %v18623_v47  ;;  %v7372_v29 = vpop.f32.mrb[249].mxu1 }
0x3002   :  { %v13950_v2 = vpop.eup %13949  ;;  %v7373_v46 = vadd.f32 %v7372_v29, %v18623_v47  ;;  %v12395_v48 = vpack.c.bf16 %v13948_v24, %v13944_v4 }
0x3003   :  { %v12393_v55 = vpack.c.bf16 %v13950_v2, %v13946_v31  ;;  %13959 = vtanh.f32 %v7371_v25 }
0x3004   :  { %v7376_v57 = vpop.f32.mrb[250].mxu1  ;;  %13961 = vtanh.f32 %v7373_v46  ;;  %v7398_v46 = vmul.f32 %v17328_v38, %v14722_v1  ;;  %v18839_v38 = vld [vmem:[#allocation17_spill] sm:$0xff] }
0x3005   :  { %v7377_v56 = vadd.f32 %v7376_v57, %v18624_v44  ;;  %v7378_v26 = vpop.f32.mrb[251].mxu1  ;;  %12394 = vmatprep.subr.bf16.mxu1 %v12393_v55  ;;  %v13952_v3 = vpop.eup %13951 }
0x3006   :  { %v7379_v54 = vadd.f32 %v7378_v26, %v18624_v44  ;;  %12396 = vmatpush1.bf16.msra.mxu1 %v12395_v48  ;;  %v13954_v13 = vpop.eup %13953 }
0x3007   :  { %13963 = vtanh.f32 %v7377_v56  ;;  %v7400_v56 = vadd.f32 %v7398_v46, %v17293_v30  ;;  %v18837_v30 = vld [vmem:[#allocation15_spill] sm:$0xff] }
0x3008   :  { %13965 = vtanh.f32 %v7379_v54  ;;  %v18842_v46 = vld [vmem:[#allocation23_spill] sm:$0xff] }
0x3009   :  { %v13956_v39 = vpop.eup %13955 }
0x300a   :  { %v13958_v36 = vpop.eup %13957  ;;  %v12399_v11 = vpack.c.bf16 %v13956_v39, %v13952_v3 }
0x300b   :  { %v12397_v29 = vpack.c.bf16 %v13958_v36, %v13954_v13  ;;  %v18840_v36 = vld [vmem:[#allocation18_spill] sm:$0xff] }
0x300d   :  { %12398 = vmatprep.subr.bf16.mxu1 %v12397_v29  ;;  %v13960_v24 = vpop.eup %13959 }
0x300e   :  { %12400 = vmatpush1.bf16.msra.mxu1 %v12399_v11  ;;  %v13962_v4 = vpop.eup %13961  ;;  %v7397_v11 = vmul.f32 %v17326_v41, %v14722_v1  ;;  %v18838_v41 = vld [vmem:[#allocation16_spill] sm:$0xff] }
0x3010   :  { %v7399_v48 = vadd.f32 %v7397_v11, %v17290_v62  ;;  %v18836_v62 = vld [vmem:[#allocation14_spill] sm:$0xff] }
0x3011   :  { %v13964_v31 = vpop.eup %13963 }
0x3012   :  { %v13966_v25 = vpop.eup %13965  ;;  %v12403_v2 = vpack.c.bf16 %v13964_v31, %v13960_v24  ;;  %v18841_v31 = vld [vmem:[#allocation21_spill] sm:$0xff] }
0x3013   :  { %v12401_v55 = vpack.c.bf16 %v13966_v25, %v13962_v4 }
0x3015   :  { %12402 = vmatprep.subr.bf16.mxu1 %v12401_v55 }
0x3016   :  { %12404 = vmatpush1.bf16.msra.mxu1 %v12403_v2 }
0x3017   :  { %12406 = vmatprep.subr.bf16.mxu1 %v14437_v5 }
0x3019   :  { %10243 = vmatmul.mubr.msk.f32.vlgmr.msra.gmra.mrb[252].mxu1 %vm402_vm1, %v17248_v19 }
0x301a   :  { %12408 = vmatpush1.bf16.msra.mxu1 %v14439_v9 }
0x301b   :  { %12410 = vmatprep.subr.bf16.mxu1 %v14441_v10 }
0x301e   :  { %12412 = vmatpush1.bf16.msra.mxu1 %v14445_v15 }
0x301f   :  { %12414 = vmatprep.subr.bf16.mxu1 %v14448_v16 }
0x3022   :  { %12416 = vmatpush1.bf16.msra.mxu1 %v14451_v21 }
0x3023   :  { %12418 = vmatprep.subr.bf16.mxu1 %v14454_v22 }
0x3026   :  { %12420 = vmatpush1.bf16.msra.mxu1 %v14457_v27 }
0x3027   :  { %12422 = vmatprep.subr.bf16.mxu1 %v14460_v28 }
0x302a   :  { %12424 = vmatpush1.bf16.msra.mxu1 %v14463_v33 }
0x302b   :  { %12426 = vmatprep.subr.bf16.mxu1 %v14466_v35 }
0x302e   :  { %12428 = vmatpush1.bf16.msra.mxu1 %v14489_v42 }
0x302f   :  { %12430 = vmatprep.subr.bf16.mxu1 %v14494_v43 }
0x3032   :  { %12432 = vmatpush1.bf16.msra.mxu1 %v14503_v49 }
0x3033   :  { %12434 = vmatprep.subr.bf16.mxu1 %v14511_v52 }
0x3036   :  { %12436 = vmatpush1.bf16.msra.mxu1 %v14529_v60 }
0x3037   :  { %12438 = vmatprep.subr.bf16.mxu1 %v14534_v61 }
0x303a   :  { %12440 = vmatpush1.bf16.msra.mxu1 %v14549_v7 }
0x303b   :  { %12442 = vmatprep.subr.bf16.mxu1 %v14554_v8 }
0x303e   :  { %12444 = vmatpush1.bf16.msra.mxu1 %v14569_v20 }
0x303f   :  { %12446 = vmatprep.subr.bf16.mxu1 %v14574_v23 }
0x3042   :  { %12448 = vmatpush1.bf16.msra.mxu1 %v14584_v32 }
0x3043   :  { %12450 = vmatprep.subr.bf16.mxu1 %v18625_v59 }
0x3046   :  { %12452 = vmatpush1.bf16.msra.mxu1 %v18626_v53 }
0x3047   :  { %12454 = vmatprep.subr.bf16.mxu1 %v18627_v6 }
0x304a   :  { %12456 = vmatpush1.bf16.msra.mxu1 %v18628_v12 }
0x304b   :  { %12458 = vmatprep.subr.bf16.mxu1 %v18629_v63 }
0x304e   :  { %12460 = vmatpush1.bf16.msra.mxu1 %v18630_v14 }
0x304f   :  { %12462 = vmatprep.subr.bf16.mxu1 %v18631_v45 }
0x3052   :  { %12464 = vmatpush1.bf16.msra.mxu1 %v18632_v34 }
0x3053   :  { %12466 = vmatprep.subr.bf16.mxu1 %v18633_v0 }
0x3056   :  { %12468 = vmatpush1.bf16.msra.mxu1 %v18634_v40 }
0x30ec   :  { %v7467_v57 = vpop.f32.mrb[252].mxu1 }
0x30ed   :  { %v7472_v26 = vadd.f32 %v7467_v57, %v7399_v48  ;;  %v7469_v54 = vpop.f32.mrb[253].mxu1 }
0x30ee   :  { %v7473_v3 = vadd.f32 %v7469_v54, %v7400_v56  ;;  %v18843_v54 = vld [vmem:[#allocation22_spill] sm:$0xff] }
0x30ef   :  { %v17390_v39 = vadd.f32 %v7472_v26, %v14730_v18 }
0x30f0   :  { %v17387_v13 = vadd.f32 %v7473_v3, %v14730_v18 }
0x30f2   :  { %7540 = vmatprep.mubr.f32.mxu1 %v17387_v13  ;;  %7547 = vmatprep.subr.mxu0 %v17387_v13 }
0x30f3   :  { %7541 = vmatmul.mubr.f32.vlgmr.msra.gmra.mrb[254].mxu1 %v17390_v39  ;;  %7548 = vmatpush1.msra.mxu0 %v17390_v39 }
0x30f4   :  { %10244 = vmatmul.mubr.msk.f32.vlgmr.msra.gmra.mrb[10].mxu0 %vm239_vm0, %v17187_v50  ;;  %7890 = vmatprep.mubr.f32.mxu1 %v18615_v37 }
0x30f5   :  { %7617 = vmatprep.mubr.f32.mxu0 %v18615_v37 }
0x30f8   :  { %10245 = vmatmul.mubr.msk.f32.gmra.mrb[12].mxu0 %vm239_vm0, %v17196_v51 }
0x30f9   :  { %7623 = vmatprep.mubr.f32.mxu0 %v18615_v37 }
0x30fc   :  { %10246 = vmatmul.mubr.msk.f32.gmra.mrb[14].mxu0 %vm239_vm0, %v17204_v17 }
0x30fd   :  { %7629 = vmatprep.mubr.f32.mxu0 %v18615_v37 }
0x3100   :  { %10247 = vmatmul.mubr.msk.f32.gmra.mrb[16].mxu0 %vm239_vm0, %v18836_v62 }
0x3101   :  { %7635 = vmatprep.mubr.f32.mxu0 %v18615_v37 }
0x3104   :  { %10248 = vmatmul.mubr.msk.f32.gmra.mrb[18].mxu0 %vm239_vm0, %v18837_v30 }
0x3105   :  { %7641 = vmatprep.mubr.f32.mxu0 %v18615_v37 }
0x3108   :  { %10249 = vmatmul.mubr.msk.f32.gmra.mrb[20].mxu0 %vm239_vm0, %v18838_v41 }
0x3109   :  { %7647 = vmatprep.mubr.f32.mxu0 %v18615_v37 }
0x310c   :  { %10250 = vmatmul.mubr.msk.f32.gmra.mrb[22].mxu0 %vm239_vm0, %v18839_v38  ;;  %v18844_v38 = vld [vmem:[#allocation24_spill] sm:$0xff] }
0x310d   :  { %7653 = vmatprep.mubr.f32.mxu0 %v18615_v37 }
0x3110   :  { %10251 = vmatmul.mubr.msk.f32.gmra.mrb[24].mxu0 %vm239_vm0, %v18840_v36 }
0x3111   :  { %7744 = vmatprep.mubr.f32.mxu0 %v18615_v37 }
0x31c6   :  { %v17421_v29 = vpop.f32.mrb[254].mxu1 }
0x31c7   :  { %v17423_v24 = vpop.f32.mrb[255].mxu1  ;;  %v7613_v4 = vpop.f32.mrb[10].mxu0 }
0x31c8   :  { %v7614_v25 = vadd.f32 %v7613_v4, %v18841_v31  ;;  %v7615_v2 = vpop.f32.mrb[11].mxu0 }
0x31c9   :  { %v7616_v55 = vadd.f32 %v7615_v2, %v18841_v31 }
0x31ca   :  { %13967 = vtanh.f32 %v7614_v25 }
0x31cb   :  { %v7619_v11 = vpop.f32.mrb[12].mxu0  ;;  %13969 = vtanh.f32 %v7616_v55 }
0x31cc   :  { %v7620_v48 = vadd.f32 %v7619_v11, %v18842_v46  ;;  %v7621_v57 = vpop.f32.mrb[13].mxu0 }
0x31cd   :  { %v7622_v56 = vadd.f32 %v7621_v57, %v18842_v46 }
0x31ce   :  { %13971 = vtanh.f32 %v7620_v48 }
0x31cf   :  { %13973 = vtanh.f32 %v7622_v56  ;;  %v7625_v26 = vpop.f32.mrb[14].mxu0 }
0x31d0   :  { %v7626_v3 = vadd.f32 %v7625_v26, %v18843_v54  ;;  %v7627_v62 = vpop.f32.mrb[15].mxu0 }
0x31d1   :  { %v7628_v30 = vadd.f32 %v7627_v62, %v18843_v54 }
0x31d2   :  { %13975 = vtanh.f32 %v7626_v3 }
0x31d3   :  { %v7631_v41 = vpop.f32.mrb[16].mxu0  ;;  %13977 = vtanh.f32 %v7628_v30 }
0x31d4   :  { %v7632_v36 = vadd.f32 %v7631_v41, %v18844_v38  ;;  %v7633_v4 = vpop.f32.mrb[17].mxu0  ;;  %v13968_v2 = vpop.eup %13967  ;;  %v18845_v41 = vld [vmem:[#allocation26_spill] sm:$0xff] }
0x31d5   :  { %v7634_v25 = vadd.f32 %v7633_v4, %v18844_v38  ;;  %v13970_v55 = vpop.eup %13969 }
0x31d6   :  { %13979 = vtanh.f32 %v7632_v36 }
0x31d7   :  { %13981 = vtanh.f32 %v7634_v25  ;;  %v7637_v11 = vpop.f32.mrb[18].mxu0 }
0x31d8   :  { %v13972_v48 = vpop.eup %13971  ;;  %v7638_v57 = vadd.f32 %v7637_v11, %v18621_v58  ;;  %v7639_v56 = vpop.f32.mrb[19].mxu0 }
0x31d9   :  { %v13974_v26 = vpop.eup %13973  ;;  %v7640_v62 = vadd.f32 %v7639_v56, %v18621_v58  ;;  %v12471_v54 = vpack.c.bf16 %v13972_v48, %v13968_v2 }
0x31da   :  { %v12469_v3 = vpack.c.bf16 %v13974_v26, %v13970_v55  ;;  %13983 = vtanh.f32 %v7638_v57 }
0x31db   :  { %v7643_v46 = vpop.f32.mrb[20].mxu0  ;;  %13985 = vtanh.f32 %v7640_v62 }
0x31dc   :  { %v7644_v30 = vadd.f32 %v7643_v46, %v18845_v41  ;;  %v7645_v31 = vpop.f32.mrb[21].mxu0  ;;  %12470 = vmatprep.subr.bf16.mxu0 %v12469_v3  ;;  %v13976_v4 = vpop.eup %13975 }
0x31dd   :  { %v7646_v36 = vadd.f32 %v7645_v31, %v18845_v41  ;;  %12472 = vmatpush1.bf16.msra.mxu0 %v12471_v54  ;;  %v13978_v25 = vpop.eup %13977 }
0x31de   :  { %13987 = vtanh.f32 %v7644_v30 }
0x31df   :  { %13989 = vtanh.f32 %v7646_v36  ;;  %v7649_v11 = vpop.f32.mrb[22].mxu0 }
0x31e0   :  { %v13980_v38 = vpop.eup %13979  ;;  %v7650_v56 = vadd.f32 %v7649_v11, %v18623_v47  ;;  %v7651_v2 = vpop.f32.mrb[23].mxu0 }
0x31e1   :  { %v13982_v55 = vpop.eup %13981  ;;  %v7652_v48 = vadd.f32 %v7651_v2, %v18623_v47  ;;  %v12475_v57 = vpack.c.bf16 %v13980_v38, %v13976_v4 }
0x31e2   :  { %v12473_v46 = vpack.c.bf16 %v13982_v55, %v13978_v25  ;;  %13991 = vtanh.f32 %v7650_v56 }
0x31e3   :  { %v7655_v26 = vpop.f32.mrb[24].mxu0  ;;  %13993 = vtanh.f32 %v7652_v48  ;;  %v7677_v48 = vmul.f32 %v17423_v24, %v14722_v1 }
0x31e4   :  { %v7656_v62 = vadd.f32 %v7655_v26, %v18624_v44  ;;  %v7657_v31 = vpop.f32.mrb[25].mxu0  ;;  %12474 = vmatprep.subr.bf16.mxu0 %v12473_v46  ;;  %v13984_v3 = vpop.eup %13983 }
0x31e5   :  { %v7658_v54 = vadd.f32 %v7657_v31, %v18624_v44  ;;  %12476 = vmatpush1.bf16.msra.mxu0 %v12475_v57  ;;  %v13986_v30 = vpop.eup %13985 }
0x31e6   :  { %13995 = vtanh.f32 %v7656_v62  ;;  %v7679_v62 = vadd.f32 %v7677_v48, %v17387_v13  ;;  %v17504_v13 = vld [vmem:[%s18320_s3 + $0x18] sm:$0xff] }
0x31e7   :  { %13997 = vtanh.f32 %v7658_v54  ;;  %18846 = vst [vmem:[#allocation19_spill] sm:$0xff] %v17504_v13 }
0x31e8   :  { %v13988_v36 = vpop.eup %13987 }
0x31e9   :  { %v13990_v11 = vpop.eup %13989  ;;  %v12479_v41 = vpack.c.bf16 %v13988_v36, %v13984_v3 }
0x31ea   :  { %v12477_v2 = vpack.c.bf16 %v13990_v11, %v13986_v30 }
0x31ec   :  { %12478 = vmatprep.subr.bf16.mxu0 %v12477_v2  ;;  %v13992_v38 = vpop.eup %13991  ;;  %v18851_v2 = vld [vmem:[#allocation21_spill] sm:$0xff] }
0x31ed   :  { %12480 = vmatpush1.bf16.msra.mxu0 %v12479_v41  ;;  %v13994_v4 = vpop.eup %13993  ;;  %v7676_v41 = vmul.f32 %v17421_v29, %v14722_v1 }
0x31ef   :  { %v7678_v57 = vadd.f32 %v7676_v41, %v17390_v39  ;;  %v17536_v39 = vld [vmem:[%s18320_s3 + $0x38] sm:$0xff] }
0x31f0   :  { %v13996_v25 = vpop.eup %13995  ;;  %18850 = vst [vmem:[#allocation10_spill] sm:$0xff] %v17536_v39 }
0x31f1   :  { %v13998_v56 = vpop.eup %13997  ;;  %v12483_v55 = vpack.c.bf16 %v13996_v25, %v13992_v38 }
0x31f2   :  { %v12481_v46 = vpack.c.bf16 %v13998_v56, %v13994_v4 }
0x31f4   :  { %12482 = vmatprep.subr.bf16.mxu0 %v12481_v46 }
0x31f5   :  { %12484 = vmatpush1.bf16.msra.mxu0 %v12483_v55  ;;  %v18852_v55 = vld [vmem:[#allocation23_spill] sm:$0xff] }
0x31f6   :  { %12486 = vmatprep.subr.bf16.mxu0 %v14437_v5 }
0x31f8   :  { %10252 = vmatmul.mubr.msk.f32.vlgmr.msra.gmra.mrb[26].mxu0 %vm402_vm1, %v17248_v19 }
0x31f9   :  { %12488 = vmatpush1.bf16.msra.mxu0 %v14439_v9 }
0x31fa   :  { %12490 = vmatprep.subr.bf16.mxu0 %v14441_v10 }
0x31fd   :  { %12492 = vmatpush1.bf16.msra.mxu0 %v14445_v15 }
0x31fe   :  { %12494 = vmatprep.subr.bf16.mxu0 %v14448_v16 }
0x3201   :  { %12496 = vmatpush1.bf16.msra.mxu0 %v14451_v21 }
0x3202   :  { %12498 = vmatprep.subr.bf16.mxu0 %v14454_v22 }
0x3205   :  { %12500 = vmatpush1.bf16.msra.mxu0 %v14457_v27 }
0x3206   :  { %12502 = vmatprep.subr.bf16.mxu0 %v14460_v28 }
0x3209   :  { %12504 = vmatpush1.bf16.msra.mxu0 %v14463_v33 }
0x320a   :  { %12506 = vmatprep.subr.bf16.mxu0 %v14466_v35 }
0x320d   :  { %12508 = vmatpush1.bf16.msra.mxu0 %v14489_v42 }
0x320e   :  { %12510 = vmatprep.subr.bf16.mxu0 %v14494_v43 }
0x3211   :  { %12512 = vmatpush1.bf16.msra.mxu0 %v14503_v49 }
0x3212   :  { %12514 = vmatprep.subr.bf16.mxu0 %v14511_v52 }
0x3215   :  { %12516 = vmatpush1.bf16.msra.mxu0 %v14529_v60 }
0x3216   :  { %12518 = vmatprep.subr.bf16.mxu0 %v14534_v61 }
0x3219   :  { %12520 = vmatpush1.bf16.msra.mxu0 %v14549_v7 }
0x321a   :  { %12522 = vmatprep.subr.bf16.mxu0 %v14554_v8 }
0x321d   :  { %12524 = vmatpush1.bf16.msra.mxu0 %v14569_v20 }
0x321e   :  { %12526 = vmatprep.subr.bf16.mxu0 %v14574_v23 }
0x3221   :  { %12528 = vmatpush1.bf16.msra.mxu0 %v14584_v32 }
0x3222   :  { %12530 = vmatprep.subr.bf16.mxu0 %v18625_v59 }
0x3225   :  { %12532 = vmatpush1.bf16.msra.mxu0 %v18626_v53 }
0x3226   :  { %12534 = vmatprep.subr.bf16.mxu0 %v18627_v6 }
0x3229   :  { %12536 = vmatpush1.bf16.msra.mxu0 %v18628_v12 }
0x322a   :  { %12538 = vmatprep.subr.bf16.mxu0 %v18629_v63 }
0x322d   :  { %12540 = vmatpush1.bf16.msra.mxu0 %v18630_v14 }
0x322e   :  { %12542 = vmatprep.subr.bf16.mxu0 %v18631_v45 }
0x3231   :  { %12544 = vmatpush1.bf16.msra.mxu0 %v18632_v34 }
0x3232   :  { %12546 = vmatprep.subr.bf16.mxu0 %v18633_v0 }
0x3235   :  { %12548 = vmatpush1.bf16.msra.mxu0 %v18634_v40 }
0x32cb   :  { %v7746_v26 = vpop.f32.mrb[26].mxu0 }
0x32cc   :  { %v7751_v31 = vadd.f32 %v7746_v26, %v7678_v57  ;;  %v7748_v54 = vpop.f32.mrb[27].mxu0  ;;  %v18853_v26 = vld [vmem:[#allocation22_spill] sm:$0xff] }
0x32cd   :  { %v7752_v3 = vadd.f32 %v7748_v54, %v7679_v62 }
0x32ce   :  { %v17485_v36 = vadd.f32 %v7751_v31, %v14730_v18 }
0x32cf   :  { %v17482_v30 = vadd.f32 %v7752_v3, %v14730_v18 }
0x32d1   :  { %7819 = vmatprep.mubr.f32.mxu0 %v17482_v30  ;;  %7826 = vmatprep.subr.mxu1 %v17482_v30 }
0x32d2   :  { %7820 = vmatmul.mubr.f32.vlgmr.msra.gmra.mrb[28].mxu0 %v17485_v36  ;;  %7827 = vmatpush1.msra.mxu1 %v17485_v36 }
0x32d3   :  { %10253 = vmatmul.mubr.msk.f32.vlgmr.msra.gmra.mrb[0].mxu1 %vm239_vm0, %v17187_v50  ;;  %8169 = vmatprep.mubr.f32.mxu0 %v18615_v37  ;;  %v17512_v50 = vld [vmem:[%s18320_s3 + $0x20] sm:$0xff] }
0x32d4   :  { %7896 = vmatprep.mubr.f32.mxu1 %v18615_v37  ;;  %18847 = vst [vmem:[#allocation20_spill] sm:$0xff] %v17512_v50 }
0x32d7   :  { %10254 = vmatmul.mubr.msk.f32.gmra.mrb[2].mxu1 %vm239_vm0, %v17196_v51  ;;  %v17520_v51 = vld [vmem:[%s18320_s3 + $0x28] sm:$0xff] }
0x32d8   :  { %7902 = vmatprep.mubr.f32.mxu1 %v18615_v37  ;;  %18848 = vst [vmem:[#allocation8_spill] sm:$0xff] %v17520_v51 }
0x32db   :  { %10255 = vmatmul.mubr.msk.f32.gmra.mrb[4].mxu1 %vm239_vm0, %v17204_v17  ;;  %v17528_v17 = vld [vmem:[%s18320_s3 + $0x30] sm:$0xff] }
0x32dc   :  { %7908 = vmatprep.mubr.f32.mxu1 %v18615_v37  ;;  %18849 = vst [vmem:[#allocation9_spill] sm:$0xff] %v17528_v17 }
0x32df   :  { %10256 = vmatmul.mubr.msk.f32.gmra.mrb[6].mxu1 %vm239_vm0, %v17504_v13 }
0x32e0   :  { %7914 = vmatprep.mubr.f32.mxu1 %v18615_v37 }
0x32e3   :  { %10257 = vmatmul.mubr.msk.f32.gmra.mrb[8].mxu1 %vm239_vm0, %v17512_v50 }
0x32e4   :  { %7920 = vmatprep.mubr.f32.mxu1 %v18615_v37 }
0x32e7   :  { %10258 = vmatmul.mubr.msk.f32.gmra.mrb[10].mxu1 %vm239_vm0, %v17520_v51 }
0x32e8   :  { %7926 = vmatprep.mubr.f32.mxu1 %v18615_v37 }
0x32eb   :  { %10259 = vmatmul.mubr.msk.f32.gmra.mrb[12].mxu1 %vm239_vm0, %v17528_v17 }
0x32ec   :  { %7932 = vmatprep.mubr.f32.mxu1 %v18615_v37 }
0x32ef   :  { %10260 = vmatmul.mubr.msk.f32.gmra.mrb[14].mxu1 %vm239_vm0, %v17536_v39 }
0x32f0   :  { %8023 = vmatprep.mubr.f32.mxu1 %v18615_v37 }
0x33a5   :  { %v17541_v29 = vpop.f32.mrb[28].mxu0 }
0x33a6   :  { %v17543_v24 = vpop.f32.mrb[29].mxu0  ;;  %v7892_v11 = vpop.f32.mrb[0].mxu1 }
0x33a7   :  { %v7893_v38 = vadd.f32 %v7892_v11, %v18851_v2  ;;  %v7894_v4 = vpop.f32.mrb[1].mxu1  ;;  %v18854_v11 = vld [vmem:[#allocation24_spill] sm:$0xff] }
0x33a8   :  { %v7895_v25 = vadd.f32 %v7894_v4, %v18851_v2 }
0x33a9   :  { %13999 = vtanh.f32 %v7893_v38 }
0x33aa   :  { %v7898_v56 = vpop.f32.mrb[2].mxu1  ;;  %14001 = vtanh.f32 %v7895_v25 }
0x33ab   :  { %v7899_v46 = vadd.f32 %v7898_v56, %v18852_v55  ;;  %v7900_v41 = vpop.f32.mrb[3].mxu1 }
0x33ac   :  { %v7901_v48 = vadd.f32 %v7900_v41, %v18852_v55 }
0x33ad   :  { %14003 = vtanh.f32 %v7899_v46 }
0x33ae   :  { %14005 = vtanh.f32 %v7901_v48  ;;  %v7904_v57 = vpop.f32.mrb[4].mxu1 }
0x33af   :  { %v7905_v62 = vadd.f32 %v7904_v57, %v18853_v26  ;;  %v7906_v31 = vpop.f32.mrb[5].mxu1 }
0x33b0   :  { %v7907_v54 = vadd.f32 %v7906_v31, %v18853_v26 }
0x33b1   :  { %14007 = vtanh.f32 %v7905_v62 }
0x33b2   :  { %v7910_v3 = vpop.f32.mrb[6].mxu1  ;;  %14009 = vtanh.f32 %v7907_v54 }
0x33b3   :  { %v7911_v4 = vadd.f32 %v7910_v3, %v18854_v11  ;;  %v7912_v2 = vpop.f32.mrb[7].mxu1  ;;  %v14000_v56 = vpop.eup %13999  ;;  %v18855_v3 = vld [vmem:[#allocation26_spill] sm:$0xff] }
0x33b4   :  { %v7913_v38 = vadd.f32 %v7912_v2, %v18854_v11  ;;  %v14002_v25 = vpop.eup %14001 }
0x33b5   :  { %14011 = vtanh.f32 %v7911_v4 }
0x33b6   :  { %14013 = vtanh.f32 %v7913_v38  ;;  %v7916_v46 = vpop.f32.mrb[8].mxu1 }
0x33b7   :  { %v14004_v41 = vpop.eup %14003  ;;  %v7917_v48 = vadd.f32 %v7916_v46, %v18621_v58  ;;  %v7918_v57 = vpop.f32.mrb[9].mxu1 }
0x33b8   :  { %v14006_v55 = vpop.eup %14005  ;;  %v7919_v31 = vadd.f32 %v7918_v57, %v18621_v58  ;;  %v12551_v26 = vpack.c.bf16 %v14004_v41, %v14000_v56 }
0x33b9   :  { %v12549_v62 = vpack.c.bf16 %v14006_v55, %v14002_v25  ;;  %14015 = vtanh.f32 %v7917_v48 }
0x33ba   :  { %v7922_v39 = vpop.f32.mrb[10].mxu1  ;;  %14017 = vtanh.f32 %v7919_v31 }
0x33bb   :  { %v7923_v54 = vadd.f32 %v7922_v39, %v18855_v3  ;;  %v7924_v17 = vpop.f32.mrb[11].mxu1  ;;  %12550 = vmatprep.subr.bf16.mxu1 %v12549_v62  ;;  %v14008_v4 = vpop.eup %14007 }
0x33bc   :  { %v7925_v2 = vadd.f32 %v7924_v17, %v18855_v3  ;;  %12552 = vmatpush1.bf16.msra.mxu1 %v12551_v26  ;;  %v14010_v38 = vpop.eup %14009 }
0x33bd   :  { %14019 = vtanh.f32 %v7923_v54 }
0x33be   :  { %14021 = vtanh.f32 %v7925_v2  ;;  %v7928_v46 = vpop.f32.mrb[12].mxu1 }
0x33bf   :  { %v14012_v11 = vpop.eup %14011  ;;  %v7929_v57 = vadd.f32 %v7928_v46, %v18623_v47  ;;  %v7930_v56 = vpop.f32.mrb[13].mxu1 }
0x33c0   :  { %v14014_v55 = vpop.eup %14013  ;;  %v7931_v25 = vadd.f32 %v7930_v56, %v18623_v47  ;;  %v12555_v41 = vpack.c.bf16 %v14012_v11, %v14008_v4 }
0x33c1   :  { %v12553_v39 = vpack.c.bf16 %v14014_v55, %v14010_v38  ;;  %14023 = vtanh.f32 %v7929_v57 }
0x33c2   :  { %v7934_v48 = vpop.f32.mrb[14].mxu1  ;;  %14025 = vtanh.f32 %v7931_v25 }
0x33c3   :  { %v7935_v31 = vadd.f32 %v7934_v48, %v18624_v44  ;;  %v7936_v17 = vpop.f32.mrb[15].mxu1  ;;  %12554 = vmatprep.subr.bf16.mxu1 %v12553_v39  ;;  %v14016_v62 = vpop.eup %14015 }
0x33c4   :  { %v7937_v26 = vadd.f32 %v7936_v17, %v18624_v44  ;;  %12556 = vmatpush1.bf16.msra.mxu1 %v12555_v41  ;;  %v14018_v54 = vpop.eup %14017 }
0x33c5   :  { %14027 = vtanh.f32 %v7935_v31 }
0x33c6   :  { %14029 = vtanh.f32 %v7937_v26 }
0x33c7   :  { %v14020_v2 = vpop.eup %14019 }
0x33c8   :  { %v14022_v46 = vpop.eup %14021  ;;  %v12559_v3 = vpack.c.bf16 %v14020_v2, %v14016_v62  ;;  %v18857_v2 = vld [vmem:[#allocation10_spill] sm:$0xff] }
0x33c9   :  { %v12557_v56 = vpack.c.bf16 %v14022_v46, %v14018_v54 }
0x33cb   :  { %12558 = vmatprep.subr.bf16.mxu1 %v12557_v56  ;;  %v14024_v11 = vpop.eup %14023 }
0x33cc   :  { %12560 = vmatpush1.bf16.msra.mxu1 %v12559_v3  ;;  %v14026_v4 = vpop.eup %14025  ;;  %v7956_v3 = vmul.f32 %v17543_v24, %v14722_v1  ;;  %v18856_v24 = vld [vmem:[#allocation9_spill] sm:$0xff] }
0x33ce   :  { %v7958_v48 = vadd.f32 %v7956_v3, %v17482_v30  ;;  %v17614_v30 = vld [vmem:[%s18320_s3] sm:$0xff] }
0x33cf   :  { %v14028_v38 = vpop.eup %14027 }
0x33d0   :  { %v14030_v57 = vpop.eup %14029  ;;  %v12563_v55 = vpack.c.bf16 %v14028_v38, %v14024_v11 }
0x33d1   :  { %v12561_v39 = vpack.c.bf16 %v14030_v57, %v14026_v4  ;;  %v18858_v4 = vld [vmem:[#allocation21_spill] sm:$0xff] }
0x33d3   :  { %12562 = vmatprep.subr.bf16.mxu1 %v12561_v39 }
0x33d4   :  { %12564 = vmatpush1.bf16.msra.mxu1 %v12563_v55 }
0x33d5   :  { %12566 = vmatprep.subr.bf16.mxu1 %v14437_v5 }
0x33d7   :  { %10261 = vmatmul.mubr.msk.f32.vlgmr.msra.gmra.mrb[16].mxu1 %vm402_vm1, %v17248_v19  ;;  %v7955_v19 = vmul.f32 %v17541_v29, %v14722_v1  ;;  %v17631_v29 = vld [vmem:[%s18320_s3 + $0x10] sm:$0xff] }
0x33d8   :  { %12568 = vmatpush1.bf16.msra.mxu1 %v14439_v9 }
0x33d9   :  { %12570 = vmatprep.subr.bf16.mxu1 %v14441_v10  ;;  %v7957_v25 = vadd.f32 %v7955_v19, %v17485_v36  ;;  %v17623_v36 = vld [vmem:[%s18320_s3 + $0x8] sm:$0xff]  ;;  %v18859_v19 = vld [vmem:[#allocation23_spill] sm:$0xff] }
0x33dc   :  { %12572 = vmatpush1.bf16.msra.mxu1 %v14445_v15 }
0x33dd   :  { %12574 = vmatprep.subr.bf16.mxu1 %v14448_v16 }
0x33e0   :  { %12576 = vmatpush1.bf16.msra.mxu1 %v14451_v21 }
0x33e1   :  { %12578 = vmatprep.subr.bf16.mxu1 %v14454_v22 }
0x33e4   :  { %12580 = vmatpush1.bf16.msra.mxu1 %v14457_v27 }
0x33e5   :  { %12582 = vmatprep.subr.bf16.mxu1 %v14460_v28 }
0x33e8   :  { %12584 = vmatpush1.bf16.msra.mxu1 %v14463_v33 }
0x33e9   :  { %12586 = vmatprep.subr.bf16.mxu1 %v14466_v35 }
0x33ec   :  { %12588 = vmatpush1.bf16.msra.mxu1 %v14489_v42 }
0x33ed   :  { %12590 = vmatprep.subr.bf16.mxu1 %v14494_v43 }
0x33f0   :  { %12592 = vmatpush1.bf16.msra.mxu1 %v14503_v49 }
0x33f1   :  { %12594 = vmatprep.subr.bf16.mxu1 %v14511_v52 }
0x33f4   :  { %12596 = vmatpush1.bf16.msra.mxu1 %v14529_v60 }
0x33f5   :  { %12598 = vmatprep.subr.bf16.mxu1 %v14534_v61 }
0x33f8   :  { %12600 = vmatpush1.bf16.msra.mxu1 %v14549_v7 }
0x33f9   :  { %12602 = vmatprep.subr.bf16.mxu1 %v14554_v8 }
0x33fc   :  { %12604 = vmatpush1.bf16.msra.mxu1 %v14569_v20 }
0x33fd   :  { %12606 = vmatprep.subr.bf16.mxu1 %v14574_v23 }
0x3400   :  { %12608 = vmatpush1.bf16.msra.mxu1 %v14584_v32 }
0x3401   :  { %12610 = vmatprep.subr.bf16.mxu1 %v18625_v59 }
0x3404   :  { %12612 = vmatpush1.bf16.msra.mxu1 %v18626_v53 }
0x3405   :  { %12614 = vmatprep.subr.bf16.mxu1 %v18627_v6 }
0x3408   :  { %12616 = vmatpush1.bf16.msra.mxu1 %v18628_v12 }
0x3409   :  { %12618 = vmatprep.subr.bf16.mxu1 %v18629_v63 }
0x340c   :  { %12620 = vmatpush1.bf16.msra.mxu1 %v18630_v14 }
0x340d   :  { %12622 = vmatprep.subr.bf16.mxu1 %v18631_v45 }
0x3410   :  { %12624 = vmatpush1.bf16.msra.mxu1 %v18632_v34 }
0x3411   :  { %12626 = vmatprep.subr.bf16.mxu1 %v18633_v0 }
0x3414   :  { %12628 = vmatpush1.bf16.msra.mxu1 %v18634_v40 }
0x34aa   :  { %v8025_v41 = vpop.f32.mrb[16].mxu1 }
0x34ab   :  { %v8030_v31 = vadd.f32 %v8025_v41, %v7957_v25  ;;  %v8027_v17 = vpop.f32.mrb[17].mxu1 }
0x34ac   :  { %v8031_v26 = vadd.f32 %v8027_v17, %v7958_v48 }
0x34ad   :  { %v17605_v54 = vadd.f32 %v8030_v31, %v14730_v18  ;;  %v18860_v31 = vld [vmem:[#allocation22_spill] sm:$0xff] }
0x34ae   :  { %v17602_v62 = vadd.f32 %v8031_v26, %v14730_v18 }
0x34b0   :  { %8098 = vmatprep.mubr.f32.mxu1 %v17602_v62  ;;  %8105 = vmatprep.subr.mxu0 %v17602_v62 }
0x34b1   :  { %8099 = vmatmul.mubr.f32.vlgmr.msra.gmra.mrb[18].mxu1 %v17605_v54  ;;  %8106 = vmatpush1.msra.mxu0 %v17605_v54 }
0x34b2   :  { %10262 = vmatmul.mubr.msk.f32.vlgmr.msra.gmra.mrb[30].mxu0 %vm239_vm0, %v17614_v30  ;;  %8448 = vmatprep.mubr.f32.mxu1 %v18615_v37 }
0x34b3   :  { %8175 = vmatprep.mubr.f32.mxu0 %v18615_v37 }
0x34b6   :  { %10263 = vmatmul.mubr.msk.f32.gmra.mrb[32].mxu0 %vm239_vm0, %v17623_v36 }
0x34b7   :  { %8181 = vmatprep.mubr.f32.mxu0 %v18615_v37 }
0x34ba   :  { %10264 = vmatmul.mubr.msk.f32.gmra.mrb[34].mxu0 %vm239_vm0, %v17631_v29 }
0x34bb   :  { %8187 = vmatprep.mubr.f32.mxu0 %v18615_v37 }
0x34be   :  { %10265 = vmatmul.mubr.msk.f32.gmra.mrb[36].mxu0 %vm239_vm0, %v17504_v13 }
0x34bf   :  { %8193 = vmatprep.mubr.f32.mxu0 %v18615_v37 }
0x34c2   :  { %10266 = vmatmul.mubr.msk.f32.gmra.mrb[38].mxu0 %vm239_vm0, %v17512_v50 }
0x34c3   :  { %8199 = vmatprep.mubr.f32.mxu0 %v18615_v37 }
0x34c6   :  { %10267 = vmatmul.mubr.msk.f32.gmra.mrb[40].mxu0 %vm239_vm0, %v17520_v51 }
0x34c7   :  { %8205 = vmatprep.mubr.f32.mxu0 %v18615_v37 }
0x34ca   :  { %10268 = vmatmul.mubr.msk.f32.gmra.mrb[42].mxu0 %vm239_vm0, %v18856_v24  ;;  %v18861_v24 = vld [vmem:[#allocation24_spill] sm:$0xff] }
0x34cb   :  { %8211 = vmatprep.mubr.f32.mxu0 %v18615_v37 }
0x34ce   :  { %10269 = vmatmul.mubr.msk.f32.gmra.mrb[44].mxu0 %vm239_vm0, %v18857_v2 }
0x34cf   :  { %8302 = vmatprep.mubr.f32.mxu0 %v18615_v37 }
0x3584   :  { %v17651_v46 = vpop.f32.mrb[18].mxu1 }
0x3585   :  { %v17653_v56 = vpop.f32.mrb[19].mxu1  ;;  %v8171_v11 = vpop.f32.mrb[30].mxu0 }
0x3586   :  { %v8172_v38 = vadd.f32 %v8171_v11, %v18858_v4  ;;  %v8173_v57 = vpop.f32.mrb[31].mxu0 }
0x3587   :  { %v8174_v55 = vadd.f32 %v8173_v57, %v18858_v4 }
0x3588   :  { %14031 = vtanh.f32 %v8172_v38 }
0x3589   :  { %v8177_v39 = vpop.f32.mrb[32].mxu0  ;;  %14033 = vtanh.f32 %v8174_v55 }
0x358a   :  { %v8178_v3 = vadd.f32 %v8177_v39, %v18859_v19  ;;  %v8179_v25 = vpop.f32.mrb[33].mxu0 }
0x358b   :  { %v8180_v41 = vadd.f32 %v8179_v25, %v18859_v19 }
0x358c   :  { %14035 = vtanh.f32 %v8178_v3 }
0x358d   :  { %14037 = vtanh.f32 %v8180_v41  ;;  %v8183_v48 = vpop.f32.mrb[34].mxu0 }
0x358e   :  { %v8184_v17 = vadd.f32 %v8183_v48, %v18860_v31  ;;  %v8185_v26 = vpop.f32.mrb[35].mxu0 }
0x358f   :  { %v8186_v2 = vadd.f32 %v8185_v26, %v18860_v31 }
0x3590   :  { %14039 = vtanh.f32 %v8184_v17 }
0x3591   :  { %v8189_v11 = vpop.f32.mrb[36].mxu0  ;;  %14041 = vtanh.f32 %v8186_v2 }
0x3592   :  { %v8190_v57 = vadd.f32 %v8189_v11, %v18861_v24  ;;  %v8191_v4 = vpop.f32.mrb[37].mxu0  ;;  %v14032_v39 = vpop.eup %14031  ;;  %v18862_v11 = vld [vmem:[#allocation26_spill] sm:$0xff] }
0x3593   :  { %v8192_v38 = vadd.f32 %v8191_v4, %v18861_v24  ;;  %v14034_v55 = vpop.eup %14033 }
0x3594   :  { %14043 = vtanh.f32 %v8190_v57 }
0x3595   :  { %14045 = vtanh.f32 %v8192_v38  ;;  %v8195_v3 = vpop.f32.mrb[38].mxu0 }
0x3596   :  { %v14036_v25 = vpop.eup %14035  ;;  %v8196_v41 = vadd.f32 %v8195_v3, %v18621_v58  ;;  %v8197_v48 = vpop.f32.mrb[39].mxu0 }
0x3597   :  { %v14038_v19 = vpop.eup %14037  ;;  %v8198_v26 = vadd.f32 %v8197_v48, %v18621_v58  ;;  %v12631_v31 = vpack.c.bf16 %v14036_v25, %v14032_v39 }
0x3598   :  { %v12629_v17 = vpack.c.bf16 %v14038_v19, %v14034_v55  ;;  %14047 = vtanh.f32 %v8196_v41 }
0x3599   :  { %v8201_v51 = vpop.f32.mrb[40].mxu0  ;;  %14049 = vtanh.f32 %v8198_v26 }
0x359a   :  { %v8202_v2 = vadd.f32 %v8201_v51, %v18862_v11  ;;  %v8203_v50 = vpop.f32.mrb[41].mxu0  ;;  %12630 = vmatprep.subr.bf16.mxu0 %v12629_v17  ;;  %v14040_v57 = vpop.eup %14039 }
0x359b   :  { %v8204_v4 = vadd.f32 %v8203_v50, %v18862_v11  ;;  %12632 = vmatpush1.bf16.msra.mxu0 %v12631_v31  ;;  %v14042_v38 = vpop.eup %14041 }
0x359c   :  { %14051 = vtanh.f32 %v8202_v2 }
0x359d   :  { %14053 = vtanh.f32 %v8204_v4  ;;  %v8207_v3 = vpop.f32.mrb[42].mxu0 }
0x359e   :  { %v14044_v24 = vpop.eup %14043  ;;  %v8208_v48 = vadd.f32 %v8207_v3, %v18623_v47  ;;  %v8209_v39 = vpop.f32.mrb[43].mxu0 }
0x359f   :  { %v14046_v19 = vpop.eup %14045  ;;  %v8210_v55 = vadd.f32 %v8209_v39, %v18623_v47  ;;  %v12635_v25 = vpack.c.bf16 %v14044_v24, %v14040_v57 }
0x35a0   :  { %v12633_v51 = vpack.c.bf16 %v14046_v19, %v14042_v38  ;;  %14055 = vtanh.f32 %v8208_v48 }
0x35a1   :  { %v8213_v41 = vpop.f32.mrb[44].mxu0  ;;  %14057 = vtanh.f32 %v8210_v55  ;;  %v17675_v55 = vld [vmem:[%s18322_s5] sm:$0xff] }
0x35a2   :  { %v8214_v26 = vadd.f32 %v8213_v41, %v18624_v44  ;;  %v8215_v50 = vpop.f32.mrb[45].mxu0  ;;  %12634 = vmatprep.subr.bf16.mxu0 %v12633_v51  ;;  %v14048_v17 = vpop.eup %14047 }
0x35a3   :  { %v8216_v31 = vadd.f32 %v8215_v50, %v18624_v44  ;;  %12636 = vmatpush1.bf16.msra.mxu0 %v12635_v25  ;;  %v14050_v2 = vpop.eup %14049  ;;  %v8235_v25 = vmul.f32 %v17653_v56, %v14722_v1  ;;  %v18866_v56 = vld [vmem:[#allocation10_spill] sm:$0xff] }
0x35a4   :  { %14059 = vtanh.f32 %v8214_v26 }
0x35a5   :  { %14061 = vtanh.f32 %v8216_v31  ;;  %v8237_v50 = vadd.f32 %v8235_v25, %v17602_v62  ;;  %v18863_v62 = vld [vmem:[#allocation20_spill] sm:$0xff]  ;;  %v18868_v25 = vld [vmem:[#allocation23_spill] sm:$0xff] }
0x35a6   :  { %v14052_v4 = vpop.eup %14051 }
0x35a7   :  { %v14054_v3 = vpop.eup %14053  ;;  %v12639_v11 = vpack.c.bf16 %v14052_v4, %v14048_v17 }
0x35a8   :  { %v12637_v39 = vpack.c.bf16 %v14054_v3, %v14050_v2 }
0x35aa   :  { %12638 = vmatprep.subr.bf16.mxu0 %v12637_v39  ;;  %v14056_v24 = vpop.eup %14055 }
0x35ab   :  { %12640 = vmatpush1.bf16.msra.mxu0 %v12639_v11  ;;  %v14058_v57 = vpop.eup %14057  ;;  %v8234_v11 = vmul.f32 %v17651_v46, %v14722_v1  ;;  %v18865_v46 = vld [vmem:[#allocation9_spill] sm:$0xff] }
0x35ad   :  { %v8236_v41 = vadd.f32 %v8234_v11, %v17605_v54  ;;  %v18864_v54 = vld [vmem:[#allocation8_spill] sm:$0xff] }
0x35ae   :  { %v14060_v38 = vpop.eup %14059 }
0x35af   :  { %v14062_v48 = vpop.eup %14061  ;;  %v12643_v19 = vpack.c.bf16 %v14060_v38, %v14056_v24  ;;  %v18867_v38 = vld [vmem:[#allocation21_spill] sm:$0xff] }
0x35b0   :  { %v12641_v51 = vpack.c.bf16 %v14062_v48, %v14058_v57 }
0x35b2   :  { %12642 = vmatprep.subr.bf16.mxu0 %v12641_v51 }
0x35b3   :  { %12644 = vmatpush1.bf16.msra.mxu0 %v12643_v19 }
0x35b4   :  { %12646 = vmatprep.subr.bf16.mxu0 %v14437_v5 }
0x35b6   :  { %10270 = vmatmul.mubr.msk.f32.vlgmr.msra.gmra.mrb[46].mxu0 %vm402_vm1, %v17675_v55 }
0x35b7   :  { %12648 = vmatpush1.bf16.msra.mxu0 %v14439_v9 }
0x35b8   :  { %12650 = vmatprep.subr.bf16.mxu0 %v14441_v10 }
0x35bb   :  { %12652 = vmatpush1.bf16.msra.mxu0 %v14445_v15 }
0x35bc   :  { %12654 = vmatprep.subr.bf16.mxu0 %v14448_v16 }
0x35bf   :  { %12656 = vmatpush1.bf16.msra.mxu0 %v14451_v21 }
0x35c0   :  { %12658 = vmatprep.subr.bf16.mxu0 %v14454_v22 }
0x35c3   :  { %12660 = vmatpush1.bf16.msra.mxu0 %v14457_v27 }
0x35c4   :  { %12662 = vmatprep.subr.bf16.mxu0 %v14460_v28 }
0x35c7   :  { %12664 = vmatpush1.bf16.msra.mxu0 %v14463_v33 }
0x35c8   :  { %12666 = vmatprep.subr.bf16.mxu0 %v14466_v35 }
0x35cb   :  { %12668 = vmatpush1.bf16.msra.mxu0 %v14489_v42 }
0x35cc   :  { %12670 = vmatprep.subr.bf16.mxu0 %v14494_v43 }
0x35cf   :  { %12672 = vmatpush1.bf16.msra.mxu0 %v14503_v49 }
0x35d0   :  { %12674 = vmatprep.subr.bf16.mxu0 %v14511_v52 }
0x35d3   :  { %12676 = vmatpush1.bf16.msra.mxu0 %v14529_v60 }
0x35d4   :  { %12678 = vmatprep.subr.bf16.mxu0 %v14534_v61 }
0x35d7   :  { %12680 = vmatpush1.bf16.msra.mxu0 %v14549_v7 }
0x35d8   :  { %12682 = vmatprep.subr.bf16.mxu0 %v14554_v8 }
0x35db   :  { %12684 = vmatpush1.bf16.msra.mxu0 %v14569_v20 }
0x35dc   :  { %12686 = vmatprep.subr.bf16.mxu0 %v14574_v23 }
0x35df   :  { %12688 = vmatpush1.bf16.msra.mxu0 %v14584_v32 }
0x35e0   :  { %12690 = vmatprep.subr.bf16.mxu0 %v18625_v59 }
0x35e3   :  { %12692 = vmatpush1.bf16.msra.mxu0 %v18626_v53 }
0x35e4   :  { %12694 = vmatprep.subr.bf16.mxu0 %v18627_v6 }
0x35e7   :  { %12696 = vmatpush1.bf16.msra.mxu0 %v18628_v12 }
0x35e8   :  { %12698 = vmatprep.subr.bf16.mxu0 %v18629_v63 }
0x35eb   :  { %12700 = vmatpush1.bf16.msra.mxu0 %v18630_v14 }
0x35ec   :  { %12702 = vmatprep.subr.bf16.mxu0 %v18631_v45 }
0x35ef   :  { %12704 = vmatpush1.bf16.msra.mxu0 %v18632_v34 }
0x35f0   :  { %12706 = vmatprep.subr.bf16.mxu0 %v18633_v0 }
0x35f3   :  { %12708 = vmatpush1.bf16.msra.mxu0 %v18634_v40 }
0x3689   :  { %v8304_v26 = vpop.f32.mrb[46].mxu0 }
0x368a   :  { %v8309_v31 = vadd.f32 %v8304_v26, %v8236_v41  ;;  %v8306_v17 = vpop.f32.mrb[47].mxu0 }
0x368b   :  { %v8310_v2 = vadd.f32 %v8306_v17, %v8237_v50  ;;  %v18869_v17 = vld [vmem:[#allocation22_spill] sm:$0xff] }
0x368c   :  { %v17720_v3 = vadd.f32 %v8309_v31, %v14730_v18 }
0x368d   :  { %v17717_v4 = vadd.f32 %v8310_v2, %v14730_v18 }
0x368f   :  { %8377 = vmatprep.mubr.f32.mxu0 %v17717_v4  ;;  %8384 = vmatprep.subr.mxu1 %v17717_v4 }
0x3690   :  { %8378 = vmatmul.mubr.f32.vlgmr.msra.gmra.mrb[48].mxu0 %v17720_v3  ;;  %8385 = vmatpush1.msra.mxu1 %v17720_v3 }
0x3691   :  { %10271 = vmatmul.mubr.msk.f32.vlgmr.msra.gmra.mrb[20].mxu1 %vm239_vm0, %v17614_v30  ;;  %8730 = vmatprep.mubr.f32.mxu0 %v18615_v37 }
0x3692   :  { %8454 = vmatprep.mubr.f32.mxu1 %v18615_v37 }
0x3695   :  { %10272 = vmatmul.mubr.msk.f32.gmra.mrb[22].mxu1 %vm239_vm0, %v17623_v36 }
0x3696   :  { %8460 = vmatprep.mubr.f32.mxu1 %v18615_v37 }
0x3699   :  { %10273 = vmatmul.mubr.msk.f32.gmra.mrb[24].mxu1 %vm239_vm0, %v17631_v29 }
0x369a   :  { %8466 = vmatprep.mubr.f32.mxu1 %v18615_v37 }
0x369d   :  { %10274 = vmatmul.mubr.msk.f32.gmra.mrb[26].mxu1 %vm239_vm0, %v17504_v13 }
0x369e   :  { %8472 = vmatprep.mubr.f32.mxu1 %v18615_v37 }
0x36a1   :  { %10275 = vmatmul.mubr.msk.f32.gmra.mrb[28].mxu1 %vm239_vm0, %v18863_v62 }
0x36a2   :  { %8478 = vmatprep.mubr.f32.mxu1 %v18615_v37 }
0x36a5   :  { %10276 = vmatmul.mubr.msk.f32.gmra.mrb[30].mxu1 %vm239_vm0, %v18864_v54  ;;  %v18870_v54 = vld [vmem:[#allocation24_spill] sm:$0xff] }
0x36a6   :  { %8484 = vmatprep.mubr.f32.mxu1 %v18615_v37 }
0x36a9   :  { %10277 = vmatmul.mubr.msk.f32.gmra.mrb[32].mxu1 %vm239_vm0, %v18865_v46 }
0x36aa   :  { %8490 = vmatprep.mubr.f32.mxu1 %v18615_v37 }
0x36ad   :  { %10278 = vmatmul.mubr.msk.f32.gmra.mrb[34].mxu1 %vm239_vm0, %v18866_v56 }
0x36ae   :  { %8581 = vmatprep.mubr.f32.mxu1 %v18615_v37 }
0x3763   :  { %v17751_v39 = vpop.f32.mrb[48].mxu0 }
0x3764   :  { %v17753_v24 = vpop.f32.mrb[49].mxu0  ;;  %v8450_v57 = vpop.f32.mrb[20].mxu1 }
0x3765   :  { %v8451_v48 = vadd.f32 %v8450_v57, %v18867_v38  ;;  %v8452_v19 = vpop.f32.mrb[21].mxu1 }
0x3766   :  { %v8453_v51 = vadd.f32 %v8452_v19, %v18867_v38 }
0x3767   :  { %14063 = vtanh.f32 %v8451_v48 }
0x3768   :  { %v8456_v11 = vpop.f32.mrb[22].mxu1  ;;  %14065 = vtanh.f32 %v8453_v51 }
0x3769   :  { %v8457_v41 = vadd.f32 %v8456_v11, %v18868_v25  ;;  %v8458_v26 = vpop.f32.mrb[23].mxu1 }
0x376a   :  { %v8459_v50 = vadd.f32 %v8458_v26, %v18868_v25 }
0x376b   :  { %14067 = vtanh.f32 %v8457_v41 }
0x376c   :  { %14069 = vtanh.f32 %v8459_v50  ;;  %v8462_v31 = vpop.f32.mrb[24].mxu1 }
0x376d   :  { %v8463_v2 = vadd.f32 %v8462_v31, %v18869_v17  ;;  %v8464_v56 = vpop.f32.mrb[25].mxu1 }
0x376e   :  { %v8465_v46 = vadd.f32 %v8464_v56, %v18869_v17 }
0x376f   :  { %14071 = vtanh.f32 %v8463_v2 }
0x3770   :  { %v8468_v57 = vpop.f32.mrb[26].mxu1  ;;  %14073 = vtanh.f32 %v8465_v46 }
0x3771   :  { %v8469_v19 = vadd.f32 %v8468_v57, %v18870_v54  ;;  %v8470_v38 = vpop.f32.mrb[27].mxu1  ;;  %v14064_v11 = vpop.eup %14063  ;;  %v18871_v57 = vld [vmem:[#allocation26_spill] sm:$0xff] }
0x3772   :  { %v8471_v48 = vadd.f32 %v8470_v38, %v18870_v54  ;;  %v14066_v51 = vpop.eup %14065 }
0x3773   :  { %14075 = vtanh.f32 %v8469_v19 }
0x3774   :  { %14077 = vtanh.f32 %v8471_v48  ;;  %v8474_v41 = vpop.f32.mrb[28].mxu1 }
0x3775   :  { %v14068_v26 = vpop.eup %14067  ;;  %v8475_v50 = vadd.f32 %v8474_v41, %v18621_v58  ;;  %v8476_v31 = vpop.f32.mrb[29].mxu1 }
0x3776   :  { %v14070_v25 = vpop.eup %14069  ;;  %v8477_v56 = vadd.f32 %v8476_v31, %v18621_v58  ;;  %v12711_v17 = vpack.c.bf16 %v14068_v26, %v14064_v11 }
0x3777   :  { %v12709_v2 = vpack.c.bf16 %v14070_v25, %v14066_v51  ;;  %14079 = vtanh.f32 %v8475_v50 }
0x3778   :  { %v8480_v62 = vpop.f32.mrb[30].mxu1  ;;  %14081 = vtanh.f32 %v8477_v56 }
0x3779   :  { %v8481_v46 = vadd.f32 %v8480_v62, %v18871_v57  ;;  %v8482_v13 = vpop.f32.mrb[31].mxu1  ;;  %12710 = vmatprep.subr.bf16.mxu1 %v12709_v2  ;;  %v14072_v19 = vpop.eup %14071 }
0x377a   :  { %v8483_v38 = vadd.f32 %v8482_v13, %v18871_v57  ;;  %12712 = vmatpush1.bf16.msra.mxu1 %v12711_v17  ;;  %v14074_v48 = vpop.eup %14073 }
0x377b   :  { %14083 = vtanh.f32 %v8481_v46 }
0x377c   :  { %14085 = vtanh.f32 %v8483_v38  ;;  %v8486_v41 = vpop.f32.mrb[32].mxu1 }
0x377d   :  { %v14076_v54 = vpop.eup %14075  ;;  %v8487_v31 = vadd.f32 %v8486_v41, %v18623_v47  ;;  %v8488_v11 = vpop.f32.mrb[33].mxu1 }
0x377e   :  { %v14078_v25 = vpop.eup %14077  ;;  %v8489_v51 = vadd.f32 %v8488_v11, %v18623_v47  ;;  %v12715_v26 = vpack.c.bf16 %v14076_v54, %v14072_v19 }
0x377f   :  { %v12713_v62 = vpack.c.bf16 %v14078_v25, %v14074_v48  ;;  %14087 = vtanh.f32 %v8487_v31 }
0x3780   :  { %v8492_v50 = vpop.f32.mrb[34].mxu1  ;;  %14089 = vtanh.f32 %v8489_v51  ;;  %v8514_v51 = vmul.f32 %v17753_v24, %v14722_v1  ;;  %v18875_v24 = vld [vmem:[#allocation9_spill] sm:$0xff] }
0x3781   :  { %v8493_v56 = vadd.f32 %v8492_v50, %v18624_v44  ;;  %v8494_v13 = vpop.f32.mrb[35].mxu1  ;;  %12714 = vmatprep.subr.bf16.mxu1 %v12713_v62  ;;  %v14080_v2 = vpop.eup %14079 }
0x3782   :  { %v8495_v17 = vadd.f32 %v8494_v13, %v18624_v44  ;;  %12716 = vmatpush1.bf16.msra.mxu1 %v12715_v26  ;;  %v14082_v46 = vpop.eup %14081 }
0x3783   :  { %14091 = vtanh.f32 %v8493_v56  ;;  %v8516_v56 = vadd.f32 %v8514_v51, %v17717_v4  ;;  %v18872_v4 = vld [vmem:[#allocation19_spill] sm:$0xff] }
0x3784   :  { %14093 = vtanh.f32 %v8495_v17  ;;  %v18878_v51 = vld [vmem:[#allocation23_spill] sm:$0xff] }
0x3785   :  { %v14084_v38 = vpop.eup %14083 }
0x3786   :  { %v14086_v41 = vpop.eup %14085  ;;  %v12719_v57 = vpack.c.bf16 %v14084_v38, %v14080_v2 }
0x3787   :  { %v12717_v11 = vpack.c.bf16 %v14086_v41, %v14082_v46  ;;  %v18876_v41 = vld [vmem:[#allocation10_spill] sm:$0xff] }
0x3789   :  { %12718 = vmatprep.subr.bf16.mxu1 %v12717_v11  ;;  %v14088_v54 = vpop.eup %14087 }
0x378a   :  { %12720 = vmatpush1.bf16.msra.mxu1 %v12719_v57  ;;  %v14090_v19 = vpop.eup %14089  ;;  %v8513_v57 = vmul.f32 %v17751_v39, %v14722_v1  ;;  %v18874_v39 = vld [vmem:[#allocation8_spill] sm:$0xff] }
0x378c   :  { %v8515_v26 = vadd.f32 %v8513_v57, %v17720_v3  ;;  %v18873_v3 = vld [vmem:[#allocation20_spill] sm:$0xff] }
0x378d   :  { %v14092_v48 = vpop.eup %14091 }
0x378e   :  { %v14094_v31 = vpop.eup %14093  ;;  %v12723_v25 = vpack.c.bf16 %v14092_v48, %v14088_v54  ;;  %v18877_v48 = vld [vmem:[#allocation21_spill] sm:$0xff] }
0x378f   :  { %v12721_v62 = vpack.c.bf16 %v14094_v31, %v14090_v19 }
0x3791   :  { %12722 = vmatprep.subr.bf16.mxu1 %v12721_v62 }
0x3792   :  { %12724 = vmatpush1.bf16.msra.mxu1 %v12723_v25 }
0x3793   :  { %12726 = vmatprep.subr.bf16.mxu1 %v14437_v5 }
0x3795   :  { %10279 = vmatmul.mubr.msk.f32.vlgmr.msra.gmra.mrb[36].mxu1 %vm402_vm1, %v17675_v55 }
0x3796   :  { %12728 = vmatpush1.bf16.msra.mxu1 %v14439_v9 }
0x3797   :  { %12730 = vmatprep.subr.bf16.mxu1 %v14441_v10 }
0x379a   :  { %12732 = vmatpush1.bf16.msra.mxu1 %v14445_v15 }
0x379b   :  { %12734 = vmatprep.subr.bf16.mxu1 %v14448_v16 }
0x379e   :  { %12736 = vmatpush1.bf16.msra.mxu1 %v14451_v21 }
0x379f   :  { %12738 = vmatprep.subr.bf16.mxu1 %v14454_v22 }
0x37a2   :  { %12740 = vmatpush1.bf16.msra.mxu1 %v14457_v27 }
0x37a3   :  { %12742 = vmatprep.subr.bf16.mxu1 %v14460_v28 }
0x37a6   :  { %12744 = vmatpush1.bf16.msra.mxu1 %v14463_v33 }
0x37a7   :  { %12746 = vmatprep.subr.bf16.mxu1 %v14466_v35 }
0x37aa   :  { %12748 = vmatpush1.bf16.msra.mxu1 %v14489_v42 }
0x37ab   :  { %12750 = vmatprep.subr.bf16.mxu1 %v14494_v43 }
0x37ae   :  { %12752 = vmatpush1.bf16.msra.mxu1 %v14503_v49 }
0x37af   :  { %12754 = vmatprep.subr.bf16.mxu1 %v14511_v52 }
0x37b2   :  { %12756 = vmatpush1.bf16.msra.mxu1 %v14529_v60 }
0x37b3   :  { %12758 = vmatprep.subr.bf16.mxu1 %v14534_v61 }
0x37b6   :  { %12760 = vmatpush1.bf16.msra.mxu1 %v14549_v7 }
0x37b7   :  { %12762 = vmatprep.subr.bf16.mxu1 %v14554_v8 }
0x37ba   :  { %12764 = vmatpush1.bf16.msra.mxu1 %v14569_v20 }
0x37bb   :  { %12766 = vmatprep.subr.bf16.mxu1 %v14574_v23 }
0x37be   :  { %12768 = vmatpush1.bf16.msra.mxu1 %v14584_v32 }
0x37bf   :  { %12770 = vmatprep.subr.bf16.mxu1 %v18625_v59 }
0x37c2   :  { %12772 = vmatpush1.bf16.msra.mxu1 %v18626_v53 }
0x37c3   :  { %12774 = vmatprep.subr.bf16.mxu1 %v18627_v6 }
0x37c6   :  { %12776 = vmatpush1.bf16.msra.mxu1 %v18628_v12 }
0x37c7   :  { %12778 = vmatprep.subr.bf16.mxu1 %v18629_v63 }
0x37ca   :  { %12780 = vmatpush1.bf16.msra.mxu1 %v18630_v14 }
0x37cb   :  { %12782 = vmatprep.subr.bf16.mxu1 %v18631_v45 }
0x37ce   :  { %12784 = vmatpush1.bf16.msra.mxu1 %v18632_v34 }
0x37cf   :  { %12786 = vmatprep.subr.bf16.mxu1 %v18633_v0 }
0x37d2   :  { %12788 = vmatpush1.bf16.msra.mxu1 %v18634_v40 }
0x3868   :  { %v8583_v50 = vpop.f32.mrb[36].mxu1 }
0x3869   :  { %v8588_v13 = vadd.f32 %v8583_v50, %v8515_v26  ;;  %v8585_v17 = vpop.f32.mrb[37].mxu1 }
0x386a   :  { %v8589_v2 = vadd.f32 %v8585_v17, %v8516_v56  ;;  %v18879_v17 = vld [vmem:[#allocation22_spill] sm:$0xff] }
0x386b   :  { %v17812_v46 = vadd.f32 %v8588_v13, %v14730_v18 }
0x386c   :  { %v17815_v38 = vadd.f32 %v8589_v2, %v14730_v18 }
0x386d   :  { %8593 = vst [vmem:[#allocation5 + $0x60] sm:$0xff] %v17812_v46 }
0x386e   :  { %8594 = vst [vmem:[#allocation5 + $0x68] sm:$0xff] %v17815_v38  ;;  %8659 = vmatprep.mubr.f32.mxu1 %v17815_v38  ;;  %8666 = vmatprep.subr.mxu0 %v17815_v38 }
0x386f   :  { %8660 = vmatmul.mubr.f32.vlgmr.msra.gmra.mrb[38].mxu1 %v17812_v46  ;;  %8667 = vmatpush1.msra.mxu0 %v17812_v46 }
0x3870   :  { %10280 = vmatmul.mubr.msk.f32.vlgmr.msra.gmra.mrb[50].mxu0 %vm239_vm0, %v17614_v30  ;;  %9009 = vmatprep.mubr.f32.mxu1 %v18615_v37 }
0x3871   :  { %8736 = vmatprep.mubr.f32.mxu0 %v18615_v37 }
0x3874   :  { %10281 = vmatmul.mubr.msk.f32.gmra.mrb[52].mxu0 %vm239_vm0, %v17623_v36 }
0x3875   :  { %8742 = vmatprep.mubr.f32.mxu0 %v18615_v37 }
0x3878   :  { %10282 = vmatmul.mubr.msk.f32.gmra.mrb[54].mxu0 %vm239_vm0, %v17631_v29 }
0x3879   :  { %8748 = vmatprep.mubr.f32.mxu0 %v18615_v37 }
0x387c   :  { %10283 = vmatmul.mubr.msk.f32.gmra.mrb[56].mxu0 %vm239_vm0, %v18872_v4 }
0x387d   :  { %8754 = vmatprep.mubr.f32.mxu0 %v18615_v37 }
0x3880   :  { %10284 = vmatmul.mubr.msk.f32.gmra.mrb[58].mxu0 %vm239_vm0, %v18873_v3 }
0x3881   :  { %8760 = vmatprep.mubr.f32.mxu0 %v18615_v37 }
0x3884   :  { %10285 = vmatmul.mubr.msk.f32.gmra.mrb[60].mxu0 %vm239_vm0, %v18874_v39 }
0x3885   :  { %8766 = vmatprep.mubr.f32.mxu0 %v18615_v37 }
0x3888   :  { %10286 = vmatmul.mubr.msk.f32.gmra.mrb[62].mxu0 %vm239_vm0, %v18875_v24  ;;  %v18880_v24 = vld [vmem:[#allocation24_spill] sm:$0xff] }
0x3889   :  { %8772 = vmatprep.mubr.f32.mxu0 %v18615_v37 }
0x388c   :  { %10287 = vmatmul.mubr.msk.f32.gmra.mrb[64].mxu0 %vm239_vm0, %v18876_v41 }
0x388d   :  { %8863 = vmatprep.mubr.f32.mxu0 %v18615_v37 }
0x3942   :  { %v17848_v11 = vpop.f32.mrb[38].mxu1 }
0x3943   :  { %v17850_v54 = vpop.f32.mrb[39].mxu1  ;;  %v8732_v19 = vpop.f32.mrb[50].mxu0 }
0x3944   :  { %v8733_v31 = vadd.f32 %v8732_v19, %v18877_v48  ;;  %v8734_v25 = vpop.f32.mrb[51].mxu0 }
0x3945   :  { %v8735_v62 = vadd.f32 %v8734_v25, %v18877_v48 }
0x3946   :  { %14095 = vtanh.f32 %v8733_v31 }
0x3947   :  { %v8738_v57 = vpop.f32.mrb[52].mxu0  ;;  %14097 = vtanh.f32 %v8735_v62 }
0x3948   :  { %v8739_v26 = vadd.f32 %v8738_v57, %v18878_v51  ;;  %v8740_v50 = vpop.f32.mrb[53].mxu0 }
0x3949   :  { %v8741_v56 = vadd.f32 %v8740_v50, %v18878_v51 }
0x394a   :  { %14099 = vtanh.f32 %v8739_v26 }
0x394b   :  { %14101 = vtanh.f32 %v8741_v56  ;;  %v8744_v13 = vpop.f32.mrb[54].mxu0 }
0x394c   :  { %v8745_v2 = vadd.f32 %v8744_v13, %v18879_v17  ;;  %v8746_v4 = vpop.f32.mrb[55].mxu0 }
0x394d   :  { %v8747_v3 = vadd.f32 %v8746_v4, %v18879_v17 }
0x394e   :  { %14103 = vtanh.f32 %v8745_v2 }
0x394f   :  { %v8750_v39 = vpop.f32.mrb[56].mxu0  ;;  %14105 = vtanh.f32 %v8747_v3 }
0x3950   :  { %v8751_v41 = vadd.f32 %v8750_v39, %v18880_v24  ;;  %v8752_v19 = vpop.f32.mrb[57].mxu0  ;;  %v14096_v25 = vpop.eup %14095  ;;  %v18881_v39 = vld [vmem:[#allocation26_spill] sm:$0xff] }
0x3951   :  { %v8753_v31 = vadd.f32 %v8752_v19, %v18880_v24  ;;  %v14098_v62 = vpop.eup %14097 }
0x3952   :  { %14107 = vtanh.f32 %v8751_v41 }
0x3953   :  { %14109 = vtanh.f32 %v8753_v31  ;;  %v8756_v57 = vpop.f32.mrb[58].mxu0 }
0x3954   :  { %v14100_v26 = vpop.eup %14099  ;;  %v8757_v50 = vadd.f32 %v8756_v57, %v18621_v58  ;;  %v8758_v56 = vpop.f32.mrb[59].mxu0 }
0x3955   :  { %v14102_v13 = vpop.eup %14101  ;;  %v8759_v4 = vadd.f32 %v8758_v56, %v18621_v58  ;;  %v12791_v17 = vpack.c.bf16 %v14100_v26, %v14096_v25 }
0x3956   :  { %v12789_v2 = vpack.c.bf16 %v14102_v13, %v14098_v62  ;;  %14111 = vtanh.f32 %v8757_v50 }
0x3957   :  { %v8762_v51 = vpop.f32.mrb[60].mxu0  ;;  %14113 = vtanh.f32 %v8759_v4 }
0x3958   :  { %v8763_v3 = vadd.f32 %v8762_v51, %v18881_v39  ;;  %v8764_v48 = vpop.f32.mrb[61].mxu0  ;;  %12790 = vmatprep.subr.bf16.mxu0 %v12789_v2  ;;  %v14104_v19 = vpop.eup %14103 }
0x3959   :  { %v8765_v41 = vadd.f32 %v8764_v48, %v18881_v39  ;;  %12792 = vmatpush1.bf16.msra.mxu0 %v12791_v17  ;;  %v14106_v31 = vpop.eup %14105 }
0x395a   :  { %14115 = vtanh.f32 %v8763_v3 }
0x395b   :  { %14117 = vtanh.f32 %v8765_v41  ;;  %v8768_v57 = vpop.f32.mrb[62].mxu0 }
0x395c   :  { %v14108_v24 = vpop.eup %14107  ;;  %v8769_v56 = vadd.f32 %v8768_v57, %v18623_v47  ;;  %v8770_v25 = vpop.f32.mrb[63].mxu0 }
0x395d   :  { %v14110_v62 = vpop.eup %14109  ;;  %v8771_v26 = vadd.f32 %v8770_v25, %v18623_v47  ;;  %v12795_v50 = vpack.c.bf16 %v14108_v24, %v14104_v19 }
0x395e   :  { %v12793_v51 = vpack.c.bf16 %v14110_v62, %v14106_v31  ;;  %14119 = vtanh.f32 %v8769_v56 }
0x395f   :  { %v8774_v13 = vpop.f32.mrb[64].mxu0  ;;  %14121 = vtanh.f32 %v8771_v26  ;;  %v8796_v26 = vmul.f32 %v17850_v54, %v14722_v1 }
0x3960   :  { %v8775_v4 = vadd.f32 %v8774_v13, %v18624_v44  ;;  %v8776_v48 = vpop.f32.mrb[65].mxu0  ;;  %12794 = vmatprep.subr.bf16.mxu0 %v12793_v51  ;;  %v14112_v2 = vpop.eup %14111 }
0x3961   :  { %v8777_v17 = vadd.f32 %v8776_v48, %v18624_v44  ;;  %12796 = vmatpush1.bf16.msra.mxu0 %v12795_v50  ;;  %v14114_v3 = vpop.eup %14113 }
0x3962   :  { %14123 = vtanh.f32 %v8775_v4  ;;  %v8798_v4 = vadd.f32 %v8796_v26, %v17815_v38  ;;  %v17963_v38 = vld [vmem:[%s18320_s3 + $0x38] sm:$0xff] }
0x3963   :  { %14125 = vtanh.f32 %v8777_v17  ;;  %18886 = vst [vmem:[#allocation12_spill] sm:$0xff] %v17963_v38 }
0x3964   :  { %v14116_v41 = vpop.eup %14115 }
0x3965   :  { %v14118_v57 = vpop.eup %14117  ;;  %v12799_v39 = vpack.c.bf16 %v14116_v41, %v14112_v2 }
0x3966   :  { %v12797_v25 = vpack.c.bf16 %v14118_v57, %v14114_v3 }
0x3968   :  { %12798 = vmatprep.subr.bf16.mxu0 %v12797_v25  ;;  %v14120_v24 = vpop.eup %14119  ;;  %v18887_v25 = vld [vmem:[#allocation21_spill] sm:$0xff] }
0x3969   :  { %12800 = vmatpush1.bf16.msra.mxu0 %v12799_v39  ;;  %v14122_v19 = vpop.eup %14121  ;;  %v8795_v39 = vmul.f32 %v17848_v11, %v14722_v1 }
0x396b   :  { %v8797_v50 = vadd.f32 %v8795_v39, %v17812_v46  ;;  %v17931_v46 = vld [vmem:[%s18320_s3 + $0x18] sm:$0xff] }
0x396c   :  { %v14124_v31 = vpop.eup %14123  ;;  %18882 = vst [vmem:[#allocation25_spill] sm:$0xff] %v17931_v46 }
0x396d   :  { %v14126_v56 = vpop.eup %14125  ;;  %v12803_v62 = vpack.c.bf16 %v14124_v31, %v14120_v24 }
0x396e   :  { %v12801_v51 = vpack.c.bf16 %v14126_v56, %v14122_v19 }
0x3970   :  { %12802 = vmatprep.subr.bf16.mxu0 %v12801_v51 }
0x3971   :  { %12804 = vmatpush1.bf16.msra.mxu0 %v12803_v62  ;;  %v18888_v62 = vld [vmem:[#allocation23_spill] sm:$0xff] }
0x3972   :  { %12806 = vmatprep.subr.bf16.mxu0 %v14437_v5 }
0x3974   :  { %10288 = vmatmul.mubr.msk.f32.vlgmr.msra.gmra.mrb[66].mxu0 %vm402_vm1, %v17675_v55 }
0x3975   :  { %12808 = vmatpush1.bf16.msra.mxu0 %v14439_v9 }
0x3976   :  { %12810 = vmatprep.subr.bf16.mxu0 %v14441_v10 }
0x3979   :  { %12812 = vmatpush1.bf16.msra.mxu0 %v14445_v15 }
0x397a   :  { %12814 = vmatprep.subr.bf16.mxu0 %v14448_v16 }
0x397d   :  { %12816 = vmatpush1.bf16.msra.mxu0 %v14451_v21 }
0x397e   :  { %12818 = vmatprep.subr.bf16.mxu0 %v14454_v22 }
0x3981   :  { %12820 = vmatpush1.bf16.msra.mxu0 %v14457_v27 }
0x3982   :  { %12822 = vmatprep.subr.bf16.mxu0 %v14460_v28 }
0x3985   :  { %12824 = vmatpush1.bf16.msra.mxu0 %v14463_v33 }
0x3986   :  { %12826 = vmatprep.subr.bf16.mxu0 %v14466_v35 }
0x3989   :  { %12828 = vmatpush1.bf16.msra.mxu0 %v14489_v42 }
0x398a   :  { %12830 = vmatprep.subr.bf16.mxu0 %v14494_v43 }
0x398d   :  { %12832 = vmatpush1.bf16.msra.mxu0 %v14503_v49 }
0x398e   :  { %12834 = vmatprep.subr.bf16.mxu0 %v14511_v52 }
0x3991   :  { %12836 = vmatpush1.bf16.msra.mxu0 %v14529_v60 }
0x3992   :  { %12838 = vmatprep.subr.bf16.mxu0 %v14534_v61 }
0x3995   :  { %12840 = vmatpush1.bf16.msra.mxu0 %v14549_v7 }
0x3996   :  { %12842 = vmatprep.subr.bf16.mxu0 %v14554_v8 }
0x3999   :  { %12844 = vmatpush1.bf16.msra.mxu0 %v14569_v20 }
0x399a   :  { %12846 = vmatprep.subr.bf16.mxu0 %v14574_v23 }
0x399d   :  { %12848 = vmatpush1.bf16.msra.mxu0 %v14584_v32 }
0x399e   :  { %12850 = vmatprep.subr.bf16.mxu0 %v18625_v59 }
0x39a1   :  { %12852 = vmatpush1.bf16.msra.mxu0 %v18626_v53 }
0x39a2   :  { %12854 = vmatprep.subr.bf16.mxu0 %v18627_v6 }
0x39a5   :  { %12856 = vmatpush1.bf16.msra.mxu0 %v18628_v12 }
0x39a6   :  { %12858 = vmatprep.subr.bf16.mxu0 %v18629_v63 }
0x39a9   :  { %12860 = vmatpush1.bf16.msra.mxu0 %v18630_v14 }
0x39aa   :  { %12862 = vmatprep.subr.bf16.mxu0 %v18631_v45 }
0x39ad   :  { %12864 = vmatpush1.bf16.msra.mxu0 %v18632_v34 }
0x39ae   :  { %12866 = vmatprep.subr.bf16.mxu0 %v18633_v0 }
0x39b1   :  { %12868 = vmatpush1.bf16.msra.mxu0 %v18634_v40 }
0x3a47   :  { %v8865_v13 = vpop.f32.mrb[66].mxu0 }
0x3a48   :  { %v8870_v48 = vadd.f32 %v8865_v13, %v8797_v50  ;;  %v8867_v17 = vpop.f32.mrb[67].mxu0  ;;  %v18889_v13 = vld [vmem:[#allocation22_spill] sm:$0xff] }
0x3a49   :  { %v8871_v2 = vadd.f32 %v8867_v17, %v8798_v4 }
0x3a4a   :  { %v17912_v41 = vadd.f32 %v8870_v48, %v14730_v18 }
0x3a4b   :  { %v17909_v3 = vadd.f32 %v8871_v2, %v14730_v18 }
0x3a4d   :  { %8938 = vmatprep.mubr.f32.mxu0 %v17909_v3  ;;  %8945 = vmatprep.subr.mxu1 %v17909_v3 }
0x3a4e   :  { %8939 = vmatmul.mubr.f32.vlgmr.msra.gmra.mrb[68].mxu0 %v17912_v41  ;;  %8946 = vmatpush1.msra.mxu1 %v17912_v41 }
0x3a4f   :  { %10289 = vmatmul.mubr.msk.f32.vlgmr.msra.gmra.mrb[40].mxu1 %vm239_vm0, %v17614_v30  ;;  %9288 = vmatprep.mubr.f32.mxu0 %v18615_v37  ;;  %v17939_v30 = vld [vmem:[%s18320_s3 + $0x20] sm:$0xff] }
0x3a50   :  { %9015 = vmatprep.mubr.f32.mxu1 %v18615_v37  ;;  %18883 = vst [vmem:[#allocation27_spill] sm:$0xff] %v17939_v30 }
0x3a53   :  { %10290 = vmatmul.mubr.msk.f32.gmra.mrb[42].mxu1 %vm239_vm0, %v17623_v36  ;;  %v17947_v36 = vld [vmem:[%s18320_s3 + $0x28] sm:$0xff] }
0x3a54   :  { %9021 = vmatprep.mubr.f32.mxu1 %v18615_v37  ;;  %18884 = vst [vmem:[#allocation28_spill] sm:$0xff] %v17947_v36 }
0x3a57   :  { %10291 = vmatmul.mubr.msk.f32.gmra.mrb[44].mxu1 %vm239_vm0, %v17631_v29  ;;  %v17955_v29 = vld [vmem:[%s18320_s3 + $0x30] sm:$0xff] }
0x3a58   :  { %9027 = vmatprep.mubr.f32.mxu1 %v18615_v37  ;;  %18885 = vst [vmem:[#allocation11_spill] sm:$0xff] %v17955_v29 }
0x3a5b   :  { %10292 = vmatmul.mubr.msk.f32.gmra.mrb[46].mxu1 %vm239_vm0, %v17931_v46 }
0x3a5c   :  { %9033 = vmatprep.mubr.f32.mxu1 %v18615_v37 }
0x3a5f   :  { %10293 = vmatmul.mubr.msk.f32.gmra.mrb[48].mxu1 %vm239_vm0, %v17939_v30 }
0x3a60   :  { %9039 = vmatprep.mubr.f32.mxu1 %v18615_v37 }
0x3a63   :  { %10294 = vmatmul.mubr.msk.f32.gmra.mrb[50].mxu1 %vm239_vm0, %v17947_v36 }
0x3a64   :  { %9045 = vmatprep.mubr.f32.mxu1 %v18615_v37 }
0x3a67   :  { %10295 = vmatmul.mubr.msk.f32.gmra.mrb[52].mxu1 %vm239_vm0, %v17955_v29 }
0x3a68   :  { %9051 = vmatprep.mubr.f32.mxu1 %v18615_v37 }
0x3a6b   :  { %10296 = vmatmul.mubr.msk.f32.gmra.mrb[54].mxu1 %vm239_vm0, %v17963_v38 }
0x3a6c   :  { %9142 = vmatprep.mubr.f32.mxu1 %v18615_v37 }
0x3b21   :  { %v17968_v11 = vpop.f32.mrb[68].mxu0 }
0x3b22   :  { %v17970_v54 = vpop.f32.mrb[69].mxu0  ;;  %v9011_v57 = vpop.f32.mrb[40].mxu1 }
0x3b23   :  { %v9012_v24 = vadd.f32 %v9011_v57, %v18887_v25  ;;  %v9013_v19 = vpop.f32.mrb[41].mxu1  ;;  %v18890_v57 = vld [vmem:[#allocation24_spill] sm:$0xff] }
0x3b24   :  { %v9014_v31 = vadd.f32 %v9013_v19, %v18887_v25 }
0x3b25   :  { %14127 = vtanh.f32 %v9012_v24 }
0x3b26   :  { %v9017_v56 = vpop.f32.mrb[42].mxu1  ;;  %14129 = vtanh.f32 %v9014_v31 }
0x3b27   :  { %v9018_v51 = vadd.f32 %v9017_v56, %v18888_v62  ;;  %v9019_v39 = vpop.f32.mrb[43].mxu1 }
0x3b28   :  { %v9020_v26 = vadd.f32 %v9019_v39, %v18888_v62 }
0x3b29   :  { %14131 = vtanh.f32 %v9018_v51 }
0x3b2a   :  { %14133 = vtanh.f32 %v9020_v26  ;;  %v9023_v50 = vpop.f32.mrb[44].mxu1 }
0x3b2b   :  { %v9024_v4 = vadd.f32 %v9023_v50, %v18889_v13  ;;  %v9025_v48 = vpop.f32.mrb[45].mxu1 }
0x3b2c   :  { %v9026_v17 = vadd.f32 %v9025_v48, %v18889_v13 }
0x3b2d   :  { %14135 = vtanh.f32 %v9024_v4 }
0x3b2e   :  { %v9029_v2 = vpop.f32.mrb[46].mxu1  ;;  %14137 = vtanh.f32 %v9026_v17 }
0x3b2f   :  { %v9030_v19 = vadd.f32 %v9029_v2, %v18890_v57  ;;  %v9031_v25 = vpop.f32.mrb[47].mxu1  ;;  %v14128_v56 = vpop.eup %14127  ;;  %v18891_v2 = vld [vmem:[#allocation26_spill] sm:$0xff] }
0x3b30   :  { %v9032_v24 = vadd.f32 %v9031_v25, %v18890_v57  ;;  %v14130_v31 = vpop.eup %14129 }
0x3b31   :  { %14139 = vtanh.f32 %v9030_v19 }
0x3b32   :  { %14141 = vtanh.f32 %v9032_v24  ;;  %v9035_v51 = vpop.f32.mrb[48].mxu1 }
0x3b33   :  { %v14132_v39 = vpop.eup %14131  ;;  %v9036_v26 = vadd.f32 %v9035_v51, %v18621_v58  ;;  %v9037_v50 = vpop.f32.mrb[49].mxu1 }
0x3b34   :  { %v14134_v62 = vpop.eup %14133  ;;  %v9038_v48 = vadd.f32 %v9037_v50, %v18621_v58  ;;  %v12871_v13 = vpack.c.bf16 %v14132_v39, %v14128_v56 }
0x3b35   :  { %v12869_v4 = vpack.c.bf16 %v14134_v62, %v14130_v31  ;;  %14143 = vtanh.f32 %v9036_v26 }
0x3b36   :  { %v9041_v38 = vpop.f32.mrb[50].mxu1  ;;  %14145 = vtanh.f32 %v9038_v48 }
0x3b37   :  { %v9042_v17 = vadd.f32 %v9041_v38, %v18891_v2  ;;  %v9043_v29 = vpop.f32.mrb[51].mxu1  ;;  %12870 = vmatprep.subr.bf16.mxu1 %v12869_v4  ;;  %v14136_v19 = vpop.eup %14135 }
0x3b38   :  { %v9044_v25 = vadd.f32 %v9043_v29, %v18891_v2  ;;  %12872 = vmatpush1.bf16.msra.mxu1 %v12871_v13  ;;  %v14138_v24 = vpop.eup %14137 }
0x3b39   :  { %14147 = vtanh.f32 %v9042_v17 }
0x3b3a   :  { %14149 = vtanh.f32 %v9044_v25  ;;  %v9047_v51 = vpop.f32.mrb[52].mxu1 }
0x3b3b   :  { %v14140_v57 = vpop.eup %14139  ;;  %v9048_v50 = vadd.f32 %v9047_v51, %v18623_v47  ;;  %v9049_v56 = vpop.f32.mrb[53].mxu1 }
0x3b3c   :  { %v14142_v62 = vpop.eup %14141  ;;  %v9050_v31 = vadd.f32 %v9049_v56, %v18623_v47  ;;  %v12875_v39 = vpack.c.bf16 %v14140_v57, %v14136_v19 }
0x3b3d   :  { %v12873_v38 = vpack.c.bf16 %v14142_v62, %v14138_v24  ;;  %14151 = vtanh.f32 %v9048_v50 }
0x3b3e   :  { %v9053_v26 = vpop.f32.mrb[54].mxu1  ;;  %14153 = vtanh.f32 %v9050_v31 }
0x3b3f   :  { %v9054_v48 = vadd.f32 %v9053_v26, %v18624_v44  ;;  %v9055_v29 = vpop.f32.mrb[55].mxu1  ;;  %12874 = vmatprep.subr.bf16.mxu1 %v12873_v38  ;;  %v14144_v4 = vpop.eup %14143 }
0x3b40   :  { %v9056_v13 = vadd.f32 %v9055_v29, %v18624_v44  ;;  %12876 = vmatpush1.bf16.msra.mxu1 %v12875_v39  ;;  %v14146_v17 = vpop.eup %14145 }
0x3b41   :  { %14155 = vtanh.f32 %v9054_v48 }
0x3b42   :  { %14157 = vtanh.f32 %v9056_v13 }
0x3b43   :  { %v14148_v25 = vpop.eup %14147 }
0x3b44   :  { %v14150_v51 = vpop.eup %14149  ;;  %v12879_v2 = vpack.c.bf16 %v14148_v25, %v14144_v4  ;;  %v18893_v25 = vld [vmem:[#allocation12_spill] sm:$0xff] }
0x3b45   :  { %v12877_v56 = vpack.c.bf16 %v14150_v51, %v14146_v17 }
0x3b47   :  { %12878 = vmatprep.subr.bf16.mxu1 %v12877_v56  ;;  %v14152_v57 = vpop.eup %14151 }
0x3b48   :  { %12880 = vmatpush1.bf16.msra.mxu1 %v12879_v2  ;;  %v14154_v19 = vpop.eup %14153  ;;  %v9075_v2 = vmul.f32 %v17970_v54, %v14722_v1  ;;  %v18892_v54 = vld [vmem:[#allocation11_spill] sm:$0xff] }
0x3b4a   :  { %v9077_v26 = vadd.f32 %v9075_v2, %v17909_v3  ;;  %v18041_v3 = vld [vmem:[%s18320_s3] sm:$0xff] }
0x3b4b   :  { %v14156_v24 = vpop.eup %14155 }
0x3b4c   :  { %v14158_v50 = vpop.eup %14157  ;;  %v12883_v62 = vpack.c.bf16 %v14156_v24, %v14152_v57 }
0x3b4d   :  { %v12881_v38 = vpack.c.bf16 %v14158_v50, %v14154_v19  ;;  %v18894_v19 = vld [vmem:[#allocation21_spill] sm:$0xff] }
0x3b4f   :  { %12882 = vmatprep.subr.bf16.mxu1 %v12881_v38 }
0x3b50   :  { %12884 = vmatpush1.bf16.msra.mxu1 %v12883_v62 }
0x3b51   :  { %12886 = vmatprep.subr.bf16.mxu1 %v14437_v5 }
0x3b53   :  { %10297 = vmatmul.mubr.msk.f32.vlgmr.msra.gmra.mrb[56].mxu1 %vm402_vm1, %v17675_v55  ;;  %v9074_v55 = vmul.f32 %v17968_v11, %v14722_v1  ;;  %v18058_v11 = vld [vmem:[%s18320_s3 + $0x10] sm:$0xff] }
0x3b54   :  { %12888 = vmatpush1.bf16.msra.mxu1 %v14439_v9 }
0x3b55   :  { %12890 = vmatprep.subr.bf16.mxu1 %v14441_v10  ;;  %v9076_v31 = vadd.f32 %v9074_v55, %v17912_v41  ;;  %v18050_v41 = vld [vmem:[%s18320_s3 + $0x8] sm:$0xff]  ;;  %v18895_v55 = vld [vmem:[#allocation23_spill] sm:$0xff] }
0x3b58   :  { %12892 = vmatpush1.bf16.msra.mxu1 %v14445_v15 }
0x3b59   :  { %12894 = vmatprep.subr.bf16.mxu1 %v14448_v16 }
0x3b5c   :  { %12896 = vmatpush1.bf16.msra.mxu1 %v14451_v21 }
0x3b5d   :  { %12898 = vmatprep.subr.bf16.mxu1 %v14454_v22 }
0x3b60   :  { %12900 = vmatpush1.bf16.msra.mxu1 %v14457_v27 }
0x3b61   :  { %12902 = vmatprep.subr.bf16.mxu1 %v14460_v28 }
0x3b64   :  { %12904 = vmatpush1.bf16.msra.mxu1 %v14463_v33 }
0x3b65   :  { %12906 = vmatprep.subr.bf16.mxu1 %v14466_v35 }
0x3b68   :  { %12908 = vmatpush1.bf16.msra.mxu1 %v14489_v42 }
0x3b69   :  { %12910 = vmatprep.subr.bf16.mxu1 %v14494_v43 }
0x3b6c   :  { %12912 = vmatpush1.bf16.msra.mxu1 %v14503_v49 }
0x3b6d   :  { %12914 = vmatprep.subr.bf16.mxu1 %v14511_v52 }
0x3b70   :  { %12916 = vmatpush1.bf16.msra.mxu1 %v14529_v60 }
0x3b71   :  { %12918 = vmatprep.subr.bf16.mxu1 %v14534_v61 }
0x3b74   :  { %12920 = vmatpush1.bf16.msra.mxu1 %v14549_v7 }
0x3b75   :  { %12922 = vmatprep.subr.bf16.mxu1 %v14554_v8 }
0x3b78   :  { %12924 = vmatpush1.bf16.msra.mxu1 %v14569_v20 }
0x3b79   :  { %12926 = vmatprep.subr.bf16.mxu1 %v14574_v23 }
0x3b7c   :  { %12928 = vmatpush1.bf16.msra.mxu1 %v14584_v32 }
0x3b7d   :  { %12930 = vmatprep.subr.bf16.mxu1 %v18625_v59 }
0x3b80   :  { %12932 = vmatpush1.bf16.msra.mxu1 %v18626_v53 }
0x3b81   :  { %12934 = vmatprep.subr.bf16.mxu1 %v18627_v6 }
0x3b84   :  { %12936 = vmatpush1.bf16.msra.mxu1 %v18628_v12 }
0x3b85   :  { %12938 = vmatprep.subr.bf16.mxu1 %v18629_v63 }
0x3b88   :  { %12940 = vmatpush1.bf16.msra.mxu1 %v18630_v14 }
0x3b89   :  { %12942 = vmatprep.subr.bf16.mxu1 %v18631_v45 }
0x3b8c   :  { %12944 = vmatpush1.bf16.msra.mxu1 %v18632_v34 }
0x3b8d   :  { %12946 = vmatprep.subr.bf16.mxu1 %v18633_v0 }
0x3b90   :  { %12948 = vmatpush1.bf16.msra.mxu1 %v18634_v40 }
0x3c26   :  { %v9144_v39 = vpop.f32.mrb[56].mxu1 }
0x3c27   :  { %v9149_v48 = vadd.f32 %v9144_v39, %v9076_v31  ;;  %v9146_v29 = vpop.f32.mrb[57].mxu1 }
0x3c28   :  { %v9150_v13 = vadd.f32 %v9146_v29, %v9077_v26 }
0x3c29   :  { %v18032_v17 = vadd.f32 %v9149_v48, %v14730_v18  ;;  %v18896_v48 = vld [vmem:[#allocation22_spill] sm:$0xff] }
0x3c2a   :  { %v18029_v4 = vadd.f32 %v9150_v13, %v14730_v18 }
0x3c2c   :  { %9217 = vmatprep.mubr.f32.mxu1 %v18029_v4  ;;  %9224 = vmatprep.subr.mxu0 %v18029_v4 }
0x3c2d   :  { %9218 = vmatmul.mubr.f32.vlgmr.msra.gmra.mrb[58].mxu1 %v18032_v17  ;;  %9225 = vmatpush1.msra.mxu0 %v18032_v17 }
0x3c2e   :  { %10298 = vmatmul.mubr.msk.f32.vlgmr.msra.gmra.mrb[70].mxu0 %vm239_vm0, %v18041_v3  ;;  %9567 = vmatprep.mubr.f32.mxu1 %v18615_v37 }
0x3c2f   :  { %9294 = vmatprep.mubr.f32.mxu0 %v18615_v37 }
0x3c32   :  { %10299 = vmatmul.mubr.msk.f32.gmra.mrb[72].mxu0 %vm239_vm0, %v18050_v41 }
0x3c33   :  { %9300 = vmatprep.mubr.f32.mxu0 %v18615_v37 }
0x3c36   :  { %10300 = vmatmul.mubr.msk.f32.gmra.mrb[74].mxu0 %vm239_vm0, %v18058_v11 }
0x3c37   :  { %9306 = vmatprep.mubr.f32.mxu0 %v18615_v37 }
0x3c3a   :  { %10301 = vmatmul.mubr.msk.f32.gmra.mrb[76].mxu0 %vm239_vm0, %v17931_v46 }
0x3c3b   :  { %9312 = vmatprep.mubr.f32.mxu0 %v18615_v37 }
0x3c3e   :  { %10302 = vmatmul.mubr.msk.f32.gmra.mrb[78].mxu0 %vm239_vm0, %v17939_v30 }
0x3c3f   :  { %9318 = vmatprep.mubr.f32.mxu0 %v18615_v37 }
0x3c42   :  { %10303 = vmatmul.mubr.msk.f32.gmra.mrb[80].mxu0 %vm239_vm0, %v17947_v36 }
0x3c43   :  { %9324 = vmatprep.mubr.f32.mxu0 %v18615_v37 }
0x3c46   :  { %10304 = vmatmul.mubr.msk.f32.gmra.mrb[82].mxu0 %vm239_vm0, %v18892_v54  ;;  %v18897_v54 = vld [vmem:[#allocation24_spill] sm:$0xff] }
0x3c47   :  { %9330 = vmatprep.mubr.f32.mxu0 %v18615_v37 }
0x3c4a   :  { %10305 = vmatmul.mubr.msk.f32.gmra.mrb[84].mxu0 %vm239_vm0, %v18893_v25 }
0x3c4b   :  { %9421 = vmatprep.mubr.f32.mxu0 %v18615_v37 }
0x3d00   :  { %v18078_v51 = vpop.f32.mrb[58].mxu1 }
0x3d01   :  { %v18080_v56 = vpop.f32.mrb[59].mxu1  ;;  %v9290_v57 = vpop.f32.mrb[70].mxu0 }
0x3d02   :  { %v9291_v24 = vadd.f32 %v9290_v57, %v18894_v19  ;;  %v9292_v50 = vpop.f32.mrb[71].mxu0 }
0x3d03   :  { %v9293_v62 = vadd.f32 %v9292_v50, %v18894_v19 }
0x3d04   :  { %14159 = vtanh.f32 %v9291_v24 }
0x3d05   :  { %v9296_v38 = vpop.f32.mrb[72].mxu0  ;;  %14161 = vtanh.f32 %v9293_v62 }
0x3d06   :  { %v9297_v2 = vadd.f32 %v9296_v38, %v18895_v55  ;;  %v9298_v31 = vpop.f32.mrb[73].mxu0 }
0x3d07   :  { %v9299_v39 = vadd.f32 %v9298_v31, %v18895_v55 }
0x3d08   :  { %14163 = vtanh.f32 %v9297_v2 }
0x3d09   :  { %14165 = vtanh.f32 %v9299_v39  ;;  %v9302_v26 = vpop.f32.mrb[74].mxu0 }
0x3d0a   :  { %v9303_v29 = vadd.f32 %v9302_v26, %v18896_v48  ;;  %v9304_v13 = vpop.f32.mrb[75].mxu0 }
0x3d0b   :  { %v9305_v25 = vadd.f32 %v9304_v13, %v18896_v48 }
0x3d0c   :  { %14167 = vtanh.f32 %v9303_v29 }
0x3d0d   :  { %v9308_v57 = vpop.f32.mrb[76].mxu0  ;;  %14169 = vtanh.f32 %v9305_v25 }
0x3d0e   :  { %v9309_v50 = vadd.f32 %v9308_v57, %v18897_v54  ;;  %v9310_v19 = vpop.f32.mrb[77].mxu0  ;;  %v14160_v38 = vpop.eup %14159  ;;  %v18898_v57 = vld [vmem:[#allocation26_spill] sm:$0xff] }
0x3d0f   :  { %v9311_v24 = vadd.f32 %v9310_v19, %v18897_v54  ;;  %v14162_v62 = vpop.eup %14161 }
0x3d10   :  { %14171 = vtanh.f32 %v9309_v50 }
0x3d11   :  { %14173 = vtanh.f32 %v9311_v24  ;;  %v9314_v2 = vpop.f32.mrb[78].mxu0 }
0x3d12   :  { %v14164_v31 = vpop.eup %14163  ;;  %v9315_v39 = vadd.f32 %v9314_v2, %v18621_v58  ;;  %v9316_v26 = vpop.f32.mrb[79].mxu0 }
0x3d13   :  { %v14166_v55 = vpop.eup %14165  ;;  %v9317_v13 = vadd.f32 %v9316_v26, %v18621_v58  ;;  %v12951_v48 = vpack.c.bf16 %v14164_v31, %v14160_v38 }
0x3d14   :  { %v12949_v29 = vpack.c.bf16 %v14166_v55, %v14162_v62  ;;  %14175 = vtanh.f32 %v9315_v39 }
0x3d15   :  { %v9320_v36 = vpop.f32.mrb[80].mxu0  ;;  %14177 = vtanh.f32 %v9317_v13 }
0x3d16   :  { %v9321_v25 = vadd.f32 %v9320_v36, %v18898_v57  ;;  %v9322_v30 = vpop.f32.mrb[81].mxu0  ;;  %12950 = vmatprep.subr.bf16.mxu0 %v12949_v29  ;;  %v14168_v50 = vpop.eup %14167 }
0x3d17   :  { %v9323_v19 = vadd.f32 %v9322_v30, %v18898_v57  ;;  %12952 = vmatpush1.bf16.msra.mxu0 %v12951_v48  ;;  %v14170_v24 = vpop.eup %14169 }
0x3d18   :  { %14179 = vtanh.f32 %v9321_v25 }
0x3d19   :  { %14181 = vtanh.f32 %v9323_v19  ;;  %v9326_v2 = vpop.f32.mrb[82].mxu0 }
0x3d1a   :  { %v14172_v54 = vpop.eup %14171  ;;  %v9327_v26 = vadd.f32 %v9326_v2, %v18623_v47  ;;  %v9328_v38 = vpop.f32.mrb[83].mxu0 }
0x3d1b   :  { %v14174_v55 = vpop.eup %14173  ;;  %v9329_v62 = vadd.f32 %v9328_v38, %v18623_v47  ;;  %v12955_v31 = vpack.c.bf16 %v14172_v54, %v14168_v50 }
0x3d1c   :  { %v12953_v36 = vpack.c.bf16 %v14174_v55, %v14170_v24  ;;  %14183 = vtanh.f32 %v9327_v26 }
0x3d1d   :  { %v9332_v39 = vpop.f32.mrb[84].mxu0  ;;  %14185 = vtanh.f32 %v9329_v62  ;;  %v18102_v62 = vld [vmem:[%s18322_s5] sm:$0xff]  ;;  %s14380_s5 = smov [#allocation5]  }
0x3d1e   :  { %v9333_v13 = vadd.f32 %v9332_v39, %v18624_v44  ;;  %v9334_v30 = vpop.f32.mrb[85].mxu0  ;;  %12954 = vmatprep.subr.bf16.mxu0 %v12953_v36  ;;  %v14176_v29 = vpop.eup %14175  ;;  %s9998_s0 = sshll.u32 %s14380_s5, 4  ;;  %s9999_s0 = int_to_ptr.vmem [resolvable:$true] %s9998_s0 }
0x3d1f   :  { %v9335_v48 = vadd.f32 %v9334_v30, %v18624_v44  ;;  %12956 = vmatpush1.bf16.msra.mxu0 %v12955_v31  ;;  %v14178_v25 = vpop.eup %14177  ;;  %v9354_v31 = vmul.f32 %v18080_v56, %v14722_v1  ;;  %v18902_v56 = vld [vmem:[#allocation12_spill] sm:$0xff]  ;;  %s14349_s4 = scalar_lea.vmem %s9999_s0, 2048  ;;  %p14354_p9 = scmp.lt.s32.totalorder %s9999_s0, %s9999_s0 }
0x3d20   :  { %14187 = vtanh.f32 %v9333_v13  ;;  %p14350_p8 = scmp.ne.s32.totalorder %s9999_s0, %s14349_s4  ;;  %p14355_p10 = scmp.lt.s32.totalorder %s14349_s4, %s14349_s4 }
0x3d21   :  { %14189 = vtanh.f32 %v9335_v48  ;;  %v9356_v30 = vadd.f32 %v9354_v31, %v18029_v4  ;;  %v18899_v4 = vld [vmem:[#allocation27_spill] sm:$0xff] }
0x3d22   :  { %v14180_v19 = vpop.eup %14179  ;;  %v18904_v31 = vld [vmem:[#allocation23_spill] sm:$0xff]  ;;  %p14356_p11 = por %p14355_p10, %p14354_p9 }
0x3d23   :  { %v14182_v2 = vpop.eup %14181  ;;  %v12959_v57 = vpack.c.bf16 %v14180_v19, %v14176_v29 }
0x3d24   :  { %v12957_v38 = vpack.c.bf16 %v14182_v2, %v14178_v25  ;;  %p14357_p12 = pnand %p14356_p11, %p14350_p8 }
0x3d26   :  { %12958 = vmatprep.subr.bf16.mxu0 %v12957_v38  ;;  %v14184_v54 = vpop.eup %14183 }
0x3d27   :  { %12960 = vmatpush1.bf16.msra.mxu0 %v12959_v57  ;;  %v14186_v50 = vpop.eup %14185  ;;  %v9353_v57 = vmul.f32 %v18078_v51, %v14722_v1  ;;  %v18901_v51 = vld [vmem:[#allocation11_spill] sm:$0xff] }
0x3d29   :  { %v9355_v39 = vadd.f32 %v9353_v57, %v18032_v17  ;;  %v18900_v17 = vld [vmem:[#allocation28_spill] sm:$0xff] }
0x3d2a   :  { %v14188_v24 = vpop.eup %14187 }
0x3d2b   :  { %v14190_v26 = vpop.eup %14189  ;;  %v12963_v55 = vpack.c.bf16 %v14188_v24, %v14184_v54  ;;  %v18903_v24 = vld [vmem:[#allocation21_spill] sm:$0xff] }
0x3d2c   :  { %v12961_v36 = vpack.c.bf16 %v14190_v26, %v14186_v50 }
0x3d2e   :  { %12962 = vmatprep.subr.bf16.mxu0 %v12961_v36 }
0x3d2f   :  { %12964 = vmatpush1.bf16.msra.mxu0 %v12963_v55 }
0x3d30   :  { %12966 = vmatprep.subr.bf16.mxu0 %v14437_v5 }
0x3d32   :  { %10306 = vmatmul.mubr.msk.f32.vlgmr.msra.gmra.mrb[86].mxu0 %vm402_vm1, %v18102_v62 }
0x3d33   :  { %12968 = vmatpush1.bf16.msra.mxu0 %v14439_v9 }
0x3d34   :  { %12970 = vmatprep.subr.bf16.mxu0 %v14441_v10 }
0x3d37   :  { %12972 = vmatpush1.bf16.msra.mxu0 %v14445_v15 }
0x3d38   :  { %12974 = vmatprep.subr.bf16.mxu0 %v14448_v16 }
0x3d3b   :  { %12976 = vmatpush1.bf16.msra.mxu0 %v14451_v21 }
0x3d3c   :  { %12978 = vmatprep.subr.bf16.mxu0 %v14454_v22 }
0x3d3f   :  { %12980 = vmatpush1.bf16.msra.mxu0 %v14457_v27 }
0x3d40   :  { %12982 = vmatprep.subr.bf16.mxu0 %v14460_v28 }
0x3d43   :  { %12984 = vmatpush1.bf16.msra.mxu0 %v14463_v33 }
0x3d44   :  { %12986 = vmatprep.subr.bf16.mxu0 %v14466_v35 }
0x3d47   :  { %12988 = vmatpush1.bf16.msra.mxu0 %v14489_v42 }
0x3d48   :  { %12990 = vmatprep.subr.bf16.mxu0 %v14494_v43 }
0x3d4b   :  { %12992 = vmatpush1.bf16.msra.mxu0 %v14503_v49 }
0x3d4c   :  { %12994 = vmatprep.subr.bf16.mxu0 %v14511_v52 }
0x3d4f   :  { %12996 = vmatpush1.bf16.msra.mxu0 %v14529_v60 }
0x3d50   :  { %12998 = vmatprep.subr.bf16.mxu0 %v14534_v61 }
0x3d53   :  { %13000 = vmatpush1.bf16.msra.mxu0 %v14549_v7 }
0x3d54   :  { %13002 = vmatprep.subr.bf16.mxu0 %v14554_v8 }
0x3d57   :  { %13004 = vmatpush1.bf16.msra.mxu0 %v14569_v20 }
0x3d58   :  { %13006 = vmatprep.subr.bf16.mxu0 %v14574_v23 }
0x3d5b   :  { %13008 = vmatpush1.bf16.msra.mxu0 %v14584_v32 }
0x3d5c   :  { %13010 = vmatprep.subr.bf16.mxu0 %v18625_v59 }
0x3d5f   :  { %13012 = vmatpush1.bf16.msra.mxu0 %v18626_v53 }
0x3d60   :  { %13014 = vmatprep.subr.bf16.mxu0 %v18627_v6 }
0x3d63   :  { %13016 = vmatpush1.bf16.msra.mxu0 %v18628_v12 }
0x3d64   :  { %13018 = vmatprep.subr.bf16.mxu0 %v18629_v63 }
0x3d67   :  { %13020 = vmatpush1.bf16.msra.mxu0 %v18630_v14 }
0x3d68   :  { %13022 = vmatprep.subr.bf16.mxu0 %v18631_v45 }
0x3d6b   :  { %13024 = vmatpush1.bf16.msra.mxu0 %v18632_v34 }
0x3d6c   :  { %13026 = vmatprep.subr.bf16.mxu0 %v18633_v0 }
0x3d6f   :  { %13028 = vmatpush1.bf16.msra.mxu0 %v18634_v40 }
0x3e05   :  { %v9423_v13 = vpop.f32.mrb[86].mxu0 }
0x3e06   :  { %v9428_v48 = vadd.f32 %v9423_v13, %v9355_v39  ;;  %v9425_v29 = vpop.f32.mrb[87].mxu0 }
0x3e07   :  { %v9429_v25 = vadd.f32 %v9425_v29, %v9356_v30  ;;  %v18905_v29 = vld [vmem:[#allocation22_spill] sm:$0xff] }
0x3e08   :  { %v18147_v2 = vadd.f32 %v9428_v48, %v14730_v18 }
0x3e09   :  { %v18144_v19 = vadd.f32 %v9429_v25, %v14730_v18 }
0x3e0b   :  { %9496 = vmatprep.mubr.f32.mxu0 %v18144_v19  ;;  %9503 = vmatprep.subr.mxu1 %v18144_v19 }
0x3e0c   :  { %9497 = vmatmul.mubr.f32.vlgmr.msra.gmra.mrb[88].mxu0 %v18147_v2  ;;  %9504 = vmatpush1.msra.mxu1 %v18147_v2 }
0x3e0d   :  { %10307 = vmatmul.mubr.msk.f32.vlgmr.msra.gmra.mrb[60].mxu1 %vm239_vm0, %v18041_v3  ;;  %9846 = vmatprep.mubr.f32.mxu0 %v18615_v37 }
0x3e0e   :  { %9573 = vmatprep.mubr.f32.mxu1 %v18615_v37 }
0x3e11   :  { %10308 = vmatmul.mubr.msk.f32.gmra.mrb[62].mxu1 %vm239_vm0, %v18050_v41 }
0x3e12   :  { %9579 = vmatprep.mubr.f32.mxu1 %v18615_v37 }
0x3e15   :  { %10309 = vmatmul.mubr.msk.f32.gmra.mrb[64].mxu1 %vm239_vm0, %v18058_v11 }
0x3e16   :  { %9585 = vmatprep.mubr.f32.mxu1 %v18615_v37 }
0x3e19   :  { %10310 = vmatmul.mubr.msk.f32.gmra.mrb[66].mxu1 %vm239_vm0, %v17931_v46 }
0x3e1a   :  { %9591 = vmatprep.mubr.f32.mxu1 %v18615_v37 }
0x3e1d   :  { %10311 = vmatmul.mubr.msk.f32.gmra.mrb[68].mxu1 %vm239_vm0, %v18899_v4 }
0x3e1e   :  { %9597 = vmatprep.mubr.f32.mxu1 %v18615_v37 }
0x3e21   :  { %10312 = vmatmul.mubr.msk.f32.gmra.mrb[70].mxu1 %vm239_vm0, %v18900_v17  ;;  %v18906_v17 = vld [vmem:[#allocation24_spill] sm:$0xff] }
0x3e22   :  { %9603 = vmatprep.mubr.f32.mxu1 %v18615_v37 }
0x3e25   :  { %10313 = vmatmul.mubr.msk.f32.gmra.mrb[72].mxu1 %vm239_vm0, %v18901_v51 }
0x3e26   :  { %9609 = vmatprep.mubr.f32.mxu1 %v18615_v37 }
0x3e29   :  { %10314 = vmatmul.mubr.msk.f32.gmra.mrb[74].mxu1 %vm239_vm0, %v18902_v56 }
0x3e2a   :  { %9700 = vmatprep.mubr.f32.mxu1 %v18615_v37 }
0x3edf   :  { %v18178_v38 = vpop.f32.mrb[88].mxu0 }
0x3ee0   :  { %v18180_v54 = vpop.f32.mrb[89].mxu0  ;;  %v9569_v50 = vpop.f32.mrb[60].mxu1 }
0x3ee1   :  { %v9570_v26 = vadd.f32 %v9569_v50, %v18903_v24  ;;  %v9571_v55 = vpop.f32.mrb[61].mxu1 }
0x3ee2   :  { %v9572_v36 = vadd.f32 %v9571_v55, %v18903_v24 }
0x3ee3   :  { %14191 = vtanh.f32 %v9570_v26 }
0x3ee4   :  { %v9575_v57 = vpop.f32.mrb[62].mxu1  ;;  %14193 = vtanh.f32 %v9572_v36 }
0x3ee5   :  { %v9576_v39 = vadd.f32 %v9575_v57, %v18904_v31  ;;  %v9577_v13 = vpop.f32.mrb[63].mxu1 }
0x3ee6   :  { %v9578_v30 = vadd.f32 %v9577_v13, %v18904_v31 }
0x3ee7   :  { %14195 = vtanh.f32 %v9576_v39 }
0x3ee8   :  { %14197 = vtanh.f32 %v9578_v30  ;;  %v9581_v48 = vpop.f32.mrb[64].mxu1 }
0x3ee9   :  { %v9582_v25 = vadd.f32 %v9581_v48, %v18905_v29  ;;  %v9583_v56 = vpop.f32.mrb[65].mxu1 }
0x3eea   :  { %v9584_v51 = vadd.f32 %v9583_v56, %v18905_v29 }
0x3eeb   :  { %14199 = vtanh.f32 %v9582_v25 }
0x3eec   :  { %v9587_v50 = vpop.f32.mrb[66].mxu1  ;;  %14201 = vtanh.f32 %v9584_v51 }
0x3eed   :  { %v9588_v55 = vadd.f32 %v9587_v50, %v18906_v17  ;;  %v9589_v24 = vpop.f32.mrb[67].mxu1  ;;  %v14192_v57 = vpop.eup %14191  ;;  %v18907_v50 = vld [vmem:[#allocation26_spill] sm:$0xff] }
0x3eee   :  { %v9590_v26 = vadd.f32 %v9589_v24, %v18906_v17  ;;  %v14194_v36 = vpop.eup %14193 }
0x3eef   :  { %14203 = vtanh.f32 %v9588_v55 }
0x3ef0   :  { %14205 = vtanh.f32 %v9590_v26  ;;  %v9593_v39 = vpop.f32.mrb[68].mxu1 }
0x3ef1   :  { %v14196_v13 = vpop.eup %14195  ;;  %v9594_v30 = vadd.f32 %v9593_v39, %v18621_v58  ;;  %v9595_v48 = vpop.f32.mrb[69].mxu1 }
0x3ef2   :  { %v14198_v31 = vpop.eup %14197  ;;  %v9596_v56 = vadd.f32 %v9595_v48, %v18621_v58  ;;  %v13031_v29 = vpack.c.bf16 %v14196_v13, %v14192_v57 }
0x3ef3   :  { %v13029_v25 = vpack.c.bf16 %v14198_v31, %v14194_v36  ;;  %14207 = vtanh.f32 %v9594_v30 }
0x3ef4   :  { %v9599_v4 = vpop.f32.mrb[70].mxu1  ;;  %14209 = vtanh.f32 %v9596_v56 }
0x3ef5   :  { %v9600_v51 = vadd.f32 %v9599_v4, %v18907_v50  ;;  %v9601_v46 = vpop.f32.mrb[71].mxu1  ;;  %13030 = vmatprep.subr.bf16.mxu1 %v13029_v25  ;;  %v14200_v55 = vpop.eup %14199 }
0x3ef6   :  { %v9602_v24 = vadd.f32 %v9601_v46, %v18907_v50  ;;  %13032 = vmatpush1.bf16.msra.mxu1 %v13031_v29  ;;  %v14202_v26 = vpop.eup %14201 }
0x3ef7   :  { %14211 = vtanh.f32 %v9600_v51 }
0x3ef8   :  { %14213 = vtanh.f32 %v9602_v24  ;;  %v9605_v39 = vpop.f32.mrb[72].mxu1 }
0x3ef9   :  { %v14204_v17 = vpop.eup %14203  ;;  %v9606_v48 = vadd.f32 %v9605_v39, %v18623_v47  ;;  %v9607_v57 = vpop.f32.mrb[73].mxu1 }
0x3efa   :  { %v14206_v31 = vpop.eup %14205  ;;  %v9608_v36 = vadd.f32 %v9607_v57, %v18623_v47  ;;  %v13035_v13 = vpack.c.bf16 %v14204_v17, %v14200_v55 }
0x3efb   :  { %v13033_v4 = vpack.c.bf16 %v14206_v31, %v14202_v26  ;;  %14215 = vtanh.f32 %v9606_v48 }
0x3efc   :  { %v9611_v30 = vpop.f32.mrb[74].mxu1  ;;  %14217 = vtanh.f32 %v9608_v36 }
0x3efd   :  { %v9612_v56 = vadd.f32 %v9611_v30, %v18624_v44  ;;  %v9613_v46 = vpop.f32.mrb[75].mxu1  ;;  %13034 = vmatprep.subr.bf16.mxu1 %v13033_v4  ;;  %v14208_v25 = vpop.eup %14207 }
0x3efe   :  { %v9614_v29 = vadd.f32 %v9613_v46, %v18624_v44  ;;  %13036 = vmatpush1.bf16.msra.mxu1 %v13035_v13  ;;  %v14210_v51 = vpop.eup %14209 }
0x3eff   :  { %14219 = vtanh.f32 %v9612_v56 }
0x3f00   :  { %14221 = vtanh.f32 %v9614_v29 }
0x3f01   :  { %v14212_v24 = vpop.eup %14211 }
0x3f02   :  { %v14214_v39 = vpop.eup %14213  ;;  %v13039_v50 = vpack.c.bf16 %v14212_v24, %v14208_v25 }
0x3f03   :  { %v13037_v57 = vpack.c.bf16 %v14214_v39, %v14210_v51  ;;  %v18917_v51 = vld [vmem:[#allocation26_spill] sm:$0xff] }
0x3f05   :  { %13038 = vmatprep.subr.bf16.mxu1 %v13037_v57  ;;  %v14216_v17 = vpop.eup %14215 }
0x3f06   :  { %13040 = vmatpush1.bf16.msra.mxu1 %v13039_v50  ;;  %v14218_v55 = vpop.eup %14217 }
0x3f09   :  { %v14220_v26 = vpop.eup %14219 }
0x3f0a   :  { %v14222_v48 = vpop.eup %14221  ;;  %v13043_v31 = vpack.c.bf16 %v14220_v26, %v14216_v17 }
0x3f0b   :  { %v13041_v4 = vpack.c.bf16 %v14222_v48, %v14218_v55 }
0x3f0d   :  { %13042 = vmatprep.subr.bf16.mxu1 %v13041_v4 }
0x3f0e   :  { %13044 = vmatpush1.bf16.msra.mxu1 %v13043_v31 }
0x3f0f   :  { %13046 = vmatprep.subr.bf16.mxu1 %v14437_v5  ;;  %v9632_v5 = vmul.f32 %v18178_v38, %v14722_v1 }
0x3f11   :  { %10315 = vmatmul.mubr.msk.f32.vlgmr.msra.gmra.mrb[76].mxu1 %vm402_vm1, %v18102_v62 }
0x3f12   :  { %13048 = vmatpush1.bf16.msra.mxu1 %v14439_v9  ;;  %v9633_v9 = vmul.f32 %v18180_v54, %v14722_v1 }
0x3f13   :  { %13050 = vmatprep.subr.bf16.mxu1 %v14441_v10  ;;  %v9634_v10 = vadd.f32 %v9632_v5, %v18147_v2 }
0x3f16   :  { %13052 = vmatpush1.bf16.msra.mxu1 %v14445_v15 }
0x3f17   :  { %13054 = vmatprep.subr.bf16.mxu1 %v14448_v16  ;;  %v9635_v16 = vadd.f32 %v9633_v9, %v18144_v19 }
0x3f1a   :  { %13056 = vmatpush1.bf16.msra.mxu1 %v14451_v21 }
0x3f1b   :  { %13058 = vmatprep.subr.bf16.mxu1 %v14454_v22 }
0x3f1e   :  { %13060 = vmatpush1.bf16.msra.mxu1 %v14457_v27 }
0x3f1f   :  { %13062 = vmatprep.subr.bf16.mxu1 %v14460_v28 }
0x3f22   :  { %13064 = vmatpush1.bf16.msra.mxu1 %v14463_v33 }
0x3f23   :  { %13066 = vmatprep.subr.bf16.mxu1 %v14466_v35  ;;  %v18908_v35 = vld [vmem:[#allocation25_spill] sm:$0xff] }
0x3f26   :  { %13068 = vmatpush1.bf16.msra.mxu1 %v14489_v42  ;;  %v18909_v42 = vld [vmem:[#allocation27_spill] sm:$0xff] }
0x3f27   :  { %13070 = vmatprep.subr.bf16.mxu1 %v14494_v43  ;;  %v18910_v43 = vld [vmem:[#allocation28_spill] sm:$0xff] }
0x3f2a   :  { %13072 = vmatpush1.bf16.msra.mxu1 %v14503_v49  ;;  %v18911_v49 = vld [vmem:[#allocation11_spill] sm:$0xff] }
0x3f2b   :  { %13074 = vmatprep.subr.bf16.mxu1 %v14511_v52  ;;  %v18912_v52 = vld [vmem:[#allocation12_spill] sm:$0xff] }
0x3f2e   :  { %13076 = vmatpush1.bf16.msra.mxu1 %v14529_v60 }
0x3f2f   :  { %13078 = vmatprep.subr.bf16.mxu1 %v14534_v61 }
0x3f32   :  { %13080 = vmatpush1.bf16.msra.mxu1 %v14549_v7 }
0x3f33   :  { %13082 = vmatprep.subr.bf16.mxu1 %v14554_v8  ;;  %v18913_v8 = vld [vmem:[#allocation21_spill] sm:$0xff] }
0x3f36   :  { %13084 = vmatpush1.bf16.msra.mxu1 %v14569_v20 }
0x3f37   :  { %13086 = vmatprep.subr.bf16.mxu1 %v14574_v23 }
0x3f3a   :  { %13088 = vmatpush1.bf16.msra.mxu1 %v14584_v32 }
0x3f3b   :  { %13090 = vmatprep.subr.bf16.mxu1 %v18625_v59 }
0x3f3e   :  { %13092 = vmatpush1.bf16.msra.mxu1 %v18626_v53  ;;  %v18914_v53 = vld [vmem:[#allocation23_spill] sm:$0xff] }
0x3f3f   :  { %13094 = vmatprep.subr.bf16.mxu1 %v18627_v6 }
0x3f42   :  { %13096 = vmatpush1.bf16.msra.mxu1 %v18628_v12 }
0x3f43   :  { %13098 = vmatprep.subr.bf16.mxu1 %v18629_v63 }
0x3f46   :  { %13100 = vmatpush1.bf16.msra.mxu1 %v18630_v14  ;;  %v18915_v14 = vld [vmem:[#allocation22_spill] sm:$0xff] }
0x3f47   :  { %13102 = vmatprep.subr.bf16.mxu1 %v18631_v45 }
0x3f4a   :  { %13104 = vmatpush1.bf16.msra.mxu1 %v18632_v34 }
0x3f4b   :  { %13106 = vmatprep.subr.bf16.mxu1 %v18633_v0 }
0x3f4e   :  { %13108 = vmatpush1.bf16.msra.mxu1 %v18634_v40 }
0x3fe4   :  { %v9702_v15 = vpop.f32.mrb[76].mxu1 }
0x3fe5   :  { %v9707_v21 = vadd.f32 %v9702_v15, %v9634_v10  ;;  %v9704_v22 = vpop.f32.mrb[77].mxu1 }
0x3fe6   :  { %v9708_v27 = vadd.f32 %v9704_v22, %v9635_v16 }
0x3fe7   :  { %v18242_v33 = vadd.f32 %v9707_v21, %v14730_v18 }
0x3fe8   :  { %v18239_v28 = vadd.f32 %v9708_v27, %v14730_v18 }
0x3fea   :  { %9775 = vmatprep.mubr.f32.mxu1 %v18239_v28  ;;  %9782 = vmatprep.subr.mxu0 %v18239_v28 }
0x3feb   :  { %9776 = vmatmul.mubr.f32.vlgmr.msra.gmra.mrb[78].mxu1 %v18242_v33  ;;  %9783 = vmatpush1.msra.mxu0 %v18242_v33 }
0x3fec   :  { %10316 = vmatmul.mubr.msk.f32.vlgmr.msra.gmra.mrb[90].mxu0 %vm239_vm0, %v18041_v3  ;;  %v18916_v3 = vld [vmem:[#allocation24_spill] sm:$0xff] }
0x3fed   :  { %9852 = vmatprep.mubr.f32.mxu0 %v18615_v37 }
0x3ff0   :  { %10317 = vmatmul.mubr.msk.f32.gmra.mrb[92].mxu0 %vm239_vm0, %v18050_v41 }
0x3ff1   :  { %9858 = vmatprep.mubr.f32.mxu0 %v18615_v37 }
0x3ff4   :  { %10318 = vmatmul.mubr.msk.f32.gmra.mrb[94].mxu0 %vm239_vm0, %v18058_v11 }
0x3ff5   :  { %9864 = vmatprep.mubr.f32.mxu0 %v18615_v37 }
0x3ff8   :  { %10319 = vmatmul.mubr.msk.f32.gmra.mrb[96].mxu0 %vm239_vm0, %v18908_v35 }
0x3ff9   :  { %9870 = vmatprep.mubr.f32.mxu0 %v18615_v37 }
0x3ffc   :  { %10320 = vmatmul.mubr.msk.f32.gmra.mrb[98].mxu0 %vm239_vm0, %v18909_v42 }
0x3ffd   :  { %9876 = vmatprep.mubr.f32.mxu0 %v18615_v37 }
0x4000   :  { %10321 = vmatmul.mubr.msk.f32.gmra.mrb[100].mxu0 %vm239_vm0, %v18910_v43 }
0x4001   :  { %9882 = vmatprep.mubr.f32.mxu0 %v18615_v37 }
0x4004   :  { %10322 = vmatmul.mubr.msk.f32.gmra.mrb[102].mxu0 %vm239_vm0, %v18911_v49 }
0x4005   :  { %9888 = vmatprep.mubr.f32.mxu0 %v18615_v37 }
0x4008   :  { %10323 = vmatmul.mubr.msk.f32.gmra.mrb[104].mxu0 %vm239_vm0, %v18912_v52 }
0x4009   :  { %9979 = vmatprep.mubr.f32.mxu0 %v18615_v37 }
0x40be   :  { %v18272_v60 = vpop.f32.mrb[78].mxu1 }
0x40bf   :  { %v18274_v61 = vpop.f32.mrb[79].mxu1  ;;  %v9848_v7 = vpop.f32.mrb[90].mxu0 }
0x40c0   :  { %v9849_v20 = vadd.f32 %v9848_v7, %v18913_v8  ;;  %v9850_v23 = vpop.f32.mrb[91].mxu0 }
0x40c1   :  { %v9851_v32 = vadd.f32 %v9850_v23, %v18913_v8 }
0x40c2   :  { %14223 = vtanh.f32 %v9849_v20 }
0x40c3   :  { %v9854_v59 = vpop.f32.mrb[92].mxu0  ;;  %14225 = vtanh.f32 %v9851_v32 }
0x40c4   :  { %v9855_v6 = vadd.f32 %v9854_v59, %v18914_v53  ;;  %v9856_v12 = vpop.f32.mrb[93].mxu0  ;;  %v9912_v59 = vmul.f32 %v18274_v61, %v14722_v1 }
0x40c5   :  { %v9857_v63 = vadd.f32 %v9856_v12, %v18914_v53 }
0x40c6   :  { %14227 = vtanh.f32 %v9855_v6  ;;  %v9914_v12 = vadd.f32 %v9912_v59, %v18239_v28 }
0x40c7   :  { %14229 = vtanh.f32 %v9857_v63  ;;  %v9860_v37 = vpop.f32.mrb[94].mxu0 }
0x40c8   :  { %v9861_v45 = vadd.f32 %v9860_v37, %v18915_v14  ;;  %v9862_v34 = vpop.f32.mrb[95].mxu0 }
0x40c9   :  { %v9863_v0 = vadd.f32 %v9862_v34, %v18915_v14 }
0x40ca   :  { %14231 = vtanh.f32 %v9861_v45 }
0x40cb   :  { %v9866_v40 = vpop.f32.mrb[96].mxu0  ;;  %14233 = vtanh.f32 %v9863_v0 }
0x40cc   :  { %v9867_v41 = vadd.f32 %v9866_v40, %v18916_v3  ;;  %v9868_v11 = vpop.f32.mrb[97].mxu0  ;;  %v14224_v2 = vpop.eup %14223 }
0x40cd   :  { %v9869_v19 = vadd.f32 %v9868_v11, %v18916_v3  ;;  %v14226_v38 = vpop.eup %14225 }
0x40ce   :  { %14235 = vtanh.f32 %v9867_v41 }
0x40cf   :  { %14237 = vtanh.f32 %v9869_v19  ;;  %v9872_v54 = vpop.f32.mrb[98].mxu0 }
0x40d0   :  { %v14228_v50 = vpop.eup %14227  ;;  %v9873_v36 = vadd.f32 %v9872_v54, %v18621_v58  ;;  %v9874_v13 = vpop.f32.mrb[99].mxu0 }
0x40d1   :  { %v14230_v30 = vpop.eup %14229  ;;  %v9875_v56 = vadd.f32 %v9874_v13, %v18621_v58  ;;  %v13111_v46 = vpack.c.bf16 %v14228_v50, %v14224_v2 }
0x40d2   :  { %v13109_v29 = vpack.c.bf16 %v14230_v30, %v14226_v38  ;;  %14239 = vtanh.f32 %v9873_v36 }
0x40d3   :  { %v9878_v25 = vpop.f32.mrb[100].mxu0  ;;  %14241 = vtanh.f32 %v9875_v56 }
0x40d4   :  { %v9879_v24 = vadd.f32 %v9878_v25, %v18917_v51  ;;  %v9880_v39 = vpop.f32.mrb[101].mxu0  ;;  %13110 = vmatprep.subr.bf16.mxu0 %v13109_v29  ;;  %v14232_v17 = vpop.eup %14231 }
0x40d5   :  { %v9881_v57 = vadd.f32 %v9880_v39, %v18917_v51  ;;  %13112 = vmatpush1.bf16.msra.mxu0 %v13111_v46  ;;  %v14234_v55 = vpop.eup %14233 }
0x40d6   :  { %14243 = vtanh.f32 %v9879_v24 }
0x40d7   :  { %14245 = vtanh.f32 %v9881_v57  ;;  %v9884_v26 = vpop.f32.mrb[102].mxu0 }
0x40d8   :  { %v14236_v48 = vpop.eup %14235  ;;  %v9885_v58 = vadd.f32 %v9884_v26, %v18623_v47  ;;  %v9886_v31 = vpop.f32.mrb[103].mxu0 }
0x40d9   :  { %v14238_v4 = vpop.eup %14237  ;;  %v9887_v5 = vadd.f32 %v9886_v31, %v18623_v47  ;;  %v13115_v9 = vpack.c.bf16 %v14236_v48, %v14232_v17 }
0x40da   :  { %v13113_v10 = vpack.c.bf16 %v14238_v4, %v14234_v55  ;;  %14247 = vtanh.f32 %v9885_v58 }
0x40db   :  { %v9890_v15 = vpop.f32.mrb[104].mxu0  ;;  %14249 = vtanh.f32 %v9887_v5 }
0x40dc   :  { %v9891_v16 = vadd.f32 %v9890_v15, %v18624_v44  ;;  %v9892_v21 = vpop.f32.mrb[105].mxu0  ;;  %13114 = vmatprep.subr.bf16.mxu0 %v13113_v10  ;;  %v14240_v27 = vpop.eup %14239 }
0x40dd   :  { %v9893_v22 = vadd.f32 %v9892_v21, %v18624_v44  ;;  %13116 = vmatpush1.bf16.msra.mxu0 %v13115_v9  ;;  %v14242_v35 = vpop.eup %14241  ;;  %v9911_v44 = vmul.f32 %v18272_v60, %v14722_v1 }
0x40de   :  { %14251 = vtanh.f32 %v9891_v16 }
0x40df   :  { %14253 = vtanh.f32 %v9893_v22  ;;  %v9913_v53 = vadd.f32 %v9911_v44, %v18242_v33 }
0x40e0   :  { %v14244_v42 = vpop.eup %14243 }
0x40e1   :  { %v14246_v43 = vpop.eup %14245  ;;  %v13119_v49 = vpack.c.bf16 %v14244_v42, %v14240_v27 }
0x40e2   :  { %v13117_v47 = vpack.c.bf16 %v14246_v43, %v14242_v35 }
0x40e4   :  { %13118 = vmatprep.subr.bf16.mxu0 %v13117_v47  ;;  %v14248_v52 = vpop.eup %14247 }
0x40e5   :  { %13120 = vmatpush1.bf16.msra.mxu0 %v13119_v49  ;;  %v14250_v7 = vpop.eup %14249 }
0x40e8   :  { %v14252_v8 = vpop.eup %14251 }
0x40e9   :  { %v14254_v20 = vpop.eup %14253  ;;  %v13123_v23 = vpack.c.bf16 %v14252_v8, %v14248_v52 }
0x40ea   :  { %v13121_v32 = vpack.c.bf16 %v14254_v20, %v14250_v7 }
0x40ec   :  { %13122 = vmatprep.subr.bf16.mxu0 %v13121_v32 }
0x40ed   :  { %13124 = vmatpush1.bf16.msra.mxu0 %v13123_v23 }
0x40f0   :  { %10324 = vmatmul.mubr.msk.f32.vlgmr.msra.gmra.mrb[106].mxu0 %vm402_vm1, %v18102_v62 }
0x41c3   :  { %v9981_v6 = vpop.f32.mrb[106].mxu0 }
0x41c4   :  { %v9986_v63 = vadd.f32 %v9981_v6, %v9913_v53  ;;  %v9983_v37 = vpop.f32.mrb[107].mxu0 }
0x41c5   :  { %v9987_v14 = vadd.f32 %v9983_v37, %v9914_v12 }
0x41c6   :  { %v9988_v45 = vadd.f32 %v9986_v63, %v14730_v18 }
0x41c7   :  { %v9989_v62 = vadd.f32 %v9987_v14, %v14730_v18 }
0x41c8   :  { %9991 = vst [vmem:[#allocation5 + $0x70] sm:$0xff] %v9988_v45 }
0x41c9   :  { %9992 = vst [vmem:[#allocation5 + $0x78] sm:$0xff] %v9989_v62 }
0x41ca   :  { %14360 = shalt.err (!%p14357_p12)
}
0x41cb   :  { %s14361_s22 = scalar_lea.hbm %s18324_s7, 2048 }
0x41cc   :  { %p14362_p13 = scmp.ne.s32.totalorder %s18324_s7, %s14361_s22  ;;  %p14365_p0 = scmp.lt.u32.totalorder %s14361_s22, %s18324_s7 }
0x41ce   :  { %p14367_p1 = pnand %p14365_p0, %p14362_p13 }
0x41d0   :  { %14370 = shalt.err (!%p14367_p1)
}
0x41d1   :  { %10004 = dma.vmem_to_hbm [thread:$0]  %s9999_s0, 2048, %s18324_s7, [#allocation4], %s14376_s11, %s14376_s11, %s14377_s12  }
0x41d2   :  { %14373 = dma.done.wait [#allocation4], 2048  }
0x41d3   :  { %14374 = vsyncadd [#allocation4], 4294965248 }
0x41d4   :  { %10008 = vsyncpa [#allocation3], 1 }
0x41d5   :  { %10009 = vsyncpa [#allocation4], 1 }

</bundles_post_ra>
